<compile_context>
chip_gen: v5e
topology: v5e:2x2
jax: 0.10.0
libtpu: 0.0.40
codegen_flags: <defaults>
</compile_context>

<pallas_src>
import functools

import jax
import jax.numpy as jnp
import numpy as np
from jax.experimental import pallas as pl
from jax.experimental.pallas import tpu as pltpu


# ---------------------------------------------------------------------------
# Kernels
# ---------------------------------------------------------------------------
def _conv_s2_wfold_bn_relu_kernel(x_ref, w_ref, bias_ref, out_ref, *,
                                  kh, th, w_out, c_out):
    """Width-folded stride-2 conv + folded-BN + ReLU.

    x_ref   : (1, 2, H2, W_out, KW*Cin) with
              x[0, p, i, ow, dx*Cin+c] = x_pad[2*i + p, 2*ow + dx, c]
    w_ref   : (KH, KW*Cin, Cout)   (BN scale already folded into the weights)
    bias_ref: (1, Cout)            folded BatchNorm bias (inference)
    out_ref : (1, th, W_out, Cout)
    """
    t = pl.program_id(1)
    oh0 = t * th
    acc = jnp.zeros((th * w_out, c_out), dtype=jnp.float32)
    for dy in range(kh):
        # out[oh, ow] needs x_pad[2*oh + dy, 2*ow + dx, c]
        #   == x_in[dy % 2, oh + dy // 2, ow, dx*Cin + c]
        patch = x_ref[0, dy % 2, pl.ds(oh0 + dy // 2, th), :, :]
        acc = acc + jnp.dot(patch.reshape(th * w_out, patch.shape[-1]),
                            w_ref[dy],
                            preferred_element_type=jnp.float32)
    y = acc + bias_ref[...]                                        # folded BN bias
    out_ref[0] = jnp.maximum(y, 0.0).reshape(th, w_out, c_out)     # ReLU


def _conv_s1_bn_relu_kernel(x_ref, w_ref, bias_ref, out_ref, *,
                            kh, kw, th, w_out, c_out):
    """Fused stride-1 conv + folded-BN + ReLU (used for the 1x1 conv_out).

    x_ref   : (1, H_pad, W_pad, Cin)
    w_ref   : (KH, KW, Cin, Cout)   (BN scale already folded in)
    out_ref : (1, th, W_out, Cout)
    """
    t = pl.program_id(1)
    oh0 = t * th
    acc = jnp.zeros((th * w_out, c_out), dtype=jnp.float32)
    for dy in range(kh):
        for dx in range(kw):
            patch = x_ref[0, pl.ds(oh0 + dy, th), pl.ds(dx, w_out), :]
            acc = acc + jnp.dot(patch.reshape(th * w_out, patch.shape[-1]),
                                w_ref[dy, dx],
                                preferred_element_type=jnp.float32)
    y = acc + bias_ref[...]
    out_ref[0] = jnp.maximum(y, 0.0).reshape(th, w_out, c_out)


# ---------------------------------------------------------------------------
# Per-layer wrapper
# ---------------------------------------------------------------------------
def _pick_row_tile(h_out, max_rows):
    for th in range(min(h_out, max_rows), 0, -1):
        if h_out % th == 0:
            return th
    return h_out


def conv_bn_relu(x_nhwc, w_oihw, gamma, beta, mean, var, *, stride, pad,
                 eps=1e-5, max_rows=256):
    """One ConvBNReLU layer: (N,H,W,Cin) f32 -> (N,H_out,W_out,Cout) f32 (NHWC)."""
    N, H, W, Cin = x_nhwc.shape
    Cout, Cin_w, KH, KW = w_oihw.shape
    assert Cin_w == Cin
    H_out = (H + 2 * pad - KH) // stride + 1
    W_out = (W + 2 * pad - KW) // stride + 1
    th = _pick_row_tile(H_out, max_rows)
    n_t = H_out // th

    # Fold BatchNorm (inference): scale goes into the weights, bias stays separate.
    inv_std = 1.0 / jnp.sqrt(var + eps)
    scale = gamma * inv_std                                        # (Cout,)
    bias = (beta - mean * scale).reshape(1, Cout)
    w_khwc = jnp.transpose(w_oihw, (2, 3, 1, 0)) * scale           # (KH, KW, Cin, Cout)

    if stride == 2:
        # Zero-pad exactly to what the taps need, then:
        #  1) width-unfold: x_unf[n, r, ow, dx*Cin+c] = x_pad[n, r, 2*ow+dx, c]
        #  2) row phase-split: x_in[n, p, i, ...] = x_unf[n, 2*i+p, ...]
        # so every in-kernel slice is contiguous and the KW taps live in the
        # matmul contraction dimension.
        H2 = H_out + (KH - 1) // 2
        W_pad = 2 * W_out + KW - 2
        pad_b = 2 * H2 - H - pad
        pad_r = W_pad - W - pad
        assert pad_b >= 0 and pad_r >= 0
        x_pad = jnp.pad(x_nhwc, ((0, 0), (pad, pad_b), (pad, pad_r), (0, 0)))
        x_unf = jnp.concatenate(
            [x_pad[:, :, dx:dx + 2 * W_out - 1:2, :] for dx in range(KW)], axis=-1)
        x_in = (x_unf.reshape(N, H2, 2, W_out, KW * Cin)
                .transpose(0, 2, 1, 3, 4))                         # (N, 2, H2, W_out, KW*Cin)
        w_in = w_khwc.reshape(KH, KW * Cin, Cout)
        kernel = functools.partial(_conv_s2_wfold_bn_relu_kernel, kh=KH,
                                   th=th, w_out=W_out, c_out=Cout)
        in_specs = [
            pl.BlockSpec((1, 2, H2, W_out, KW * Cin), lambda b, t: (b, 0, 0, 0, 0)),
            pl.BlockSpec((KH, KW * Cin, Cout), lambda b, t: (0, 0, 0)),
            pl.BlockSpec((1, Cout), lambda b, t: (0, 0)),
        ]
        args = (x_in, w_in, bias)
    else:
        assert stride == 1
        Hp, Wp = H + 2 * pad, W + 2 * pad
        x_in = (x_nhwc if pad == 0 else
                jnp.pad(x_nhwc, ((0, 0), (pad, pad), (pad, pad), (0, 0))))
        kernel = functools.partial(_conv_s1_bn_relu_kernel, kh=KH, kw=KW,
                                   th=th, w_out=W_out, c_out=Cout)
        in_specs = [
            pl.BlockSpec((1, Hp, Wp, Cin), lambda b, t: (b, 0, 0, 0)),
            pl.BlockSpec((KH, KW, Cin, Cout), lambda b, t: (0, 0, 0, 0)),
            pl.BlockSpec((1, Cout), lambda b, t: (0, 0)),
        ]
        args = (x_in, w_khwc, bias)

    return pl.pallas_call(
        kernel,
        out_shape=jax.ShapeDtypeStruct((N, H_out, W_out, Cout), jnp.float32),
        grid_spec=pltpu.PrefetchScalarGridSpec(
            num_scalar_prefetch=0,
            grid=(N, n_t),
            in_specs=in_specs,
            out_specs=pl.BlockSpec((1, th, W_out, Cout), lambda b, t: (b, t, 0, 0)),
        ),
        compiler_params=pltpu.CompilerParams(
            dimension_semantics=("parallel", "arbitrary"),
            vmem_limit_bytes=32 * 1024 * 1024),
    )(*args)


# ---------------------------------------------------------------------------
# SpatialPath forward (conv1 7x7/s2 -> conv2 3x3/s2 -> conv3 3x3/s2 -> conv_out 1x1)
# ---------------------------------------------------------------------------
_LAYERS = (("1", 2, 3), ("2", 2, 1), ("3", 2, 1), ("4", 1, 0))


def spatial_path_forward(x_nchw, params, eps=1e-5):
    """x_nchw: (N, 3, H, W) f32 -> (N, 128, H/8, W/8) f32 (NCHW, like PyTorch)."""
    x = jnp.transpose(x_nchw, (0, 2, 3, 1))      # single NCHW -> NHWC transpose
    for name, stride, pad in _LAYERS:
        x = conv_bn_relu(x, params["w" + name], params["g" + name],
                         params["b" + name], params["m" + name],
                         params["v" + name], stride=stride, pad=pad, eps=eps)
    return jnp.transpose(x, (0, 3, 1, 2))        # single NHWC -> NCHW transpose


# ---------------------------------------------------------------------------
# Pure-JAX reference (mirrors the PyTorch forward, inference-mode BN)
# ---------------------------------------------------------------------------
def _conv_bn_relu_ref(x, w, g, b, m, v, stride, pad, eps):
    y = jax.lax.conv_general_dilated(
        x, w, window_strides=(stride, stride),
        padding=[(pad, pad), (pad, pad)],
        dimension_numbers=("NCHW", "OIHW", "NCHW"),
        precision=jax.lax.Precision.HIGHEST)
    scale = g / jnp.sqrt(v + eps)
    bias = b - m * scale
    y = y * scale[None, :, None, None] + bias[None, :, None, None]
    return jnp.maximum(y, 0.0)


def reference_forward(x_nchw, params, eps=1e-5):
    x = x_nchw
    for name, stride, pad in _LAYERS:
        x = _conv_bn_relu_ref(x, params["w" + name], params["g" + name],
                              params["b" + name], params["m" + name],
                              params["v" + name], stride, pad, eps)
    return x


if __name__ == "__main__":
    key = jax.random.PRNGKey(0)

    # SpatialPath fixes channels at 3 -> 64 -> 64 -> 64 -> 128; keep spatial small.
    N, H, W = 2, 64, 64
    cfg = {"1": (3, 64, 7), "2": (64, 64, 3), "3": (64, 64, 3), "4": (64, 128, 1)}

    keys = jax.random.split(key, 1 + 5 * len(cfg))
    x = jax.random.normal(keys[0], (N, 3, H, W), dtype=jnp.float32)

    # Deterministic synthetic parameters (kaiming_normal_ with a=1 -> std = 1/sqrt(fan_in)).
    params = {}
    ki = 1
    for name, (cin, cout, k) in cfg.items():
        fan_in = cin * k * k
        params["w" + name] = (jax.random.normal(keys[ki], (cout, cin, k, k),
                                                dtype=jnp.float32)
                              * (1.0 / fan_in) ** 0.5)
        params["g" + name] = 1.0 + 0.1 * jax.random.normal(keys[ki + 1], (cout,), jnp.float32)
        params["b" + name] = 0.1 * jax.random.normal(keys[ki + 2], (cout,), jnp.float32)
        params["m" + name] = 0.05 * jax.random.normal(keys[ki + 3], (cout,), jnp.float32)
        params["v" + name] = 1.0 + 0.1 * jax.random.uniform(keys[ki + 4], (cout,), jnp.float32)
        ki += 5

    fwd = jax.jit(spatial_path_forward)
    ref_fwd = jax.jit(reference_forward)

    out = jax.block_until_ready(fwd(x, params))
    ref = jax.block_until_ready(ref_fwd(x, params))

    assert out.shape == (N, 128, H // 8, W // 8), out.shape
    np.testing.assert_allclose(np.asarray(out), np.asarray(ref), rtol=1e-2, atol=1e-2)
    print("KERNEL_OK")
</pallas_src>

<mosaic_0001>
module attributes {stable_mosaic.version = 11 : i64} {
  func.func @_conv_s2_wfold_bn_relu_kernel(%arg0: i32, %arg1: i32, %arg2: memref<1x2x35x32x21xf32, #tpu.memory_space<vmem>>, %arg3: memref<7x21x64xf32, #tpu.memory_space<vmem>>, %arg4: memref<1x64xf32, #tpu.memory_space<vmem>>, %arg5: memref<1x32x32x64xf32, #tpu.memory_space<vmem>>) attributes {dimension_semantics = [#tpu.dimension_semantics<parallel>, #tpu.dimension_semantics<arbitrary>], iteration_bounds = array<i64: 2, 1>, scalar_prefetch = 0 : i64, scratch_operands = 0 : i64, tpu.core_type = #tpu.core_type<tc>, window_params = [{transform_indices = @transform_0, window_bounds = array<i64: 1, 2, 35, 32, 21>}, {pipeline_mode = #tpu.pipeline_mode<synchronous>, transform_indices = @transform_1, window_bounds = array<i64: 7, 21, 64>}, {pipeline_mode = #tpu.pipeline_mode<synchronous>, transform_indices = @transform_2, window_bounds = array<i64: 1, 64>}, {transform_indices = @transform_3, window_bounds = array<i64: 1, 32, 32, 64>}]} {
    %c32_i32 = arith.constant 32 : i32
    %0 = arith.muli %arg1, %c32_i32 : i32
    %cst = arith.constant 0.000000e+00 : f32
    %1 = vector.broadcast %cst : f32 to vector<1024x64xf32>
    %c0_i32 = arith.constant 0 : i32
    %2 = arith.addi %0, %c0_i32 : i32
    %c0 = arith.constant 0 : index
    %c0_0 = arith.constant 0 : index
    %3 = arith.index_cast %2 : i32 to index
    %c0_1 = arith.constant 0 : index
    %c0_2 = arith.constant 0 : index
    %4 = vector.load %arg2[%c0, %c0_0, %3, %c0_1, %c0_2] : memref<1x2x35x32x21xf32, #tpu.memory_space<vmem>>, vector<1x1x32x32x21xf32>
    %5 = vector.shape_cast %4 : vector<1x1x32x32x21xf32> to vector<32x32x21xf32>
    %6 = vector.shape_cast %5 : vector<32x32x21xf32> to vector<1024x21xf32>
    %c0_3 = arith.constant 0 : index
    %c0_4 = arith.constant 0 : index
    %c0_5 = arith.constant 0 : index
    %7 = vector.load %arg3[%c0_3, %c0_4, %c0_5] : memref<7x21x64xf32, #tpu.memory_space<vmem>>, vector<1x21x64xf32>
    %8 = vector.shape_cast %7 : vector<1x21x64xf32> to vector<21x64xf32>
    %cst_6 = arith.constant dense<0.000000e+00> : vector<1024x64xf32>
    %9 = tpu.matmul %6, %8, %cst_6 {dimension_numbers = #tpu.dot_dimension_numbers<[1], [0], [0], [1], [0, 0, 1, 1], [], []>} : vector<1024x21xf32>, vector<21x64xf32>, vector<1024x64xf32> -> vector<1024x64xf32>
    %10 = arith.addf %1, %9 : vector<1024x64xf32>
    %c0_i32_7 = arith.constant 0 : i32
    %11 = arith.addi %0, %c0_i32_7 : i32
    %c0_8 = arith.constant 0 : index
    %c1 = arith.constant 1 : index
    %12 = arith.index_cast %11 : i32 to index
    %c0_9 = arith.constant 0 : index
    %c0_10 = arith.constant 0 : index
    %13 = vector.load %arg2[%c0_8, %c1, %12, %c0_9, %c0_10] : memref<1x2x35x32x21xf32, #tpu.memory_space<vmem>>, vector<1x1x32x32x21xf32>
    %14 = vector.shape_cast %13 : vector<1x1x32x32x21xf32> to vector<32x32x21xf32>
    %15 = vector.shape_cast %14 : vector<32x32x21xf32> to vector<1024x21xf32>
    %c1_11 = arith.constant 1 : index
    %c0_12 = arith.constant 0 : index
    %c0_13 = arith.constant 0 : index
    %16 = vector.load %arg3[%c1_11, %c0_12, %c0_13] : memref<7x21x64xf32, #tpu.memory_space<vmem>>, vector<1x21x64xf32>
    %17 = vector.shape_cast %16 : vector<1x21x64xf32> to vector<21x64xf32>
    %cst_14 = arith.constant dense<0.000000e+00> : vector<1024x64xf32>
    %18 = tpu.matmul %15, %17, %cst_14 {dimension_numbers = #tpu.dot_dimension_numbers<[1], [0], [0], [1], [0, 0, 1, 1], [], []>} : vector<1024x21xf32>, vector<21x64xf32>, vector<1024x64xf32> -> vector<1024x64xf32>
    %19 = arith.addf %10, %18 : vector<1024x64xf32>
    %c1_i32 = arith.constant 1 : i32
    %20 = arith.addi %0, %c1_i32 : i32
    %c0_15 = arith.constant 0 : index
    %c0_16 = arith.constant 0 : index
    %21 = arith.index_cast %20 : i32 to index
    %c0_17 = arith.constant 0 : index
    %c0_18 = arith.constant 0 : index
    %22 = vector.load %arg2[%c0_15, %c0_16, %21, %c0_17, %c0_18] : memref<1x2x35x32x21xf32, #tpu.memory_space<vmem>>, vector<1x1x32x32x21xf32>
    %23 = vector.shape_cast %22 : vector<1x1x32x32x21xf32> to vector<32x32x21xf32>
    %24 = vector.shape_cast %23 : vector<32x32x21xf32> to vector<1024x21xf32>
    %c2 = arith.constant 2 : index
    %c0_19 = arith.constant 0 : index
    %c0_20 = arith.constant 0 : index
    %25 = vector.load %arg3[%c2, %c0_19, %c0_20] : memref<7x21x64xf32, #tpu.memory_space<vmem>>, vector<1x21x64xf32>
    %26 = vector.shape_cast %25 : vector<1x21x64xf32> to vector<21x64xf32>
    %cst_21 = arith.constant dense<0.000000e+00> : vector<1024x64xf32>
    %27 = tpu.matmul %24, %26, %cst_21 {dimension_numbers = #tpu.dot_dimension_numbers<[1], [0], [0], [1], [0, 0, 1, 1], [], []>} : vector<1024x21xf32>, vector<21x64xf32>, vector<1024x64xf32> -> vector<1024x64xf32>
    %28 = arith.addf %19, %27 : vector<1024x64xf32>
    %c1_i32_22 = arith.constant 1 : i32
    %29 = arith.addi %0, %c1_i32_22 : i32
    %c0_23 = arith.constant 0 : index
    %c1_24 = arith.constant 1 : index
    %30 = arith.index_cast %29 : i32 to index
    %c0_25 = arith.constant 0 : index
    %c0_26 = arith.constant 0 : index
    %31 = vector.load %arg2[%c0_23, %c1_24, %30, %c0_25, %c0_26] : memref<1x2x35x32x21xf32, #tpu.memory_space<vmem>>, vector<1x1x32x32x21xf32>
    %32 = vector.shape_cast %31 : vector<1x1x32x32x21xf32> to vector<32x32x21xf32>
    %33 = vector.shape_cast %32 : vector<32x32x21xf32> to vector<1024x21xf32>
    %c3 = arith.constant 3 : index
    %c0_27 = arith.constant 0 : index
    %c0_28 = arith.constant 0 : index
    %34 = vector.load %arg3[%c3, %c0_27, %c0_28] : memref<7x21x64xf32, #tpu.memory_space<vmem>>, vector<1x21x64xf32>
    %35 = vector.shape_cast %34 : vector<1x21x64xf32> to vector<21x64xf32>
    %cst_29 = arith.constant dense<0.000000e+00> : vector<1024x64xf32>
    %36 = tpu.matmul %33, %35, %cst_29 {dimension_numbers = #tpu.dot_dimension_numbers<[1], [0], [0], [1], [0, 0, 1, 1], [], []>} : vector<1024x21xf32>, vector<21x64xf32>, vector<1024x64xf32> -> vector<1024x64xf32>
    %37 = arith.addf %28, %36 : vector<1024x64xf32>
    %c2_i32 = arith.constant 2 : i32
    %38 = arith.addi %0, %c2_i32 : i32
    %c0_30 = arith.constant 0 : index
    %c0_31 = arith.constant 0 : index
    %39 = arith.index_cast %38 : i32 to index
    %c0_32 = arith.constant 0 : index
    %c0_33 = arith.constant 0 : index
    %40 = vector.load %arg2[%c0_30, %c0_31, %39, %c0_32, %c0_33] : memref<1x2x35x32x21xf32, #tpu.memory_space<vmem>>, vector<1x1x32x32x21xf32>
    %41 = vector.shape_cast %40 : vector<1x1x32x32x21xf32> to vector<32x32x21xf32>
    %42 = vector.shape_cast %41 : vector<32x32x21xf32> to vector<1024x21xf32>
    %c4 = arith.constant 4 : index
    %c0_34 = arith.constant 0 : index
    %c0_35 = arith.constant 0 : index
    %43 = vector.load %arg3[%c4, %c0_34, %c0_35] : memref<7x21x64xf32, #tpu.memory_space<vmem>>, vector<1x21x64xf32>
    %44 = vector.shape_cast %43 : vector<1x21x64xf32> to vector<21x64xf32>
    %cst_36 = arith.constant dense<0.000000e+00> : vector<1024x64xf32>
    %45 = tpu.matmul %42, %44, %cst_36 {dimension_numbers = #tpu.dot_dimension_numbers<[1], [0], [0], [1], [0, 0, 1, 1], [], []>} : vector<1024x21xf32>, vector<21x64xf32>, vector<1024x64xf32> -> vector<1024x64xf32>
    %46 = arith.addf %37, %45 : vector<1024x64xf32>
    %c2_i32_37 = arith.constant 2 : i32
    %47 = arith.addi %0, %c2_i32_37 : i32
    %c0_38 = arith.constant 0 : index
    %c1_39 = arith.constant 1 : index
    %48 = arith.index_cast %47 : i32 to index
    %c0_40 = arith.constant 0 : index
    %c0_41 = arith.constant 0 : index
    %49 = vector.load %arg2[%c0_38, %c1_39, %48, %c0_40, %c0_41] : memref<1x2x35x32x21xf32, #tpu.memory_space<vmem>>, vector<1x1x32x32x21xf32>
    %50 = vector.shape_cast %49 : vector<1x1x32x32x21xf32> to vector<32x32x21xf32>
    %51 = vector.shape_cast %50 : vector<32x32x21xf32> to vector<1024x21xf32>
    %c5 = arith.constant 5 : index
    %c0_42 = arith.constant 0 : index
    %c0_43 = arith.constant 0 : index
    %52 = vector.load %arg3[%c5, %c0_42, %c0_43] : memref<7x21x64xf32, #tpu.memory_space<vmem>>, vector<1x21x64xf32>
    %53 = vector.shape_cast %52 : vector<1x21x64xf32> to vector<21x64xf32>
    %cst_44 = arith.constant dense<0.000000e+00> : vector<1024x64xf32>
    %54 = tpu.matmul %51, %53, %cst_44 {dimension_numbers = #tpu.dot_dimension_numbers<[1], [0], [0], [1], [0, 0, 1, 1], [], []>} : vector<1024x21xf32>, vector<21x64xf32>, vector<1024x64xf32> -> vector<1024x64xf32>
    %55 = arith.addf %46, %54 : vector<1024x64xf32>
    %c3_i32 = arith.constant 3 : i32
    %56 = arith.addi %0, %c3_i32 : i32
    %c0_45 = arith.constant 0 : index
    %c0_46 = arith.constant 0 : index
    %57 = arith.index_cast %56 : i32 to index
    %c0_47 = arith.constant 0 : index
    %c0_48 = arith.constant 0 : index
    %58 = vector.load %arg2[%c0_45, %c0_46, %57, %c0_47, %c0_48] : memref<1x2x35x32x21xf32, #tpu.memory_space<vmem>>, vector<1x1x32x32x21xf32>
    %59 = vector.shape_cast %58 : vector<1x1x32x32x21xf32> to vector<32x32x21xf32>
    %60 = vector.shape_cast %59 : vector<32x32x21xf32> to vector<1024x21xf32>
    %c6 = arith.constant 6 : index
    %c0_49 = arith.constant 0 : index
    %c0_50 = arith.constant 0 : index
    %61 = vector.load %arg3[%c6, %c0_49, %c0_50] : memref<7x21x64xf32, #tpu.memory_space<vmem>>, vector<1x21x64xf32>
    %62 = vector.shape_cast %61 : vector<1x21x64xf32> to vector<21x64xf32>
    %cst_51 = arith.constant dense<0.000000e+00> : vector<1024x64xf32>
    %63 = tpu.matmul %60, %62, %cst_51 {dimension_numbers = #tpu.dot_dimension_numbers<[1], [0], [0], [1], [0, 0, 1, 1], [], []>} : vector<1024x21xf32>, vector<21x64xf32>, vector<1024x64xf32> -> vector<1024x64xf32>
    %64 = arith.addf %55, %63 : vector<1024x64xf32>
    %c0_52 = arith.constant 0 : index
    %c0_53 = arith.constant 0 : index
    %65 = vector.load %arg4[%c0_52, %c0_53] : memref<1x64xf32, #tpu.memory_space<vmem>>, vector<1x64xf32>
    %66 = vector.broadcast %65 : vector<1x64xf32> to vector<1024x64xf32>
    %67 = arith.addf %64, %66 : vector<1024x64xf32>
    %cst_54 = arith.constant 0.000000e+00 : f32
    %68 = vector.broadcast %cst_54 : f32 to vector<1024x64xf32>
    %69 = arith.maximumf %67, %68 : vector<1024x64xf32>
    %70 = vector.shape_cast %69 : vector<1024x64xf32> to vector<32x32x64xf32>
    %c0_55 = arith.constant 0 : index
    %c0_56 = arith.constant 0 : index
    %c0_57 = arith.constant 0 : index
    %c0_58 = arith.constant 0 : index
    %71 = vector.load %arg5[%c0_55, %c0_56, %c0_57, %c0_58] : memref<1x32x32x64xf32, #tpu.memory_space<vmem>>, vector<1x32x32x64xf32>
    %72 = vector.shape_cast %71 : vector<1x32x32x64xf32> to vector<32x32x64xf32>
    %73 = vector.shape_cast %70 : vector<32x32x64xf32> to vector<1x32x32x64xf32>
    tpu.vector_store %arg5[%c0_55, %c0_56, %c0_57, %c0_58], %73 {strides = array<i32>} : memref<1x32x32x64xf32, #tpu.memory_space<vmem>>, vector<1x32x32x64xf32>,
    return
  }
  func.func @transform_0(%arg0: i32, %arg1: i32) -> (i32, i32, i32, i32, i32) {
    %c0_i32 = arith.constant 0 : i32
    %c0_i32_0 = arith.constant 0 : i32
    %c0_i32_1 = arith.constant 0 : i32
    %c0_i32_2 = arith.constant 0 : i32
    %c0_i32_3 = arith.constant 0 : i32
    return %arg0, %c0_i32, %c0_i32_0, %c0_i32_1, %c0_i32_2 : i32, i32, i32, i32, i32
  }
  func.func @transform_1(%arg0: i32, %arg1: i32) -> (i32, i32, i32) {
    %c0_i32 = arith.constant 0 : i32
    %c0_i32_0 = arith.constant 0 : i32
    %c0_i32_1 = arith.constant 0 : i32
    %c0_i32_2 = arith.constant 0 : i32
    return %c0_i32, %c0_i32_0, %c0_i32_1 : i32, i32, i32
  }
  func.func @transform_2(%arg0: i32, %arg1: i32) -> (i32, i32) {
    %c0_i32 = arith.constant 0 : i32
    %c0_i32_0 = arith.constant 0 : i32
    %c0_i32_1 = arith.constant 0 : i32
    return %c0_i32, %c0_i32_0 : i32, i32
  }
  func.func @transform_3(%arg0: i32, %arg1: i32) -> (i32, i32, i32, i32) {
    %c0_i32 = arith.constant 0 : i32
    %c0_i32_0 = arith.constant 0 : i32
    %c0_i32_1 = arith.constant 0 : i32
    return %arg0, %arg1, %c0_i32, %c0_i32_0 : i32, i32, i32, i32
  }
}

module attributes {stable_mosaic.version = 11 : i64} {
  func.func @_conv_s2_wfold_bn_relu_kernel(%arg0: i32, %arg1: i32, %arg2: memref<1x2x17x16x192xf32, #tpu.memory_space<vmem>>, %arg3: memref<3x192x64xf32, #tpu.memory_space<vmem>>, %arg4: memref<1x64xf32, #tpu.memory_space<vmem>>, %arg5: memref<1x16x16x64xf32, #tpu.memory_space<vmem>>) attributes {dimension_semantics = [#tpu.dimension_semantics<parallel>, #tpu.dimension_semantics<arbitrary>], iteration_bounds = array<i64: 2, 1>, scalar_prefetch = 0 : i64, scratch_operands = 0 : i64, tpu.core_type = #tpu.core_type<tc>, window_params = [{transform_indices = @transform_0, window_bounds = array<i64: 1, 2, 17, 16, 192>}, {pipeline_mode = #tpu.pipeline_mode<synchronous>, transform_indices = @transform_1, window_bounds = array<i64: 3, 192, 64>}, {pipeline_mode = #tpu.pipeline_mode<synchronous>, transform_indices = @transform_2, window_bounds = array<i64: 1, 64>}, {transform_indices = @transform_3, window_bounds = array<i64: 1, 16, 16, 64>}]} {
    %c16_i32 = arith.constant 16 : i32
    %0 = arith.muli %arg1, %c16_i32 : i32
    %cst = arith.constant 0.000000e+00 : f32
    %1 = vector.broadcast %cst : f32 to vector<256x64xf32>
    %c0_i32 = arith.constant 0 : i32
    %2 = arith.addi %0, %c0_i32 : i32
    %c0 = arith.constant 0 : index
    %c0_0 = arith.constant 0 : index
    %3 = arith.index_cast %2 : i32 to index
    %c0_1 = arith.constant 0 : index
    %c0_2 = arith.constant 0 : index
    %4 = vector.load %arg2[%c0, %c0_0, %3, %c0_1, %c0_2] : memref<1x2x17x16x192xf32, #tpu.memory_space<vmem>>, vector<1x1x16x16x192xf32>
    %5 = vector.shape_cast %4 : vector<1x1x16x16x192xf32> to vector<16x16x192xf32>
    %6 = vector.shape_cast %5 : vector<16x16x192xf32> to vector<256x192xf32>
    %c0_3 = arith.constant 0 : index
    %c0_4 = arith.constant 0 : index
    %c0_5 = arith.constant 0 : index
    %7 = vector.load %arg3[%c0_3, %c0_4, %c0_5] : memref<3x192x64xf32, #tpu.memory_space<vmem>>, vector<1x192x64xf32>
    %8 = vector.shape_cast %7 : vector<1x192x64xf32> to vector<192x64xf32>
    %cst_6 = arith.constant dense<0.000000e+00> : vector<256x64xf32>
    %9 = tpu.matmul %6, %8, %cst_6 {dimension_numbers = #tpu.dot_dimension_numbers<[1], [0], [0], [1], [0, 0, 1, 1], [], []>} : vector<256x192xf32>, vector<192x64xf32>, vector<256x64xf32> -> vector<256x64xf32>
    %10 = arith.addf %1, %9 : vector<256x64xf32>
    %c0_i32_7 = arith.constant 0 : i32
    %11 = arith.addi %0, %c0_i32_7 : i32
    %c0_8 = arith.constant 0 : index
    %c1 = arith.constant 1 : index
    %12 = arith.index_cast %11 : i32 to index
    %c0_9 = arith.constant 0 : index
    %c0_10 = arith.constant 0 : index
    %13 = vector.load %arg2[%c0_8, %c1, %12, %c0_9, %c0_10] : memref<1x2x17x16x192xf32, #tpu.memory_space<vmem>>, vector<1x1x16x16x192xf32>
    %14 = vector.shape_cast %13 : vector<1x1x16x16x192xf32> to vector<16x16x192xf32>
    %15 = vector.shape_cast %14 : vector<16x16x192xf32> to vector<256x192xf32>
    %c1_11 = arith.constant 1 : index
    %c0_12 = arith.constant 0 : index
    %c0_13 = arith.constant 0 : index
    %16 = vector.load %arg3[%c1_11, %c0_12, %c0_13] : memref<3x192x64xf32, #tpu.memory_space<vmem>>, vector<1x192x64xf32>
    %17 = vector.shape_cast %16 : vector<1x192x64xf32> to vector<192x64xf32>
    %cst_14 = arith.constant dense<0.000000e+00> : vector<256x64xf32>
    %18 = tpu.matmul %15, %17, %cst_14 {dimension_numbers = #tpu.dot_dimension_numbers<[1], [0], [0], [1], [0, 0, 1, 1], [], []>} : vector<256x192xf32>, vector<192x64xf32>, vector<256x64xf32> -> vector<256x64xf32>
    %19 = arith.addf %10, %18 : vector<256x64xf32>
    %c1_i32 = arith.constant 1 : i32
    %20 = arith.addi %0, %c1_i32 : i32
    %c0_15 = arith.constant 0 : index
    %c0_16 = arith.constant 0 : index
    %21 = arith.index_cast %20 : i32 to index
    %c0_17 = arith.constant 0 : index
    %c0_18 = arith.constant 0 : index
    %22 = vector.load %arg2[%c0_15, %c0_16, %21, %c0_17, %c0_18] : memref<1x2x17x16x192xf32, #tpu.memory_space<vmem>>, vector<1x1x16x16x192xf32>
    %23 = vector.shape_cast %22 : vector<1x1x16x16x192xf32> to vector<16x16x192xf32>
    %24 = vector.shape_cast %23 : vector<16x16x192xf32> to vector<256x192xf32>
    %c2 = arith.constant 2 : index
    %c0_19 = arith.constant 0 : index
    %c0_20 = arith.constant 0 : index
    %25 = vector.load %arg3[%c2, %c0_19, %c0_20] : memref<3x192x64xf32, #tpu.memory_space<vmem>>, vector<1x192x64xf32>
    %26 = vector.shape_cast %25 : vector<1x192x64xf32> to vector<192x64xf32>
    %cst_21 = arith.constant dense<0.000000e+00> : vector<256x64xf32>
    %27 = tpu.matmul %24, %26, %cst_21 {dimension_numbers = #tpu.dot_dimension_numbers<[1], [0], [0], [1], [0, 0, 1, 1], [], []>} : vector<256x192xf32>, vector<192x64xf32>, vector<256x64xf32> -> vector<256x64xf32>
    %28 = arith.addf %19, %27 : vector<256x64xf32>
    %c0_22 = arith.constant 0 : index
    %c0_23 = arith.constant 0 : index
    %29 = vector.load %arg4[%c0_22, %c0_23] : memref<1x64xf32, #tpu.memory_space<vmem>>, vector<1x64xf32>
    %30 = vector.broadcast %29 : vector<1x64xf32> to vector<256x64xf32>
    %31 = arith.addf %28, %30 : vector<256x64xf32>
    %cst_24 = arith.constant 0.000000e+00 : f32
    %32 = vector.broadcast %cst_24 : f32 to vector<256x64xf32>
    %33 = arith.maximumf %31, %32 : vector<256x64xf32>
    %34 = vector.shape_cast %33 : vector<256x64xf32> to vector<16x16x64xf32>
    %c0_25 = arith.constant 0 : index
    %c0_26 = arith.constant 0 : index
    %c0_27 = arith.constant 0 : index
    %c0_28 = arith.constant 0 : index
    %35 = vector.load %arg5[%c0_25, %c0_26, %c0_27, %c0_28] : memref<1x16x16x64xf32, #tpu.memory_space<vmem>>, vector<1x16x16x64xf32>
    %36 = vector.shape_cast %35 : vector<1x16x16x64xf32> to vector<16x16x64xf32>
    %37 = vector.shape_cast %34 : vector<16x16x64xf32> to vector<1x16x16x64xf32>
    tpu.vector_store %arg5[%c0_25, %c0_26, %c0_27, %c0_28], %37 {strides = array<i32>} : memref<1x16x16x64xf32, #tpu.memory_space<vmem>>, vector<1x16x16x64xf32>,
    return
  }
  func.func @transform_0(%arg0: i32, %arg1: i32) -> (i32, i32, i32, i32, i32) {
    %c0_i32 = arith.constant 0 : i32
    %c0_i32_0 = arith.constant 0 : i32
    %c0_i32_1 = arith.constant 0 : i32
    %c0_i32_2 = arith.constant 0 : i32
    %c0_i32_3 = arith.constant 0 : i32
    return %arg0, %c0_i32, %c0_i32_0, %c0_i32_1, %c0_i32_2 : i32, i32, i32, i32, i32
  }
  func.func @transform_1(%arg0: i32, %arg1: i32) -> (i32, i32, i32) {
    %c0_i32 = arith.constant 0 : i32
    %c0_i32_0 = arith.constant 0 : i32
    %c0_i32_1 = arith.constant 0 : i32
    %c0_i32_2 = arith.constant 0 : i32
    return %c0_i32, %c0_i32_0, %c0_i32_1 : i32, i32, i32
  }
  func.func @transform_2(%arg0: i32, %arg1: i32) -> (i32, i32) {
    %c0_i32 = arith.constant 0 : i32
    %c0_i32_0 = arith.constant 0 : i32
    %c0_i32_1 = arith.constant 0 : i32
    return %c0_i32, %c0_i32_0 : i32, i32
  }
  func.func @transform_3(%arg0: i32, %arg1: i32) -> (i32, i32, i32, i32) {
    %c0_i32 = arith.constant 0 : i32
    %c0_i32_0 = arith.constant 0 : i32
    %c0_i32_1 = arith.constant 0 : i32
    return %arg0, %arg1, %c0_i32, %c0_i32_0 : i32, i32, i32, i32
  }
}

module attributes {stable_mosaic.version = 11 : i64} {
  func.func @_conv_s2_wfold_bn_relu_kernel(%arg0: i32, %arg1: i32, %arg2: memref<1x2x9x8x192xf32, #tpu.memory_space<vmem>>, %arg3: memref<3x192x64xf32, #tpu.memory_space<vmem>>, %arg4: memref<1x64xf32, #tpu.memory_space<vmem>>, %arg5: memref<1x8x8x64xf32, #tpu.memory_space<vmem>>) attributes {dimension_semantics = [#tpu.dimension_semantics<parallel>, #tpu.dimension_semantics<arbitrary>], iteration_bounds = array<i64: 2, 1>, scalar_prefetch = 0 : i64, scratch_operands = 0 : i64, tpu.core_type = #tpu.core_type<tc>, window_params = [{transform_indices = @transform_0, window_bounds = array<i64: 1, 2, 9, 8, 192>}, {pipeline_mode = #tpu.pipeline_mode<synchronous>, transform_indices = @transform_1, window_bounds = array<i64: 3, 192, 64>}, {pipeline_mode = #tpu.pipeline_mode<synchronous>, transform_indices = @transform_2, window_bounds = array<i64: 1, 64>}, {transform_indices = @transform_3, window_bounds = array<i64: 1, 8, 8, 64>}]} {
    %c8_i32 = arith.constant 8 : i32
    %0 = arith.muli %arg1, %c8_i32 : i32
    %cst = arith.constant 0.000000e+00 : f32
    %1 = vector.broadcast %cst : f32 to vector<64x64xf32>
    %c0_i32 = arith.constant 0 : i32
    %2 = arith.addi %0, %c0_i32 : i32
    %c0 = arith.constant 0 : index
    %c0_0 = arith.constant 0 : index
    %3 = arith.index_cast %2 : i32 to index
    %c0_1 = arith.constant 0 : index
    %c0_2 = arith.constant 0 : index
    %4 = vector.load %arg2[%c0, %c0_0, %3, %c0_1, %c0_2] : memref<1x2x9x8x192xf32, #tpu.memory_space<vmem>>, vector<1x1x8x8x192xf32>
    %5 = vector.shape_cast %4 : vector<1x1x8x8x192xf32> to vector<8x8x192xf32>
    %6 = vector.shape_cast %5 : vector<8x8x192xf32> to vector<64x192xf32>
    %c0_3 = arith.constant 0 : index
    %c0_4 = arith.constant 0 : index
    %c0_5 = arith.constant 0 : index
    %7 = vector.load %arg3[%c0_3, %c0_4, %c0_5] : memref<3x192x64xf32, #tpu.memory_space<vmem>>, vector<1x192x64xf32>
    %8 = vector.shape_cast %7 : vector<1x192x64xf32> to vector<192x64xf32>
    %cst_6 = arith.constant dense<0.000000e+00> : vector<64x64xf32>
    %9 = tpu.matmul %6, %8, %cst_6 {dimension_numbers = #tpu.dot_dimension_numbers<[1], [0], [0], [1], [0, 0, 1, 1], [], []>} : vector<64x192xf32>, vector<192x64xf32>, vector<64x64xf32> -> vector<64x64xf32>
    %10 = arith.addf %1, %9 : vector<64x64xf32>
    %c0_i32_7 = arith.constant 0 : i32
    %11 = arith.addi %0, %c0_i32_7 : i32
    %c0_8 = arith.constant 0 : index
    %c1 = arith.constant 1 : index
    %12 = arith.index_cast %11 : i32 to index
    %c0_9 = arith.constant 0 : index
    %c0_10 = arith.constant 0 : index
    %13 = vector.load %arg2[%c0_8, %c1, %12, %c0_9, %c0_10] : memref<1x2x9x8x192xf32, #tpu.memory_space<vmem>>, vector<1x1x8x8x192xf32>
    %14 = vector.shape_cast %13 : vector<1x1x8x8x192xf32> to vector<8x8x192xf32>
    %15 = vector.shape_cast %14 : vector<8x8x192xf32> to vector<64x192xf32>
    %c1_11 = arith.constant 1 : index
    %c0_12 = arith.constant 0 : index
    %c0_13 = arith.constant 0 : index
    %16 = vector.load %arg3[%c1_11, %c0_12, %c0_13] : memref<3x192x64xf32, #tpu.memory_space<vmem>>, vector<1x192x64xf32>
    %17 = vector.shape_cast %16 : vector<1x192x64xf32> to vector<192x64xf32>
    %cst_14 = arith.constant dense<0.000000e+00> : vector<64x64xf32>
    %18 = tpu.matmul %15, %17, %cst_14 {dimension_numbers = #tpu.dot_dimension_numbers<[1], [0], [0], [1], [0, 0, 1, 1], [], []>} : vector<64x192xf32>, vector<192x64xf32>, vector<64x64xf32> -> vector<64x64xf32>
    %19 = arith.addf %10, %18 : vector<64x64xf32>
    %c1_i32 = arith.constant 1 : i32
    %20 = arith.addi %0, %c1_i32 : i32
    %c0_15 = arith.constant 0 : index
    %c0_16 = arith.constant 0 : index
    %21 = arith.index_cast %20 : i32 to index
    %c0_17 = arith.constant 0 : index
    %c0_18 = arith.constant 0 : index
    %22 = vector.load %arg2[%c0_15, %c0_16, %21, %c0_17, %c0_18] : memref<1x2x9x8x192xf32, #tpu.memory_space<vmem>>, vector<1x1x8x8x192xf32>
    %23 = vector.shape_cast %22 : vector<1x1x8x8x192xf32> to vector<8x8x192xf32>
    %24 = vector.shape_cast %23 : vector<8x8x192xf32> to vector<64x192xf32>
    %c2 = arith.constant 2 : index
    %c0_19 = arith.constant 0 : index
    %c0_20 = arith.constant 0 : index
    %25 = vector.load %arg3[%c2, %c0_19, %c0_20] : memref<3x192x64xf32, #tpu.memory_space<vmem>>, vector<1x192x64xf32>
    %26 = vector.shape_cast %25 : vector<1x192x64xf32> to vector<192x64xf32>
    %cst_21 = arith.constant dense<0.000000e+00> : vector<64x64xf32>
    %27 = tpu.matmul %24, %26, %cst_21 {dimension_numbers = #tpu.dot_dimension_numbers<[1], [0], [0], [1], [0, 0, 1, 1], [], []>} : vector<64x192xf32>, vector<192x64xf32>, vector<64x64xf32> -> vector<64x64xf32>
    %28 = arith.addf %19, %27 : vector<64x64xf32>
    %c0_22 = arith.constant 0 : index
    %c0_23 = arith.constant 0 : index
    %29 = vector.load %arg4[%c0_22, %c0_23] : memref<1x64xf32, #tpu.memory_space<vmem>>, vector<1x64xf32>
    %30 = vector.broadcast %29 : vector<1x64xf32> to vector<64x64xf32>
    %31 = arith.addf %28, %30 : vector<64x64xf32>
    %cst_24 = arith.constant 0.000000e+00 : f32
    %32 = vector.broadcast %cst_24 : f32 to vector<64x64xf32>
    %33 = arith.maximumf %31, %32 : vector<64x64xf32>
    %34 = vector.shape_cast %33 : vector<64x64xf32> to vector<8x8x64xf32>
    %c0_25 = arith.constant 0 : index
    %c0_26 = arith.constant 0 : index
    %c0_27 = arith.constant 0 : index
    %c0_28 = arith.constant 0 : index
    %35 = vector.load %arg5[%c0_25, %c0_26, %c0_27, %c0_28] : memref<1x8x8x64xf32, #tpu.memory_space<vmem>>, vector<1x8x8x64xf32>
    %36 = vector.shape_cast %35 : vector<1x8x8x64xf32> to vector<8x8x64xf32>
    %37 = vector.shape_cast %34 : vector<8x8x64xf32> to vector<1x8x8x64xf32>
    tpu.vector_store %arg5[%c0_25, %c0_26, %c0_27, %c0_28], %37 {strides = array<i32>} : memref<1x8x8x64xf32, #tpu.memory_space<vmem>>, vector<1x8x8x64xf32>,
    return
  }
  func.func @transform_0(%arg0: i32, %arg1: i32) -> (i32, i32, i32, i32, i32) {
    %c0_i32 = arith.constant 0 : i32
    %c0_i32_0 = arith.constant 0 : i32
    %c0_i32_1 = arith.constant 0 : i32
    %c0_i32_2 = arith.constant 0 : i32
    %c0_i32_3 = arith.constant 0 : i32
    return %arg0, %c0_i32, %c0_i32_0, %c0_i32_1, %c0_i32_2 : i32, i32, i32, i32, i32
  }
  func.func @transform_1(%arg0: i32, %arg1: i32) -> (i32, i32, i32) {
    %c0_i32 = arith.constant 0 : i32
    %c0_i32_0 = arith.constant 0 : i32
    %c0_i32_1 = arith.constant 0 : i32
    %c0_i32_2 = arith.constant 0 : i32
    return %c0_i32, %c0_i32_0, %c0_i32_1 : i32, i32, i32
  }
  func.func @transform_2(%arg0: i32, %arg1: i32) -> (i32, i32) {
    %c0_i32 = arith.constant 0 : i32
    %c0_i32_0 = arith.constant 0 : i32
    %c0_i32_1 = arith.constant 0 : i32
    return %c0_i32, %c0_i32_0 : i32, i32
  }
  func.func @transform_3(%arg0: i32, %arg1: i32) -> (i32, i32, i32, i32) {
    %c0_i32 = arith.constant 0 : i32
    %c0_i32_0 = arith.constant 0 : i32
    %c0_i32_1 = arith.constant 0 : i32
    return %arg0, %arg1, %c0_i32, %c0_i32_0 : i32, i32, i32, i32
  }
}

module attributes {stable_mosaic.version = 11 : i64} {
  func.func @_conv_s1_bn_relu_kernel(%arg0: i32, %arg1: i32, %arg2: memref<1x8x8x64xf32, #tpu.memory_space<vmem>>, %arg3: memref<1x1x64x128xf32, #tpu.memory_space<vmem>>, %arg4: memref<1x128xf32, #tpu.memory_space<vmem>>, %arg5: memref<1x8x8x128xf32, #tpu.memory_space<vmem>>) attributes {dimension_semantics = [#tpu.dimension_semantics<parallel>, #tpu.dimension_semantics<arbitrary>], iteration_bounds = array<i64: 2, 1>, scalar_prefetch = 0 : i64, scratch_operands = 0 : i64, tpu.core_type = #tpu.core_type<tc>, window_params = [{transform_indices = @transform_0, window_bounds = array<i64: 1, 8, 8, 64>}, {pipeline_mode = #tpu.pipeline_mode<synchronous>, transform_indices = @transform_1, window_bounds = array<i64: 1, 1, 64, 128>}, {pipeline_mode = #tpu.pipeline_mode<synchronous>, transform_indices = @transform_2, window_bounds = array<i64: 1, 128>}, {transform_indices = @transform_3, window_bounds = array<i64: 1, 8, 8, 128>}]} {
    %c8_i32 = arith.constant 8 : i32
    %0 = arith.muli %arg1, %c8_i32 : i32
    %cst = arith.constant 0.000000e+00 : f32
    %1 = vector.broadcast %cst : f32 to vector<64x128xf32>
    %c0_i32 = arith.constant 0 : i32
    %2 = arith.addi %0, %c0_i32 : i32
    %c0 = arith.constant 0 : index
    %3 = arith.index_cast %2 : i32 to index
    %c0_0 = arith.constant 0 : index
    %c0_1 = arith.constant 0 : index
    %4 = vector.load %arg2[%c0, %3, %c0_0, %c0_1] : memref<1x8x8x64xf32, #tpu.memory_space<vmem>>, vector<1x8x8x64xf32>
    %5 = vector.shape_cast %4 : vector<1x8x8x64xf32> to vector<8x8x64xf32>
    %6 = vector.shape_cast %5 : vector<8x8x64xf32> to vector<64x64xf32>
    %c0_2 = arith.constant 0 : index
    %c0_3 = arith.constant 0 : index
    %c0_4 = arith.constant 0 : index
    %c0_5 = arith.constant 0 : index
    %7 = vector.load %arg3[%c0_2, %c0_3, %c0_4, %c0_5] : memref<1x1x64x128xf32, #tpu.memory_space<vmem>>, vector<1x1x64x128xf32>
    %8 = vector.shape_cast %7 : vector<1x1x64x128xf32> to vector<64x128xf32>
    %cst_6 = arith.constant dense<0.000000e+00> : vector<64x128xf32>
    %9 = tpu.matmul %6, %8, %cst_6 {dimension_numbers = #tpu.dot_dimension_numbers<[1], [0], [0], [1], [0, 0, 1, 1], [], []>} : vector<64x64xf32>, vector<64x128xf32>, vector<64x128xf32> -> vector<64x128xf32>
    %10 = arith.addf %1, %9 : vector<64x128xf32>
    %c0_7 = arith.constant 0 : index
    %c0_8 = arith.constant 0 : index
    %11 = vector.load %arg4[%c0_7, %c0_8] : memref<1x128xf32, #tpu.memory_space<vmem>>, vector<1x128xf32>
    %12 = vector.broadcast %11 : vector<1x128xf32> to vector<64x128xf32>
    %13 = arith.addf %10, %12 : vector<64x128xf32>
    %cst_9 = arith.constant 0.000000e+00 : f32
    %14 = vector.broadcast %cst_9 : f32 to vector<64x128xf32>
    %15 = arith.maximumf %13, %14 : vector<64x128xf32>
    %16 = vector.shape_cast %15 : vector<64x128xf32> to vector<8x8x128xf32>
    %c0_10 = arith.constant 0 : index
    %c0_11 = arith.constant 0 : index
    %c0_12 = arith.constant 0 : index
    %c0_13 = arith.constant 0 : index
    %17 = vector.load %arg5[%c0_10, %c0_11, %c0_12, %c0_13] : memref<1x8x8x128xf32, #tpu.memory_space<vmem>>, vector<1x8x8x128xf32>
    %18 = vector.shape_cast %17 : vector<1x8x8x128xf32> to vector<8x8x128xf32>
    %19 = vector.shape_cast %16 : vector<8x8x128xf32> to vector<1x8x8x128xf32>
    tpu.vector_store %arg5[%c0_10, %c0_11, %c0_12, %c0_13], %19 {strides = array<i32>} : memref<1x8x8x128xf32, #tpu.memory_space<vmem>>, vector<1x8x8x128xf32>,
    return
  }
  func.func @transform_0(%arg0: i32, %arg1: i32) -> (i32, i32, i32, i32) {
    %c0_i32 = arith.constant 0 : i32
    %c0_i32_0 = arith.constant 0 : i32
    %c0_i32_1 = arith.constant 0 : i32
    %c0_i32_2 = arith.constant 0 : i32
    return %arg0, %c0_i32, %c0_i32_0, %c0_i32_1 : i32, i32, i32, i32
  }
  func.func @transform_1(%arg0: i32, %arg1: i32) -> (i32, i32, i32, i32) {
    %c0_i32 = arith.constant 0 : i32
    %c0_i32_0 = arith.constant 0 : i32
    %c0_i32_1 = arith.constant 0 : i32
    %c0_i32_2 = arith.constant 0 : i32
    %c0_i32_3 = arith.constant 0 : i32
    return %c0_i32, %c0_i32_0, %c0_i32_1, %c0_i32_2 : i32, i32, i32, i32
  }
  func.func @transform_2(%arg0: i32, %arg1: i32) -> (i32, i32) {
    %c0_i32 = arith.constant 0 : i32
    %c0_i32_0 = arith.constant 0 : i32
    %c0_i32_1 = arith.constant 0 : i32
    return %c0_i32, %c0_i32_0 : i32, i32
  }
  func.func @transform_3(%arg0: i32, %arg1: i32) -> (i32, i32, i32, i32) {
    %c0_i32 = arith.constant 0 : i32
    %c0_i32_0 = arith.constant 0 : i32
    %c0_i32_1 = arith.constant 0 : i32
    return %arg0, %arg1, %c0_i32, %c0_i32_0 : i32, i32, i32, i32
  }
}

</mosaic_0001>

<bundles_post_ra>
// kernel: spatial_path_forward.5
= control target key start
LH: loop header
LB: loop body
LE: loop exit
PB: predicated region body
PF: predicated region fallthrough
CT: control target
= control target key end

     0   :  { %s2038_s12 = smov 0   ;;  %s2040_s13 = smov 0   ;;  %s3240_s0 = inlined_call_operand.vmem [shape: f32[2,2,17,16,192], index: 0, kind: input, shape index: {}]   ;;  %s3241_s1 = inlined_call_operand.vmem [shape: f32[3,192,64], index: 1, kind: input, shape index: {}]   ;;  %s3242_s2 = inlined_call_operand.vmem [shape: f32[1,64], index: 2, kind: input, shape index: {}]   ;;  %s3243_s3 = inlined_call_operand.vmem [shape: f32[2,16,16,64], index: 3, kind: output, shape index: {}]  }
   0x1   :  { %s2042_s14 = smov 0  }
   0x2 LB: > { %s25_s15 = sadd.s32 1, %s2012_s13  ;;  %p1673_p0 = scmp.ge.s32.totalorder %s2016_s14, 1  ;;  %s2016_s14 = sphi %s2042_s14, %s13_s14   ;;  %s2012_s13 = sphi %s2040_s13, %s3351_s13   ;;  %s2008_s12 = sphi %s2038_s12, %s3350_s12  }
   0x3   : > { %p27_p1 = scmp.ge.s32.totalorder %s25_s15, 2  ;;  %p151_p2 = scmp.lt.s32.totalorder %s2016_s14, 3 }
   0x5   : > { %s3353_s15 = smov (%p27_p1, %s25_s15), 0  ;;  %p152_p3 = pnand %p1673_p0, %p151_p2 }
   0x7   : > { %155 = sbr.rel (%p152_p3) target bundleno = 555 (0x22b), region = 32 }
   0xc   : > { %v1756_v0 = vld [vmem:[%s3241_s1 + $0x138] sm:$0xff]  ;;  %p180_p4 = scmp.lt.s32.totalorder %s2008_s12, 1  ;;  %v1755_v3 = vld [vmem:[%s3241_s1 + $0x130] sm:$0xff]  ;;  %v1754_v6 = vld [vmem:[%s3241_s1 + $0x128] sm:$0xff]  ;;  %vm380_vm0 = vcmask 523264  }
   0xd   : > { %v279_v1 = vld [vmem:[%s3241_s1 + $0x78] sm:$0xff]  ;;  %477 = vmatpush.msra.mxu0 %v1756_v0  ;;  %v278_v4 = vld [vmem:[%s3241_s1 + $0x70] sm:$0xff]  ;;  %v277_v7 = vld [vmem:[%s3241_s1 + $0x68] sm:$0xff] }
   0xe   : > { %v2065_v2 = vld [vmem:[%s3241_s1 + $0xb8] sm:$0xff]  ;;  %799 = vmatpush.msra.mxu2 %v279_v1  ;;  %v2076_v5 = vld [vmem:[%s3241_s1 + $0xb0] sm:$0xff]  ;;  %v2088_v8 = vld [vmem:[%s3241_s1 + $0xa8] sm:$0xff]  ;;  %s3355_s12 = smov (!%p180_p4, %s2008_s12), 1 }
   0xf   : > { %1960 = vmatpush.msra.mxu3 %v2065_v2  ;;  %478 = vmatpush.msra.mxu0 %v1755_v3  ;;  %v2093_v9 = vld [vmem:[%s3241_s1 + $0x178] sm:$0xff]  ;;  %v1753_v10 = vld [vmem:[%s3241_s1 + $0x120] sm:$0xff]  ;;  %v2108_v12 = vld [vmem:[%s3241_s1 + $0x170] sm:$0xff]  ;;  %s1968_s4 = smul.u32 1088, %s3355_s12 }
  0x10   : > { %800 = vmatpush.msra.mxu2 %v278_v4  ;;  %1952 = vmatpush.msra.mxu1 %v2093_v9  ;;  %v276_v11 = vld [vmem:[%s3241_s1 + $0x60] sm:$0xff]  ;;  %v1752_v14 = vld [vmem:[%s3241_s1 + $0x118] sm:$0xff]  ;;  %v2126_v16 = vld [vmem:[%s3241_s1 + $0x168] sm:$0xff] }
  0x11   : > { %1961 = vmatpush.msra.mxu3 %v2076_v5  ;;  %479 = vmatpush.msra.mxu0 %v1754_v6  ;;  %v2113_v13 = vld [vmem:[%s3241_s1 + $0xa0] sm:$0xff]  ;;  %v275_v15 = vld [vmem:[%s3241_s1 + $0x58] sm:$0xff]  ;;  %v1751_v19 = vld [vmem:[%s3241_s1 + $0x110] sm:$0xff]  ;;  %s2173_s25 = scalar_lea.vmem %s3240_s0, %s1968_s4 }
  0x12   : > { %801 = vmatpush.msra.mxu2 %v277_v7  ;;  %1953 = vmatpush.msra.mxu1 %v2108_v12  ;;  %v2131_v17 = vld [vmem:[%s3241_s1 + $0x98] sm:$0xff]  ;;  %v2136_v18 = vld [vmem:[%s3241_s1 + $0x160] sm:$0xff]  ;;  %v274_v20 = vld [vmem:[%s3241_s1 + $0x50] sm:$0xff] }
  0x13   : > { %1962 = vmatpush.msra.mxu3 %v2088_v8  ;;  %480 = vmatpush.msra.mxu0 %v1753_v10  ;;  %v2150_v21 = vld [vmem:[%s3241_s1 + $0x90] sm:$0xff]  ;;  %v2155_v22 = vld [vmem:[%s3241_s1 + $0x158] sm:$0xff]  ;;  %v1750_v23 = vld [vmem:[%s3241_s1 + $0x108] sm:$0xff] }
  0x14   : > { %802 = vmatpush.msra.mxu2 %v276_v11  ;;  %1954 = vmatpush.msra.mxu1 %v2126_v16  ;;  %v273_v24 = vld [vmem:[%s3241_s1 + $0x48] sm:$0xff]  ;;  %v2178_v26 = vld [vmem:[%s3241_s1 + $0x150] sm:$0xff]  ;;  %v1749_v27 = vld [vmem:[%s3241_s1 + $0x100] sm:$0xff] }
  0x15   : > { %1963 = vmatpush.msra.mxu3 %v2113_v13  ;;  %481 = vmatpush.msra.mxu0 %v1752_v14  ;;  %v2168_v25 = vld [vmem:[%s3241_s1 + $0x88] sm:$0xff]  ;;  %v272_v28 = vld [vmem:[%s3241_s1 + $0x40] sm:$0xff]  ;;  %v2200_v31 = vld [vmem:[%s2173_s25 + $0xf8] sm:$0xff] }
  0x16   : > { %803 = vmatpush.msra.mxu2 %v275_v15  ;;  %1955 = vmatpush.msra.mxu1 %v2136_v18  ;;  %v2191_v29 = vld [vmem:[%s3241_s1 + $0x80] sm:$0xff]  ;;  %v2196_v30 = vld [vmem:[%s3241_s1 + $0x148] sm:$0xff]  ;;  %v1748_v32 = vld [vmem:[%s3241_s1 + $0xf8] sm:$0xff] }
  0x17   : > { %1964 = vmatpush.msra.mxu3 %v2131_v17  ;;  %482 = vmatpush.msra.mxu0 %v1751_v19  ;;  %v1916_v33 = vld [vmem:[%s3241_s1 + $0x238] sm:$0xff]  ;;  %v1747_v35 = vld [vmem:[%s3241_s1 + $0xf0] sm:$0xff]  ;;  %v2220_v36 = vld [vmem:[%s3241_s1 + $0x140] sm:$0xff] }
  0x18   : > { %804 = vmatpush.msra.mxu2 %v274_v20  ;;  %1956 = vmatpush.msra.mxu1 %v2155_v22  ;;  %v271_v34 = vld [vmem:[%s3241_s1 + $0x38] sm:$0xff]  ;;  %v270_v37 = vld [vmem:[%s3241_s1 + $0x30] sm:$0xff]  ;;  %v1746_v39 = vld [vmem:[%s3241_s1 + $0xe8] sm:$0xff] }
  0x19   : > { %1965 = vmatpush.msra.mxu3 %v2150_v21  ;;  %483 = vmatpush.msra.mxu0 %v1750_v23  ;;  %v1708_v38 = vld [vmem:[%s2173_s25 + $0x318] sm:$0xff]  ;;  %v269_v41 = vld [vmem:[%s3241_s1 + $0x28] sm:$0xff]  ;;  %v1915_v42 = vld [vmem:[%s3241_s1 + $0x230] sm:$0xff] }
  0x1a   : > { %805 = vmatpush.msra.mxu2 %v273_v24  ;;  %1957 = vmatpush.msra.mxu1 %v2178_v26  ;;  %v1908_v40 = vld [vmem:[%s3241_s1 + $0x1f8] sm:$0xff]  ;;  %v1745_v43 = vld [vmem:[%s3241_s1 + $0xe0] sm:$0xff]  ;;  %v1907_v44 = vld [vmem:[%s3241_s1 + $0x1f0] sm:$0xff] }
  0x1b   : > { %1966 = vmatpush.msra.mxu3 %v2168_v25  ;;  %484 = vmatpush.msra.mxu0 %v1749_v27  ;;  %v268_v45 = vld [vmem:[%s3241_s1 + $0x20] sm:$0xff]  ;;  %v2252_v46 = vld [vmem:[%s2173_s25 + $0x108] sm:$0xff]  ;;  %v1744_v47 = vld [vmem:[%s3241_s1 + $0xd8] sm:$0xff] }
  0x1c   : > { %806 = vmatpush.msra.mxu2 %v272_v28  ;;  %1958 = vmatpush.msra.mxu1 %v2196_v30  ;;  %v267_v48 = vld [vmem:[%s3241_s1 + $0x18] sm:$0xff]  ;;  %v1906_v49 = vld [vmem:[%s3241_s1 + $0x1e8] sm:$0xff]  ;;  %v1743_v51 = vld [vmem:[%s3241_s1 + $0xd0] sm:$0xff] }
  0x1d   : > { %1967 = vmatpush.msra.mxu3 %v2191_v29  ;;  %485 = vmatpush.msra.mxu0 %v1748_v32  ;;  %v1914_v50 = vld [vmem:[%s3241_s1 + $0x228] sm:$0xff]  ;;  %v266_v52 = vld [vmem:[%s3241_s1 + $0x10] sm:$0xff]  ;;  %v1905_v55 = vld [vmem:[%s3241_s1 + $0x1e0] sm:$0xff] }
  0x1e   : > { %1812 = vmatmul.msk.f32.vlgmr.msra.gmra.mxu3 %vm380_vm0, %v2200_v31  ;;  %807 = vmatpush.msra.mxu2 %v271_v34  ;;  %v1710_v53 = vld [vmem:[%s2173_s25 + $0x328] sm:$0xff]  ;;  %v1741_v57 = vld [vmem:[%s3241_s1 + $0xc0] sm:$0xff]  ;;  %v1904_v58 = vld [vmem:[%s3241_s1 + $0x1d8] sm:$0xff] }
  0x1f   : > { %1335 = vmatpush.msrb.mxu3 %v1916_v33  ;;  %486 = vmatpush.msra.mxu0 %v1747_v35  ;;  %v1742_v54 = vld [vmem:[%s3241_s1 + $0xc8] sm:$0xff]  ;;  %v264_v59 = vld [vmem:[%s3241_s1] sm:$0xff]  ;;  %v2297_v62 = vld [vmem:[%s2173_s25 + $0x118] sm:$0xff] }
  0x20   : > { %1959 = vmatpush.msra.mxu1 %v2220_v36  ;;  %808 = vmatpush.msra.mxu2 %v270_v37  ;;  %v265_v56 = vld [vmem:[%s3241_s1 + $0x8] sm:$0xff]  ;;  %v1677_v60 = vld [vmem:[%s2173_s25 + $0x220] sm:$0xff]  ;;  %v1712_v63 = vld [vmem:[%s2173_s25 + $0x338] sm:$0xff] }
  0x21   : > { %1780 = vmatmul.msk.f32.vlgmr.msra.gmra.mxu1 %vm380_vm0, %v1708_v38  ;;  %487 = vmatpush.msra.mxu0 %v1746_v39  ;;  %v200_v61 = vld [vmem:[%s2173_s25] sm:$0xff]  ;;  %v1903_v0 = vld [vmem:[%s3241_s1 + $0x1d0] sm:$0xff]  ;;  %v2316_v6 = vld [vmem:[%s2173_s25 + $0x128] sm:$0xff] }
  0x22   : > { %1214 = vmatpush.msrb.mxu1 %v1908_v40  ;;  %809 = vmatpush.msra.mxu2 %v269_v41  ;;  %v1913_v1 = vld [vmem:[%s3241_s1 + $0x220] sm:$0xff]  ;;  %v1679_v3 = vld [vmem:[%s2173_s25 + $0x230] sm:$0xff]  ;;  %v1716_v10 = vld [vmem:[%s2173_s25 + $0x358] sm:$0xff] }
  0x23   : > { %1336 = vmatpush.msrb.mxu3 %v1915_v42  ;;  %488 = vmatpush.msra.mxu0 %v1745_v43  ;;  %v202_v4 = vld [vmem:[%s2173_s25 + $0x10] sm:$0xff]  ;;  %v1681_v7 = vld [vmem:[%s2173_s25 + $0x240] sm:$0xff]  ;;  %v2360_v15 = vld [vmem:[%s2173_s25 + $0x148] sm:$0xff] }
  0x24   : > { %1215 = vmatpush.msrb.mxu1 %v1907_v44  ;;  %810 = vmatpush.msra.mxu2 %v268_v45  ;;  %v1901_v11 = vld [vmem:[%s3241_s1 + $0x1c0] sm:$0xff]  ;;  %v2357_v14 = vld [vmem:[%s2173_s25 + $0x30] sm:$0xff]  ;;  %v2375_v20 = vld [vmem:[%s2173_s25 + $0x158] sm:$0xff] }
  0x25   : > { %1337 = vmatpush.msrb.mxu3 %v1914_v50  ;;  %489 = vmatpush.msra.mxu0 %v1744_v47  ;;  %v2372_v19 = vld [vmem:[%s2173_s25 + $0x40] sm:$0xff]  ;;  %v1911_v23 = vld [vmem:[%s3241_s1 + $0x210] sm:$0xff]  ;;  %v1722_v27 = vld [vmem:[%s2173_s25 + $0x388] sm:$0xff] }
  0x26   : > { %1813 = vmatmul.msk.f32.gmra.mxu3 %vm380_vm0, %v2252_v46  ;;  %811 = vmatpush.msra.mxu2 %v267_v48  ;;  %v1687_v24 = vld [vmem:[%s2173_s25 + $0x270] sm:$0xff]  ;;  %v1898_v28 = vld [vmem:[%s3241_s1 + $0x1a8] sm:$0xff]  ;;  %v2408_v32 = vld [vmem:[%s2173_s25 + $0x178] sm:$0xff] }
  0x27   : > { %1216 = vmatpush.msrb.mxu1 %v1906_v49  ;;  %490 = vmatpush.msra.mxu0 %v1743_v51  ;;  %v1724_v33 = vld [vmem:[%s2173_s25 + $0x398] sm:$0xff]  ;;  %v1897_v34 = vld [vmem:[%s3241_s1 + $0x1a0] sm:$0xff]  ;;  %v1910_v35 = vld [vmem:[%s3241_s1 + $0x208] sm:$0xff] }
  0x28   : > { %812 = vmatpush.msra.mxu2 %v266_v52  ;;  %1338 = vmatpush.msrb.mxu3 %v1913_v1  ;;  %v2423_v37 = vld [vmem:[%s2173_s25 + $0x70] sm:$0xff]  ;;  %v2426_v38 = vld [vmem:[%s2173_s25 + $0x188] sm:$0xff]  ;;  %v1896_v40 = vld [vmem:[%s3241_s1 + $0x198] sm:$0xff] }
  0x29   : > { %1781 = vmatmul.msk.f32.gmra.mxu1 %vm380_vm0, %v1710_v53  ;;  %491 = vmatpush.msra.mxu0 %v1742_v54  ;;  %v1726_v39 = vld [vmem:[%s2173_s25 + $0x3a8] sm:$0xff]  ;;  %v1693_v41 = vld [vmem:[%s2173_s25 + $0x2a0] sm:$0xff]  ;;  %v2441_v43 = vld [vmem:[%s2173_s25 + $0x198] sm:$0xff] }
  0x2a   : > { %1217 = vmatpush.msrb.mxu1 %v1905_v55  ;;  %813 = vmatpush.msra.mxu2 %v265_v56  ;;  %v2438_v42 = vld [vmem:[%s2173_s25 + $0x80] sm:$0xff]  ;;  %v1728_v44 = vld [vmem:[%s2173_s25 + $0x3b8] sm:$0xff]  ;;  %v1895_v45 = vld [vmem:[%s3241_s1 + $0x190] sm:$0xff] }
  0x2b   : > { %492 = vmatpush.msra.mxu0 %v1741_v57  ;;  %v1909_v47 = vld [vmem:[%s3241_s1 + $0x200] sm:$0xff]  ;;  %v1695_v48 = vld [vmem:[%s2173_s25 + $0x2b0] sm:$0xff]  ;;  %v2459_v50 = vld [vmem:[%s2173_s25 + $0x1a8] sm:$0xff] }
  0x2c   : > { %1218 = vmatpush.msrb.mxu1 %v1904_v58  ;;  %814 = vmatpush.msra.mxu2 %v264_v59  ;;  %v2456_v49 = vld [vmem:[%s2173_s25 + $0x90] sm:$0xff]  ;;  %v1730_v51 = vld [vmem:[%s2173_s25 + $0x3c8] sm:$0xff]  ;;  %v1697_v53 = vld [vmem:[%s2173_s25 + $0x2c0] sm:$0xff] }
  0x2d   : > { %493 = vmatmul.f32.vlgmr.msra.gmra.mxu0 %v1677_v60  ;;  %815 = vmatmul.f32.vlgmr.msra.gmra.mxu2 %v200_v61  ;;  %v1894_v52 = vld [vmem:[%s3241_s1 + $0x188] sm:$0xff]  ;;  %v2471_v54 = vld [vmem:[%s2173_s25 + $0xa0] sm:$0xff]  ;;  %v2474_v55 = vld [vmem:[%s2173_s25 + $0x1b8] sm:$0xff] }
  0x2e   : > { %1814 = vmatmul.msk.f32.gmra.mxu3 %vm380_vm0, %v2297_v62  ;;  %920 = vmatpush.msrb.mxu2 %v2065_v2  ;;  %v1714_v2 = vld [vmem:[%s2173_s25 + $0x348] sm:$0xff]  ;;  %v1732_v56 = vld [vmem:[%s2173_s25 + $0x3d8] sm:$0xff]  ;;  %v1893_v57 = vld [vmem:[%s3241_s1 + $0x180] sm:$0xff] }
  0x2f   : > { %598 = vmatpush.msrb.mxu0 %v2093_v9  ;;  %1219 = vmatpush.msrb.mxu1 %v1903_v0  ;;  %v2337_v9 = vld [vmem:[%s2173_s25 + $0x138] sm:$0xff]  ;;  %v1699_v58 = vld [vmem:[%s2173_s25 + $0x2d0] sm:$0xff]  ;;  %v2489_v60 = vld [vmem:[%s2173_s25 + $0x1c8] sm:$0xff] }
  0x30   : > { %921 = vmatpush.msrb.mxu2 %v2076_v5  ;;  %v1902_v5 = vld [vmem:[%s3241_s1 + $0x1c8] sm:$0xff]  ;;  %v2486_v59 = vld [vmem:[%s2173_s25 + $0xb0] sm:$0xff]  ;;  %v2498_v0 = vld [vmem:[%s2173_s25 + $0xc0] sm:$0xff] }
  0x31   : > { %1782 = vmatmul.msk.f32.gmra.mxu1 %vm380_vm0, %v1712_v63  ;;  %599 = vmatpush.msrb.mxu0 %v2108_v12  ;;  %v1912_v12 = vld [vmem:[%s3241_s1 + $0x218] sm:$0xff]  ;;  %v1734_v61 = vld [vmem:[%s2173_s25 + $0x3e8] sm:$0xff]  ;;  %v1701_v63 = vld [vmem:[%s2173_s25 + $0x2e0] sm:$0xff] }
  0x32   : > { %922 = vmatpush.msrb.mxu2 %v2088_v8  ;;  %1220 = vmatpush.msrb.mxu1 %v1902_v5  ;;  %v2334_v8 = vld [vmem:[%s2173_s25 + $0x20] sm:$0xff]  ;;  %v2501_v1 = vld [vmem:[%s2173_s25 + $0x1d8] sm:$0xff]  ;;  %v2513_v5 = vld [vmem:[%s2173_s25 + $0x1e8] sm:$0xff] }
  0x33   : > { %600 = vmatpush.msrb.mxu0 %v2126_v16  ;;  %1339 = vmatpush.msrb.mxu3 %v1912_v12  ;;  %v1718_v16 = vld [vmem:[%s2173_s25 + $0x368] sm:$0xff]  ;;  %v2525_v12 = vld [vmem:[%s2173_s25 + $0x1f8] sm:$0xff] }
  0x34   : > { %923 = vmatpush.msrb.mxu2 %v2113_v13  ;;  %1221 = vmatpush.msrb.mxu1 %v1901_v11  ;;  %v1683_v13 = vld [vmem:[%s2173_s25 + $0x250] sm:$0xff]  ;;  %v2522_v11 = vld [vmem:[%s2173_s25 + $0xe0] sm:$0xff] }
  0x35   : > { %496 = vmatmul.f32.gmra.mxu0 %v1679_v3  ;;  %818 = vmatmul.f32.gmra.mxu2 %v202_v4  ;;  %v1736_v3 = vld [vmem:[%s2173_s25 + $0x3f8] sm:$0xff]  ;;  %v1703_v4 = vld [vmem:[%s2173_s25 + $0x2f0] sm:$0xff] }
  0x36   : > { %1815 = vmatmul.msk.f32.gmra.mxu3 %vm380_vm0, %v2316_v6  ;;  %601 = vmatpush.msrb.mxu0 %v2136_v18  ;;  %v1685_v18 = vld [vmem:[%s2173_s25 + $0x260] sm:$0xff] }
  0x37   : > { %924 = vmatpush.msrb.mxu2 %v2131_v17  ;;  %v1900_v17 = vld [vmem:[%s3241_s1 + $0x1b8] sm:$0xff]  ;;  %1340 = vmatpush.msrb.mxu3 %v1911_v23 }
  0x38   : > { %602 = vmatpush.msrb.mxu0 %v2155_v22  ;;  %1222 = vmatpush.msrb.mxu1 %v1900_v17  ;;  %v1899_v22 = vld [vmem:[%s3241_s1 + $0x1b0] sm:$0xff] }
  0x39   : > { %1783 = vmatmul.msk.f32.gmra.mxu1 %vm380_vm0, %v1714_v2  ;;  %925 = vmatpush.msrb.mxu2 %v2150_v21  ;;  %v1720_v21 = vld [vmem:[%s2173_s25 + $0x378] sm:$0xff]  ;;  %v2510_v2 = vld [vmem:[%s2173_s25 + $0xd0] sm:$0xff] }
  0x3a   : > { %603 = vmatpush.msrb.mxu0 %v2178_v26  ;;  %1223 = vmatpush.msrb.mxu1 %v1899_v22  ;;  %v2393_v26 = vld [vmem:[%s2173_s25 + $0x168] sm:$0xff] }
  0x3b   : > { %926 = vmatpush.msrb.mxu2 %v2168_v25  ;;  %v2390_v25 = vld [vmem:[%s2173_s25 + $0x50] sm:$0xff]  ;;  %1341 = vmatpush.msrb.mxu3 %v1910_v35  ;;  %v2541_v22 = vld [vmem:[%s2173_s25 + $0x28] sm:$0xff] }
  0x3c   : > { %604 = vmatpush.msrb.mxu0 %v2196_v30  ;;  %1224 = vmatpush.msrb.mxu1 %v1898_v28  ;;  %v2405_v30 = vld [vmem:[%s2173_s25 + $0x60] sm:$0xff] }
  0x3d   : > { %499 = vmatmul.f32.gmra.mxu0 %v1681_v7  ;;  %821 = vmatmul.f32.gmra.mxu2 %v2334_v8  ;;  %v1738_v7 = vld [vmem:[%s2173_s25 + $0x408] sm:$0xff]  ;;  %v1709_v28 = vld [vmem:[%s2173_s25 + $0x320] sm:$0xff] }
  0x3e   : > { %1816 = vmatmul.msk.f32.gmra.mxu3 %vm380_vm0, %v2337_v9  ;;  %927 = vmatpush.msrb.mxu2 %v2191_v29  ;;  %v1689_v29 = vld [vmem:[%s2173_s25 + $0x280] sm:$0xff] }
  0x3f   : > { %605 = vmatpush.msrb.mxu0 %v2220_v36  ;;  %1225 = vmatpush.msrb.mxu1 %v1897_v34  ;;  %v1691_v36 = vld [vmem:[%s2173_s25 + $0x290] sm:$0xff] }
  0x40   : > { %1342 = vmatpush.msrb.mxu3 %v1909_v47 }
  0x41   : > { %1784 = vmatmul.msk.f32.gmra.mxu1 %vm380_vm0, %v1716_v10  ;;  %v1705_v10 = vld [vmem:[%s2173_s25 + $0x300] sm:$0xff] }
  0x42   : > { %1226 = vmatpush.msrb.mxu1 %v1896_v40  ;;  %v2574_v40 = vld [vmem:[%s2173_s25 + $0x110] sm:$0xff] }
  0x44   : > { %1227 = vmatpush.msrb.mxu1 %v1895_v45 }
  0x45   : > { %502 = vmatmul.f32.gmra.mxu0 %v1683_v13  ;;  %824 = vmatmul.f32.gmra.mxu2 %v2357_v14 }
  0x46   : > { %1817 = vmatmul.msk.f32.gmra.mxu3 %vm380_vm0, %v2360_v15  ;;  %1228 = vmatpush.msrb.mxu1 %v1894_v52  ;;  %v2596_v52 = vld [vmem:[%s2173_s25 + $0x58] sm:$0xff] }
  0x48   : > { %1229 = vmatpush.msrb.mxu1 %v1893_v57 }
  0x49   : > { %1785 = vmatmul.msk.f32.gmra.mxu1 %vm380_vm0, %v1718_v16  ;;  %v1740_v16 = vld [vmem:[%s2173_s25 + $0x418] sm:$0xff] }
  0x4d   : > { %505 = vmatmul.f32.gmra.mxu0 %v1685_v18  ;;  %827 = vmatmul.f32.gmra.mxu2 %v2372_v19  ;;  %v1707_v18 = vld [vmem:[%s2173_s25 + $0x310] sm:$0xff] }
  0x4e   : > { %1818 = vmatmul.msk.f32.gmra.mxu3 %vm380_vm0, %v2375_v20 }
  0x51   : > { %1786 = vmatmul.msk.f32.gmra.mxu1 %vm380_vm0, %v1720_v21  ;;  %v2538_v21 = vld [vmem:[%s2173_s25 + $0xf0] sm:$0xff] }
  0x55   : > { %508 = vmatmul.f32.gmra.mxu0 %v1687_v24  ;;  %830 = vmatmul.f32.gmra.mxu2 %v2390_v25 }
  0x56   : > { %1819 = vmatmul.msk.f32.gmra.mxu3 %vm380_vm0, %v2393_v26 }
  0x59   : > { %1787 = vmatmul.msk.f32.gmra.mxu1 %vm380_vm0, %v1722_v27 }
  0x5d   : > { %511 = vmatmul.f32.gmra.mxu0 %v1689_v29  ;;  %833 = vmatmul.f32.gmra.mxu2 %v2405_v30  ;;  %v2555_v29 = vld [vmem:[%s2173_s25 + $0x100] sm:$0xff] }
  0x5e   : > { %1820 = vmatmul.msk.f32.gmra.mxu3 %vm380_vm0, %v2408_v32 }
  0x61   : > { %1788 = vmatmul.msk.f32.gmra.mxu1 %vm380_vm0, %v1724_v33  ;;  %v2558_v33 = vld [vmem:[%s2173_s25 + $0x38] sm:$0xff] }
  0x65   : > { %514 = vmatmul.f32.gmra.mxu0 %v1691_v36  ;;  %836 = vmatmul.f32.gmra.mxu2 %v2423_v37 }
  0x66   : > { %1821 = vmatmul.msk.f32.gmra.mxu3 %vm380_vm0, %v2426_v38 }
  0x69   : > { %1789 = vmatmul.msk.f32.gmra.mxu1 %vm380_vm0, %v1726_v39  ;;  %v1711_v39 = vld [vmem:[%s2173_s25 + $0x330] sm:$0xff] }
  0x6d   : > { %517 = vmatmul.f32.gmra.mxu0 %v1693_v41  ;;  %839 = vmatmul.f32.gmra.mxu2 %v2438_v42  ;;  %v2577_v41 = vld [vmem:[%s2173_s25 + $0x48] sm:$0xff] }
  0x6e   : > { %1822 = vmatmul.msk.f32.gmra.mxu3 %vm380_vm0, %v2441_v43 }
  0x71   : > { %1790 = vmatmul.msk.f32.gmra.mxu1 %vm380_vm0, %v1728_v44 }
  0x75   : > { %520 = vmatmul.f32.gmra.mxu0 %v1695_v48  ;;  %842 = vmatmul.f32.gmra.mxu2 %v2456_v49  ;;  %v1713_v48 = vld [vmem:[%s2173_s25 + $0x340] sm:$0xff] }
  0x76   : > { %1823 = vmatmul.msk.f32.gmra.mxu3 %vm380_vm0, %v2459_v50 }
  0x79   : > { %1791 = vmatmul.msk.f32.gmra.mxu1 %vm380_vm0, %v1730_v51  ;;  %v2593_v51 = vld [vmem:[%s2173_s25 + $0x120] sm:$0xff] }
  0x7d   : > { %523 = vmatmul.f32.gmra.mxu0 %v1697_v53  ;;  %845 = vmatmul.f32.gmra.mxu2 %v2471_v54 }
  0x7e   : > { %1824 = vmatmul.msk.f32.gmra.mxu3 %vm380_vm0, %v2474_v55 }
  0x81   : > { %1792 = vmatmul.msk.f32.gmra.mxu1 %vm380_vm0, %v1732_v56 }
  0x85   : > { %526 = vmatmul.f32.gmra.mxu0 %v1699_v58  ;;  %848 = vmatmul.f32.gmra.mxu2 %v2486_v59  ;;  %v1715_v58 = vld [vmem:[%s2173_s25 + $0x350] sm:$0xff] }
  0x86   : > { %1825 = vmatmul.msk.f32.gmra.mxu3 %vm380_vm0, %v2489_v60 }
  0x89   : > { %1793 = vmatmul.msk.f32.gmra.mxu1 %vm380_vm0, %v1734_v61  ;;  %v2612_v61 = vld [vmem:[%s2173_s25 + $0x130] sm:$0xff] }
  0x8d   : > { %529 = vmatmul.f32.gmra.mxu0 %v1701_v63  ;;  %851 = vmatmul.f32.gmra.mxu2 %v2498_v0  ;;  %v2615_v63 = vld [vmem:[%s2173_s25 + $0x68] sm:$0xff] }
  0x8e   : > { %1826 = vmatmul.msk.f32.gmra.mxu3 %vm380_vm0, %v2501_v1 }
  0x91   : > { %1794 = vmatmul.msk.f32.gmra.mxu1 %vm380_vm0, %v1736_v3 }
  0x95   : > { %532 = vmatmul.f32.gmra.mxu0 %v1703_v4  ;;  %854 = vmatmul.f32.gmra.mxu2 %v2510_v2 }
  0x96   : > { %1827 = vmatmul.msk.f32.gmra.mxu3 %vm380_vm0, %v2513_v5 }
  0x99   : > { %1795 = vmatmul.msk.f32.gmra.mxu1 %vm380_vm0, %v1738_v7 }
  0x9d   : > { %535 = vmatmul.f32.gmra.mxu0 %v1705_v10  ;;  %857 = vmatmul.f32.gmra.mxu2 %v2522_v11  ;;  %v1717_v10 = vld [vmem:[%s2173_s25 + $0x360] sm:$0xff] }
  0x9e   : > { %1828 = vmatmul.msk.f32.gmra.mxu3 %vm380_vm0, %v2525_v12  ;;  %v2530_v13 = vpop.f32.mrf.mxu1 }
  0xa1   : > { %v2533_v17 = vpop.f32.mrf.mxu3  ;;  %1796 = vmatmul.msk.f32.gmra.mxu1 %vm380_vm0, %v1740_v16  ;;  %v2631_v16 = vld [vmem:[%s2173_s25 + $0x140] sm:$0xff] }
  0xa5   : > { %538 = vmatmul.f32.gmra.mxu0 %v1707_v18  ;;  %860 = vmatmul.f32.gmra.mxu2 %v2538_v21  ;;  %v2634_v18 = vld [vmem:[%s2173_s25 + $0x78] sm:$0xff] }
  0xa6   : > { %1917 = vmatmul.msk.f32.vlgmr.msrb.gmra.mxu3 %vm380_vm0, %v2541_v22  ;;  %v2546_v23 = vpop.f32.mrf.mxu1 }
  0xa9   : > { %v2548_v24 = vpop.f32.mrf.mxu3  ;;  %1230 = vmatmul.f32.vlgmr.msrb.gmra.mxu1 %v2334_v8 }
  0xaa   : > { %v2551_v27 = vpop.f32.mrf.mxu0 }
  0xab   : > { %3244 = vst [vmem:[#allocation2_spill] sm:$0xff] %v2551_v27  ;;  %v201_v27 = vld [vmem:[%s2173_s25 + $0x8] sm:$0xff] }
  0xad   : > { %541 = vmatmul.f32.gmra.mxu0 %v1709_v28  ;;  %863 = vmatmul.f32.gmra.mxu2 %v2555_v29 }
  0xae   : > { %1918 = vmatmul.msk.f32.gmra.mxu3 %vm380_vm0, %v2558_v33  ;;  %v2563_v34 = vpop.f32.mrf.mxu1 }
  0xaf   : > { %3245 = vst [vmem:[#allocation3_spill] sm:$0xff] %v2563_v34 }
  0xb0   : > { %v2565_v35 = vpop.f32.mrf.mxu2 }
  0xb1   : > { %3246 = vst [vmem:[#allocation4_spill] sm:$0xff] %v2565_v35  ;;  %v2567_v8 = vpop.f32.mrf.mxu3  ;;  %1233 = vmatmul.f32.gmra.mxu1 %v2357_v14  ;;  %v1678_v35 = vld [vmem:[%s2173_s25 + $0x228] sm:$0xff] }
  0xb2   : > { %3247 = vst [vmem:[#allocation5_spill] sm:$0xff] %v2567_v8  ;;  %v2570_v36 = vpop.f32.mrf.mxu0  ;;  %v2799_v8 = vld [vmem:[%s2173_s25 + $0x1d0] sm:$0xff] }
  0xb3   : > { %3248 = vst [vmem:[#allocation6_spill] sm:$0xff] %v2570_v36  ;;  %v1733_v36 = vld [vmem:[%s2173_s25 + $0x3e0] sm:$0xff] }
  0xb5   : > { %544 = vmatmul.f32.gmra.mxu0 %v1711_v39  ;;  %866 = vmatmul.f32.gmra.mxu2 %v2574_v40 }
  0xb6   : > { %1919 = vmatmul.msk.f32.gmra.mxu3 %vm380_vm0, %v2577_v41  ;;  %v2582_v44 = vpop.f32.mrf.mxu1 }
  0xb7   : > { %3249 = vst [vmem:[#allocation7_spill] sm:$0xff] %v2582_v44  ;;  %v2783_v44 = vld [vmem:[%s2173_s25 + $0x1c0] sm:$0xff] }
  0xb8   : > { %v2584_v45 = vpop.f32.mrf.mxu2 }
  0xb9   : > { %3250 = vst [vmem:[#allocation8_spill] sm:$0xff] %v2584_v45  ;;  %v2586_v14 = vpop.f32.mrf.mxu3  ;;  %1236 = vmatmul.f32.gmra.mxu1 %v2372_v19  ;;  %v2764_v45 = vld [vmem:[%s2173_s25 + $0x1b0] sm:$0xff] }
  0xba   : > { %3251 = vst [vmem:[#allocation9_spill] sm:$0xff] %v2586_v14  ;;  %v2589_v47 = vpop.f32.mrf.mxu0  ;;  %v1731_v14 = vld [vmem:[%s2173_s25 + $0x3d0] sm:$0xff] }
  0xbb   : > { %3252 = vst [vmem:[#allocation10_spill] sm:$0xff] %v2589_v47  ;;  %v1729_v47 = vld [vmem:[%s2173_s25 + $0x3c0] sm:$0xff] }
  0xbd   : > { %547 = vmatmul.f32.gmra.mxu0 %v1713_v48  ;;  %869 = vmatmul.f32.gmra.mxu2 %v2593_v51 }
  0xbe   : > { %1920 = vmatmul.msk.f32.gmra.mxu3 %vm380_vm0, %v2596_v52  ;;  %v2601_v53 = vpop.f32.mrf.mxu1 }
  0xbf   : > { %3253 = vst [vmem:[#allocation11_spill] sm:$0xff] %v2601_v53  ;;  %v2748_v53 = vld [vmem:[%s2173_s25 + $0xd8] sm:$0xff] }
  0xc0   : > { %v2603_v56 = vpop.f32.mrf.mxu2 }
  0xc1   : > { %3254 = vst [vmem:[#allocation12_spill] sm:$0xff] %v2603_v56  ;;  %v2605_v19 = vpop.f32.mrf.mxu3  ;;  %1239 = vmatmul.f32.gmra.mxu1 %v2390_v25  ;;  %v2729_v56 = vld [vmem:[%s2173_s25 + $0xc8] sm:$0xff] }
  0xc2   : > { %3255 = vst [vmem:[#allocation13_spill] sm:$0xff] %v2605_v19  ;;  %v2608_v57 = vpop.f32.mrf.mxu0  ;;  %v1727_v19 = vld [vmem:[%s2173_s25 + $0x3b0] sm:$0xff] }
  0xc3   : > { %3256 = vst [vmem:[#allocation14_spill] sm:$0xff] %v2608_v57  ;;  %v1725_v57 = vld [vmem:[%s2173_s25 + $0x3a0] sm:$0xff] }
  0xc5   : > { %550 = vmatmul.f32.gmra.mxu0 %v1715_v58  ;;  %872 = vmatmul.f32.gmra.mxu2 %v2612_v61  ;;  %v1719_v58 = vld [vmem:[%s2173_s25 + $0x370] sm:$0xff] }
  0xc6   : > { %1921 = vmatmul.msk.f32.gmra.mxu3 %vm380_vm0, %v2615_v63  ;;  %v2620_v3 = vpop.f32.mrf.mxu1 }
  0xc7   : > { %3257 = vst [vmem:[#allocation15_spill] sm:$0xff] %v2620_v3  ;;  %v2710_v3 = vld [vmem:[%s2173_s25 + $0xb8] sm:$0xff] }
  0xc8   : > { %v2622_v4 = vpop.f32.mrf.mxu2 }
  0xc9   : > { %3258 = vst [vmem:[#allocation16_spill] sm:$0xff] %v2622_v4  ;;  %v2624_v25 = vpop.f32.mrf.mxu3  ;;  %1242 = vmatmul.f32.gmra.mxu1 %v2405_v30  ;;  %v2691_v4 = vld [vmem:[%s2173_s25 + $0xa8] sm:$0xff] }
  0xca   : > { %3259 = vst [vmem:[#allocation17_spill] sm:$0xff] %v2624_v25  ;;  %v2627_v7 = vpop.f32.mrf.mxu0  ;;  %v2672_v25 = vld [vmem:[%s2173_s25 + $0x98] sm:$0xff] }
  0xcb   : > { %3260 = vst [vmem:[#allocation18_spill] sm:$0xff] %v2627_v7  ;;  %v2653_v7 = vld [vmem:[%s2173_s25 + $0x88] sm:$0xff] }
  0xcd   : > { %553 = vmatmul.f32.gmra.mxu0 %v1717_v10  ;;  %875 = vmatmul.f32.gmra.mxu2 %v2631_v16  ;;  %v2650_v10 = vld [vmem:[%s2173_s25 + $0x150] sm:$0xff] }
  0xce   : > { %1922 = vmatmul.msk.f32.gmra.mxu3 %vm380_vm0, %v2634_v18  ;;  %v2639_v28 = vpop.f32.mrf.mxu1 }
  0xcf   : > { %3261 = vst [vmem:[#allocation19_spill] sm:$0xff] %v2639_v28  ;;  %v1721_v28 = vld [vmem:[%s2173_s25 + $0x380] sm:$0xff] }
  0xd0   : > { %v2641_v39 = vpop.f32.mrf.mxu2 }
  0xd1   : > { %3262 = vst [vmem:[#allocation20_spill] sm:$0xff] %v2641_v39  ;;  %v2643_v30 = vpop.f32.mrf.mxu3  ;;  %1245 = vmatmul.f32.gmra.mxu1 %v2423_v37 }
  0xd2   : > { %3263 = vst [vmem:[#allocation21_spill] sm:$0xff] %v2643_v30  ;;  %v2646_v48 = vpop.f32.mrf.mxu0 }
  0xd3   : > { %3264 = vst [vmem:[#allocation22_spill] sm:$0xff] %v2646_v48 }
  0xd5   : > { %556 = vmatmul.f32.gmra.mxu0 %v1719_v58  ;;  %878 = vmatmul.f32.gmra.mxu2 %v2650_v10  ;;  %v2669_v58 = vld [vmem:[%s2173_s25 + $0x160] sm:$0xff] }
  0xd6   : > { %1923 = vmatmul.msk.f32.gmra.mxu3 %vm380_vm0, %v2653_v7  ;;  %v2658_v39 = vpop.f32.mrf.mxu1 }
  0xd7   : > { %3265 = vst [vmem:[#allocation23_spill] sm:$0xff] %v2658_v39  ;;  %v1723_v39 = vld [vmem:[%s2173_s25 + $0x390] sm:$0xff] }
  0xd8   : > { %v2660_v30 = vpop.f32.mrf.mxu2 }
  0xd9   : > { %3266 = vst [vmem:[#allocation24_spill] sm:$0xff] %v2660_v30  ;;  %v2662_v37 = vpop.f32.mrf.mxu3  ;;  %1248 = vmatmul.f32.gmra.mxu1 %v2438_v42 }
  0xda   : > { %3267 = vst [vmem:[#allocation25_spill] sm:$0xff] %v2662_v37  ;;  %v2665_v48 = vpop.f32.mrf.mxu0 }
  0xdb   : > { %3268 = vst [vmem:[#allocation26_spill] sm:$0xff] %v2665_v48 }
  0xdd   : > { %559 = vmatmul.f32.gmra.mxu0 %v1721_v28  ;;  %881 = vmatmul.f32.gmra.mxu2 %v2669_v58  ;;  %v2688_v28 = vld [vmem:[%s2173_s25 + $0x170] sm:$0xff] }
  0xde   : > { %1924 = vmatmul.msk.f32.gmra.mxu3 %vm380_vm0, %v2672_v25  ;;  %v2677_v30 = vpop.f32.mrf.mxu1 }
  0xe0   : > { %v2679_v37 = vpop.f32.mrf.mxu2 }
  0xe1   : > { %3269 = vst [vmem:[#allocation27_spill] sm:$0xff] %v2679_v37  ;;  %v2681_v42 = vpop.f32.mrf.mxu3  ;;  %1251 = vmatmul.f32.gmra.mxu1 %v2456_v49 }
  0xe2   : > { %3270 = vst [vmem:[#allocation28_spill] sm:$0xff] %v2681_v42  ;;  %v2684_v48 = vpop.f32.mrf.mxu0 }
  0xe3   : > { %3271 = vst [vmem:[#allocation29_spill] sm:$0xff] %v2684_v48 }
  0xe5   : > { %562 = vmatmul.f32.gmra.mxu0 %v1723_v39  ;;  %884 = vmatmul.f32.gmra.mxu2 %v2688_v28  ;;  %v2707_v39 = vld [vmem:[%s2173_s25 + $0x180] sm:$0xff] }
  0xe6   : > { %1925 = vmatmul.msk.f32.gmra.mxu3 %vm380_vm0, %v2691_v4  ;;  %v2696_v37 = vpop.f32.mrf.mxu1 }
  0xe8   : > { %v2698_v42 = vpop.f32.mrf.mxu2 }
  0xe9   : > { %3272 = vst [vmem:[#allocation30_spill] sm:$0xff] %v2698_v42  ;;  %v2700_v49 = vpop.f32.mrf.mxu3  ;;  %1254 = vmatmul.f32.gmra.mxu1 %v2471_v54 }
  0xea   : > { %3273 = vst [vmem:[#allocation31_spill] sm:$0xff] %v2700_v49  ;;  %v2703_v48 = vpop.f32.mrf.mxu0 }
  0xeb   : > { %3274 = vst [vmem:[#allocation32_spill] sm:$0xff] %v2703_v48 }
  0xed   : > { %565 = vmatmul.f32.gmra.mxu0 %v1725_v57  ;;  %887 = vmatmul.f32.gmra.mxu2 %v2707_v39  ;;  %v2726_v57 = vld [vmem:[%s2173_s25 + $0x190] sm:$0xff] }
  0xee   : > { %1926 = vmatmul.msk.f32.gmra.mxu3 %vm380_vm0, %v2710_v3  ;;  %v2715_v42 = vpop.f32.mrf.mxu1 }
  0xf0   : > { %v2717_v49 = vpop.f32.mrf.mxu2 }
  0xf1   : > { %3275 = vst [vmem:[#allocation33_spill] sm:$0xff] %v2717_v49  ;;  %v2719_v54 = vpop.f32.mrf.mxu3  ;;  %1257 = vmatmul.f32.gmra.mxu1 %v2486_v59 }
  0xf2   : > { %3276 = vst [vmem:[#allocation34_spill] sm:$0xff] %v2719_v54  ;;  %v2722_v48 = vpop.f32.mrf.mxu0 }
  0xf3   : > { %3277 = vst [vmem:[#allocation35_spill] sm:$0xff] %v2722_v48 }
  0xf5   : > { %568 = vmatmul.f32.gmra.mxu0 %v1727_v19  ;;  %890 = vmatmul.f32.gmra.mxu2 %v2726_v57  ;;  %v2745_v19 = vld [vmem:[%s2173_s25 + $0x1a0] sm:$0xff] }
  0xf6   : > { %1927 = vmatmul.msk.f32.gmra.mxu3 %vm380_vm0, %v2729_v56  ;;  %v2734_v49 = vpop.f32.mrf.mxu1 }
  0xf8   : > { %v2736_v54 = vpop.f32.mrf.mxu2 }
  0xf9   : > { %3278 = vst [vmem:[#allocation36_spill] sm:$0xff] %v2736_v54  ;;  %v2738_v59 = vpop.f32.mrf.mxu3  ;;  %1260 = vmatmul.f32.gmra.mxu1 %v2498_v0 }
  0xfa   : > { %3279 = vst [vmem:[#allocation37_spill] sm:$0xff] %v2738_v59  ;;  %v2741_v48 = vpop.f32.mrf.mxu0 }
  0xfb   : > { %3280 = vst [vmem:[#allocation38_spill] sm:$0xff] %v2741_v48 }
  0xfd   : > { %571 = vmatmul.f32.gmra.mxu0 %v1729_v47  ;;  %893 = vmatmul.f32.gmra.mxu2 %v2745_v19  ;;  %v2767_v47 = vld [vmem:[%s2173_s25 + $0xe8] sm:$0xff] }
  0xfe   : > { %1928 = vmatmul.msk.f32.gmra.mxu3 %vm380_vm0, %v2748_v53  ;;  %v2753_v54 = vpop.f32.mrf.mxu1 }
 0x100   : > { %v2755_v59 = vpop.f32.mrf.mxu2 }
 0x101   : > { %3281 = vst [vmem:[#allocation39_spill] sm:$0xff] %v2755_v59  ;;  %v2757_v0 = vpop.f32.mrf.mxu3  ;;  %1263 = vmatmul.f32.gmra.mxu1 %v2510_v2 }
 0x102   : > { %3282 = vst [vmem:[#allocation40_spill] sm:$0xff] %v2757_v0  ;;  %v2760_v48 = vpop.f32.mrf.mxu0 }
 0x103   : > { %3283 = vst [vmem:[#allocation41_spill] sm:$0xff] %v2760_v48 }
 0x105   : > { %574 = vmatmul.f32.gmra.mxu0 %v1731_v14  ;;  %896 = vmatmul.f32.gmra.mxu2 %v2764_v45 }
 0x106   : > { %1929 = vmatmul.msk.f32.gmra.mxu3 %vm380_vm0, %v2767_v47  ;;  %v2772_v59 = vpop.f32.mrf.mxu1 }
 0x108   : > { %v2774_v0 = vpop.f32.mrf.mxu2 }
 0x109   : > { %3284 = vst [vmem:[#allocation42_spill] sm:$0xff] %v2774_v0  ;;  %v2776_v2 = vpop.f32.mrf.mxu3  ;;  %1266 = vmatmul.f32.gmra.mxu1 %v2522_v11 }
 0x10a   : > { %3285 = vst [vmem:[#allocation43_spill] sm:$0xff] %v2776_v2  ;;  %v2779_v48 = vpop.f32.mrf.mxu0 }
 0x10b   : > { %3286 = vst [vmem:[#allocation44_spill] sm:$0xff] %v2779_v48  ;;  %v1735_v48 = vld [vmem:[%s2173_s25 + $0x3f0] sm:$0xff] }
 0x10d   : > { %577 = vmatmul.f32.gmra.mxu0 %v1733_v36  ;;  %899 = vmatmul.f32.gmra.mxu2 %v2783_v44 }
 0x10e   : > { %1930 = vmatmul.msk.f32.gmra.mxu3 %vm380_vm0, %v2200_v31  ;;  %v2788_v14 = vpop.f32.mrf.mxu1 }
 0x110   : > { %v2790_v0 = vpop.f32.mrf.mxu2 }
 0x111   : > { %3287 = vst [vmem:[#allocation45_spill] sm:$0xff] %v2790_v0  ;;  %v2792_v2 = vpop.f32.mrf.mxu3  ;;  %1269 = vmatmul.f32.gmra.mxu1 %v2538_v21  ;;  %v2815_v0 = vld [vmem:[%s2173_s25 + $0x1e0] sm:$0xff] }
 0x112   : > { %3288 = vst [vmem:[#allocation46_spill] sm:$0xff] %v2792_v2  ;;  %v2795_v11 = vpop.f32.mrf.mxu0 }
 0x113   : > { %3289 = vst [vmem:[#allocation47_spill] sm:$0xff] %v2795_v11  ;;  %v1737_v11 = vld [vmem:[%s2173_s25 + $0x400] sm:$0xff] }
 0x115   : > { %580 = vmatmul.f32.gmra.mxu0 %v1735_v48  ;;  %902 = vmatmul.f32.gmra.mxu2 %v2799_v8 }
 0x116   : > { %1931 = vmatmul.msk.f32.gmra.mxu3 %vm380_vm0, %v2252_v46  ;;  %v2804_v31 = vpop.f32.mrf.mxu1 }
 0x118   : > { %v2806_v36 = vpop.f32.mrf.mxu2 }
 0x119   : > { %3290 = vst [vmem:[#allocation48_spill] sm:$0xff] %v2806_v36  ;;  %v2808_v2 = vpop.f32.mrf.mxu3  ;;  %1272 = vmatmul.f32.gmra.mxu1 %v2555_v29  ;;  %v2831_v36 = vld [vmem:[%s2173_s25 + $0x1f0] sm:$0xff] }
 0x11a   : > { %3291 = vst [vmem:[#allocation49_spill] sm:$0xff] %v2808_v2  ;;  %v2811_v21 = vpop.f32.mrf.mxu0 }
 0x11b   : > { %3292 = vst [vmem:[#allocation50_spill] sm:$0xff] %v2811_v21  ;;  %v1739_v21 = vld [vmem:[%s2173_s25 + $0x410] sm:$0xff] }
 0x11d   : > { %583 = vmatmul.f32.gmra.mxu0 %v1737_v11  ;;  %905 = vmatmul.f32.gmra.mxu2 %v2815_v0 }
 0x11e   : > { %1932 = vmatmul.msk.f32.gmra.mxu3 %vm380_vm0, %v2297_v62  ;;  %v2820_v46 = vpop.f32.mrf.mxu1 }
 0x120   : > { %v2822_v48 = vpop.f32.mrf.mxu2 }
 0x121   : > { %3293 = vst [vmem:[#allocation51_spill] sm:$0xff] %v2822_v48  ;;  %v2824_v2 = vpop.f32.mrf.mxu3  ;;  %1275 = vmatmul.f32.gmra.mxu1 %v2574_v40 }
 0x122   : > { %3294 = vst [vmem:[#allocation52_spill] sm:$0xff] %v2824_v2  ;;  %v2827_v29 = vpop.f32.mrf.mxu0 }
 0x125   : > { %586 = vmatmul.f32.gmra.mxu0 %v1739_v21  ;;  %908 = vmatmul.f32.gmra.mxu2 %v2831_v36 }
 0x126   : > { %1933 = vmatmul.msk.f32.gmra.mxu3 %vm380_vm0, %v2316_v6  ;;  %v1231_v62 = vpop.f32.mrf.mxu1 }
 0x128   : > { %v2836_v11 = vpop.f32.mrf.mxu2 }
 0x129   : > { %v1344_v48 = vpop.f32.mrf.mxu3  ;;  %1278 = vmatmul.f32.gmra.mxu1 %v2593_v51 }
 0x12a   : > { %v2839_v40 = vadd.f32 %v1344_v48, %v1231_v62  ;;  %v2841_v2 = vpop.f32.mrf.mxu0  ;;  %v1680_v62 = vld [vmem:[%s2173_s25 + $0x238] sm:$0xff] }
 0x12c   : > { %3295 = vst [vmem:[#allocation53_spill] sm:$0xff] %v2839_v40  ;;  %v203_v40 = vld [vmem:[%s2173_s25 + $0x18] sm:$0xff] }
 0x12d   : > { %1765 = vmatmul.msk.f32.vlgmr.msrb.gmra.mxu0 %vm380_vm0, %v1678_v35  ;;  %1797 = vmatmul.msk.f32.vlgmr.msrb.gmra.mxu2 %vm380_vm0, %v201_v27 }
 0x12e   : > { %1934 = vmatmul.msk.f32.gmra.mxu3 %vm380_vm0, %v2337_v9  ;;  %v1234_v6 = vpop.f32.mrf.mxu1 }
 0x130   : > { %v2849_v21 = vpop.f32.mrf.mxu2 }
 0x131   : > { %v1347_v34 = vpop.f32.mrf.mxu3  ;;  %1281 = vmatmul.f32.gmra.mxu1 %v2612_v61 }
 0x132   : > { %v2852_v51 = vadd.f32 %v1347_v34, %v1234_v6  ;;  %v2854_v48 = vpop.f32.mrf.mxu0  ;;  %v1682_v6 = vld [vmem:[%s2173_s25 + $0x248] sm:$0xff] }
 0x135   : > { %1766 = vmatmul.msk.f32.gmra.mxu0 %vm380_vm0, %v1680_v62  ;;  %1798 = vmatmul.msk.f32.gmra.mxu2 %vm380_vm0, %v203_v40 }
 0x136   : > { %1935 = vmatmul.msk.f32.gmra.mxu3 %vm380_vm0, %v2360_v15  ;;  %v1237_v9 = vpop.f32.mrf.mxu1 }
 0x138   : > { %v2862_v27 = vpop.f32.mrf.mxu2 }
 0x139   : > { %v1350_v35 = vpop.f32.mrf.mxu3  ;;  %1284 = vmatmul.f32.gmra.mxu1 %v2631_v16 }
 0x13a   : > { %v2865_v34 = vadd.f32 %v1350_v35, %v1237_v9  ;;  %v2867_v61 = vpop.f32.mrf.mxu0  ;;  %v1684_v35 = vld [vmem:[%s2173_s25 + $0x258] sm:$0xff] }
 0x13d   : > { %1767 = vmatmul.msk.f32.gmra.mxu0 %vm380_vm0, %v1682_v6  ;;  %1799 = vmatmul.msk.f32.gmra.mxu2 %vm380_vm0, %v2541_v22 }
 0x13e   : > { %1936 = vmatmul.msk.f32.gmra.mxu3 %vm380_vm0, %v2375_v20  ;;  %v1240_v15 = vpop.f32.mrf.mxu1 }
 0x140   : > { %v2875_v40 = vpop.f32.mrf.mxu2 }
 0x141   : > { %v1353_v62 = vpop.f32.mrf.mxu3  ;;  %1287 = vmatmul.f32.gmra.mxu1 %v2650_v10 }
 0x142   : > { %v2878_v16 = vadd.f32 %v1353_v62, %v1240_v15  ;;  %v2880_v9 = vpop.f32.mrf.mxu0  ;;  %v1686_v62 = vld [vmem:[%s2173_s25 + $0x268] sm:$0xff] }
 0x145   : > { %1768 = vmatmul.msk.f32.gmra.mxu0 %vm380_vm0, %v1684_v35  ;;  %1800 = vmatmul.msk.f32.gmra.mxu2 %vm380_vm0, %v2558_v33 }
 0x146   : > { %1937 = vmatmul.msk.f32.gmra.mxu3 %vm380_vm0, %v2393_v26  ;;  %v1243_v20 = vpop.f32.mrf.mxu1 }
 0x148   : > { %v2888_v22 = vpop.f32.mrf.mxu2 }
 0x149   : > { %v1356_v6 = vpop.f32.mrf.mxu3  ;;  %1290 = vmatmul.f32.gmra.mxu1 %v2669_v58 }
 0x14a   : > { %v2891_v10 = vadd.f32 %v1356_v6, %v1243_v20  ;;  %v2893_v15 = vpop.f32.mrf.mxu0  ;;  %v1688_v6 = vld [vmem:[%s2173_s25 + $0x278] sm:$0xff] }
 0x14d   : > { %1769 = vmatmul.msk.f32.gmra.mxu0 %vm380_vm0, %v1686_v62  ;;  %1801 = vmatmul.msk.f32.gmra.mxu2 %vm380_vm0, %v2577_v41 }
 0x14e   : > { %1938 = vmatmul.msk.f32.gmra.mxu3 %vm380_vm0, %v2408_v32  ;;  %v1246_v26 = vpop.f32.mrf.mxu1 }
 0x150   : > { %v2901_v33 = vpop.f32.mrf.mxu2 }
 0x151   : > { %v1359_v35 = vpop.f32.mrf.mxu3  ;;  %1293 = vmatmul.f32.gmra.mxu1 %v2688_v28 }
 0x152   : > { %v2904_v58 = vadd.f32 %v1359_v35, %v1246_v26  ;;  %v2906_v20 = vpop.f32.mrf.mxu0  ;;  %v1690_v35 = vld [vmem:[%s2173_s25 + $0x288] sm:$0xff] }
 0x155   : > { %1770 = vmatmul.msk.f32.gmra.mxu0 %vm380_vm0, %v1688_v6  ;;  %1802 = vmatmul.msk.f32.gmra.mxu2 %vm380_vm0, %v2596_v52 }
 0x156   : > { %1939 = vmatmul.msk.f32.gmra.mxu3 %vm380_vm0, %v2426_v38  ;;  %v1249_v32 = vpop.f32.mrf.mxu1 }
 0x158   : > { %v2914_v41 = vpop.f32.mrf.mxu2 }
 0x159   : > { %v1362_v62 = vpop.f32.mrf.mxu3  ;;  %1296 = vmatmul.f32.gmra.mxu1 %v2707_v39 }
 0x15a   : > { %v2917_v28 = vadd.f32 %v1362_v62, %v1249_v32  ;;  %v2919_v26 = vpop.f32.mrf.mxu0  ;;  %v1692_v62 = vld [vmem:[%s2173_s25 + $0x298] sm:$0xff] }
 0x15c   : > { %3296 = vst [vmem:[#allocation54_spill] sm:$0xff] %v2917_v28 }
 0x15d   : > { %1771 = vmatmul.msk.f32.gmra.mxu0 %vm380_vm0, %v1690_v35  ;;  %1803 = vmatmul.msk.f32.gmra.mxu2 %vm380_vm0, %v2615_v63 }
 0x15e   : > { %1940 = vmatmul.msk.f32.gmra.mxu3 %vm380_vm0, %v2441_v43  ;;  %v1252_v38 = vpop.f32.mrf.mxu1 }
 0x160   : > { %v2927_v52 = vpop.f32.mrf.mxu2 }
 0x161   : > { %v1365_v6 = vpop.f32.mrf.mxu3  ;;  %1299 = vmatmul.f32.gmra.mxu1 %v2726_v57 }
 0x162   : > { %v2930_v39 = vadd.f32 %v1365_v6, %v1252_v38  ;;  %v563_v32 = vpop.f32.mrf.mxu0 }
 0x163   : > { %v677_v63 = vadd.f32 %v2677_v30, %v563_v32 }
 0x165   : > { %1772 = vmatmul.msk.f32.gmra.mxu0 %vm380_vm0, %v1692_v62  ;;  %1804 = vmatmul.msk.f32.gmra.mxu2 %vm380_vm0, %v2634_v18  ;;  %v1694_v62 = vld [vmem:[%s2173_s25 + $0x2a8] sm:$0xff] }
 0x166   : > { %1941 = vmatmul.msk.f32.gmra.mxu3 %vm380_vm0, %v2459_v50  ;;  %v1255_v43 = vpop.f32.mrf.mxu1 }
 0x168   : > { %v885_v35 = vpop.f32.mrf.mxu2 }
 0x169   : > { %v1368_v28 = vpop.f32.mrf.mxu3  ;;  %1302 = vmatmul.f32.gmra.mxu1 %v2745_v19  ;;  %v2940_v57 = vadd.f32 %v885_v35, %v677_v63  ;;  %v1696_v63 = vld [vmem:[%s2173_s25 + $0x2b8] sm:$0xff] }
 0x16a   : > { %v2942_v38 = vadd.f32 %v1368_v28, %v1255_v43  ;;  %v566_v6 = vpop.f32.mrf.mxu0 }
 0x16b   : > { %v680_v18 = vadd.f32 %v2696_v37, %v566_v6 }
 0x16d   : > { %1773 = vmatmul.msk.f32.gmra.mxu0 %vm380_vm0, %v1694_v62  ;;  %1805 = vmatmul.msk.f32.gmra.mxu2 %vm380_vm0, %v2653_v7 }
 0x16e   : > { %1942 = vmatmul.msk.f32.gmra.mxu3 %vm380_vm0, %v2474_v55  ;;  %v1258_v50 = vpop.f32.mrf.mxu1 }
 0x170   : > { %v888_v30 = vpop.f32.mrf.mxu2 }
 0x171   : > { %v1371_v19 = vpop.f32.mrf.mxu3  ;;  %1305 = vmatmul.f32.gmra.mxu1 %v2764_v45  ;;  %v2952_v28 = vadd.f32 %v888_v30, %v680_v18 }
 0x172   : > { %v2954_v32 = vadd.f32 %v1371_v19, %v1258_v50  ;;  %v569_v43 = vpop.f32.mrf.mxu0  ;;  %v1698_v50 = vld [vmem:[%s2173_s25 + $0x2c8] sm:$0xff] }
 0x173   : > { %v683_v7 = vadd.f32 %v2715_v42, %v569_v43  ;;  %v1700_v43 = vld [vmem:[%s2173_s25 + $0x2d8] sm:$0xff] }
 0x175   : > { %1774 = vmatmul.msk.f32.gmra.mxu0 %vm380_vm0, %v1696_v63  ;;  %1806 = vmatmul.msk.f32.gmra.mxu2 %vm380_vm0, %v2672_v25 }
 0x176   : > { %1943 = vmatmul.msk.f32.gmra.mxu3 %vm380_vm0, %v2489_v60  ;;  %v1261_v55 = vpop.f32.mrf.mxu1 }
 0x178   : > { %v891_v37 = vpop.f32.mrf.mxu2 }
 0x179   : > { %v1374_v45 = vpop.f32.mrf.mxu3  ;;  %1308 = vmatmul.f32.gmra.mxu1 %v2783_v44  ;;  %v2964_v35 = vadd.f32 %v891_v37, %v683_v7  ;;  %v1702_v37 = vld [vmem:[%s2173_s25 + $0x2e8] sm:$0xff] }
 0x17a   : > { %v2966_v6 = vadd.f32 %v1374_v45, %v1261_v55  ;;  %v572_v62 = vpop.f32.mrf.mxu0 }
 0x17b   : > { %v686_v25 = vadd.f32 %v2734_v49, %v572_v62 }
 0x17d   : > { %1775 = vmatmul.msk.f32.gmra.mxu0 %vm380_vm0, %v1698_v50  ;;  %1807 = vmatmul.msk.f32.gmra.mxu2 %vm380_vm0, %v2691_v4 }
 0x17e   : > { %1944 = vmatmul.msk.f32.gmra.mxu3 %vm380_vm0, %v2501_v1  ;;  %v1264_v60 = vpop.f32.mrf.mxu1 }
 0x180   : > { %v894_v42 = vpop.f32.mrf.mxu2 }
 0x181   : > { %v1377_v44 = vpop.f32.mrf.mxu3  ;;  %1311 = vmatmul.f32.gmra.mxu1 %v2799_v8  ;;  %v2976_v18 = vadd.f32 %v894_v42, %v686_v25 }
 0x182   : > { %v2978_v30 = vadd.f32 %v1377_v44, %v1264_v60  ;;  %v575_v19 = vpop.f32.mrf.mxu0  ;;  %v1704_v60 = vld [vmem:[%s2173_s25 + $0x2f8] sm:$0xff] }
 0x183   : > { %v689_v4 = vadd.f32 %v2753_v54, %v575_v19 }
 0x185   : > { %1776 = vmatmul.msk.f32.gmra.mxu0 %vm380_vm0, %v1700_v43  ;;  %1808 = vmatmul.msk.f32.gmra.mxu2 %vm380_vm0, %v2710_v3 }
 0x186   : > { %1945 = vmatmul.msk.f32.gmra.mxu3 %vm380_vm0, %v2513_v5  ;;  %v1267_v1 = vpop.f32.mrf.mxu1 }
 0x188   : > { %v897_v49 = vpop.f32.mrf.mxu2 }
 0x189   : > { %v1380_v8 = vpop.f32.mrf.mxu3  ;;  %1314 = vmatmul.f32.gmra.mxu1 %v2815_v0  ;;  %v2988_v63 = vadd.f32 %v897_v49, %v689_v4  ;;  %v1892_v4 = vld [vmem:[%s2173_s25 + $0x218] sm:$0xff] }
 0x18a   : > { %v2990_v55 = vadd.f32 %v1380_v8, %v1267_v1  ;;  %v578_v7 = vpop.f32.mrf.mxu0  ;;  %v1706_v1 = vld [vmem:[%s2173_s25 + $0x308] sm:$0xff]  ;;  %v1891_v8 = vld [vmem:[%s2173_s25 + $0x210] sm:$0xff] }
 0x18b   : > { %v692_v3 = vadd.f32 %v2772_v59, %v578_v7  ;;  %v1889_v59 = vld [vmem:[%s2173_s25 + $0x200] sm:$0xff] }
 0x18d   : > { %1777 = vmatmul.msk.f32.gmra.mxu0 %vm380_vm0, %v1702_v37  ;;  %1809 = vmatmul.msk.f32.gmra.mxu2 %vm380_vm0, %v2729_v56  ;;  %v1890_v56 = vld [vmem:[%s2173_s25 + $0x208] sm:$0xff]  ;;  %s1951_s25 = sshll.u32 %s3355_s12, 8 }
 0x18e   : > { %1946 = vmatmul.msk.f32.gmra.mxu3 %vm380_vm0, %v2525_v12  ;;  %v1270_v5 = vpop.f32.mrf.mxu1  ;;  %s3043_s7 = scalar_lea.vmem %s3243_s3, %s1951_s25 }
 0x190   : > { %v900_v54 = vpop.f32.mrf.mxu2 }
 0x191   : > { %v1383_v0 = vpop.f32.mrf.mxu3  ;;  %1317 = vmatmul.f32.gmra.mxu1 %v2831_v36  ;;  %v3000_v45 = vadd.f32 %v900_v54, %v692_v3  ;;  %v656_v54 = vadd.f32 %v2546_v23, %v2841_v2 }
 0x192   : > { %v3002_v62 = vadd.f32 %v1383_v0, %v1270_v5  ;;  %v581_v50 = vpop.f32.mrf.mxu0 }
 0x193   : > { %v695_v36 = vadd.f32 %v2788_v14, %v581_v50 }
 0x195   : > { %1778 = vmatmul.msk.f32.gmra.mxu0 %vm380_vm0, %v1704_v60  ;;  %1810 = vmatmul.msk.f32.gmra.mxu2 %vm380_vm0, %v2748_v53  ;;  %v653_v53 = vadd.f32 %v2530_v13, %v2827_v29 }
 0x196   : > { %1947 = vmatmul.msk.f32.gmra.mxu3 %vm380_vm0, %v1890_v56  ;;  %v1273_v12 = vpop.f32.mrf.mxu1 }
 0x197   : > { %v862_v49 = vadd.f32 %v2836_v11, %v653_v53  ;;  %v3033_v11 = vld [vmem:[%s3242_s2] ss:$0 sm:$0xff] }
 0x198   : > { %v903_v25 = vpop.f32.mrf.mxu2 }
 0x199   : > { %v1386_v42 = vpop.f32.mrf.mxu3  ;;  %1320 = vmatmul.f32.gmra.mxu1 %v1889_v59  ;;  %v3012_v44 = vadd.f32 %v903_v25, %v695_v36  ;;  %v975_v3 = vadd.f32 %v2533_v17, %v862_v49  ;;  %v3297_v25 = vld [vmem:[#allocation3_spill] sm:$0xff] }
 0x19a   : > { %v3014_v19 = vadd.f32 %v1386_v42, %v1273_v12  ;;  %v584_v43 = vpop.f32.mrf.mxu0  ;;  %v659_v42 = vadd.f32 %v3297_v25, %v2854_v48  ;;  %v3304_v25 = vld [vmem:[#allocation8_spill] sm:$0xff] }
 0x19b   : > { %v698_v7 = vadd.f32 %v2804_v31, %v584_v43  ;;  %v865_v31 = vadd.f32 %v2849_v21, %v656_v54  ;;  %v3301_v54 = vld [vmem:[#allocation7_spill] sm:$0xff] }
 0x19c   : > { %v868_v53 = vadd.f32 %v2862_v27, %v659_v42  ;;  %v3302_v27 = vld [vmem:[#allocation53_spill] sm:$0xff] }
 0x19d   : > { %1779 = vmatmul.msk.f32.gmra.mxu0 %vm380_vm0, %v1706_v1  ;;  %1811 = vmatmul.msk.f32.gmra.mxu2 %vm380_vm0, %v2767_v47  ;;  %v978_v23 = vadd.f32 %v2548_v24, %v865_v31  ;;  %v3298_v1 = vld [vmem:[#allocation2_spill] sm:$0xff]  ;;  %v3299_v24 = vld [vmem:[#allocation4_spill] sm:$0xff] }
 0x19e   : > { %1948 = vmatmul.msk.f32.gmra.mxu3 %vm380_vm0, %v1892_v4  ;;  %v1276_v14 = vpop.f32.mrf.mxu1 }
 0x1a0   : > { %v906_v37 = vpop.f32.mrf.mxu2 }
 0x1a1   : > { %v1389_v5 = vpop.f32.mrf.mxu3  ;;  %1323 = vmatmul.f32.gmra.mxu1 %v1891_v8  ;;  %v3028_v13 = vadd.f32 %v906_v37, %v698_v7 }
 0x1a2   : > { %v1390_v29 = vadd.f32 %v1389_v5, %v1276_v14  ;;  %v587_v47 = vpop.f32.mrf.mxu0  ;;  %v3300_v5 = vld [vmem:[#allocation5_spill] sm:$0xff] }
 0x1a3   : > { %v701_v56 = vadd.f32 %v2820_v46, %v587_v47 }
 0x1a4   : > { %v1455_v0 = vadd.f32 %v1390_v29, %v975_v3  ;;  %v981_v3 = vadd.f32 %v3300_v5, %v868_v53 }
 0x1a6   : > { %v1491_v50 = vadd.f32 %v3033_v11, %v1455_v0  ;;  %v1279_v60 = vpop.f32.mrf.mxu1  ;;  %v662_v0 = vadd.f32 %v3301_v54, %v2867_v61  ;;  %v3305_v61 = vld [vmem:[#allocation9_spill] sm:$0xff] }
 0x1a8   : > { %v1523_v17 = vmax.f32 %v1491_v50, 0.0  ;;  %v909_v12 = vpop.f32.mrf.mxu2 }
 0x1a9   : > { %v1392_v59 = vpop.f32.mrf.mxu3  ;;  %v3049_v2 = vadd.f32 %v909_v12, %v701_v56  ;;  %v871_v56 = vadd.f32 %v2875_v40, %v662_v0  ;;  %v3306_v40 = vld [vmem:[#allocation11_spill] sm:$0xff]  ;;  %v3308_v0 = vld [vmem:[#allocation12_spill] sm:$0xff] }
 0x1aa   : > { %1555 = vst.msk [vmem:[%s3043_s7 + $0x78] sm:$0xff] %vm380_vm0, %v1523_v17  ;;  %v1393_v21 = vadd.f32 %v1392_v59, %v1279_v60  ;;  %v607_v36 = vpop.f32.mrf.mxu0  ;;  %v3303_v60 = vld [vmem:[#allocation6_spill] sm:$0xff] }
 0x1ab   : > { %v608_v4 = vadd.f32 %v607_v36, %v3298_v1 }
 0x1ac   : > { %v1456_v43 = vadd.f32 %v1393_v21, %v978_v23 }
 0x1ad   : > { %v817_v8 = vadd.f32 %v3299_v24, %v608_v4  ;;  %v984_v4 = vadd.f32 %v3305_v61, %v871_v56 }
 0x1ae   : > { %v1492_v46 = vadd.f32 %v3033_v11, %v1456_v43  ;;  %v1282_v49 = vpop.f32.mrf.mxu1 }
 0x1b0   : > { %v1524_v14 = vmax.f32 %v1492_v46, 0.0  ;;  %v929_v7 = vpop.f32.mrf.mxu2 }
 0x1b1   : > { %v1395_v37 = vpop.f32.mrf.mxu3  ;;  %v930_v29 = vadd.f32 %v929_v7, %v817_v8  ;;  %v3307_v7 = vld [vmem:[#allocation10_spill] sm:$0xff] }
 0x1b2   : > { %1556 = vst.msk [vmem:[%s3043_s7 + $0x80] sm:$0xff] %vm380_vm0, %v1524_v14  ;;  %v1396_v47 = vadd.f32 %v1395_v37, %v1282_v49  ;;  %v610_v48 = vpop.f32.mrf.mxu0  ;;  %v665_v14 = vadd.f32 %v3306_v40, %v2880_v9  ;;  %v3309_v9 = vld [vmem:[#allocation13_spill] sm:$0xff] }
 0x1b3   : > { %v1440_v31 = vadd.f32 %v3302_v27, %v930_v29  ;;  %v611_v17 = vadd.f32 %v610_v48, %v3303_v60 }
 0x1b4   : > { %v1457_v50 = vadd.f32 %v1396_v47, %v981_v3  ;;  %v874_v5 = vadd.f32 %v2888_v22, %v665_v14  ;;  %v3310_v22 = vld [vmem:[#allocation15_spill] sm:$0xff] }
 0x1b5   : > { %v1476_v12 = vadd.f32 %v3033_v11, %v1440_v31  ;;  %v820_v42 = vadd.f32 %v3304_v25, %v611_v17 }
 0x1b6   : > { %v1493_v59 = vadd.f32 %v3033_v11, %v1457_v50  ;;  %v1285_v23 = vpop.f32.mrf.mxu1  ;;  %v987_v60 = vadd.f32 %v3309_v9, %v874_v5 }
 0x1b7   : > { %v1508_v21 = vmax.f32 %v1476_v12, 0.0  ;;  %v668_v12 = vadd.f32 %v3310_v22, %v2893_v15  ;;  %v3313_v15 = vld [vmem:[#allocation17_spill] sm:$0xff] }
 0x1b8   : > { %v1525_v36 = vmax.f32 %v1493_v59, 0.0  ;;  %v932_v43 = vpop.f32.mrf.mxu2 }
 0x1b9   : > { %v1398_v1 = vpop.f32.mrf.mxu3  ;;  %1540 = vst.msk [vmem:[%s3043_s7] sm:$0xff] %vm380_vm0, %v1508_v21  ;;  %v933_v53 = vadd.f32 %v932_v43, %v820_v42  ;;  %v3311_v21 = vld [vmem:[#allocation14_spill] sm:$0xff]  ;;  %v877_v25 = vadd.f32 %v2901_v33, %v668_v12  ;;  %v3314_v33 = vld [vmem:[#allocation19_spill] sm:$0xff] }
 0x1ba   : > { %v1399_v46 = vadd.f32 %v1398_v1, %v1285_v23  ;;  %v613_v49 = vpop.f32.mrf.mxu0  ;;  %1557 = vst.msk [vmem:[%s3043_s7 + $0x88] sm:$0xff] %vm380_vm0, %v1525_v36 }
 0x1bb   : > { %v1441_v24 = vadd.f32 %v2852_v51, %v933_v53  ;;  %v614_v37 = vadd.f32 %v613_v49, %v3307_v7  ;;  %v3312_v53 = vld [vmem:[#allocation16_spill] sm:$0xff]  ;;  %v990_v14 = vadd.f32 %v3313_v15, %v877_v25  ;;  %v671_v7 = vadd.f32 %v3314_v33, %v2906_v20  ;;  %v3317_v20 = vld [vmem:[#allocation21_spill] sm:$0xff] }
 0x1bc   : > { %v1458_v8 = vadd.f32 %v1399_v46, %v984_v4 }
 0x1bd   : > { %v1477_v3 = vadd.f32 %v3033_v11, %v1441_v24  ;;  %v823_v27 = vadd.f32 %v3308_v0, %v614_v37 }
 0x1be   : > { %v1494_v29 = vadd.f32 %v3033_v11, %v1458_v8  ;;  %v1288_v47 = vpop.f32.mrf.mxu1 }
 0x1bf   : > { %v1509_v48 = vmax.f32 %v1477_v3, 0.0  ;;  %v3315_v3 = vld [vmem:[#allocation18_spill] sm:$0xff] }
 0x1c0   : > { %v1526_v54 = vmax.f32 %v1494_v29, 0.0  ;;  %v935_v31 = vpop.f32.mrf.mxu2 }
 0x1c1   : > { %v1401_v50 = vpop.f32.mrf.mxu3  ;;  %1541 = vst.msk [vmem:[%s3043_s7 + $0x8] sm:$0xff] %vm380_vm0, %v1509_v48  ;;  %v936_v51 = vadd.f32 %v935_v31, %v823_v27 }
 0x1c2   : > { %v1402_v17 = vadd.f32 %v1401_v50, %v1288_v47  ;;  %v616_v56 = vpop.f32.mrf.mxu0  ;;  %1558 = vst.msk [vmem:[%s3043_s7 + $0x90] sm:$0xff] %vm380_vm0, %v1526_v54  ;;  %v880_v47 = vadd.f32 %v2914_v41, %v671_v7  ;;  %v3316_v50 = vld [vmem:[#allocation20_spill] sm:$0xff]  ;;  %v3318_v41 = vld [vmem:[#allocation23_spill] sm:$0xff] }
 0x1c3   : > { %v1442_v59 = vadd.f32 %v2865_v34, %v936_v51  ;;  %v617_v36 = vadd.f32 %v616_v56, %v3311_v21  ;;  %v674_v12 = vadd.f32 %v3318_v41, %v2919_v26  ;;  %v3319_v21 = vld [vmem:[#allocation22_spill] sm:$0xff]  ;;  %v3321_v26 = vld [vmem:[#allocation25_spill] sm:$0xff] }
 0x1c4   : > { %v1459_v23 = vadd.f32 %v1402_v17, %v987_v60  ;;  %v993_v17 = vadd.f32 %v3317_v20, %v880_v47  ;;  %v3323_v47 = vld [vmem:[#allocation27_spill] sm:$0xff] }
 0x1c5   : > { %v1478_v42 = vadd.f32 %v3033_v11, %v1442_v59  ;;  %v826_v46 = vadd.f32 %v3312_v53, %v617_v36  ;;  %v883_v25 = vadd.f32 %v2927_v52, %v674_v12  ;;  %v3320_v53 = vld [vmem:[#allocation24_spill] sm:$0xff] }
 0x1c6   : > { %v1495_v43 = vadd.f32 %v3033_v11, %v1459_v23  ;;  %v1291_v1 = vpop.f32.mrf.mxu1 }
 0x1c7   : > { %v1510_v61 = vmax.f32 %v1478_v42, 0.0  ;;  %v996_v15 = vadd.f32 %v3321_v26, %v883_v25  ;;  %v3328_v25 = vld [vmem:[#allocation31_spill] sm:$0xff] }
 0x1c8   : > { %v1527_v4 = vmax.f32 %v1495_v43, 0.0  ;;  %v938_v49 = vpop.f32.mrf.mxu2 }
 0x1c9   : > { %v1404_v40 = vpop.f32.mrf.mxu3  ;;  %1542 = vst.msk [vmem:[%s3043_s7 + $0x10] sm:$0xff] %vm380_vm0, %v1510_v61  ;;  %v939_v34 = vadd.f32 %v938_v49, %v826_v46 }
 0x1ca   : > { %v1405_v24 = vadd.f32 %v1404_v40, %v1291_v1  ;;  %v619_v8 = vpop.f32.mrf.mxu0  ;;  %1559 = vst.msk [vmem:[%s3043_s7 + $0x98] sm:$0xff] %vm380_vm0, %v1527_v4 }
 0x1cb   : > { %v1443_v37 = vadd.f32 %v2878_v16, %v939_v34  ;;  %v620_v29 = vadd.f32 %v619_v8, %v3315_v3  ;;  %v3322_v8 = vld [vmem:[#allocation26_spill] sm:$0xff] }
 0x1cc   : > { %v1460_v5 = vadd.f32 %v1405_v24, %v990_v14 }
 0x1cd   : > { %v1479_v48 = vadd.f32 %v3033_v11, %v1443_v37  ;;  %v829_v9 = vadd.f32 %v3316_v50, %v620_v29 }
 0x1ce   : > { %v1496_v54 = vadd.f32 %v3033_v11, %v1460_v5  ;;  %v1294_v0 = vpop.f32.mrf.mxu1 }
 0x1cf   : > { %v1511_v27 = vmax.f32 %v1479_v48, 0.0 }
 0x1d0   : > { %v1528_v31 = vmax.f32 %v1496_v54, 0.0  ;;  %v941_v60 = vpop.f32.mrf.mxu2 }
 0x1d1   : > { %v1407_v51 = vpop.f32.mrf.mxu3  ;;  %1543 = vst.msk [vmem:[%s3043_s7 + $0x18] sm:$0xff] %vm380_vm0, %v1511_v27  ;;  %v942_v16 = vadd.f32 %v941_v60, %v829_v9  ;;  %v3324_v27 = vld [vmem:[#allocation28_spill] sm:$0xff]  ;;  %v3325_v60 = vld [vmem:[#allocation54_spill] sm:$0xff] }
 0x1d2   : > { %v1408_v56 = vadd.f32 %v1407_v51, %v1294_v0  ;;  %v622_v22 = vpop.f32.mrf.mxu0  ;;  %1560 = vst.msk [vmem:[%s3043_s7 + $0xa0] sm:$0xff] %vm380_vm0, %v1528_v31  ;;  %v999_v31 = vadd.f32 %v3324_v27, %v2940_v57 }
 0x1d3   : > { %v1444_v59 = vadd.f32 %v2891_v10, %v942_v16  ;;  %v623_v36 = vadd.f32 %v622_v22, %v3319_v21 }
 0x1d4   : > { %v1461_v23 = vadd.f32 %v1408_v56, %v993_v17  ;;  %v3326_v17 = vld [vmem:[#allocation29_spill] sm:$0xff] }
 0x1d5   : > { %v1480_v42 = vadd.f32 %v3033_v11, %v1444_v59  ;;  %v832_v46 = vadd.f32 %v3320_v53, %v623_v36  ;;  %v3327_v59 = vld [vmem:[#allocation30_spill] sm:$0xff] }
 0x1d6   : > { %v1497_v43 = vadd.f32 %v3033_v11, %v1461_v23  ;;  %v1297_v1 = vpop.f32.mrf.mxu1 }
 0x1d7   : > { %v1512_v61 = vmax.f32 %v1480_v42, 0.0  ;;  %v1002_v42 = vadd.f32 %v3328_v25, %v2952_v28 }
 0x1d8   : > { %v1529_v4 = vmax.f32 %v1497_v43, 0.0  ;;  %v944_v49 = vpop.f32.mrf.mxu2 }
 0x1d9   : > { %v1410_v40 = vpop.f32.mrf.mxu3  ;;  %1544 = vst.msk [vmem:[%s3043_s7 + $0x20] sm:$0xff] %vm380_vm0, %v1512_v61  ;;  %v945_v10 = vadd.f32 %v944_v49, %v832_v46  ;;  %v3329_v46 = vld [vmem:[#allocation32_spill] sm:$0xff] }
 0x1da   : > { %v1411_v14 = vadd.f32 %v1410_v40, %v1297_v1  ;;  %v625_v34 = vpop.f32.mrf.mxu0  ;;  %1561 = vst.msk [vmem:[%s3043_s7 + $0xa8] sm:$0xff] %vm380_vm0, %v1529_v4 }
 0x1db   : > { %v1445_v52 = vadd.f32 %v2904_v58, %v945_v10  ;;  %v626_v33 = vadd.f32 %v625_v34, %v3322_v8  ;;  %v3331_v8 = vld [vmem:[#allocation34_spill] sm:$0xff] }
 0x1dc   : > { %v1462_v24 = vadd.f32 %v1411_v14, %v996_v15  ;;  %v3330_v14 = vld [vmem:[#allocation33_spill] sm:$0xff] }
 0x1dd   : > { %v1481_v7 = vadd.f32 %v3033_v11, %v1445_v52  ;;  %v835_v48 = vadd.f32 %v3323_v47, %v626_v33  ;;  %v1005_v33 = vadd.f32 %v3331_v8, %v2964_v35  ;;  %v3340_v8 = vld [vmem:[#allocation43_spill] sm:$0xff] }
 0x1de   : > { %v1498_v37 = vadd.f32 %v3033_v11, %v1462_v24  ;;  %v1300_v5 = vpop.f32.mrf.mxu1 }
 0x1df   : > { %v1513_v3 = vmax.f32 %v1481_v7, 0.0 }
 0x1e0   : > { %v1530_v29 = vmax.f32 %v1498_v37, 0.0  ;;  %v947_v54 = vpop.f32.mrf.mxu2 }
 0x1e1   : > { %v1413_v0 = vpop.f32.mrf.mxu3  ;;  %1545 = vst.msk [vmem:[%s3043_s7 + $0x28] sm:$0xff] %vm380_vm0, %v1513_v3  ;;  %v948_v58 = vadd.f32 %v947_v54, %v835_v48 }
 0x1e2   : > { %v1414_v50 = vadd.f32 %v1413_v0, %v1300_v5  ;;  %v628_v9 = vpop.f32.mrf.mxu0  ;;  %1562 = vst.msk [vmem:[%s3043_s7 + $0xb0] sm:$0xff] %vm380_vm0, %v1530_v29  ;;  %v3332_v29 = vld [vmem:[#allocation35_spill] sm:$0xff] }
 0x1e3   : > { %v1446_v51 = vadd.f32 %v3325_v60, %v948_v58  ;;  %v629_v16 = vadd.f32 %v628_v9, %v3326_v17  ;;  %v3334_v60 = vld [vmem:[#allocation37_spill] sm:$0xff] }
 0x1e4   : > { %v1463_v20 = vadd.f32 %v1414_v50, %v999_v31  ;;  %v3333_v31 = vld [vmem:[#allocation36_spill] sm:$0xff] }
 0x1e5   : > { %v1482_v56 = vadd.f32 %v3033_v11, %v1446_v51  ;;  %v838_v23 = vadd.f32 %v3327_v59, %v629_v16  ;;  %v1008_v51 = vadd.f32 %v3334_v60, %v2976_v18 }
 0x1e6   : > { %v1499_v22 = vadd.f32 %v3033_v11, %v1463_v20  ;;  %v1303_v41 = vpop.f32.mrf.mxu1 }
 0x1e7   : > { %v1514_v57 = vmax.f32 %v1482_v56, 0.0 }
 0x1e8   : > { %v1531_v12 = vmax.f32 %v1499_v22, 0.0  ;;  %v950_v21 = vpop.f32.mrf.mxu2  ;;  %v3335_v22 = vld [vmem:[#allocation38_spill] sm:$0xff] }
 0x1e9   : > { %v1416_v36 = vpop.f32.mrf.mxu3  ;;  %1546 = vst.msk [vmem:[%s3043_s7 + $0x30] sm:$0xff] %vm380_vm0, %v1514_v57  ;;  %v951_v43 = vadd.f32 %v950_v21, %v838_v23  ;;  %v3336_v21 = vld [vmem:[#allocation39_spill] sm:$0xff] }
 0x1ea   : > { %v1417_v1 = vadd.f32 %v1416_v36, %v1303_v41  ;;  %v631_v61 = vpop.f32.mrf.mxu0  ;;  %1563 = vst.msk [vmem:[%s3043_s7 + $0xb8] sm:$0xff] %vm380_vm0, %v1531_v12 }
 0x1eb   : > { %v1447_v4 = vadd.f32 %v2930_v39, %v951_v43  ;;  %v632_v49 = vadd.f32 %v631_v61, %v3329_v46  ;;  %v3337_v43 = vld [vmem:[#allocation40_spill] sm:$0xff] }
 0x1ec   : > { %v1464_v53 = vadd.f32 %v1417_v1, %v1002_v42  ;;  %v1011_v1 = vadd.f32 %v3337_v43, %v2988_v63 }
 0x1ed   : > { %v1483_v40 = vadd.f32 %v3033_v11, %v1447_v4  ;;  %v841_v34 = vadd.f32 %v3330_v14, %v632_v49  ;;  %v3338_v49 = vld [vmem:[#allocation41_spill] sm:$0xff]  ;;  %v3339_v14 = vld [vmem:[#allocation42_spill] sm:$0xff] }
 0x1ee   : > { %v1500_v26 = vadd.f32 %v3033_v11, %v1464_v53  ;;  %v1306_v15 = vpop.f32.mrf.mxu1 }
 0x1ef   : > { %v1515_v28 = vmax.f32 %v1483_v40, 0.0 }
 0x1f0   : > { %v1532_v10 = vmax.f32 %v1500_v26, 0.0  ;;  %v953_v52 = vpop.f32.mrf.mxu2 }
 0x1f1   : > { %v1419_v24 = vpop.f32.mrf.mxu3  ;;  %1547 = vst.msk [vmem:[%s3043_s7 + $0x38] sm:$0xff] %vm380_vm0, %v1515_v28  ;;  %v954_v39 = vadd.f32 %v953_v52, %v841_v34 }
 0x1f2   : > { %v1420_v7 = vadd.f32 %v1419_v24, %v1306_v15  ;;  %v634_v37 = vpop.f32.mrf.mxu0  ;;  %1564 = vst.msk [vmem:[%s3043_s7 + $0xc0] sm:$0xff] %vm380_vm0, %v1532_v10 }
 0x1f3   : > { %v1448_v5 = vadd.f32 %v2942_v38, %v954_v39  ;;  %v635_v47 = vadd.f32 %v634_v37, %v3332_v29 }
 0x1f4   : > { %v1465_v3 = vadd.f32 %v1420_v7, %v1005_v33  ;;  %v1014_v33 = vadd.f32 %v3340_v8, %v3000_v45 }
 0x1f5   : > { %v1484_v48 = vadd.f32 %v3033_v11, %v1448_v5  ;;  %v844_v58 = vadd.f32 %v3333_v31, %v635_v47 }
 0x1f6   : > { %v1501_v54 = vadd.f32 %v3033_v11, %v1465_v3  ;;  %v1309_v0 = vpop.f32.mrf.mxu1  ;;  %v3341_v3 = vld [vmem:[#allocation44_spill] sm:$0xff] }
 0x1f7   : > { %v1516_v35 = vmax.f32 %v1484_v48, 0.0 }
 0x1f8   : > { %v1533_v27 = vmax.f32 %v1501_v54, 0.0  ;;  %v956_v50 = vpop.f32.mrf.mxu2 }
 0x1f9   : > { %v1422_v9 = vpop.f32.mrf.mxu3  ;;  %1548 = vst.msk [vmem:[%s3043_s7 + $0x40] sm:$0xff] %vm380_vm0, %v1516_v35  ;;  %v957_v38 = vadd.f32 %v956_v50, %v844_v58  ;;  %v3342_v35 = vld [vmem:[#allocation45_spill] sm:$0xff]  ;;  %v3343_v50 = vld [vmem:[#allocation46_spill] sm:$0xff] }
 0x1fa   : > { %v1423_v20 = vadd.f32 %v1422_v9, %v1309_v0  ;;  %v637_v17 = vpop.f32.mrf.mxu0  ;;  %1565 = vst.msk [vmem:[%s3043_s7 + $0xc8] sm:$0xff] %vm380_vm0, %v1533_v27  ;;  %v1017_v9 = vadd.f32 %v3343_v50, %v3012_v44 }
 0x1fb   : > { %v1449_v16 = vadd.f32 %v2954_v32, %v957_v38  ;;  %v638_v41 = vadd.f32 %v637_v17, %v3335_v22  ;;  %v3344_v17 = vld [vmem:[#allocation47_spill] sm:$0xff] }
 0x1fc   : > { %v1466_v56 = vadd.f32 %v1423_v20, %v1008_v51 }
 0x1fd   : > { %v1485_v57 = vadd.f32 %v3033_v11, %v1449_v16  ;;  %v847_v36 = vadd.f32 %v3336_v21, %v638_v41  ;;  %v3346_v21 = vld [vmem:[#allocation49_spill] sm:$0xff] }
 0x1fe   : > { %v1502_v12 = vadd.f32 %v3033_v11, %v1466_v56  ;;  %v1312_v59 = vpop.f32.mrf.mxu1 }
 0x1ff   : > { %v1517_v18 = vmax.f32 %v1485_v57, 0.0 }
 0x200   : > { %v1534_v23 = vmax.f32 %v1502_v12, 0.0  ;;  %v959_v25 = vpop.f32.mrf.mxu2  ;;  %v3345_v12 = vld [vmem:[#allocation48_spill] sm:$0xff] }
 0x201   : > { %v1425_v42 = vpop.f32.mrf.mxu3  ;;  %1549 = vst.msk [vmem:[%s3043_s7 + $0x48] sm:$0xff] %vm380_vm0, %v1517_v18  ;;  %v960_v32 = vadd.f32 %v959_v25, %v847_v36  ;;  %v1020_v36 = vadd.f32 %v3346_v21, %v3028_v13 }
 0x202   : > { %v1426_v61 = vadd.f32 %v1425_v42, %v1312_v59  ;;  %v640_v4 = vpop.f32.mrf.mxu0  ;;  %1566 = vst.msk [vmem:[%s3043_s7 + $0xd0] sm:$0xff] %vm380_vm0, %v1534_v23 }
 0x203   : > { %v1450_v53 = vadd.f32 %v2966_v6, %v960_v32  ;;  %v641_v40 = vadd.f32 %v640_v4, %v3338_v49  ;;  %v3347_v32 = vld [vmem:[#allocation50_spill] sm:$0xff] }
 0x204   : > { %v1467_v46 = vadd.f32 %v1426_v61, %v1011_v1 }
 0x205   : > { %v1486_v26 = vadd.f32 %v3033_v11, %v1450_v53  ;;  %v850_v34 = vadd.f32 %v3339_v14, %v641_v40  ;;  %v3348_v40 = vld [vmem:[#allocation51_spill] sm:$0xff] }
 0x206   : > { %v1503_v15 = vadd.f32 %v3033_v11, %v1467_v46  ;;  %v1315_v28 = vpop.f32.mrf.mxu1 }
 0x207   : > { %v1518_v63 = vmax.f32 %v1486_v26, 0.0 }
 0x208   : > { %v1535_v10 = vmax.f32 %v1503_v15, 0.0  ;;  %v962_v52 = vpop.f32.mrf.mxu2 }
 0x209   : > { %v1428_v24 = vpop.f32.mrf.mxu3  ;;  %1550 = vst.msk [vmem:[%s3043_s7 + $0x50] sm:$0xff] %vm380_vm0, %v1518_v63  ;;  %v963_v6 = vadd.f32 %v962_v52, %v850_v34  ;;  %v3349_v63 = vld [vmem:[#allocation52_spill] sm:$0xff] }
 0x20a   : > { %v1429_v39 = vadd.f32 %v1428_v24, %v1315_v28  ;;  %v643_v7 = vpop.f32.mrf.mxu0  ;;  %1567 = vst.msk [vmem:[%s3043_s7 + $0xd8] sm:$0xff] %vm380_vm0, %v1535_v10  ;;  %v1023_v10 = vadd.f32 %v3349_v63, %v3049_v2 }
 0x20b   : > { %v1451_v37 = vadd.f32 %v2978_v30, %v963_v6  ;;  %v644_v29 = vadd.f32 %v643_v7, %v3341_v3 }
 0x20c   : > { %v1468_v5 = vadd.f32 %v1429_v39, %v1014_v33 }
 0x20d   : > { %v1487_v47 = vadd.f32 %v3033_v11, %v1451_v37  ;;  %v853_v27 = vadd.f32 %v3342_v35, %v644_v29 }
 0x20e   : > { %v1504_v48 = vadd.f32 %v3033_v11, %v1468_v5  ;;  %v1318_v54 = vpop.f32.mrf.mxu1 }
 0x20f   : > { %v1519_v45 = vmax.f32 %v1487_v47, 0.0 }
 0x210   : > { %v1536_v0 = vmax.f32 %v1504_v48, 0.0  ;;  %v965_v31 = vpop.f32.mrf.mxu2 }
 0x211   : > { %v1431_v58 = vpop.f32.mrf.mxu3  ;;  %1551 = vst.msk [vmem:[%s3043_s7 + $0x58] sm:$0xff] %vm380_vm0, %v1519_v45  ;;  %v966_v30 = vadd.f32 %v965_v31, %v853_v27 }
 0x212   : > { %v1432_v60 = vadd.f32 %v1431_v58, %v1318_v54  ;;  %v646_v51 = vpop.f32.mrf.mxu0  ;;  %1568 = vst.msk [vmem:[%s3043_s7 + $0xe0] sm:$0xff] %vm380_vm0, %v1536_v0 }
 0x213   : > { %v1452_v38 = vadd.f32 %v2990_v55, %v966_v30  ;;  %v647_v16 = vadd.f32 %v646_v51, %v3344_v17 }
 0x214   : > { %v1469_v20 = vadd.f32 %v1432_v60, %v1017_v9 }
 0x215   : > { %v1488_v56 = vadd.f32 %v3033_v11, %v1452_v38  ;;  %v856_v59 = vadd.f32 %v3345_v12, %v647_v16 }
 0x216   : > { %v1505_v22 = vadd.f32 %v3033_v11, %v1469_v20  ;;  %v1321_v41 = vpop.f32.mrf.mxu1 }
 0x217   : > { %v1520_v44 = vmax.f32 %v1488_v56, 0.0 }
 0x218   : > { %v1537_v57 = vmax.f32 %v1505_v22, 0.0  ;;  %v968_v18 = vpop.f32.mrf.mxu2 }
 0x219   : > { %v1434_v23 = vpop.f32.mrf.mxu3  ;;  %1552 = vst.msk [vmem:[%s3043_s7 + $0x60] sm:$0xff] %vm380_vm0, %v1520_v44  ;;  %v969_v55 = vadd.f32 %v968_v18, %v856_v59 }
 0x21a   : > { %v1435_v25 = vadd.f32 %v1434_v23, %v1321_v41  ;;  %v649_v42 = vpop.f32.mrf.mxu0  ;;  %1569 = vst.msk [vmem:[%s3043_s7 + $0xe8] sm:$0xff] %vm380_vm0, %v1537_v57 }
 0x21b   : > { %v1453_v43 = vadd.f32 %v3002_v62, %v969_v55  ;;  %v650_v61 = vadd.f32 %v649_v42, %v3347_v32 }
 0x21c   : > { %v1470_v1 = vadd.f32 %v1435_v25, %v1020_v36 }
 0x21d   : > { %v1489_v4 = vadd.f32 %v3033_v11, %v1453_v43  ;;  %v859_v26 = vadd.f32 %v3348_v40, %v650_v61 }
 0x21e   : > { %v1506_v53 = vadd.f32 %v3033_v11, %v1470_v1  ;;  %v1324_v46 = vpop.f32.mrf.mxu1 }
 0x21f   : > { %v1521_v13 = vmax.f32 %v1489_v4, 0.0 }
 0x220   : > { %v1538_v49 = vmax.f32 %v1506_v53, 0.0  ;;  %v971_v15 = vpop.f32.mrf.mxu2 }
 0x221   : > { %v1437_v28 = vpop.f32.mrf.mxu3  ;;  %1553 = vst.msk [vmem:[%s3043_s7 + $0x68] sm:$0xff] %vm380_vm0, %v1521_v13  ;;  %v972_v62 = vadd.f32 %v971_v15, %v859_v26 }
 0x222   : > { %v1438_v14 = vadd.f32 %v1437_v28, %v1324_v46  ;;  %1570 = vst.msk [vmem:[%s3043_s7 + $0xf0] sm:$0xff] %vm380_vm0, %v1538_v49 }
 0x223   : > { %v1454_v34 = vadd.f32 %v3014_v19, %v972_v62 }
 0x224   : > { %v1471_v52 = vadd.f32 %v1438_v14, %v1023_v10 }
 0x225   : > { %v1490_v24 = vadd.f32 %v3033_v11, %v1454_v34 }
 0x226   : > { %v1507_v8 = vadd.f32 %v3033_v11, %v1471_v52 }
 0x227   : > { %v1522_v33 = vmax.f32 %v1490_v24, 0.0 }
 0x228   : > { %v1539_v6 = vmax.f32 %v1507_v8, 0.0 }
 0x229   : > { %1554 = vst.msk [vmem:[%s3043_s7 + $0x70] sm:$0xff] %vm380_vm0, %v1522_v33 }
 0x22a   : > { %1571 = vst.msk [vmem:[%s3043_s7 + $0xf8] sm:$0xff] %vm380_vm0, %v1539_v6 }
 0x22b PF: > { %s13_s14 = sadd.s32 1, %s2016_s14   ;;  %s3350_s12 = smov %s2012_s13 }
 0x22c   : > { %p10_p5 = scmp.ge.s32.totalorder %s13_s14, 4   ;;  %s3351_s13 = smov %s3353_s15 }
 0x22e   :  { %12 = sbr.rel (!%p10_p5) target bundleno = 2 (0x2), region = 67 }

// kernel: spatial_path_forward.6
= control target key start
LH: loop header
LB: loop body
LE: loop exit
PB: predicated region body
PF: predicated region fallthrough
CT: control target
= control target key end

     0   :  { %s974_s12 = smov 0   ;;  %s976_s13 = smov 0   ;;  %s1429_s0 = inlined_call_operand.vmem [shape: f32[2,2,9,8,192], index: 0, kind: input, shape index: {}]   ;;  %s1430_s1 = inlined_call_operand.vmem [shape: f32[3,192,64], index: 1, kind: input, shape index: {}]   ;;  %s1431_s2 = inlined_call_operand.vmem [shape: f32[1,64], index: 2, kind: input, shape index: {}]   ;;  %s1432_s3 = inlined_call_operand.vmem [shape: f32[2,8,8,64], index: 3, kind: output, shape index: {}]  }
   0x1   :  { %s978_s14 = smov 0  }
   0x2 LB: > { %s25_s15 = sadd.s32 1, %s948_s13  ;;  %p777_p0 = scmp.ge.s32.totalorder %s952_s14, 1  ;;  %s952_s14 = sphi %s978_s14, %s13_s14   ;;  %s948_s13 = sphi %s976_s13, %s1434_s13   ;;  %s944_s12 = sphi %s974_s12, %s1433_s12  }
   0x3   : > { %p27_p1 = scmp.ge.s32.totalorder %s25_s15, 2  ;;  %p151_p2 = scmp.lt.s32.totalorder %s952_s14, 3 }
   0x5   : > { %s1436_s15 = smov (%p27_p1, %s25_s15), 0  ;;  %p152_p3 = pnand %p777_p0, %p151_p2 }
   0x6   : > { %p179_p4 = scmp.lt.s32.totalorder (!%p152_p3), %s944_s12, 1 }
   0x7   : > { %155 = sbr.rel (%p152_p3) target bundleno = 268 (0x10c), region = 32 }
   0xc   : > { %v812_v0 = vld [vmem:[%s1430_s1 + $0x138] sm:$0xff]  ;;  %v811_v3 = vld [vmem:[%s1430_s1 + $0x130] sm:$0xff]  ;;  %v810_v6 = vld [vmem:[%s1430_s1 + $0x128] sm:$0xff]  ;;  %s1438_s12 = smov (!%p179_p4, %s944_s12), 1  ;;  %vm282_vm0 = vcmask 523264  }
   0xd   : > { %v229_v1 = vld [vmem:[%s1430_s1 + $0x78] sm:$0xff]  ;;  %307 = vmatpush.msra.mxu0 %v812_v0  ;;  %v228_v4 = vld [vmem:[%s1430_s1 + $0x70] sm:$0xff]  ;;  %v227_v7 = vld [vmem:[%s1430_s1 + $0x68] sm:$0xff]  ;;  %s904_s4 = smul.u32 288, %s1438_s12  ;;  %s887_s5 = sshll.u32 %s1438_s12, 6 }
   0xe   : > { %v1001_v2 = vld [vmem:[%s1430_s1 + $0xb8] sm:$0xff]  ;;  %413 = vmatpush.msra.mxu2 %v229_v1  ;;  %v1012_v5 = vld [vmem:[%s1430_s1 + $0xb0] sm:$0xff]  ;;  %v1024_v8 = vld [vmem:[%s1430_s1 + $0xa8] sm:$0xff]  ;;  %s1386_s7 = scalar_lea.vmem %s1432_s3, %s887_s5 }
   0xf   : > { %896 = vmatpush.msra.mxu3 %v1001_v2  ;;  %308 = vmatpush.msra.mxu0 %v811_v3  ;;  %v1029_v9 = vld [vmem:[%s1430_s1 + $0x178] sm:$0xff]  ;;  %v809_v10 = vld [vmem:[%s1430_s1 + $0x120] sm:$0xff]  ;;  %v1044_v12 = vld [vmem:[%s1430_s1 + $0x170] sm:$0xff]  ;;  %s1109_s25 = scalar_lea.vmem %s1429_s0, %s904_s4 }
  0x10   : > { %414 = vmatpush.msra.mxu2 %v228_v4  ;;  %888 = vmatpush.msra.mxu1 %v1029_v9  ;;  %v226_v11 = vld [vmem:[%s1430_s1 + $0x60] sm:$0xff]  ;;  %v808_v14 = vld [vmem:[%s1430_s1 + $0x118] sm:$0xff]  ;;  %v1062_v16 = vld [vmem:[%s1430_s1 + $0x168] sm:$0xff] }
  0x11   : > { %897 = vmatpush.msra.mxu3 %v1012_v5  ;;  %309 = vmatpush.msra.mxu0 %v810_v6  ;;  %v1049_v13 = vld [vmem:[%s1430_s1 + $0xa0] sm:$0xff]  ;;  %v225_v15 = vld [vmem:[%s1430_s1 + $0x58] sm:$0xff]  ;;  %v807_v19 = vld [vmem:[%s1430_s1 + $0x110] sm:$0xff] }
  0x12   : > { %415 = vmatpush.msra.mxu2 %v227_v7  ;;  %889 = vmatpush.msra.mxu1 %v1044_v12  ;;  %v1067_v17 = vld [vmem:[%s1430_s1 + $0x98] sm:$0xff]  ;;  %v1072_v18 = vld [vmem:[%s1430_s1 + $0x160] sm:$0xff]  ;;  %v224_v20 = vld [vmem:[%s1430_s1 + $0x50] sm:$0xff] }
  0x13   : > { %898 = vmatpush.msra.mxu3 %v1024_v8  ;;  %310 = vmatpush.msra.mxu0 %v809_v10  ;;  %v1086_v21 = vld [vmem:[%s1430_s1 + $0x90] sm:$0xff]  ;;  %v1091_v22 = vld [vmem:[%s1430_s1 + $0x158] sm:$0xff]  ;;  %v806_v23 = vld [vmem:[%s1430_s1 + $0x108] sm:$0xff] }
  0x14   : > { %416 = vmatpush.msra.mxu2 %v226_v11  ;;  %890 = vmatpush.msra.mxu1 %v1062_v16  ;;  %v223_v24 = vld [vmem:[%s1430_s1 + $0x48] sm:$0xff]  ;;  %v1114_v26 = vld [vmem:[%s1430_s1 + $0x150] sm:$0xff]  ;;  %v805_v27 = vld [vmem:[%s1430_s1 + $0x100] sm:$0xff] }
  0x15   : > { %899 = vmatpush.msra.mxu3 %v1049_v13  ;;  %311 = vmatpush.msra.mxu0 %v808_v14  ;;  %v1104_v25 = vld [vmem:[%s1430_s1 + $0x88] sm:$0xff]  ;;  %v222_v28 = vld [vmem:[%s1430_s1 + $0x40] sm:$0xff]  ;;  %v1136_v31 = vld [vmem:[%s1109_s25 + $0x38] sm:$0xff] }
  0x16   : > { %417 = vmatpush.msra.mxu2 %v225_v15  ;;  %891 = vmatpush.msra.mxu1 %v1072_v18  ;;  %v1127_v29 = vld [vmem:[%s1430_s1 + $0x80] sm:$0xff]  ;;  %v1132_v30 = vld [vmem:[%s1430_s1 + $0x148] sm:$0xff]  ;;  %v804_v32 = vld [vmem:[%s1430_s1 + $0xf8] sm:$0xff] }
  0x17   : > { %900 = vmatpush.msra.mxu3 %v1067_v17  ;;  %312 = vmatpush.msra.mxu0 %v807_v19  ;;  %v876_v33 = vld [vmem:[%s1430_s1 + $0x238] sm:$0xff]  ;;  %v803_v35 = vld [vmem:[%s1430_s1 + $0xf0] sm:$0xff]  ;;  %v1156_v36 = vld [vmem:[%s1430_s1 + $0x140] sm:$0xff] }
  0x18   : > { %418 = vmatpush.msra.mxu2 %v224_v20  ;;  %892 = vmatpush.msra.mxu1 %v1091_v22  ;;  %v221_v34 = vld [vmem:[%s1430_s1 + $0x38] sm:$0xff]  ;;  %v220_v37 = vld [vmem:[%s1430_s1 + $0x30] sm:$0xff]  ;;  %v802_v39 = vld [vmem:[%s1430_s1 + $0xe8] sm:$0xff] }
  0x19   : > { %901 = vmatpush.msra.mxu3 %v1086_v21  ;;  %313 = vmatpush.msra.mxu0 %v806_v23  ;;  %v875_v38 = vld [vmem:[%s1430_s1 + $0x230] sm:$0xff]  ;;  %v788_v40 = vld [vmem:[%s1109_s25 + $0xc8] sm:$0xff]  ;;  %v868_v42 = vld [vmem:[%s1430_s1 + $0x1f8] sm:$0xff] }
  0x1a   : > { %419 = vmatpush.msra.mxu2 %v223_v24  ;;  %893 = vmatpush.msra.mxu1 %v1114_v26  ;;  %v219_v41 = vld [vmem:[%s1430_s1 + $0x28] sm:$0xff]  ;;  %v801_v43 = vld [vmem:[%s1430_s1 + $0xe0] sm:$0xff]  ;;  %v867_v46 = vld [vmem:[%s1430_s1 + $0x1f0] sm:$0xff] }
  0x1b   : > { %902 = vmatpush.msra.mxu3 %v1104_v25  ;;  %314 = vmatpush.msra.mxu0 %v805_v27  ;;  %v874_v44 = vld [vmem:[%s1430_s1 + $0x228] sm:$0xff]  ;;  %v218_v45 = vld [vmem:[%s1430_s1 + $0x20] sm:$0xff]  ;;  %v800_v48 = vld [vmem:[%s1430_s1 + $0xd8] sm:$0xff] }
  0x1c   : > { %420 = vmatpush.msra.mxu2 %v222_v28  ;;  %894 = vmatpush.msra.mxu1 %v1132_v30  ;;  %v1191_v47 = vld [vmem:[%s1109_s25 + $0x48] sm:$0xff]  ;;  %v217_v49 = vld [vmem:[%s1430_s1 + $0x18] sm:$0xff]  ;;  %v799_v51 = vld [vmem:[%s1430_s1 + $0xd0] sm:$0xff] }
  0x1d   : > { %903 = vmatpush.msra.mxu3 %v1127_v29  ;;  %315 = vmatpush.msra.mxu0 %v804_v32  ;;  %v866_v50 = vld [vmem:[%s1430_s1 + $0x1e8] sm:$0xff]  ;;  %v873_v52 = vld [vmem:[%s1430_s1 + $0x220] sm:$0xff]  ;;  %v216_v53 = vld [vmem:[%s1430_s1 + $0x10] sm:$0xff] }
  0x1e   : > { %832 = vmatmul.msk.f32.vlgmr.msra.gmra.mxu3 %vm282_vm0, %v1136_v31  ;;  %421 = vmatpush.msra.mxu2 %v221_v34  ;;  %v865_v54 = vld [vmem:[%s1430_s1 + $0x1e0] sm:$0xff]  ;;  %v798_v55 = vld [vmem:[%s1430_s1 + $0xc8] sm:$0xff]  ;;  %v790_v56 = vld [vmem:[%s1109_s25 + $0xd8] sm:$0xff] }
  0x1f   : > { %613 = vmatpush.msrb.mxu3 %v876_v33  ;;  %316 = vmatpush.msra.mxu0 %v803_v35  ;;  %v215_v57 = vld [vmem:[%s1430_s1 + $0x8] sm:$0xff]  ;;  %v864_v58 = vld [vmem:[%s1430_s1 + $0x1d8] sm:$0xff]  ;;  %v797_v59 = vld [vmem:[%s1430_s1 + $0xc0] sm:$0xff] }
  0x20   : > { %895 = vmatpush.msra.mxu1 %v1156_v36  ;;  %422 = vmatpush.msra.mxu2 %v220_v37  ;;  %v872_v60 = vld [vmem:[%s1430_s1 + $0x218] sm:$0xff]  ;;  %v214_v61 = vld [vmem:[%s1430_s1] sm:$0xff]  ;;  %v781_v62 = vld [vmem:[%s1109_s25 + $0x90] sm:$0xff] }
  0x21   : > { %614 = vmatpush.msrb.mxu3 %v875_v38  ;;  %317 = vmatpush.msra.mxu0 %v802_v39  ;;  %v198_v63 = vld [vmem:[%s1109_s25] sm:$0xff]  ;;  %v1239_v0 = vld [vmem:[%s1109_s25 + $0x58] sm:$0xff]  ;;  %v863_v1 = vld [vmem:[%s1430_s1 + $0x1d0] sm:$0xff] }
  0x22   : > { %824 = vmatmul.msk.f32.vlgmr.msra.gmra.mxu1 %vm282_vm0, %v788_v40  ;;  %423 = vmatpush.msra.mxu2 %v219_v41  ;;  %v871_v3 = vld [vmem:[%s1430_s1 + $0x210] sm:$0xff]  ;;  %v862_v4 = vld [vmem:[%s1430_s1 + $0x1c8] sm:$0xff]  ;;  %v869_v10 = vld [vmem:[%s1430_s1 + $0x200] sm:$0xff] }
  0x23   : > { %564 = vmatpush.msrb.mxu1 %v868_v42  ;;  %318 = vmatpush.msra.mxu0 %v801_v43  ;;  %v870_v6 = vld [vmem:[%s1430_s1 + $0x208] sm:$0xff]  ;;  %v200_v11 = vld [vmem:[%s1109_s25 + $0x10] sm:$0xff]  ;;  %v202_v19 = vld [vmem:[%s1109_s25 + $0x20] sm:$0xff] }
  0x24   : > { %615 = vmatpush.msrb.mxu3 %v874_v44  ;;  %424 = vmatpush.msra.mxu2 %v218_v45  ;;  %v792_v7 = vld [vmem:[%s1109_s25 + $0xe8] sm:$0xff]  ;;  %v1294_v20 = vld [vmem:[%s1109_s25 + $0x78] sm:$0xff]  ;;  %v204_v23 = vld [vmem:[%s1109_s25 + $0x30] sm:$0xff] }
  0x25   : > { %565 = vmatpush.msrb.mxu1 %v867_v46  ;;  %319 = vmatpush.msra.mxu0 %v800_v48  ;;  %v1270_v14 = vld [vmem:[%s1109_s25 + $0x68] sm:$0xff]  ;;  %v838_v24 = vld [vmem:[%s1109_s25 + $0x18] sm:$0xff]  ;;  %v789_v27 = vld [vmem:[%s1109_s25 + $0xd0] sm:$0xff] }
  0x26   : > { %833 = vmatmul.msk.f32.gmra.mxu3 %vm282_vm0, %v1191_v47  ;;  %425 = vmatpush.msra.mxu2 %v217_v49  ;;  %v858_v15 = vld [vmem:[%s1430_s1 + $0x1a8] sm:$0xff]  ;;  %v206_v28 = vld [vmem:[%s1109_s25 + $0x40] sm:$0xff]  ;;  %v208_v32 = vld [vmem:[%s1109_s25 + $0x50] sm:$0xff] }
  0x27   : > { %566 = vmatpush.msrb.mxu1 %v866_v50  ;;  %320 = vmatpush.msra.mxu0 %v799_v51  ;;  %v793_v33 = vld [vmem:[%s1109_s25 + $0xf0] sm:$0xff]  ;;  %v210_v34 = vld [vmem:[%s1109_s25 + $0x60] sm:$0xff]  ;;  %v199_v37 = vld [vmem:[%s1109_s25 + $0x8] sm:$0xff] }
  0x28   : > { %616 = vmatpush.msrb.mxu3 %v873_v52  ;;  %426 = vmatpush.msra.mxu2 %v216_v53  ;;  %v795_v35 = vld [vmem:[%s1109_s25 + $0x100] sm:$0xff]  ;;  %v784_v38 = vld [vmem:[%s1109_s25 + $0xa8] sm:$0xff]  ;;  %v786_v39 = vld [vmem:[%s1109_s25 + $0xb8] sm:$0xff] }
  0x29   : > { %567 = vmatpush.msrb.mxu1 %v865_v54  ;;  %321 = vmatpush.msra.mxu0 %v798_v55  ;;  %v852_v40 = vld [vmem:[%s1109_s25 + $0x88] sm:$0xff]  ;;  %v851_v41 = vld [vmem:[%s1109_s25 + $0x80] sm:$0xff] }
  0x2a   : > { %825 = vmatmul.msk.f32.gmra.mxu1 %vm282_vm0, %v790_v56  ;;  %427 = vmatpush.msra.mxu2 %v215_v57 }
  0x2b   : > { %568 = vmatpush.msrb.mxu1 %v864_v58  ;;  %322 = vmatpush.msra.mxu0 %v797_v59 }
  0x2c   : > { %617 = vmatpush.msrb.mxu3 %v872_v60  ;;  %428 = vmatpush.msra.mxu2 %v214_v61 }
  0x2d   : > { %323 = vmatmul.f32.vlgmr.msra.gmra.mxu0 %v781_v62  ;;  %429 = vmatmul.f32.vlgmr.msra.gmra.mxu2 %v198_v63 }
  0x2e   : > { %834 = vmatmul.msk.f32.gmra.mxu3 %vm282_vm0, %v1239_v0  ;;  %462 = vmatpush.msrb.mxu2 %v1001_v2  ;;  %v861_v2 = vld [vmem:[%s1430_s1 + $0x1c0] sm:$0xff] }
  0x2f   : > { %356 = vmatpush.msrb.mxu0 %v1029_v9  ;;  %569 = vmatpush.msrb.mxu1 %v863_v1  ;;  %v783_v9 = vld [vmem:[%s1109_s25 + $0xa0] sm:$0xff] }
  0x30   : > { %618 = vmatpush.msrb.mxu3 %v871_v3  ;;  %463 = vmatpush.msrb.mxu2 %v1012_v5  ;;  %v860_v5 = vld [vmem:[%s1430_s1 + $0x1b8] sm:$0xff] }
  0x31   : > { %357 = vmatpush.msrb.mxu0 %v1044_v12  ;;  %570 = vmatpush.msrb.mxu1 %v862_v4  ;;  %v794_v12 = vld [vmem:[%s1109_s25 + $0xf8] sm:$0xff] }
  0x32   : > { %619 = vmatpush.msrb.mxu3 %v870_v6  ;;  %826 = vmatmul.msk.f32.gmra.mxu1 %vm282_vm0, %v792_v7 }
  0x33   : > { %464 = vmatpush.msrb.mxu2 %v1024_v8  ;;  %571 = vmatpush.msrb.mxu1 %v861_v2  ;;  %v859_v8 = vld [vmem:[%s1430_s1 + $0x1b0] sm:$0xff] }
  0x34   : > { %358 = vmatpush.msrb.mxu0 %v1062_v16  ;;  %620 = vmatpush.msrb.mxu3 %v869_v10  ;;  %v785_v16 = vld [vmem:[%s1109_s25 + $0xb0] sm:$0xff] }
  0x35   : > { %326 = vmatmul.f32.gmra.mxu0 %v783_v9  ;;  %432 = vmatmul.f32.gmra.mxu2 %v200_v11 }
  0x36   : > { %835 = vmatmul.msk.f32.gmra.mxu3 %vm282_vm0, %v1270_v14  ;;  %572 = vmatpush.msrb.mxu1 %v860_v5 }
  0x37   : > { %465 = vmatpush.msrb.mxu2 %v1049_v13  ;;  %359 = vmatpush.msrb.mxu0 %v1072_v18  ;;  %v857_v13 = vld [vmem:[%s1430_s1 + $0x1a0] sm:$0xff]  ;;  %v796_v18 = vld [vmem:[%s1109_s25 + $0x108] sm:$0xff] }
  0x38   : > { %573 = vmatpush.msrb.mxu1 %v859_v8 }
  0x39   : > { %466 = vmatpush.msrb.mxu2 %v1067_v17  ;;  %360 = vmatpush.msrb.mxu0 %v1091_v22  ;;  %v856_v17 = vld [vmem:[%s1430_s1 + $0x198] sm:$0xff]  ;;  %v787_v22 = vld [vmem:[%s1109_s25 + $0xc0] sm:$0xff] }
  0x3a   : > { %827 = vmatmul.msk.f32.gmra.mxu1 %vm282_vm0, %v794_v12 }
  0x3b   : > { %467 = vmatpush.msrb.mxu2 %v1086_v21  ;;  %574 = vmatpush.msrb.mxu1 %v858_v15  ;;  %v855_v21 = vld [vmem:[%s1430_s1 + $0x190] sm:$0xff]  ;;  %v1379_v15 = vld [vmem:[%s1431_s2] ss:$0 sm:$0xff] }
  0x3c   : > { %361 = vmatpush.msrb.mxu0 %v1114_v26  ;;  %v853_v26 = vld [vmem:[%s1430_s1 + $0x180] sm:$0xff] }
  0x3d   : > { %329 = vmatmul.f32.gmra.mxu0 %v785_v16  ;;  %468 = vmatpush.msrb.mxu2 %v1104_v25  ;;  %v854_v25 = vld [vmem:[%s1430_s1 + $0x188] sm:$0xff] }
  0x3e   : > { %435 = vmatmul.f32.gmra.mxu2 %v202_v19  ;;  %836 = vmatmul.msk.f32.gmra.mxu3 %vm282_vm0, %v1294_v20 }
  0x3f   : > { %575 = vmatpush.msrb.mxu1 %v857_v13  ;;  %362 = vmatpush.msrb.mxu0 %v1132_v30  ;;  %v791_v30 = vld [vmem:[%s1109_s25 + $0xe0] sm:$0xff] }
  0x40   : > { %469 = vmatpush.msrb.mxu2 %v1127_v29  ;;  %v840_v29 = vld [vmem:[%s1109_s25 + $0x28] sm:$0xff] }
  0x41   : > { %576 = vmatpush.msrb.mxu1 %v856_v17  ;;  %363 = vmatpush.msrb.mxu0 %v1156_v36  ;;  %v212_v36 = vld [vmem:[%s1109_s25 + $0x70] sm:$0xff] }
  0x42   : > { %828 = vmatmul.msk.f32.gmra.mxu1 %vm282_vm0, %v796_v18 }
  0x43   : > { %577 = vmatpush.msrb.mxu1 %v855_v21 }
  0x45   : > { %332 = vmatmul.f32.gmra.mxu0 %v787_v22  ;;  %578 = vmatpush.msrb.mxu1 %v854_v25 }
  0x46   : > { %438 = vmatmul.f32.gmra.mxu2 %v204_v23  ;;  %877 = vmatmul.msk.f32.vlgmr.msrb.gmra.mxu3 %vm282_vm0, %v838_v24 }
  0x47   : > { %579 = vmatpush.msrb.mxu1 %v853_v26 }
  0x4a   : > { %580 = vmatmul.f32.vlgmr.msrb.gmra.mxu1 %v200_v11 }
  0x4d   : > { %335 = vmatmul.f32.gmra.mxu0 %v789_v27 }
  0x4e   : > { %441 = vmatmul.f32.gmra.mxu2 %v206_v28  ;;  %878 = vmatmul.msk.f32.gmra.mxu3 %vm282_vm0, %v840_v29 }
  0x52   : > { %583 = vmatmul.f32.gmra.mxu1 %v202_v19 }
  0x55   : > { %338 = vmatmul.f32.gmra.mxu0 %v791_v30 }
  0x56   : > { %444 = vmatmul.f32.gmra.mxu2 %v208_v32  ;;  %879 = vmatmul.msk.f32.gmra.mxu3 %vm282_vm0, %v1136_v31  ;;  %v782_v31 = vld [vmem:[%s1109_s25 + $0x98] sm:$0xff] }
  0x5a   : > { %586 = vmatmul.f32.gmra.mxu1 %v204_v23 }
  0x5d   : > { %341 = vmatmul.f32.gmra.mxu0 %v793_v33 }
  0x5e   : > { %447 = vmatmul.f32.gmra.mxu2 %v210_v34  ;;  %880 = vmatmul.msk.f32.gmra.mxu3 %vm282_vm0, %v1191_v47 }
  0x62   : > { %589 = vmatmul.f32.gmra.mxu1 %v206_v28 }
  0x65   : > { %344 = vmatmul.f32.gmra.mxu0 %v795_v35 }
  0x66   : > { %450 = vmatmul.f32.gmra.mxu2 %v212_v36  ;;  %881 = vmatmul.msk.f32.gmra.mxu3 %vm282_vm0, %v1239_v0 }
  0x6a   : > { %592 = vmatmul.f32.gmra.mxu1 %v208_v32 }
  0x6d   : > { %821 = vmatmul.msk.f32.vlgmr.msrb.gmra.mxu0 %vm282_vm0, %v782_v31 }
  0x6e   : > { %829 = vmatmul.msk.f32.vlgmr.msrb.gmra.mxu2 %vm282_vm0, %v199_v37  ;;  %882 = vmatmul.msk.f32.gmra.mxu3 %vm282_vm0, %v1270_v14 }
  0x72   : > { %595 = vmatmul.f32.gmra.mxu1 %v210_v34 }
  0x75   : > { %822 = vmatmul.msk.f32.gmra.mxu0 %vm282_vm0, %v784_v38 }
  0x76   : > { %830 = vmatmul.msk.f32.gmra.mxu2 %vm282_vm0, %v838_v24  ;;  %883 = vmatmul.msk.f32.gmra.mxu3 %vm282_vm0, %v1294_v20 }
  0x7a   : > { %598 = vmatmul.f32.gmra.mxu1 %v212_v36 }
  0x7d   : > { %823 = vmatmul.msk.f32.gmra.mxu0 %vm282_vm0, %v786_v39 }
  0x7e   : > { %831 = vmatmul.msk.f32.gmra.mxu2 %vm282_vm0, %v840_v29  ;;  %884 = vmatmul.msk.f32.gmra.mxu3 %vm282_vm0, %v852_v40 }
  0x82   : > { %601 = vmatmul.f32.gmra.mxu1 %v851_v41 }
  0x9f   : > { %v374_v42 = vpop.f32.mrf.mxu1 }
  0xa1   : > { %v480_v43 = vpop.f32.mrf.mxu3 }
  0xa7   : > { %v377_v44 = vpop.f32.mrf.mxu1 }
  0xa9   : > { %v483_v45 = vpop.f32.mrf.mxu3 }
  0xaa   : > { %v324_v46 = vpop.f32.mrf.mxu0 }
  0xaf   : > { %v380_v47 = vpop.f32.mrf.mxu1 }
  0xb0   : > { %v430_v48 = vpop.f32.mrf.mxu2 }
  0xb1   : > { %v486_v49 = vpop.f32.mrf.mxu3 }
  0xb2   : > { %v1358_v50 = vpop.f32.mrf.mxu0 }
  0xb7   : > { %v383_v51 = vpop.f32.mrf.mxu1 }
  0xb8   : > { %v1360_v52 = vpop.f32.mrf.mxu2 }
  0xb9   : > { %v1362_v53 = vpop.f32.mrf.mxu3 }
  0xba   : > { %v1364_v54 = vpop.f32.mrf.mxu0 }
  0xbf   : > { %v1366_v55 = vpop.f32.mrf.mxu1 }
  0xc1   : > { %v1368_v56 = vpop.f32.mrf.mxu2  ;;  %v1370_v57 = vpop.f32.mrf.mxu3 }
  0xc2   : > { %v333_v58 = vpop.f32.mrf.mxu0 }
  0xc3   : > { %v375_v9 = vadd.f32 %v374_v42, %v333_v58 }
  0xc7   : > { %v581_v59 = vpop.f32.mrf.mxu1 }
  0xc9   : > { %v439_v60 = vpop.f32.mrf.mxu2  ;;  %v622_v61 = vpop.f32.mrf.mxu3 }
  0xca   : > { %v336_v62 = vpop.f32.mrf.mxu0  ;;  %v440_v10 = vadd.f32 %v439_v60, %v375_v9  ;;  %v623_v37 = vadd.f32 %v622_v61, %v581_v59 }
  0xcb   : > { %v378_v19 = vadd.f32 %v377_v44, %v336_v62 }
  0xcc   : > { %v481_v8 = vadd.f32 %v480_v43, %v440_v10 }
  0xcf   : > { %v584_v63 = vpop.f32.mrf.mxu1 }
  0xd1   : > { %v442_v0 = vpop.f32.mrf.mxu2  ;;  %v625_v1 = vpop.f32.mrf.mxu3 }
  0xd2   : > { %v339_v3 = vpop.f32.mrf.mxu0  ;;  %v443_v13 = vadd.f32 %v442_v0, %v378_v19  ;;  %v626_v0 = vadd.f32 %v625_v1, %v584_v63 }
  0xd3   : > { %v381_v27 = vadd.f32 %v380_v47, %v339_v3 }
  0xd4   : > { %v484_v24 = vadd.f32 %v483_v45, %v443_v13 }
  0xd7   : > { %v1372_v4 = vpop.f32.mrf.mxu1 }
  0xd9   : > { %v445_v6 = vpop.f32.mrf.mxu2  ;;  %v1374_v7 = vpop.f32.mrf.mxu3 }
  0xda   : > { %v342_v2 = vpop.f32.mrf.mxu0  ;;  %v446_v30 = vadd.f32 %v445_v6, %v381_v27 }
  0xdb   : > { %v384_v42 = vadd.f32 %v383_v51, %v342_v2 }
  0xdc   : > { %v487_v38 = vadd.f32 %v486_v49, %v446_v30 }
  0xdf   : > { %v590_v11 = vpop.f32.mrf.mxu1 }
  0xe1   : > { %v448_v14 = vpop.f32.mrf.mxu2  ;;  %v631_v5 = vpop.f32.mrf.mxu3 }
  0xe2   : > { %v632_v12 = vadd.f32 %v631_v5, %v590_v11  ;;  %v345_v16 = vpop.f32.mrf.mxu0 }
  0xe3   : > { %v387_v2 = vadd.f32 %v1366_v55, %v345_v16  ;;  %v629_v55 = vadd.f32 %v1374_v7, %v1372_v4 }
  0xe4   : > { %v649_v20 = vadd.f32 %v632_v12, %v481_v8 }
  0xe6   : > { %v661_v17 = vadd.f32 %v1379_v15, %v649_v20 }
  0xe7   : > { %v593_v21 = vpop.f32.mrf.mxu1 }
  0xe8   : > { %v669_v18 = vmax.f32 %v661_v17, 0.0 }
  0xe9   : > { %v451_v22 = vpop.f32.mrf.mxu2  ;;  %v634_v23 = vpop.f32.mrf.mxu3 }
  0xea   : > { %677 = vst.msk [vmem:[%s1386_s7 + $0x18] sm:$0xff] %vm282_vm0, %v669_v18  ;;  %v635_v25 = vadd.f32 %v634_v23, %v593_v21  ;;  %v365_v26 = vpop.f32.mrf.mxu0  ;;  %v452_v11 = vadd.f32 %v451_v22, %v387_v2 }
  0xeb   : > { %v366_v29 = vadd.f32 %v365_v26, %v324_v46  ;;  %v449_v46 = vadd.f32 %v448_v14, %v384_v42 }
  0xec   : > { %v650_v28 = vadd.f32 %v635_v25, %v484_v24  ;;  %v493_v16 = vadd.f32 %v1370_v57, %v452_v11 }
  0xed   : > { %v431_v34 = vadd.f32 %v430_v48, %v366_v29  ;;  %v490_v51 = vadd.f32 %v1362_v53, %v449_v46 }
  0xee   : > { %v662_v32 = vadd.f32 %v1379_v15, %v650_v28 }
  0xef   : > { %v596_v35 = vpop.f32.mrf.mxu1 }
  0xf0   : > { %v670_v33 = vmax.f32 %v662_v32, 0.0 }
  0xf1   : > { %v471_v36 = vpop.f32.mrf.mxu2  ;;  %v637_v31 = vpop.f32.mrf.mxu3 }
  0xf2   : > { %678 = vst.msk [vmem:[%s1386_s7 + $0x20] sm:$0xff] %vm282_vm0, %v670_v33  ;;  %v472_v39 = vadd.f32 %v471_v36, %v431_v34  ;;  %v638_v40 = vadd.f32 %v637_v31, %v596_v35  ;;  %v368_v41 = vpop.f32.mrf.mxu0 }
  0xf3   : > { %v369_v45 = vadd.f32 %v368_v41, %v1358_v50 }
  0xf4   : > { %v646_v43 = vadd.f32 %v623_v37, %v472_v39  ;;  %v651_v44 = vadd.f32 %v638_v40, %v487_v38 }
  0xf5   : > { %v434_v49 = vadd.f32 %v1360_v52, %v369_v45 }
  0xf6   : > { %v658_v47 = vadd.f32 %v1379_v15, %v646_v43  ;;  %v663_v48 = vadd.f32 %v1379_v15, %v651_v44 }
  0xf7   : > { %v599_v60 = vpop.f32.mrf.mxu1 }
  0xf8   : > { %v666_v58 = vmax.f32 %v658_v47, 0.0  ;;  %v671_v59 = vmax.f32 %v663_v48, 0.0 }
  0xf9   : > { %v474_v61 = vpop.f32.mrf.mxu2  ;;  %v640_v62 = vpop.f32.mrf.mxu3 }
  0xfa   : > { %674 = vst.msk [vmem:[%s1386_s7] sm:$0xff] %vm282_vm0, %v666_v58  ;;  %v475_v3 = vadd.f32 %v474_v61, %v434_v49  ;;  %v641_v50 = vadd.f32 %v640_v62, %v599_v60  ;;  %v371_v6 = vpop.f32.mrf.mxu0 }
  0xfb   : > { %679 = vst.msk [vmem:[%s1386_s7 + $0x28] sm:$0xff] %vm282_vm0, %v671_v59  ;;  %v372_v52 = vadd.f32 %v371_v6, %v1364_v54 }
  0xfc   : > { %v647_v9 = vadd.f32 %v626_v0, %v475_v3  ;;  %v652_v10 = vadd.f32 %v641_v50, %v490_v51 }
  0xfd   : > { %v437_v5 = vadd.f32 %v1368_v56, %v372_v52 }
  0xfe   : > { %v659_v63 = vadd.f32 %v1379_v15, %v647_v9  ;;  %v664_v53 = vadd.f32 %v1379_v15, %v652_v10 }
  0xff   : > { %v602_v8 = vpop.f32.mrf.mxu1 }
 0x100   : > { %v667_v1 = vmax.f32 %v659_v63, 0.0  ;;  %v672_v14 = vmax.f32 %v664_v53, 0.0 }
 0x101   : > { %v477_v12 = vpop.f32.mrf.mxu2  ;;  %v643_v19 = vpop.f32.mrf.mxu3 }
 0x102   : > { %675 = vst.msk [vmem:[%s1386_s7 + $0x8] sm:$0xff] %vm282_vm0, %v667_v1  ;;  %v478_v54 = vadd.f32 %v477_v12, %v437_v5  ;;  %v644_v20 = vadd.f32 %v643_v19, %v602_v8 }
 0x103   : > { %680 = vst.msk [vmem:[%s1386_s7 + $0x30] sm:$0xff] %vm282_vm0, %v672_v14 }
 0x104   : > { %v648_v13 = vadd.f32 %v629_v55, %v478_v54  ;;  %v653_v17 = vadd.f32 %v644_v20, %v493_v16 }
 0x106   : > { %v660_v56 = vadd.f32 %v1379_v15, %v648_v13  ;;  %v665_v18 = vadd.f32 %v1379_v15, %v653_v17 }
 0x108   : > { %v668_v21 = vmax.f32 %v660_v56, 0.0  ;;  %v673_v22 = vmax.f32 %v665_v18, 0.0 }
 0x10a   : > { %676 = vst.msk [vmem:[%s1386_s7 + $0x10] sm:$0xff] %vm282_vm0, %v668_v21 }
 0x10b   : > { %681 = vst.msk [vmem:[%s1386_s7 + $0x38] sm:$0xff] %vm282_vm0, %v673_v22 }
 0x10c PF: > { %s13_s14 = sadd.s32 1, %s952_s14   ;;  %s1433_s12 = smov %s948_s13 }
 0x10d   : > { %p10_p5 = scmp.ge.s32.totalorder %s13_s14, 4   ;;  %s1434_s13 = smov %s1436_s15 }
 0x10f   :  { %12 = sbr.rel (!%p10_p5) target bundleno = 2 (0x2), region = 67 }

// kernel: spatial_path_forward.7
= control target key start
LH: loop header
LB: loop body
LE: loop exit
PB: predicated region body
PF: predicated region fallthrough
CT: control target
= control target key end

     0   :  { %8 = vsyncpa [#allocation3], 0  ;;  %s725_s0 = inlined_call_operand.vmem [shape: f32[2,8,8,64], index: 0, kind: input, shape index: {}]   ;;  %s726_s1 = inlined_call_operand.vmem [shape: f32[1,1,64,128], index: 1, kind: input, shape index: {}]   ;;  %s727_s2 = inlined_call_operand.vmem [shape: f32[1,128], index: 2, kind: input, shape index: {}]   ;;  %s728_s3 = inlined_call_operand.hbm [shape: f32[2,8,8,128], index: 3, kind: output, shape index: {}]  }
   0x1   :  { %10 = vsyncpa [#allocation3 + $0x1], 0  ;;  %s589_s12 = smov 0   ;;  %s591_s13 = smov 0  }
   0x2   :  { %s593_s14 = smov 0   ;;  %s595_s15 = smov 0  }
   0x3   :  { %s597_s16 = smov 0   ;;  %s599_s17 = smov 0  }
   0x4 LB: > { %s382_s18 = sadd.s32 4294967295, %s565_s17   ;;  %s383_s19 = sadd.s32 4294967294, %s565_s17   ;;  %s565_s17 = sphi %s599_s17, %s16_s17   ;;  %s561_s16 = sphi %s597_s16, %s735_s16   ;;  %s557_s15 = sphi %s595_s15, %s734_s15   ;;  %s553_s14 = sphi %s593_s14, %s733_s14   ;;  %s549_s13 = sphi %s591_s13, %s732_s13   ;;  %s545_s12 = sphi %s589_s12, %s731_s12  }
   0x5   : > { %s28_s20 = sadd.s32 1, %s561_s16  ;;  %s105_s21 = sadd.s32 1, %s553_s14 }
   0x6   : > { %p30_p0 = scmp.ge.s32.totalorder %s28_s20, 2  ;;  %p115_p1 = scmp.ne.s32.totalorder %s553_s14, %s549_s13 }
   0x7   : > { %p116_p2 = scmp.eq.s32.totalorder %s382_s18, 1  ;;  %p121_p3 = scmp.ne.s32.totalorder %s549_s13, %s545_s12 }
   0x8   : > { %s737_s20 = smov (%p30_p0, %s28_s20), 0  ;;  %p122_p5 = scmp.eq.s32.totalorder %s383_s19, 1 }
   0x9   : > { %p629_p4 = por %p116_p2, %p115_p1  ;;  %s100_s23 = ssub.s32 %s561_s16, %s737_s20 }
   0xa   : > { %p386_p6 = scmp.ge.s32.totalorder %s565_s17, 1  ;;  %p103_p7 = scmp.eq.s32.totalorder %s100_s23, 0 }
   0xb   : > { %p636_p8 = por %p122_p5, %p121_p3  ;;  %p154_p9 = scmp.lt.s32.totalorder %s565_s17, 3 }
   0xc   : > { %s642_s25 = scalar_select %p103_p7, %s553_s14, %s105_s21  }
   0xd   : > { %p155_p10 = pnand %p386_p6, %p154_p9 }
   0xe   : > { %p178_p11 = scmp.lt.s32.totalorder (!%p155_p10), %s557_s15, 1  ;;  %s175_s30 = sand.u32 (!%p155_p10), 1, %s549_s13  }
   0xf   : > { %158 = sbr.rel (%p155_p10) target bundleno = 185 (0xb9), region = 32  ;;  %s387_s6 = sshll.u32 (!%p155_p10), %s175_s30, 6 }
  0x10   : > { %s177_s7 = scalar_lea.vmem (!%p155_p10), [#allocation2], %s387_s6  ;;  %s404_s8 = sshll.u32 (!%p155_p10), %s557_s15, 6 }
  0x11   : > { %s303_s11 = scalar_lea.hbm (!%p155_p10), %s728_s3, %s404_s8  ;;  %s304_s18 = sshll.u32 (!%p155_p10), %s177_s7, 4  ;;  %s305_s18 = int_to_ptr.vmem [resolvable:$true] %s304_s18 }
  0x12   : > { %s306_s19 = sshll.u32 (!%p155_p10), %s303_s11, 4  ;;  %s507_s28 = scalar_lea.hbm (!%p155_p10), %s728_s3, 128  ;;  %s307_s19 = int_to_ptr.hbm [resolvable:$true] %s306_s19 }
  0x13   : > { %s501_s21 = sshra.s32 (!%p155_p10), %s307_s19, 4  ;;  %s502_s21 = int_to_ptr.hbm [resolvable:$true] %s501_s21 }
  0x14   : > { %v202_v0 = vld [vmem:[%s726_s1 + $0x38] sm:$0xff]  ;;  %v201_v1 = vld [vmem:[%s726_s1 + $0x30] sm:$0xff]  ;;  %v200_v2 = vld [vmem:[%s726_s1 + $0x28] sm:$0xff]  ;;  %s179_s5 = scalar_select %p178_p11, %s557_s15, 1  ;;  %vm207_vm0 = vcmask 523264  }
  0x15   : > { %406 = vmatpush.msra.mxu2 %v202_v0  ;;  %407 = vmatpush.msra.mxu3 %v202_v0  ;;  %v199_v3 = vld [vmem:[%s726_s1 + $0x20] sm:$0xff]  ;;  %v198_v4 = vld [vmem:[%s726_s1 + $0x18] sm:$0xff]  ;;  %v197_v5 = vld [vmem:[%s726_s1 + $0x10] sm:$0xff]  ;;  %s290_s15 = scalar_lea.sflag [#allocation3], %s175_s30  ;;  %s503_s23 = scalar_lea.hbm %s502_s21, 64 }
  0x16   : > { %240 = vmatpush.msra.mxu0 %v202_v0  ;;  %405 = vmatpush.msra.mxu1 %v202_v0  ;;  %s403_s10 = sshll.u32 %s179_s5, 6  ;;  %v196_v6 = vld [vmem:[%s726_s1 + $0x8] sm:$0xff]  ;;  %v195_v7 = vld [vmem:[%s726_s1] sm:$0xff]  ;;  %p504_p12 = scmp.ne.s32.totalorder %s502_s21, %s503_s23 }
  0x17   : > { %409 = vmatpush.msra.mxu2 %v201_v1  ;;  %410 = vmatpush.msra.mxu3 %v201_v1  ;;  %s182_s27 = scalar_lea.vmem %s725_s0, %s403_s10  ;;  %v486_v16 = vld [vmem:[%s727_s2] ss:$0 sm:$0xff]  ;;  %p508_p1 = scmp.lt.s32.totalorder %s502_s21, %s728_s3 }
  0x18   : > { %241 = vmatpush.msra.mxu0 %v201_v1  ;;  %408 = vmatpush.msra.mxu1 %v201_v1  ;;  %v191_v8 = vld [vmem:[%s182_s27 + $0x20] sm:$0xff]  ;;  %v193_v9 = vld [vmem:[%s182_s27 + $0x30] sm:$0xff]  ;;  %v192_v12 = vld [vmem:[%s182_s27 + $0x28] sm:$0xff]  ;;  %p505_p13 = pnand %p504_p12, %p629_p4  ;;  %p509_p2 = scmp.lt.s32.totalorder %s507_s28, %s503_s23 }
  0x19   : > { %412 = vmatpush.msra.mxu2 %v200_v2  ;;  %413 = vmatpush.msra.mxu3 %v200_v2  ;;  %v187_v10 = vld [vmem:[%s182_s27] sm:$0xff]  ;;  %v189_v11 = vld [vmem:[%s182_s27 + $0x10] sm:$0xff]  ;;  %v194_v13 = vld [vmem:[%s182_s27 + $0x38] sm:$0xff] }
  0x1a   : > { %242 = vmatpush.msra.mxu0 %v200_v2  ;;  %411 = vmatpush.msra.mxu1 %v200_v2  ;;  %v188_v14 = vld [vmem:[%s182_s27 + $0x8] sm:$0xff]  ;;  %v190_v15 = vld [vmem:[%s182_s27 + $0x18] sm:$0xff]  ;;  %p506_p0 = pneg %p505_p13  ;;  %p510_p3 = por %p509_p2, %p508_p1 }
  0x1b   : > { %415 = vmatpush.msra.mxu2 %v199_v3  ;;  %416 = vmatpush.msra.mxu3 %v199_v3 }
  0x1c   : > { %243 = vmatpush.msra.mxu0 %v199_v3  ;;  %414 = vmatpush.msra.mxu1 %v199_v3  ;;  %p511_p5 = pnand %p510_p3, %p506_p0 }
  0x1d   : > { %418 = vmatpush.msra.mxu2 %v198_v4  ;;  %419 = vmatpush.msra.mxu3 %v198_v4 }
  0x1e   : > { %244 = vmatpush.msra.mxu0 %v198_v4  ;;  %417 = vmatpush.msra.mxu1 %v198_v4 }
  0x1f   : > { %421 = vmatpush.msra.mxu2 %v197_v5  ;;  %422 = vmatpush.msra.mxu3 %v197_v5 }
  0x20   : > { %245 = vmatpush.msra.mxu0 %v197_v5  ;;  %420 = vmatpush.msra.mxu1 %v197_v5 }
  0x21   : > { %424 = vmatpush.msra.mxu2 %v196_v6  ;;  %425 = vmatpush.msra.mxu3 %v196_v6 }
  0x22   : > { %246 = vmatpush.msra.mxu0 %v196_v6  ;;  %423 = vmatpush.msra.mxu1 %v196_v6 }
  0x23   : > { %427 = vmatpush.msra.mxu2 %v195_v7  ;;  %428 = vmatpush.msra.mxu3 %v195_v7 }
  0x24   : > { %394 = vmatmul.msk.f32.vlgmr.msra.gmra.mxu2 %vm207_vm0, %v191_v8  ;;  %396 = vmatmul.msk.f32.vlgmr.msra.gmra.mxu3 %vm207_vm0, %v193_v9 }
  0x25   : > { %247 = vmatpush.msra.mxu0 %v195_v7  ;;  %426 = vmatpush.msra.mxu1 %v195_v7 }
  0x26   : > { %390 = vmatmul.msk.f32.vlgmr.msra.gmra.mxu0 %vm207_vm0, %v187_v10  ;;  %392 = vmatmul.msk.f32.vlgmr.msra.gmra.mxu1 %vm207_vm0, %v189_v11 }
  0x2c   : > { %395 = vmatmul.msk.f32.gmra.mxu2 %vm207_vm0, %v192_v12  ;;  %397 = vmatmul.msk.f32.gmra.mxu3 %vm207_vm0, %v194_v13 }
  0x2e   : > { %391 = vmatmul.msk.f32.gmra.mxu0 %vm207_vm0, %v188_v14  ;;  %393 = vmatmul.msk.f32.gmra.mxu1 %vm207_vm0, %v190_v15 }
  0xa3   : > { %v249_v17 = vpop.f32.mrf.mxu0  ;;  %v255_v18 = vpop.f32.mrf.mxu1 }
  0xa4   : > { %v250_v19 = vadd.f32 %v486_v16, %v249_v17  ;;  %v256_v20 = vadd.f32 %v486_v16, %v255_v18 }
  0xa6   : > { %v273_v21 = vmax.f32 %v250_v19, 0.0  ;;  %v275_v22 = vmax.f32 %v256_v20, 0.0 }
  0xa7   : > { %v261_v23 = vpop.f32.mrf.mxu2  ;;  %v267_v24 = vpop.f32.mrf.mxu3 }
  0xa8   : > { %281 = vst [vmem:[%s177_s7] sm:$0xff] %v273_v21  ;;  %v262_v25 = vadd.f32 %v486_v16, %v261_v23  ;;  %v268_v26 = vadd.f32 %v486_v16, %v267_v24 }
  0xa9   : > { %283 = vst [vmem:[%s177_s7 + $0x10] sm:$0xff] %v275_v22 }
  0xaa   : > { %v277_v27 = vmax.f32 %v262_v25, 0.0  ;;  %v279_v28 = vmax.f32 %v268_v26, 0.0 }
  0xab   : > { %v252_v29 = vpop.f32.mrf.mxu0  ;;  %v258_v30 = vpop.f32.mrf.mxu1 }
  0xac   : > { %285 = vst [vmem:[%s177_s7 + $0x20] sm:$0xff] %v277_v27  ;;  %v253_v31 = vadd.f32 %v486_v16, %v252_v29  ;;  %v259_v32 = vadd.f32 %v486_v16, %v258_v30 }
  0xad   : > { %287 = vst [vmem:[%s177_s7 + $0x30] sm:$0xff] %v279_v28 }
  0xae   : > { %v274_v33 = vmax.f32 %v253_v31, 0.0  ;;  %v276_v34 = vmax.f32 %v259_v32, 0.0 }
  0xaf   : > { %v264_v35 = vpop.f32.mrf.mxu2  ;;  %v270_v36 = vpop.f32.mrf.mxu3 }
  0xb0   : > { %282 = vst [vmem:[%s177_s7 + $0x8] sm:$0xff] %v274_v33  ;;  %v265_v37 = vadd.f32 %v486_v16, %v264_v35  ;;  %v271_v38 = vadd.f32 %v486_v16, %v270_v36 }
  0xb1   : > { %284 = vst [vmem:[%s177_s7 + $0x18] sm:$0xff] %v276_v34 }
  0xb2   : > { %v278_v39 = vmax.f32 %v265_v37, 0.0  ;;  %v280_v40 = vmax.f32 %v271_v38, 0.0 }
  0xb4   : > { %286 = vst [vmem:[%s177_s7 + $0x28] sm:$0xff] %v278_v39 }
  0xb5   : > { %288 = vst [vmem:[%s177_s7 + $0x38] sm:$0xff] %v280_v40 }
  0xb6   : > { %514 = shalt.err (!%p511_p5)
}
  0xb7   : > { %s567_s30 = smov 128   ;;  %s568_s5 = smov 8  }
  0xb8   : > { %429 = dma.vmem_to_hbm [thread:$0]  (%p629_p4), %s305_s18, 1024, %s307_s19, %s290_s15, %s567_s30, %s567_s30, %s568_s5  }
  0xb9 PF: > { %p435_p6 = scmp.ge.s32.totalorder %s565_s17, 2  ;;  %s321_s6 = sand.u32 1, %s545_s12  }
  0xba   : > { %s322_s7 = scalar_lea.sflag [#allocation3], %s321_s6 }
  0xbb   : > { %p432_p7 = pnand %p435_p6, %p636_p8 }
  0xbd   : > { %p433_p9 = pneg %p432_p7 }
  0xbf   : > { %540 = dma.done.wait (%p433_p9), %s322_s7, 1024  }
  0xc0   : > { %542 = vsyncadd (%p433_p9), %s322_s7, 4294966272  ;;  %s16_s17 = sadd.s32 1, %s565_s17   ;;  %s731_s12 = smov %s549_s13 }
  0xc1   : > { %p13_p10 = scmp.ge.s32.totalorder %s16_s17, 4   ;;  %s732_s13 = smov %s553_s14 }
  0xc2   : > { %s733_s14 = smov %s642_s25  ;;  %s734_s15 = smov %s561_s16 }
  0xc3   : > { %s735_s16 = smov %s737_s20  ;;  %15 = sbr.rel (!%p13_p10) target bundleno = 4 (0x4), region = 68 }
  0xc8   :  { %328 = vsyncpa [#allocation3], 1 }
  0xc9   :  { %330 = vsyncpa [#allocation3 + $0x1], 1 }

// kernel: spatial_path_forward.4
= control target key start
LH: loop header
LB: loop body
LE: loop exit
PB: predicated region body
PF: predicated region fallthrough
CT: control target
= control target key end

     0   :  { %s9579_s12 = smov 0   ;;  %s9581_s13 = smov 0   ;;  %s13670_s0 = inlined_call_operand.vmem [shape: f32[2,2,35,32,21], index: 0, kind: input, shape index: {}]   ;;  %s13671_s1 = inlined_call_operand.vmem [shape: f32[7,21,64], index: 1, kind: input, shape index: {}]   ;;  %s13672_s2 = inlined_call_operand.vmem [shape: f32[1,64], index: 2, kind: input, shape index: {}]   ;;  %s13673_s3 = inlined_call_operand.vmem [shape: f32[2,32,32,64], index: 3, kind: output, shape index: {}]  }
   0x1   :  { %s9583_s14 = smov 0  }
   0x2 LB: > { %s25_s15 = sadd.s32 1, %s9553_s13  ;;  %p7800_p0 = scmp.ge.s32.totalorder %s9557_s14, 1  ;;  %s9557_s14 = sphi %s9583_s14, %s13_s14   ;;  %s9553_s13 = sphi %s9581_s13, %s14297_s13   ;;  %s9549_s12 = sphi %s9579_s12, %s14296_s12  }
   0x3   : > { %p27_p1 = scmp.ge.s32.totalorder %s25_s15, 2  ;;  %p151_p2 = scmp.lt.s32.totalorder %s9557_s14, 3 }
   0x5   : > { %s14299_s15 = smov (%p27_p1, %s25_s15), 0  ;;  %p152_p3 = pnand %p7800_p0, %p151_p2 }
   0x7   : > { %155 = sbr.rel (%p152_p3) target bundleno = 1949 (0x79d), region = 32 }
   0xc   : > { %v7934_v0 = vld [vmem:[%s13671_s1 + $0x28] sm:$0x1f]  ;;  %vm849_vm0 = vcmask 1044480   ;;  %v7933_v1 = vld [vmem:[%s13671_s1 + $0x20] sm:$0xff]  ;;  %p180_p4 = scmp.lt.s32.totalorder %s9549_s12, 1  ;;  %v8322_v4 = vld [vmem:[%s13671_s1 + $0x38] sm:$0xff] }
   0xd   : > { %9496 = vmatpush.msk.msra.mxu3 %vm849_vm0, %v7934_v0  ;;  %v8323_v2 = vld [vmem:[%s13671_s1 + $0x40] sm:$0x1f]  ;;  %v329_v3 = vld [vmem:[%s13671_s1 + $0x10] sm:$0x1f]  ;;  %7935 = vmatpush.msk.msra.mxu0 %vm849_vm0, %v7934_v0  ;;  %v7932_v5 = vld [vmem:[%s13671_s1 + $0x18] sm:$0xff]  ;;  %vm464_vm1 = vcmask 171008  }
   0xe   : > { %8324 = vmatpush.msk.msra.mxu2 %vm849_vm0, %v8323_v2  ;;  %s14301_s12 = smov (!%p180_p4, %s9549_s12), 1  ;;  %8064 = vmatpush.msk.msra.mxu1 %vm849_vm0, %v329_v3  ;;  %v328_v6 = vld [vmem:[%s13671_s1 + $0x8] sm:$0xff]  ;;  %v8321_v7 = vld [vmem:[%s13671_s1 + $0x30] sm:$0xff]  ;;  %v9363_v8 = vld [vmem:[%s13671_s1 + $0xa0] sm:$0x1f]  ;;  %vm7555_vm2 = vcmask 523264  }
   0xf   : > { %9497 = vmatpush.msra.mxu3 %v7933_v1  ;;  %867 = vmatpush.msra.mxu0 %v7933_v1  ;;  %s9505_s5 = smul.u32 2240, %s14301_s12  ;;  %v327_v9 = vld [vmem:[%s13671_s1] sm:$0xff]  ;;  %v8843_v10 = vld [vmem:[%s13671_s1 + $0x70] sm:$0x1f]  ;;  %v9103_v11 = vld [vmem:[%s13671_s1 + $0x88] sm:$0x1f] }
  0x10   : > { %2578 = vmatpush.msra.mxu2 %v8322_v4  ;;  %1655 = vmatpush.msra.mxu1 %v328_v6  ;;  %s9495_s19 = sshll.u32 %s14301_s12, 10 }
  0x11   : > { %9498 = vmatpush.msra.mxu3 %v7932_v5  ;;  %868 = vmatpush.msra.mxu0 %v7932_v5  ;;  %s9637_s16 = scalar_lea.vmem %s13670_s0, %s9505_s5  ;;  %s11426_s22 = scalar_lea.vmem %s13673_s3, %s9495_s19 }
  0x12   : > { %2579 = vmatpush.msra.mxu2 %v8321_v7  ;;  %v7900_v12 = vld [vmem:[%s9637_s16 + $0x760] sm:$0xff]  ;;  %1656 = vmatpush.msra.mxu1 %v327_v9  ;;  %v7901_v16 = vld [vmem:[%s9637_s16 + $0x768] sm:$0xff]  ;;  %v7902_v20 = vld [vmem:[%s9637_s16 + $0x770] sm:$0xff] }
  0x13   : > { %9499 = vmatpush.msk.msrb.mxu3 %vm849_vm0, %v329_v3  ;;  %v8193_v13 = vld [vmem:[%s9637_s16 + $0x20] sm:$0xff]  ;;  %8844 = vmatpush.msk.msrb.mxu0 %vm849_vm0, %v8843_v10  ;;  %v8194_v17 = vld [vmem:[%s9637_s16 + $0x28] sm:$0xff]  ;;  %v8195_v21 = vld [vmem:[%s9637_s16 + $0x30] sm:$0xff] }
  0x14   : > { %9364 = vmatpush.msk.msrb.mxu2 %vm849_vm0, %v9363_v8  ;;  %v7804_v14 = vld [vmem:[%s9637_s16 + $0x460] sm:$0xff]  ;;  %8032 = vmatmul.msk.f32.vlgmr.msra.gmra.mxu3 %vm464_vm1, %v7900_v12  ;;  %v7805_v18 = vld [vmem:[%s9637_s16 + $0x468] sm:$0xff]  ;;  %v7806_v22 = vld [vmem:[%s9637_s16 + $0x470] sm:$0xff] }
  0x15   : > { %8325 = vmatmul.msk.f32.vlgmr.msra.gmra.mxu2 %vm464_vm1, %v8193_v13  ;;  %v199_v15 = vld [vmem:[%s9637_s16] sm:$0xff]  ;;  %7936 = vmatmul.msk.f32.vlgmr.msra.gmra.mxu0 %vm464_vm1, %v7804_v14  ;;  %v200_v19 = vld [vmem:[%s9637_s16 + $0x8] sm:$0xff]  ;;  %v201_v23 = vld [vmem:[%s9637_s16 + $0x10] sm:$0xff] }
  0x16   : > { %8065 = vmatmul.msk.f32.vlgmr.msra.gmra.mxu1 %vm464_vm1, %v199_v15  ;;  %9500 = vmatpush.msrb.mxu3 %v328_v6  ;;  %v7903_v24 = vld [vmem:[%s9637_s16 + $0x778] sm:$0xff]  ;;  %v7904_v28 = vld [vmem:[%s9637_s16 + $0x780] sm:$0xff]  ;;  %v7905_v31 = vld [vmem:[%s9637_s16 + $0x788] sm:$0xff] }
  0x17   : > { %9104 = vmatpush.msk.msrb.mxu1 %vm849_vm0, %v9103_v11  ;;  %v8196_v25 = vld [vmem:[%s9637_s16 + $0x38] sm:$0xff]  ;;  %v8197_v29 = vld [vmem:[%s9637_s16 + $0x40] sm:$0xff]  ;;  %v8198_v32 = vld [vmem:[%s9637_s16 + $0x48] sm:$0xff] }
  0x18   : > { %9501 = vmatpush.msrb.mxu3 %v327_v9  ;;  %v7807_v26 = vld [vmem:[%s9637_s16 + $0x478] sm:$0xff]  ;;  %v7808_v30 = vld [vmem:[%s9637_s16 + $0x480] sm:$0xff]  ;;  %v7809_v33 = vld [vmem:[%s9637_s16 + $0x488] sm:$0xff] }
  0x19   : > { %v202_v27 = vld [vmem:[%s9637_s16 + $0x18] sm:$0xff]  ;;  %v7906_v34 = vld [vmem:[%s9637_s16 + $0x790] sm:$0xff]  ;;  %v7908_v40 = vld [vmem:[%s9637_s16 + $0x7a0] sm:$0xff] }
  0x1a   : > { %9502 = vmatpush.msk.msra.mxu3 %vm849_vm0, %v8323_v2  ;;  %v8199_v35 = vld [vmem:[%s9637_s16 + $0x50] sm:$0xff]  ;;  %v7907_v37 = vld [vmem:[%s9637_s16 + $0x798] sm:$0xff]  ;;  %v8201_v41 = vld [vmem:[%s9637_s16 + $0x60] sm:$0xff] }
  0x1b   : > { %v7810_v36 = vld [vmem:[%s9637_s16 + $0x490] sm:$0xff]  ;;  %v8200_v38 = vld [vmem:[%s9637_s16 + $0x58] sm:$0xff]  ;;  %v7812_v42 = vld [vmem:[%s9637_s16 + $0x4a0] sm:$0xff] }
  0x1c   : > { %8033 = vmatmul.msk.f32.gmra.mxu3 %vm464_vm1, %v7901_v16  ;;  %v7811_v39 = vld [vmem:[%s9637_s16 + $0x498] sm:$0xff]  ;;  %v7909_v43 = vld [vmem:[%s9637_s16 + $0x7a8] sm:$0xff]  ;;  %v7910_v46 = vld [vmem:[%s9637_s16 + $0x7b0] sm:$0xff] }
  0x1d   : > { %8326 = vmatmul.msk.f32.gmra.mxu2 %vm464_vm1, %v8194_v17  ;;  %7937 = vmatmul.msk.f32.gmra.mxu0 %vm464_vm1, %v7805_v18  ;;  %v8202_v44 = vld [vmem:[%s9637_s16 + $0x68] sm:$0xff]  ;;  %v8203_v47 = vld [vmem:[%s9637_s16 + $0x70] sm:$0xff]  ;;  %v7911_v49 = vld [vmem:[%s9637_s16 + $0x7b8] sm:$0xff] }
  0x1e   : > { %8066 = vmatmul.msk.f32.gmra.mxu1 %vm464_vm1, %v200_v19  ;;  %9503 = vmatpush.msra.mxu3 %v8322_v4  ;;  %v7813_v45 = vld [vmem:[%s9637_s16 + $0x4a8] sm:$0xff]  ;;  %v7814_v48 = vld [vmem:[%s9637_s16 + $0x4b0] sm:$0xff]  ;;  %v8204_v50 = vld [vmem:[%s9637_s16 + $0x78] sm:$0xff] }
  0x1f   : > { %v7815_v51 = vld [vmem:[%s9637_s16 + $0x4b8] sm:$0xff]  ;;  %v7912_v52 = vld [vmem:[%s9637_s16 + $0x7c0] sm:$0xff]  ;;  %v7913_v55 = vld [vmem:[%s9637_s16 + $0x7c8] sm:$0xff] }
  0x20   : > { %9504 = vmatpush.msra.mxu3 %v8321_v7  ;;  %v8205_v53 = vld [vmem:[%s9637_s16 + $0x80] sm:$0xff]  ;;  %v8206_v56 = vld [vmem:[%s9637_s16 + $0x88] sm:$0xff]  ;;  %v7914_v58 = vld [vmem:[%s9637_s16 + $0x7d0] sm:$0xff] }
  0x21   : > { %v7816_v54 = vld [vmem:[%s9637_s16 + $0x4c0] sm:$0xff]  ;;  %v7817_v57 = vld [vmem:[%s9637_s16 + $0x4c8] sm:$0xff]  ;;  %v8207_v59 = vld [vmem:[%s9637_s16 + $0x90] sm:$0xff] }
  0x22   : > { %v7818_v60 = vld [vmem:[%s9637_s16 + $0x4d0] sm:$0xff]  ;;  %v7915_v61 = vld [vmem:[%s9637_s16 + $0x7d8] sm:$0xff]  ;;  %v7916_v0 = vld [vmem:[%s9637_s16 + $0x7e0] sm:$0xff] }
  0x23   : > { %v8208_v62 = vld [vmem:[%s9637_s16 + $0x98] sm:$0xff]  ;;  %v8209_v1 = vld [vmem:[%s9637_s16 + $0xa0] sm:$0xff]  ;;  %v7917_v7 = vld [vmem:[%s9637_s16 + $0x7e8] sm:$0xff] }
  0x24   : > { %8034 = vmatmul.msk.f32.gmra.mxu3 %vm464_vm1, %v7902_v20  ;;  %v7819_v63 = vld [vmem:[%s9637_s16 + $0x4d8] sm:$0xff]  ;;  %v7820_v4 = vld [vmem:[%s9637_s16 + $0x4e0] sm:$0xff]  ;;  %v8210_v8 = vld [vmem:[%s9637_s16 + $0xa8] sm:$0xff] }
  0x25   : > { %8327 = vmatmul.msk.f32.gmra.mxu2 %vm464_vm1, %v8195_v21  ;;  %7938 = vmatmul.msk.f32.gmra.mxu0 %vm464_vm1, %v7806_v22  ;;  %v7821_v11 = vld [vmem:[%s9637_s16 + $0x4e8] sm:$0xff]  ;;  %v7918_v14 = vld [vmem:[%s9637_s16 + $0x7f0] sm:$0xff]  ;;  %v8212_v22 = vld [vmem:[%s9637_s16 + $0xb8] sm:$0xff] }
  0x26   : > { %8067 = vmatmul.msk.f32.gmra.mxu1 %vm464_vm1, %v201_v23  ;;  %v8211_v15 = vld [vmem:[%s9637_s16 + $0xb0] sm:$0xff] }
  0x27   : > { %v7822_v18 = vld [vmem:[%s9637_s16 + $0x4f0] sm:$0xff] }
  0x2c   : > { %8035 = vmatmul.msk.f32.gmra.mxu3 %vm464_vm1, %v7903_v24 }
  0x2d   : > { %8328 = vmatmul.msk.f32.gmra.mxu2 %vm464_vm1, %v8196_v25  ;;  %7939 = vmatmul.msk.f32.gmra.mxu0 %vm464_vm1, %v7807_v26 }
  0x2e   : > { %8068 = vmatmul.msk.f32.gmra.mxu1 %vm464_vm1, %v202_v27 }
  0x34   : > { %8036 = vmatmul.msk.f32.gmra.mxu3 %vm464_vm1, %v7904_v28  ;;  %v7920_v28 = vld [vmem:[%s9637_s16 + $0x800] sm:$0xff] }
  0x35   : > { %8329 = vmatmul.msk.f32.gmra.mxu2 %vm464_vm1, %v8197_v29  ;;  %7940 = vmatmul.msk.f32.gmra.mxu0 %vm464_vm1, %v7808_v30 }
  0x36   : > { %8069 = vmatmul.msk.f32.gmra.mxu1 %vm464_vm1, %v8193_v13 }
  0x3c   : > { %8037 = vmatmul.msk.f32.gmra.mxu3 %vm464_vm1, %v7905_v31 }
  0x3d   : > { %8330 = vmatmul.msk.f32.gmra.mxu2 %vm464_vm1, %v8198_v32  ;;  %7941 = vmatmul.msk.f32.gmra.mxu0 %vm464_vm1, %v7809_v33 }
  0x3e   : > { %8070 = vmatmul.msk.f32.gmra.mxu1 %vm464_vm1, %v8194_v17 }
  0x44   : > { %8038 = vmatmul.msk.f32.gmra.mxu3 %vm464_vm1, %v7906_v34 }
  0x45   : > { %8331 = vmatmul.msk.f32.gmra.mxu2 %vm464_vm1, %v8199_v35  ;;  %7942 = vmatmul.msk.f32.gmra.mxu0 %vm464_vm1, %v7810_v36  ;;  %v8214_v36 = vld [vmem:[%s9637_s16 + $0xc8] sm:$0xff] }
  0x46   : > { %8071 = vmatmul.msk.f32.gmra.mxu1 %vm464_vm1, %v8195_v21  ;;  %v7919_v21 = vld [vmem:[%s9637_s16 + $0x7f8] sm:$0xff] }
  0x4c   : > { %8039 = vmatmul.msk.f32.gmra.mxu3 %vm464_vm1, %v7907_v37 }
  0x4d   : > { %8332 = vmatmul.msk.f32.gmra.mxu2 %vm464_vm1, %v8200_v38  ;;  %7943 = vmatmul.msk.f32.gmra.mxu0 %vm464_vm1, %v7811_v39  ;;  %v7825_v39 = vld [vmem:[%s9637_s16 + $0x508] sm:$0xff] }
  0x4e   : > { %8072 = vmatmul.msk.f32.gmra.mxu1 %vm464_vm1, %v8196_v25  ;;  %v7823_v25 = vld [vmem:[%s9637_s16 + $0x4f8] sm:$0xff] }
  0x54   : > { %8040 = vmatmul.msk.f32.gmra.mxu3 %vm464_vm1, %v7908_v40 }
  0x55   : > { %8333 = vmatmul.msk.f32.gmra.mxu2 %vm464_vm1, %v8201_v41  ;;  %7944 = vmatmul.msk.f32.gmra.mxu0 %vm464_vm1, %v7812_v42  ;;  %v7922_v42 = vld [vmem:[%s9637_s16 + $0x810] sm:$0xff] }
  0x56   : > { %8073 = vmatmul.msk.f32.gmra.mxu1 %vm464_vm1, %v8197_v29  ;;  %v8213_v29 = vld [vmem:[%s9637_s16 + $0xc0] sm:$0xff] }
  0x5c   : > { %8041 = vmatmul.msk.f32.gmra.mxu3 %vm464_vm1, %v7909_v43  ;;  %v8215_v43 = vld [vmem:[%s9637_s16 + $0xd0] sm:$0xff] }
  0x5d   : > { %8334 = vmatmul.msk.f32.gmra.mxu2 %vm464_vm1, %v8202_v44  ;;  %7945 = vmatmul.msk.f32.gmra.mxu0 %vm464_vm1, %v7813_v45 }
  0x5e   : > { %8074 = vmatmul.msk.f32.gmra.mxu1 %vm464_vm1, %v8198_v32  ;;  %v7824_v32 = vld [vmem:[%s9637_s16 + $0x500] sm:$0xff] }
  0x64   : > { %8042 = vmatmul.msk.f32.gmra.mxu3 %vm464_vm1, %v7910_v46  ;;  %v7826_v46 = vld [vmem:[%s9637_s16 + $0x510] sm:$0xff] }
  0x65   : > { %8335 = vmatmul.msk.f32.gmra.mxu2 %vm464_vm1, %v8203_v47  ;;  %7946 = vmatmul.msk.f32.gmra.mxu0 %vm464_vm1, %v7814_v48 }
  0x66   : > { %8075 = vmatmul.msk.f32.gmra.mxu1 %vm464_vm1, %v8199_v35  ;;  %v7921_v35 = vld [vmem:[%s9637_s16 + $0x808] sm:$0xff] }
  0x6c   : > { %8043 = vmatmul.msk.f32.gmra.mxu3 %vm464_vm1, %v7911_v49  ;;  %v7923_v49 = vld [vmem:[%s9637_s16 + $0x818] sm:$0xff] }
  0x6d   : > { %8336 = vmatmul.msk.f32.gmra.mxu2 %vm464_vm1, %v8204_v50  ;;  %7947 = vmatmul.msk.f32.gmra.mxu0 %vm464_vm1, %v7815_v51 }
  0x6e   : > { %8076 = vmatmul.msk.f32.gmra.mxu1 %vm464_vm1, %v8200_v38 }
  0x74   : > { %8044 = vmatmul.msk.f32.gmra.mxu3 %vm464_vm1, %v7912_v52 }
  0x75   : > { %8337 = vmatmul.msk.f32.gmra.mxu2 %vm464_vm1, %v8205_v53  ;;  %7948 = vmatmul.msk.f32.gmra.mxu0 %vm464_vm1, %v7816_v54 }
  0x76   : > { %8077 = vmatmul.msk.f32.gmra.mxu1 %vm464_vm1, %v8201_v41 }
  0x7c   : > { %8045 = vmatmul.msk.f32.gmra.mxu3 %vm464_vm1, %v7913_v55 }
  0x7d   : > { %8338 = vmatmul.msk.f32.gmra.mxu2 %vm464_vm1, %v8206_v56  ;;  %7949 = vmatmul.msk.f32.gmra.mxu0 %vm464_vm1, %v7817_v57  ;;  %v8217_v57 = vld [vmem:[%s9637_s16 + $0xe0] sm:$0xff] }
  0x7e   : > { %8078 = vmatmul.msk.f32.gmra.mxu1 %vm464_vm1, %v8202_v44 }
  0x84   : > { %8046 = vmatmul.msk.f32.gmra.mxu3 %vm464_vm1, %v7914_v58 }
  0x85   : > { %8339 = vmatmul.msk.f32.gmra.mxu2 %vm464_vm1, %v8207_v59  ;;  %7950 = vmatmul.msk.f32.gmra.mxu0 %vm464_vm1, %v7818_v60  ;;  %v7828_v60 = vld [vmem:[%s9637_s16 + $0x520] sm:$0xff] }
  0x86   : > { %8079 = vmatmul.msk.f32.gmra.mxu1 %vm464_vm1, %v8203_v47 }
  0x8c   : > { %8047 = vmatmul.msk.f32.gmra.mxu3 %vm464_vm1, %v7915_v61 }
  0x8d   : > { %8340 = vmatmul.msk.f32.gmra.mxu2 %vm464_vm1, %v8208_v62  ;;  %7951 = vmatmul.msk.f32.gmra.mxu0 %vm464_vm1, %v7819_v63  ;;  %v7925_v63 = vld [vmem:[%s9637_s16 + $0x828] sm:$0xff] }
  0x8e   : > { %8080 = vmatmul.msk.f32.gmra.mxu1 %vm464_vm1, %v8204_v50  ;;  %v8216_v50 = vld [vmem:[%s9637_s16 + $0xd8] sm:$0xff] }
  0x92   : > { %v9768_v2 = vpop.f32.mrf.mxu0 }
  0x93   : > { %13674 = vst [vmem:[#allocation2_spill] sm:$0xff] %v9768_v2  ;;  %v9770_v3 = vpop.f32.mrf.mxu1  ;;  %v7856_v2 = vld [vmem:[%s9637_s16 + $0x600] sm:$0xff] }
  0x94   : > { %13675 = vst [vmem:[#allocation3_spill] sm:$0xff] %v9770_v3  ;;  %8048 = vmatmul.msk.f32.gmra.mxu3 %vm464_vm1, %v7916_v0  ;;  %v8218_v0 = vld [vmem:[%s9637_s16 + $0xe8] sm:$0xff] }
  0x95   : > { %8341 = vmatmul.msk.f32.gmra.mxu2 %vm464_vm1, %v8209_v1  ;;  %7952 = vmatmul.msk.f32.gmra.mxu0 %vm464_vm1, %v7820_v4 }
  0x96   : > { %8081 = vmatmul.msk.f32.gmra.mxu1 %vm464_vm1, %v8205_v53  ;;  %v7827_v53 = vld [vmem:[%s9637_s16 + $0x518] sm:$0xff] }
  0x97   : > { %v9777_v5 = vpop.f32.mrf.mxu3 }
  0x98   : > { %v9779_v6 = vpop.f32.mrf.mxu2 }
  0x99   : > { %13676 = vst [vmem:[#allocation4_spill] sm:$0xff] %v9779_v6  ;;  %v7855_v6 = vld [vmem:[%s9637_s16 + $0x5f8] sm:$0xff] }
  0x9a   : > { %v9783_v9 = vpop.f32.mrf.mxu0 }
  0x9b   : > { %13677 = vst [vmem:[#allocation5_spill] sm:$0xff] %v9783_v9  ;;  %v9785_v10 = vpop.f32.mrf.mxu1 }
  0x9c   : > { %13678 = vst [vmem:[#allocation6_spill] sm:$0xff] %v9785_v10  ;;  %8049 = vmatmul.msk.f32.gmra.mxu3 %vm464_vm1, %v7917_v7  ;;  %v7829_v7 = vld [vmem:[%s9637_s16 + $0x528] sm:$0xff]  ;;  %v7854_v10 = vld [vmem:[%s9637_s16 + $0x5f0] sm:$0xff] }
  0x9d   : > { %8342 = vmatmul.msk.f32.gmra.mxu2 %vm464_vm1, %v8210_v8  ;;  %7953 = vmatmul.msk.f32.gmra.mxu0 %vm464_vm1, %v7821_v11 }
  0x9e   : > { %8082 = vmatmul.msk.f32.gmra.mxu1 %vm464_vm1, %v8206_v56  ;;  %v7924_v56 = vld [vmem:[%s9637_s16 + $0x820] sm:$0xff] }
  0x9f   : > { %v9792_v12 = vpop.f32.mrf.mxu3 }
  0xa0   : > { %v9794_v13 = vpop.f32.mrf.mxu2 }
  0xa1   : > { %13679 = vst [vmem:[#allocation7_spill] sm:$0xff] %v9794_v13 }
  0xa2   : > { %v9798_v16 = vpop.f32.mrf.mxu0 }
  0xa3   : > { %13680 = vst [vmem:[#allocation8_spill] sm:$0xff] %v9798_v16  ;;  %v9800_v17 = vpop.f32.mrf.mxu1  ;;  %v7853_v16 = vld [vmem:[%s9637_s16 + $0x5e8] sm:$0xff] }
  0xa4   : > { %13681 = vst [vmem:[#allocation9_spill] sm:$0xff] %v9800_v17  ;;  %8050 = vmatmul.msk.f32.gmra.mxu3 %vm464_vm1, %v7918_v14  ;;  %v7926_v14 = vld [vmem:[%s9637_s16 + $0x830] sm:$0xff] }
  0xa5   : > { %8343 = vmatmul.msk.f32.gmra.mxu2 %vm464_vm1, %v8211_v15  ;;  %7954 = vmatmul.msk.f32.gmra.mxu0 %vm464_vm1, %v7822_v18 }
  0xa6   : > { %8083 = vmatmul.msk.f32.gmra.mxu1 %vm464_vm1, %v8207_v59 }
  0xa7   : > { %v9807_v19 = vpop.f32.mrf.mxu3 }
  0xa8   : > { %v9809_v20 = vpop.f32.mrf.mxu2 }
  0xa9   : > { %13682 = vst [vmem:[#allocation10_spill] sm:$0xff] %v9809_v20  ;;  %v7852_v20 = vld [vmem:[%s9637_s16 + $0x5e0] sm:$0xff] }
  0xaa   : > { %v9813_v23 = vpop.f32.mrf.mxu0 }
  0xab   : > { %13683 = vst [vmem:[#allocation11_spill] sm:$0xff] %v9813_v23  ;;  %v9815_v24 = vpop.f32.mrf.mxu1 }
  0xac   : > { %13684 = vst [vmem:[#allocation12_spill] sm:$0xff] %v9815_v24  ;;  %8051 = vmatmul.msk.f32.gmra.mxu3 %vm464_vm1, %v7919_v21  ;;  %v7851_v24 = vld [vmem:[%s9637_s16 + $0x5d8] sm:$0xff] }
  0xad   : > { %8344 = vmatmul.msk.f32.gmra.mxu2 %vm464_vm1, %v8212_v22  ;;  %7955 = vmatmul.msk.f32.gmra.mxu0 %vm464_vm1, %v7823_v25 }
  0xae   : > { %8084 = vmatmul.msk.f32.gmra.mxu1 %vm464_vm1, %v8208_v62 }
  0xaf   : > { %v9822_v26 = vpop.f32.mrf.mxu3 }
  0xb0   : > { %v9824_v27 = vpop.f32.mrf.mxu2 }
  0xb1   : > { %13685 = vst [vmem:[#allocation13_spill] sm:$0xff] %v9824_v27 }
  0xb2   : > { %v9828_v30 = vpop.f32.mrf.mxu0 }
  0xb3   : > { %13686 = vst [vmem:[#allocation14_spill] sm:$0xff] %v9828_v30  ;;  %v9830_v31 = vpop.f32.mrf.mxu1  ;;  %v7850_v30 = vld [vmem:[%s9637_s16 + $0x5d0] sm:$0xff] }
  0xb4   : > { %13687 = vst [vmem:[#allocation15_spill] sm:$0xff] %v9830_v31  ;;  %8052 = vmatmul.msk.f32.gmra.mxu3 %vm464_vm1, %v7920_v28 }
  0xb5   : > { %8345 = vmatmul.msk.f32.gmra.mxu2 %vm464_vm1, %v8213_v29  ;;  %7956 = vmatmul.msk.f32.gmra.mxu0 %vm464_vm1, %v7824_v32  ;;  %v8220_v32 = vld [vmem:[%s9637_s16 + $0xf8] sm:$0xff] }
  0xb6   : > { %8085 = vmatmul.msk.f32.gmra.mxu1 %vm464_vm1, %v8209_v1 }
  0xb7   : > { %v9837_v33 = vpop.f32.mrf.mxu3 }
  0xb8   : > { %v9839_v34 = vpop.f32.mrf.mxu2 }
  0xb9   : > { %13688 = vst [vmem:[#allocation16_spill] sm:$0xff] %v9839_v34  ;;  %v7849_v34 = vld [vmem:[%s9637_s16 + $0x5c8] sm:$0xff] }
  0xba   : > { %v9843_v37 = vpop.f32.mrf.mxu0 }
  0xbb   : > { %13689 = vst [vmem:[#allocation17_spill] sm:$0xff] %v9843_v37  ;;  %v9845_v38 = vpop.f32.mrf.mxu1 }
  0xbc   : > { %13690 = vst [vmem:[#allocation18_spill] sm:$0xff] %v9845_v38  ;;  %8053 = vmatmul.msk.f32.gmra.mxu3 %vm464_vm1, %v7921_v35  ;;  %v7848_v38 = vld [vmem:[%s9637_s16 + $0x5c0] sm:$0xff] }
  0xbd   : > { %8346 = vmatmul.msk.f32.gmra.mxu2 %vm464_vm1, %v8214_v36  ;;  %7957 = vmatmul.msk.f32.gmra.mxu0 %vm464_vm1, %v7825_v39  ;;  %v7831_v39 = vld [vmem:[%s9637_s16 + $0x538] sm:$0xff] }
  0xbe   : > { %8086 = vmatmul.msk.f32.gmra.mxu1 %vm464_vm1, %v8210_v8 }
  0xbf   : > { %v9852_v40 = vpop.f32.mrf.mxu3 }
  0xc0   : > { %v9854_v41 = vpop.f32.mrf.mxu2 }
  0xc1   : > { %13691 = vst [vmem:[#allocation19_spill] sm:$0xff] %v9854_v41 }
  0xc2   : > { %v9858_v44 = vpop.f32.mrf.mxu0 }
  0xc3   : > { %13692 = vst [vmem:[#allocation20_spill] sm:$0xff] %v9858_v44  ;;  %v9860_v45 = vpop.f32.mrf.mxu1  ;;  %v7847_v44 = vld [vmem:[%s9637_s16 + $0x5b8] sm:$0xff] }
  0xc4   : > { %13693 = vst [vmem:[#allocation21_spill] sm:$0xff] %v9860_v45  ;;  %8054 = vmatmul.msk.f32.gmra.mxu3 %vm464_vm1, %v7922_v42 }
  0xc5   : > { %8347 = vmatmul.msk.f32.gmra.mxu2 %vm464_vm1, %v8215_v43  ;;  %7958 = vmatmul.msk.f32.gmra.mxu0 %vm464_vm1, %v7826_v46  ;;  %v7928_v46 = vld [vmem:[%s9637_s16 + $0x840] sm:$0xff] }
  0xc6   : > { %8087 = vmatmul.msk.f32.gmra.mxu1 %vm464_vm1, %v8211_v15  ;;  %v8219_v15 = vld [vmem:[%s9637_s16 + $0xf0] sm:$0xff] }
  0xc7   : > { %v9867_v47 = vpop.f32.mrf.mxu3 }
  0xc8   : > { %v9869_v48 = vpop.f32.mrf.mxu2 }
  0xc9   : > { %13694 = vst [vmem:[#allocation22_spill] sm:$0xff] %v9869_v48  ;;  %v7846_v48 = vld [vmem:[%s9637_s16 + $0x5b0] sm:$0xff] }
  0xca   : > { %v9873_v51 = vpop.f32.mrf.mxu0 }
  0xcb   : > { %13695 = vst [vmem:[#allocation23_spill] sm:$0xff] %v9873_v51  ;;  %v9875_v52 = vpop.f32.mrf.mxu1 }
  0xcc   : > { %13696 = vst [vmem:[#allocation24_spill] sm:$0xff] %v9875_v52  ;;  %8055 = vmatmul.msk.f32.gmra.mxu3 %vm464_vm1, %v7923_v49  ;;  %v8221_v49 = vld [vmem:[%s9637_s16 + $0x100] sm:$0xff]  ;;  %v7845_v52 = vld [vmem:[%s9637_s16 + $0x5a8] sm:$0xff] }
  0xcd   : > { %8348 = vmatmul.msk.f32.gmra.mxu2 %vm464_vm1, %v8216_v50  ;;  %7959 = vmatmul.msk.f32.gmra.mxu0 %vm464_vm1, %v7827_v53 }
  0xce   : > { %8088 = vmatmul.msk.f32.gmra.mxu1 %vm464_vm1, %v8212_v22  ;;  %v7830_v22 = vld [vmem:[%s9637_s16 + $0x530] sm:$0xff] }
  0xcf   : > { %v9882_v54 = vpop.f32.mrf.mxu3 }
  0xd0   : > { %v9884_v55 = vpop.f32.mrf.mxu2 }
  0xd1   : > { %13697 = vst [vmem:[#allocation25_spill] sm:$0xff] %v9884_v55 }
  0xd2   : > { %v9888_v58 = vpop.f32.mrf.mxu0 }
  0xd3   : > { %13698 = vst [vmem:[#allocation26_spill] sm:$0xff] %v9888_v58  ;;  %v9890_v59 = vpop.f32.mrf.mxu1  ;;  %v7844_v58 = vld [vmem:[%s9637_s16 + $0x5a0] sm:$0xff] }
  0xd4   : > { %13699 = vst [vmem:[#allocation27_spill] sm:$0xff] %v9890_v59  ;;  %8056 = vmatmul.msk.f32.gmra.mxu3 %vm464_vm1, %v7924_v56 }
  0xd5   : > { %8349 = vmatmul.msk.f32.gmra.mxu2 %vm464_vm1, %v8217_v57  ;;  %7960 = vmatmul.msk.f32.gmra.mxu0 %vm464_vm1, %v7828_v60  ;;  %v7832_v60 = vld [vmem:[%s9637_s16 + $0x540] sm:$0xff] }
  0xd6   : > { %8089 = vmatmul.msk.f32.gmra.mxu1 %vm464_vm1, %v8213_v29  ;;  %v7927_v29 = vld [vmem:[%s9637_s16 + $0x838] sm:$0xff] }
  0xd7   : > { %v9897_v61 = vpop.f32.mrf.mxu3 }
  0xd8   : > { %v9899_v62 = vpop.f32.mrf.mxu2 }
  0xd9   : > { %13700 = vst [vmem:[#allocation28_spill] sm:$0xff] %v9899_v62  ;;  %v7843_v62 = vld [vmem:[%s9637_s16 + $0x598] sm:$0xff] }
  0xda   : > { %v9903_v1 = vpop.f32.mrf.mxu0 }
  0xdb   : > { %13701 = vst [vmem:[#allocation29_spill] sm:$0xff] %v9903_v1  ;;  %v9905_v4 = vpop.f32.mrf.mxu1 }
  0xdc   : > { %13702 = vst [vmem:[#allocation30_spill] sm:$0xff] %v9905_v4  ;;  %8057 = vmatmul.msk.f32.gmra.mxu3 %vm464_vm1, %v7925_v63  ;;  %v7842_v4 = vld [vmem:[%s9637_s16 + $0x590] sm:$0xff] }
  0xdd   : > { %8350 = vmatmul.msk.f32.gmra.mxu2 %vm464_vm1, %v8218_v0  ;;  %7961 = vmatmul.msk.f32.gmra.mxu0 %vm464_vm1, %v7829_v7  ;;  %v9362_v7 = vld [vmem:[%s13671_s1 + $0x98] sm:$0xff] }
  0xde   : > { %8090 = vmatmul.msk.f32.gmra.mxu1 %vm464_vm1, %v8214_v36  ;;  %6780 = vmatpush.msrb.mxu2 %v9362_v7 }
  0xdf   : > { %v9912_v8 = vpop.f32.mrf.mxu3 }
  0xe0   : > { %v9914_v11 = vpop.f32.mrf.mxu2 }
  0xe1   : > { %13703 = vst [vmem:[#allocation31_spill] sm:$0xff] %v9914_v11 }
  0xe2   : > { %v9918_v18 = vpop.f32.mrf.mxu0 }
  0xe3   : > { %13704 = vst [vmem:[#allocation32_spill] sm:$0xff] %v9918_v18  ;;  %v9920_v21 = vpop.f32.mrf.mxu1  ;;  %v7841_v18 = vld [vmem:[%s9637_s16 + $0x588] sm:$0xff] }
  0xe4   : > { %13705 = vst [vmem:[#allocation33_spill] sm:$0xff] %v9920_v21  ;;  %8058 = vmatmul.msk.f32.gmra.mxu3 %vm464_vm1, %v7926_v14  ;;  %v7929_v14 = vld [vmem:[%s9637_s16 + $0x848] sm:$0xff] }
  0xe5   : > { %8351 = vmatmul.msk.f32.gmra.mxu2 %vm464_vm1, %v8219_v15  ;;  %7962 = vmatmul.msk.f32.gmra.mxu0 %vm464_vm1, %v7830_v22  ;;  %v8222_v22 = vld [vmem:[%s9637_s16 + $0x108] sm:$0xff] }
  0xe6   : > { %8091 = vmatmul.msk.f32.gmra.mxu1 %vm464_vm1, %v8215_v43 }
  0xe7   : > { %v9927_v25 = vpop.f32.mrf.mxu3 }
  0xe8   : > { %v9929_v28 = vpop.f32.mrf.mxu2 }
  0xe9   : > { %13706 = vst [vmem:[#allocation34_spill] sm:$0xff] %v9929_v28 }
  0xea   : > { %v9933_v35 = vpop.f32.mrf.mxu0 }
  0xeb   : > { %13707 = vst [vmem:[#allocation35_spill] sm:$0xff] %v9933_v35  ;;  %v9935_v36 = vpop.f32.mrf.mxu1 }
  0xec   : > { %13708 = vst [vmem:[#allocation36_spill] sm:$0xff] %v9935_v36  ;;  %8059 = vmatmul.msk.f32.gmra.mxu3 %vm464_vm1, %v7927_v29 }
  0xed   : > { %8352 = vmatmul.msk.f32.gmra.mxu2 %vm464_vm1, %v8220_v32  ;;  %7963 = vmatmul.msk.f32.gmra.mxu0 %vm464_vm1, %v7831_v39 }
  0xee   : > { %8092 = vmatmul.msk.f32.gmra.mxu1 %vm464_vm1, %v8216_v50 }
  0xef   : > { %v9942_v42 = vpop.f32.mrf.mxu3 }
  0xf0   : > { %v9944_v43 = vpop.f32.mrf.mxu2 }
  0xf1   : > { %13709 = vst [vmem:[#allocation37_spill] sm:$0xff] %v9944_v43 }
  0xf2   : > { %v9948_v53 = vpop.f32.mrf.mxu0 }
  0xf3   : > { %13710 = vst [vmem:[#allocation38_spill] sm:$0xff] %v9948_v53  ;;  %v9950_v56 = vpop.f32.mrf.mxu1  ;;  %v7834_v53 = vld [vmem:[%s9637_s16 + $0x550] sm:$0xff] }
  0xf4   : > { %13711 = vst [vmem:[#allocation39_spill] sm:$0xff] %v9950_v56  ;;  %8060 = vmatmul.msk.f32.gmra.mxu3 %vm464_vm1, %v7928_v46  ;;  %v7833_v46 = vld [vmem:[%s9637_s16 + $0x548] sm:$0xff] }
  0xf5   : > { %8353 = vmatmul.msk.f32.gmra.mxu2 %vm464_vm1, %v8221_v49  ;;  %7964 = vmatmul.msk.f32.gmra.mxu0 %vm464_vm1, %v7832_v60  ;;  %v9102_v60 = vld [vmem:[%s13671_s1 + $0x80] sm:$0xff] }
  0xf6   : > { %8093 = vmatmul.msk.f32.gmra.mxu1 %vm464_vm1, %v8217_v57  ;;  %v8842_v57 = vld [vmem:[%s13671_s1 + $0x68] sm:$0xff] }
  0xf7   : > { %v9957_v50 = vpop.f32.mrf.mxu3  ;;  %4679 = vmatpush.msrb.mxu0 %v8842_v57  ;;  %5729 = vmatpush.msrb.mxu1 %v9102_v60  ;;  %v7931_v57 = vld [vmem:[%s9637_s16 + $0x858] sm:$0xff] }
  0xf8   : > { %13712 = vst [vmem:[#allocation40_spill] sm:$0xff] %v9957_v50  ;;  %v9959_v63 = vpop.f32.mrf.mxu2  ;;  %v8224_v60 = vld [vmem:[%s9637_s16 + $0x118] sm:$0xff] }
  0xf9   : > { %13713 = vst [vmem:[#allocation41_spill] sm:$0xff] %v9959_v63 }
  0xfa   : > { %v9966_v29 = vpop.f32.mrf.mxu0 }
  0xfb   : > { %13714 = vst [vmem:[#allocation42_spill] sm:$0xff] %v9966_v29  ;;  %v9968_v39 = vpop.f32.mrf.mxu1  ;;  %v8223_v29 = vld [vmem:[%s9637_s16 + $0x110] sm:$0xff] }
  0xfc   : > { %13715 = vst [vmem:[#allocation43_spill] sm:$0xff] %v9968_v39  ;;  %8061 = vmatmul.msk.f32.gmra.mxu3 %vm464_vm1, %v7929_v14  ;;  %v7930_v39 = vld [vmem:[%s9637_s16 + $0x850] sm:$0xff] }
  0xfd   : > { %8354 = vmatmul.msk.f32.gmra.mxu2 %vm464_vm1, %v8222_v22  ;;  %7965 = vmatmul.msk.f32.gmra.mxu0 %vm464_vm1, %v7833_v46 }
  0xfe   : > { %8094 = vmatmul.msk.f32.gmra.mxu1 %vm464_vm1, %v8218_v0 }
  0xff   : > { %v9981_v7 = vpop.f32.mrf.mxu3 }
 0x100   : > { %13716 = vst [vmem:[#allocation44_spill] sm:$0xff] %v9981_v7  ;;  %v9983_v14 = vpop.f32.mrf.mxu2  ;;  %v8255_v7 = vld [vmem:[%s9637_s16 + $0x210] sm:$0xff] }
 0x101   : > { %13717 = vst [vmem:[#allocation45_spill] sm:$0xff] %v9983_v14 }
 0x102   : > { %v9987_v63 = vpop.f32.mrf.mxu0 }
 0x103   : > { %13718 = vst [vmem:[#allocation46_spill] sm:$0xff] %v9987_v63  ;;  %v9989_v56 = vpop.f32.mrf.mxu1 }
 0x104   : > { %13719 = vst [vmem:[#allocation47_spill] sm:$0xff] %v9989_v56  ;;  %8062 = vmatmul.msk.f32.gmra.mxu3 %vm464_vm1, %v7930_v39  ;;  %v7835_v39 = vld [vmem:[%s9637_s16 + $0x558] sm:$0xff] }
 0x105   : > { %8355 = vmatmul.msk.f32.gmra.mxu2 %vm464_vm1, %v8223_v29  ;;  %7966 = vmatmul.msk.f32.gmra.mxu0 %vm464_vm1, %v7834_v53 }
 0x106   : > { %8095 = vmatmul.msk.f32.gmra.mxu1 %vm464_vm1, %v8219_v15 }
 0x107   : > { %v9996_v0 = vpop.f32.mrf.mxu3 }
 0x108   : > { %13720 = vst [vmem:[#allocation48_spill] sm:$0xff] %v9996_v0  ;;  %v9998_v46 = vpop.f32.mrf.mxu2 }
 0x109   : > { %13721 = vst [vmem:[#allocation49_spill] sm:$0xff] %v9998_v46  ;;  %v295_v46 = vld [vmem:[%s9637_s16 + $0x300] sm:$0xff] }
 0x10a   : > { %v10002_v63 = vpop.f32.mrf.mxu0 }
 0x10b   : > { %13722 = vst [vmem:[#allocation50_spill] sm:$0xff] %v10002_v63  ;;  %v10004_v56 = vpop.f32.mrf.mxu1  ;;  %v8225_v63 = vld [vmem:[%s9637_s16 + $0x120] sm:$0xff] }
 0x10c   : > { %13723 = vst [vmem:[#allocation51_spill] sm:$0xff] %v10004_v56  ;;  %8063 = vmatmul.msk.f32.gmra.mxu3 %vm464_vm1, %v7931_v57  ;;  %v7836_v57 = vld [vmem:[%s9637_s16 + $0x560] sm:$0xff] }
 0x10d   : > { %8356 = vmatmul.msk.f32.gmra.mxu2 %vm464_vm1, %v8224_v60  ;;  %7967 = vmatmul.msk.f32.gmra.mxu0 %vm464_vm1, %v7835_v39 }
 0x10e   : > { %8096 = vmatmul.msk.f32.gmra.mxu1 %vm464_vm1, %v8220_v32 }
 0x10f   : > { %v10011_v15 = vpop.f32.mrf.mxu3 }
 0x110   : > { %13724 = vst [vmem:[#allocation52_spill] sm:$0xff] %v10011_v15  ;;  %v10013_v53 = vpop.f32.mrf.mxu2  ;;  %v8254_v15 = vld [vmem:[%s9637_s16 + $0x208] sm:$0xff] }
 0x111   : > { %13725 = vst [vmem:[#allocation53_spill] sm:$0xff] %v10013_v53  ;;  %v296_v53 = vld [vmem:[%s9637_s16 + $0x308] sm:$0xff] }
 0x112   : > { %v10017_v14 = vpop.f32.mrf.mxu0 }
 0x113   : > { %13726 = vst [vmem:[#allocation54_spill] sm:$0xff] %v10017_v14  ;;  %v10019_v56 = vpop.f32.mrf.mxu1  ;;  %v8226_v14 = vld [vmem:[%s9637_s16 + $0x128] sm:$0xff] }
 0x114   : > { %13727 = vst [vmem:[#allocation55_spill] sm:$0xff] %v10019_v56  ;;  %8161 = vmatmul.msk.f32.vlgmr.msrb.gmra.mxu3 %vm464_vm1, %v295_v46  ;;  %v7837_v46 = vld [vmem:[%s9637_s16 + $0x568] sm:$0xff] }
 0x115   : > { %8357 = vmatmul.msk.f32.gmra.mxu2 %vm464_vm1, %v8225_v63  ;;  %7968 = vmatmul.msk.f32.gmra.mxu0 %vm464_vm1, %v7836_v57 }
 0x116   : > { %8097 = vmatmul.msk.f32.gmra.mxu1 %vm464_vm1, %v8221_v49 }
 0x117   : > { %v10026_v32 = vpop.f32.mrf.mxu3 }
 0x118   : > { %13728 = vst [vmem:[#allocation56_spill] sm:$0xff] %v10026_v32  ;;  %v10028_v39 = vpop.f32.mrf.mxu2  ;;  %v7864_v32 = vld [vmem:[%s9637_s16 + $0x640] sm:$0xff] }
 0x119   : > { %13729 = vst [vmem:[#allocation57_spill] sm:$0xff] %v10028_v39  ;;  %v297_v39 = vld [vmem:[%s9637_s16 + $0x310] sm:$0xff] }
 0x11a   : > { %v10032_v43 = vpop.f32.mrf.mxu0 }
 0x11b   : > { %13730 = vst [vmem:[#allocation58_spill] sm:$0xff] %v10032_v43  ;;  %v10034_v56 = vpop.f32.mrf.mxu1  ;;  %v8227_v43 = vld [vmem:[%s9637_s16 + $0x130] sm:$0xff] }
 0x11c   : > { %13731 = vst [vmem:[#allocation59_spill] sm:$0xff] %v10034_v56  ;;  %8162 = vmatmul.msk.f32.gmra.mxu3 %vm464_vm1, %v296_v53  ;;  %v7838_v53 = vld [vmem:[%s9637_s16 + $0x570] sm:$0xff] }
 0x11d   : > { %8358 = vmatmul.msk.f32.gmra.mxu2 %vm464_vm1, %v8226_v14  ;;  %7969 = vmatmul.msk.f32.gmra.mxu0 %vm464_vm1, %v7837_v46 }
 0x11e   : > { %8098 = vmatmul.msk.f32.gmra.mxu1 %vm464_vm1, %v8222_v22 }
 0x11f   : > { %v10041_v49 = vpop.f32.mrf.mxu3 }
 0x120   : > { %13732 = vst [vmem:[#allocation60_spill] sm:$0xff] %v10041_v49  ;;  %v10043_v57 = vpop.f32.mrf.mxu2 }
 0x121   : > { %13733 = vst [vmem:[#allocation61_spill] sm:$0xff] %v10043_v57  ;;  %v298_v57 = vld [vmem:[%s9637_s16 + $0x318] sm:$0xff] }
 0x122   : > { %v10047_v36 = vpop.f32.mrf.mxu0 }
 0x123   : > { %13734 = vst [vmem:[#allocation62_spill] sm:$0xff] %v10047_v36  ;;  %v10049_v56 = vpop.f32.mrf.mxu1  ;;  %v8228_v36 = vld [vmem:[%s9637_s16 + $0x138] sm:$0xff] }
 0x124   : > { %13735 = vst [vmem:[#allocation63_spill] sm:$0xff] %v10049_v56  ;;  %8163 = vmatmul.msk.f32.gmra.mxu3 %vm464_vm1, %v297_v39  ;;  %v7839_v39 = vld [vmem:[%s9637_s16 + $0x578] sm:$0xff] }
 0x125   : > { %8359 = vmatmul.msk.f32.gmra.mxu2 %vm464_vm1, %v8227_v43  ;;  %7970 = vmatmul.msk.f32.gmra.mxu0 %vm464_vm1, %v7838_v53 }
 0x126   : > { %8099 = vmatmul.msk.f32.gmra.mxu1 %vm464_vm1, %v8223_v29 }
 0x127   : > { %v10056_v22 = vpop.f32.mrf.mxu3 }
 0x128   : > { %13736 = vst [vmem:[#allocation64_spill] sm:$0xff] %v10056_v22  ;;  %v10058_v46 = vpop.f32.mrf.mxu2  ;;  %v7863_v22 = vld [vmem:[%s9637_s16 + $0x638] sm:$0xff] }
 0x129   : > { %13737 = vst [vmem:[#allocation65_spill] sm:$0xff] %v10058_v46  ;;  %v10076_v46 = vld [vmem:[%s9637_s16 + $0x320] sm:$0xff] }
 0x12a   : > { %v10062_v35 = vpop.f32.mrf.mxu0 }
 0x12b   : > { %13738 = vst [vmem:[#allocation66_spill] sm:$0xff] %v10062_v35  ;;  %v10064_v56 = vpop.f32.mrf.mxu1  ;;  %v8229_v35 = vld [vmem:[%s9637_s16 + $0x140] sm:$0xff] }
 0x12c   : > { %13739 = vst [vmem:[#allocation67_spill] sm:$0xff] %v10064_v56  ;;  %8164 = vmatmul.msk.f32.gmra.mxu3 %vm464_vm1, %v298_v57  ;;  %v7840_v57 = vld [vmem:[%s9637_s16 + $0x580] sm:$0xff] }
 0x12d   : > { %8360 = vmatmul.msk.f32.gmra.mxu2 %vm464_vm1, %v8228_v36  ;;  %7971 = vmatmul.msk.f32.gmra.mxu0 %vm464_vm1, %v7839_v39 }
 0x12e   : > { %8100 = vmatmul.msk.f32.gmra.mxu1 %vm464_vm1, %v8224_v60 }
 0x12f   : > { %v10071_v29 = vpop.f32.mrf.mxu3 }
 0x130   : > { %13740 = vst [vmem:[#allocation68_spill] sm:$0xff] %v10071_v29  ;;  %v10073_v53 = vpop.f32.mrf.mxu2 }
 0x131   : > { %13741 = vst [vmem:[#allocation69_spill] sm:$0xff] %v10073_v53 }
 0x132   : > { %v10079_v56 = vpop.f32.mrf.mxu0 }
 0x133   : > { %13742 = vst [vmem:[#allocation70_spill] sm:$0xff] %v10079_v56  ;;  %v10081_v28 = vpop.f32.mrf.mxu1  ;;  %v10094_v56 = vld [vmem:[%s9637_s16 + $0x328] sm:$0xff] }
 0x134   : > { %13743 = vst [vmem:[#allocation71_spill] sm:$0xff] %v10081_v28  ;;  %8165 = vmatmul.msk.f32.gmra.mxu3 %vm464_vm1, %v10076_v46  ;;  %v8230_v28 = vld [vmem:[%s9637_s16 + $0x148] sm:$0xff] }
 0x135   : > { %8361 = vmatmul.msk.f32.gmra.mxu2 %vm464_vm1, %v8229_v35  ;;  %7972 = vmatmul.msk.f32.gmra.mxu0 %vm464_vm1, %v7840_v57 }
 0x136   : > { %8101 = vmatmul.msk.f32.gmra.mxu1 %vm464_vm1, %v8225_v63 }
 0x137   : > { %v10089_v60 = vpop.f32.mrf.mxu3 }
 0x138   : > { %13744 = vst [vmem:[#allocation72_spill] sm:$0xff] %v10089_v60  ;;  %v10091_v39 = vpop.f32.mrf.mxu2  ;;  %v7862_v60 = vld [vmem:[%s9637_s16 + $0x630] sm:$0xff] }
 0x139   : > { %13745 = vst [vmem:[#allocation73_spill] sm:$0xff] %v10091_v39 }
 0x13a   : > { %v10097_v53 = vpop.f32.mrf.mxu0 }
 0x13b   : > { %13746 = vst [vmem:[#allocation74_spill] sm:$0xff] %v10097_v53  ;;  %v10099_v21 = vpop.f32.mrf.mxu1  ;;  %v10112_v53 = vld [vmem:[%s9637_s16 + $0x330] sm:$0xff] }
 0x13c   : > { %13747 = vst [vmem:[#allocation75_spill] sm:$0xff] %v10099_v21  ;;  %8166 = vmatmul.msk.f32.gmra.mxu3 %vm464_vm1, %v10094_v56  ;;  %v8231_v21 = vld [vmem:[%s9637_s16 + $0x150] sm:$0xff] }
 0x13d   : > { %8362 = vmatmul.msk.f32.gmra.mxu2 %vm464_vm1, %v8230_v28  ;;  %7973 = vmatmul.msk.f32.gmra.mxu0 %vm464_vm1, %v7841_v18 }
 0x13e   : > { %8102 = vmatmul.msk.f32.gmra.mxu1 %vm464_vm1, %v8226_v14 }
 0x13f   : > { %v10107_v63 = vpop.f32.mrf.mxu3 }
 0x140   : > { %13748 = vst [vmem:[#allocation76_spill] sm:$0xff] %v10107_v63  ;;  %v10109_v57 = vpop.f32.mrf.mxu2 }
 0x141   : > { %13749 = vst [vmem:[#allocation77_spill] sm:$0xff] %v10109_v57 }
 0x142   : > { %v10115_v39 = vpop.f32.mrf.mxu0 }
 0x143   : > { %13750 = vst [vmem:[#allocation78_spill] sm:$0xff] %v10115_v39  ;;  %v10117_v11 = vpop.f32.mrf.mxu1  ;;  %v10130_v39 = vld [vmem:[%s9637_s16 + $0x338] sm:$0xff] }
 0x144   : > { %13751 = vst [vmem:[#allocation79_spill] sm:$0xff] %v10117_v11  ;;  %8167 = vmatmul.msk.f32.gmra.mxu3 %vm464_vm1, %v10112_v53  ;;  %v8232_v11 = vld [vmem:[%s9637_s16 + $0x158] sm:$0xff] }
 0x145   : > { %8363 = vmatmul.msk.f32.gmra.mxu2 %vm464_vm1, %v8231_v21  ;;  %7974 = vmatmul.msk.f32.gmra.mxu0 %vm464_vm1, %v7842_v4 }
 0x146   : > { %8103 = vmatmul.msk.f32.gmra.mxu1 %vm464_vm1, %v8227_v43 }
 0x147   : > { %v10125_v18 = vpop.f32.mrf.mxu3 }
 0x148   : > { %13752 = vst [vmem:[#allocation80_spill] sm:$0xff] %v10125_v18  ;;  %v10127_v14 = vpop.f32.mrf.mxu2  ;;  %v7861_v18 = vld [vmem:[%s9637_s16 + $0x628] sm:$0xff] }
 0x149   : > { %13753 = vst [vmem:[#allocation81_spill] sm:$0xff] %v10127_v14 }
 0x14a   : > { %v10133_v57 = vpop.f32.mrf.mxu0 }
 0x14b   : > { %13754 = vst [vmem:[#allocation82_spill] sm:$0xff] %v10133_v57  ;;  %v10135_v1 = vpop.f32.mrf.mxu1  ;;  %v10148_v57 = vld [vmem:[%s9637_s16 + $0x340] sm:$0xff] }
 0x14c   : > { %13755 = vst [vmem:[#allocation83_spill] sm:$0xff] %v10135_v1  ;;  %8168 = vmatmul.msk.f32.gmra.mxu3 %vm464_vm1, %v10130_v39  ;;  %v8233_v1 = vld [vmem:[%s9637_s16 + $0x160] sm:$0xff] }
 0x14d   : > { %8364 = vmatmul.msk.f32.gmra.mxu2 %vm464_vm1, %v8232_v11  ;;  %7975 = vmatmul.msk.f32.gmra.mxu0 %vm464_vm1, %v7843_v62 }
 0x14e   : > { %8104 = vmatmul.msk.f32.gmra.mxu1 %vm464_vm1, %v8228_v36 }
 0x14f   : > { %v10143_v4 = vpop.f32.mrf.mxu3 }
 0x150   : > { %13756 = vst [vmem:[#allocation84_spill] sm:$0xff] %v10143_v4  ;;  %v10145_v43 = vpop.f32.mrf.mxu2 }
 0x151   : > { %13757 = vst [vmem:[#allocation85_spill] sm:$0xff] %v10145_v43 }
 0x152   : > { %v10151_v14 = vpop.f32.mrf.mxu0 }
 0x153   : > { %13758 = vst [vmem:[#allocation86_spill] sm:$0xff] %v10151_v14  ;;  %v10153_v59 = vpop.f32.mrf.mxu1  ;;  %v10166_v14 = vld [vmem:[%s9637_s16 + $0x348] sm:$0xff] }
 0x154   : > { %13759 = vst [vmem:[#allocation87_spill] sm:$0xff] %v10153_v59  ;;  %8169 = vmatmul.msk.f32.gmra.mxu3 %vm464_vm1, %v10148_v57  ;;  %v8234_v59 = vld [vmem:[%s9637_s16 + $0x168] sm:$0xff] }
 0x155   : > { %8365 = vmatmul.msk.f32.gmra.mxu2 %vm464_vm1, %v8233_v1  ;;  %7976 = vmatmul.msk.f32.gmra.mxu0 %vm464_vm1, %v7844_v58 }
 0x156   : > { %8105 = vmatmul.msk.f32.gmra.mxu1 %vm464_vm1, %v8229_v35 }
 0x157   : > { %v10161_v62 = vpop.f32.mrf.mxu3 }
 0x158   : > { %13760 = vst [vmem:[#allocation88_spill] sm:$0xff] %v10161_v62  ;;  %v10163_v36 = vpop.f32.mrf.mxu2  ;;  %v7860_v62 = vld [vmem:[%s9637_s16 + $0x620] sm:$0xff] }
 0x159   : > { %13761 = vst [vmem:[#allocation89_spill] sm:$0xff] %v10163_v36 }
 0x15a   : > { %v10169_v43 = vpop.f32.mrf.mxu0 }
 0x15b   : > { %13762 = vst [vmem:[#allocation90_spill] sm:$0xff] %v10169_v43  ;;  %v10171_v55 = vpop.f32.mrf.mxu1  ;;  %v10184_v43 = vld [vmem:[%s9637_s16 + $0x350] sm:$0xff] }
 0x15c   : > { %13763 = vst [vmem:[#allocation91_spill] sm:$0xff] %v10171_v55  ;;  %8170 = vmatmul.msk.f32.gmra.mxu3 %vm464_vm1, %v10166_v14  ;;  %v8235_v55 = vld [vmem:[%s9637_s16 + $0x170] sm:$0xff] }
 0x15d   : > { %8366 = vmatmul.msk.f32.gmra.mxu2 %vm464_vm1, %v8234_v59  ;;  %7977 = vmatmul.msk.f32.gmra.mxu0 %vm464_vm1, %v7845_v52 }
 0x15e   : > { %8106 = vmatmul.msk.f32.gmra.mxu1 %vm464_vm1, %v8230_v28 }
 0x15f   : > { %v10179_v58 = vpop.f32.mrf.mxu3 }
 0x160   : > { %13764 = vst [vmem:[#allocation92_spill] sm:$0xff] %v10179_v58  ;;  %v10181_v35 = vpop.f32.mrf.mxu2 }
 0x161   : > { %13765 = vst [vmem:[#allocation93_spill] sm:$0xff] %v10181_v35 }
 0x162   : > { %v10187_v36 = vpop.f32.mrf.mxu0 }
 0x163   : > { %13766 = vst [vmem:[#allocation94_spill] sm:$0xff] %v10187_v36  ;;  %v10189_v51 = vpop.f32.mrf.mxu1  ;;  %v10202_v36 = vld [vmem:[%s9637_s16 + $0x358] sm:$0xff] }
 0x164   : > { %13767 = vst [vmem:[#allocation95_spill] sm:$0xff] %v10189_v51  ;;  %8171 = vmatmul.msk.f32.gmra.mxu3 %vm464_vm1, %v10184_v43  ;;  %v8236_v51 = vld [vmem:[%s9637_s16 + $0x178] sm:$0xff] }
 0x165   : > { %8367 = vmatmul.msk.f32.gmra.mxu2 %vm464_vm1, %v8235_v55  ;;  %7978 = vmatmul.msk.f32.gmra.mxu0 %vm464_vm1, %v7846_v48 }
 0x166   : > { %8107 = vmatmul.msk.f32.gmra.mxu1 %vm464_vm1, %v8231_v21 }
 0x167   : > { %v10197_v52 = vpop.f32.mrf.mxu3 }
 0x168   : > { %13768 = vst [vmem:[#allocation96_spill] sm:$0xff] %v10197_v52  ;;  %v10199_v28 = vpop.f32.mrf.mxu2  ;;  %v7859_v52 = vld [vmem:[%s9637_s16 + $0x618] sm:$0xff] }
 0x169   : > { %13769 = vst [vmem:[#allocation97_spill] sm:$0xff] %v10199_v28 }
 0x16a   : > { %v10205_v35 = vpop.f32.mrf.mxu0 }
 0x16b   : > { %13770 = vst [vmem:[#allocation98_spill] sm:$0xff] %v10205_v35  ;;  %v10207_v45 = vpop.f32.mrf.mxu1  ;;  %v10220_v35 = vld [vmem:[%s9637_s16 + $0x360] sm:$0xff] }
 0x16c   : > { %13771 = vst [vmem:[#allocation99_spill] sm:$0xff] %v10207_v45  ;;  %8172 = vmatmul.msk.f32.gmra.mxu3 %vm464_vm1, %v10202_v36  ;;  %v8237_v45 = vld [vmem:[%s9637_s16 + $0x180] sm:$0xff] }
 0x16d   : > { %8368 = vmatmul.msk.f32.gmra.mxu2 %vm464_vm1, %v8236_v51  ;;  %7979 = vmatmul.msk.f32.gmra.mxu0 %vm464_vm1, %v7847_v44 }
 0x16e   : > { %8108 = vmatmul.msk.f32.gmra.mxu1 %vm464_vm1, %v8232_v11 }
 0x16f   : > { %v10215_v48 = vpop.f32.mrf.mxu3 }
 0x170   : > { %13772 = vst [vmem:[#allocation100_spill] sm:$0xff] %v10215_v48  ;;  %v10217_v21 = vpop.f32.mrf.mxu2 }
 0x171   : > { %13773 = vst [vmem:[#allocation101_spill] sm:$0xff] %v10217_v21 }
 0x172   : > { %v10223_v28 = vpop.f32.mrf.mxu0 }
 0x173   : > { %13774 = vst [vmem:[#allocation102_spill] sm:$0xff] %v10223_v28  ;;  %v10225_v41 = vpop.f32.mrf.mxu1  ;;  %v10238_v28 = vld [vmem:[%s9637_s16 + $0x368] sm:$0xff] }
 0x174   : > { %13775 = vst [vmem:[#allocation103_spill] sm:$0xff] %v10225_v41  ;;  %8173 = vmatmul.msk.f32.gmra.mxu3 %vm464_vm1, %v10220_v35  ;;  %v8238_v41 = vld [vmem:[%s9637_s16 + $0x188] sm:$0xff] }
 0x175   : > { %8369 = vmatmul.msk.f32.gmra.mxu2 %vm464_vm1, %v8237_v45  ;;  %7980 = vmatmul.msk.f32.gmra.mxu0 %vm464_vm1, %v7848_v38 }
 0x176   : > { %8109 = vmatmul.msk.f32.gmra.mxu1 %vm464_vm1, %v8233_v1 }
 0x177   : > { %v10233_v44 = vpop.f32.mrf.mxu3 }
 0x178   : > { %13776 = vst [vmem:[#allocation104_spill] sm:$0xff] %v10233_v44  ;;  %v10235_v11 = vpop.f32.mrf.mxu2  ;;  %v7858_v44 = vld [vmem:[%s9637_s16 + $0x610] sm:$0xff] }
 0x179   : > { %13777 = vst [vmem:[#allocation105_spill] sm:$0xff] %v10235_v11 }
 0x17a   : > { %v10241_v21 = vpop.f32.mrf.mxu0 }
 0x17b   : > { %13778 = vst [vmem:[#allocation106_spill] sm:$0xff] %v10241_v21  ;;  %v10243_v37 = vpop.f32.mrf.mxu1  ;;  %v10256_v21 = vld [vmem:[%s9637_s16 + $0x370] sm:$0xff] }
 0x17c   : > { %13779 = vst [vmem:[#allocation107_spill] sm:$0xff] %v10243_v37  ;;  %8174 = vmatmul.msk.f32.gmra.mxu3 %vm464_vm1, %v10238_v28  ;;  %v8239_v37 = vld [vmem:[%s9637_s16 + $0x190] sm:$0xff] }
 0x17d   : > { %8370 = vmatmul.msk.f32.gmra.mxu2 %vm464_vm1, %v8238_v41  ;;  %7981 = vmatmul.msk.f32.gmra.mxu0 %vm464_vm1, %v7849_v34 }
 0x17e   : > { %8110 = vmatmul.msk.f32.gmra.mxu1 %vm464_vm1, %v8234_v59 }
 0x17f   : > { %v10251_v38 = vpop.f32.mrf.mxu3 }
 0x180   : > { %13780 = vst [vmem:[#allocation108_spill] sm:$0xff] %v10251_v38  ;;  %v10253_v1 = vpop.f32.mrf.mxu2 }
 0x181   : > { %13781 = vst [vmem:[#allocation109_spill] sm:$0xff] %v10253_v1 }
 0x182   : > { %v10259_v11 = vpop.f32.mrf.mxu0 }
 0x183   : > { %13782 = vst [vmem:[#allocation110_spill] sm:$0xff] %v10259_v11  ;;  %v10261_v31 = vpop.f32.mrf.mxu1  ;;  %v10274_v11 = vld [vmem:[%s9637_s16 + $0x378] sm:$0xff] }
 0x184   : > { %13783 = vst [vmem:[#allocation111_spill] sm:$0xff] %v10261_v31  ;;  %8175 = vmatmul.msk.f32.gmra.mxu3 %vm464_vm1, %v10256_v21  ;;  %v8240_v31 = vld [vmem:[%s9637_s16 + $0x198] sm:$0xff] }
 0x185   : > { %8371 = vmatmul.msk.f32.gmra.mxu2 %vm464_vm1, %v8239_v37  ;;  %7982 = vmatmul.msk.f32.gmra.mxu0 %vm464_vm1, %v7850_v30 }
 0x186   : > { %8111 = vmatmul.msk.f32.gmra.mxu1 %vm464_vm1, %v8235_v55 }
 0x187   : > { %v10269_v34 = vpop.f32.mrf.mxu3 }
 0x188   : > { %13784 = vst [vmem:[#allocation112_spill] sm:$0xff] %v10269_v34  ;;  %v10271_v59 = vpop.f32.mrf.mxu2  ;;  %v7857_v34 = vld [vmem:[%s9637_s16 + $0x608] sm:$0xff] }
 0x189   : > { %13785 = vst [vmem:[#allocation113_spill] sm:$0xff] %v10271_v59 }
 0x18a   : > { %v10277_v1 = vpop.f32.mrf.mxu0 }
 0x18b   : > { %13786 = vst [vmem:[#allocation114_spill] sm:$0xff] %v10277_v1  ;;  %v10279_v27 = vpop.f32.mrf.mxu1  ;;  %v10292_v1 = vld [vmem:[%s9637_s16 + $0x380] sm:$0xff] }
 0x18c   : > { %13787 = vst [vmem:[#allocation115_spill] sm:$0xff] %v10279_v27  ;;  %8176 = vmatmul.msk.f32.gmra.mxu3 %vm464_vm1, %v10274_v11  ;;  %v8241_v27 = vld [vmem:[%s9637_s16 + $0x1a0] sm:$0xff] }
 0x18d   : > { %8372 = vmatmul.msk.f32.gmra.mxu2 %vm464_vm1, %v8240_v31  ;;  %7983 = vmatmul.msk.f32.gmra.mxu0 %vm464_vm1, %v7851_v24 }
 0x18e   : > { %8112 = vmatmul.msk.f32.gmra.mxu1 %vm464_vm1, %v8236_v51 }
 0x18f   : > { %v10287_v30 = vpop.f32.mrf.mxu3 }
 0x190   : > { %13788 = vst [vmem:[#allocation116_spill] sm:$0xff] %v10287_v30  ;;  %v10289_v55 = vpop.f32.mrf.mxu2 }
 0x191   : > { %13789 = vst [vmem:[#allocation117_spill] sm:$0xff] %v10289_v55 }
 0x192   : > { %v10295_v59 = vpop.f32.mrf.mxu0 }
 0x193   : > { %13790 = vst [vmem:[#allocation118_spill] sm:$0xff] %v10295_v59  ;;  %v10297_v23 = vpop.f32.mrf.mxu1  ;;  %v10310_v59 = vld [vmem:[%s9637_s16 + $0x388] sm:$0xff] }
 0x194   : > { %13791 = vst [vmem:[#allocation119_spill] sm:$0xff] %v10297_v23  ;;  %8177 = vmatmul.msk.f32.gmra.mxu3 %vm464_vm1, %v10292_v1  ;;  %v8242_v23 = vld [vmem:[%s9637_s16 + $0x1a8] sm:$0xff] }
 0x195   : > { %8373 = vmatmul.msk.f32.gmra.mxu2 %vm464_vm1, %v8241_v27  ;;  %7984 = vmatmul.msk.f32.gmra.mxu0 %vm464_vm1, %v7852_v20 }
 0x196   : > { %8113 = vmatmul.msk.f32.gmra.mxu1 %vm464_vm1, %v8237_v45 }
 0x197   : > { %v10305_v24 = vpop.f32.mrf.mxu3 }
 0x198   : > { %v10307_v51 = vpop.f32.mrf.mxu2 }
 0x199   : > { %13792 = vst [vmem:[#allocation120_spill] sm:$0xff] %v10307_v51 }
 0x19a   : > { %v10313_v55 = vpop.f32.mrf.mxu0 }
 0x19b   : > { %13793 = vst [vmem:[#allocation121_spill] sm:$0xff] %v10313_v55  ;;  %v10315_v17 = vpop.f32.mrf.mxu1  ;;  %v10328_v55 = vld [vmem:[%s9637_s16 + $0x390] sm:$0xff] }
 0x19c   : > { %13794 = vst [vmem:[#allocation122_spill] sm:$0xff] %v10315_v17  ;;  %8178 = vmatmul.msk.f32.gmra.mxu3 %vm464_vm1, %v10310_v59  ;;  %v8243_v17 = vld [vmem:[%s9637_s16 + $0x1b0] sm:$0xff] }
 0x19d   : > { %8374 = vmatmul.msk.f32.gmra.mxu2 %vm464_vm1, %v8242_v23  ;;  %7985 = vmatmul.msk.f32.gmra.mxu0 %vm464_vm1, %v7853_v16 }
 0x19e   : > { %8114 = vmatmul.msk.f32.gmra.mxu1 %vm464_vm1, %v8238_v41 }
 0x19f   : > { %v10323_v20 = vpop.f32.mrf.mxu3 }
 0x1a0   : > { %v10325_v45 = vpop.f32.mrf.mxu2 }
 0x1a1   : > { %13795 = vst [vmem:[#allocation123_spill] sm:$0xff] %v10325_v45 }
 0x1a2   : > { %v10331_v51 = vpop.f32.mrf.mxu0 }
 0x1a3   : > { %13796 = vst [vmem:[#allocation124_spill] sm:$0xff] %v10331_v51  ;;  %v10333_v13 = vpop.f32.mrf.mxu1  ;;  %v10346_v51 = vld [vmem:[%s9637_s16 + $0x398] sm:$0xff] }
 0x1a4   : > { %13797 = vst [vmem:[#allocation125_spill] sm:$0xff] %v10333_v13  ;;  %8179 = vmatmul.msk.f32.gmra.mxu3 %vm464_vm1, %v10328_v55  ;;  %v8244_v13 = vld [vmem:[%s9637_s16 + $0x1b8] sm:$0xff] }
 0x1a5   : > { %8375 = vmatmul.msk.f32.gmra.mxu2 %vm464_vm1, %v8243_v17  ;;  %7986 = vmatmul.msk.f32.gmra.mxu0 %vm464_vm1, %v7854_v10 }
 0x1a6   : > { %8115 = vmatmul.msk.f32.gmra.mxu1 %vm464_vm1, %v8239_v37 }
 0x1a7   : > { %v10341_v16 = vpop.f32.mrf.mxu3 }
 0x1a8   : > { %v10343_v41 = vpop.f32.mrf.mxu2 }
 0x1a9   : > { %13798 = vst [vmem:[#allocation126_spill] sm:$0xff] %v10343_v41 }
 0x1aa   : > { %v10349_v45 = vpop.f32.mrf.mxu0 }
 0x1ab   : > { %13799 = vst [vmem:[#allocation127_spill] sm:$0xff] %v10349_v45  ;;  %v10351_v9 = vpop.f32.mrf.mxu1  ;;  %v10364_v45 = vld [vmem:[%s9637_s16 + $0x3a0] sm:$0xff] }
 0x1ac   : > { %13800 = vst [vmem:[#allocation128_spill] sm:$0xff] %v10351_v9  ;;  %8180 = vmatmul.msk.f32.gmra.mxu3 %vm464_vm1, %v10346_v51  ;;  %v8245_v9 = vld [vmem:[%s9637_s16 + $0x1c0] sm:$0xff] }
 0x1ad   : > { %8376 = vmatmul.msk.f32.gmra.mxu2 %vm464_vm1, %v8244_v13  ;;  %7987 = vmatmul.msk.f32.gmra.mxu0 %vm464_vm1, %v7855_v6 }
 0x1ae   : > { %8116 = vmatmul.msk.f32.gmra.mxu1 %vm464_vm1, %v8240_v31 }
 0x1af   : > { %v10359_v10 = vpop.f32.mrf.mxu3 }
 0x1b0   : > { %v10361_v37 = vpop.f32.mrf.mxu2 }
 0x1b1   : > { %13801 = vst [vmem:[#allocation129_spill] sm:$0xff] %v10361_v37 }
 0x1b2   : > { %v10367_v41 = vpop.f32.mrf.mxu0 }
 0x1b3   : > { %13802 = vst [vmem:[#allocation130_spill] sm:$0xff] %v10367_v41  ;;  %v10369_v3 = vpop.f32.mrf.mxu1  ;;  %v10382_v41 = vld [vmem:[%s9637_s16 + $0x3a8] sm:$0xff] }
 0x1b4   : > { %13803 = vst [vmem:[#allocation131_spill] sm:$0xff] %v10369_v3  ;;  %8181 = vmatmul.msk.f32.gmra.mxu3 %vm464_vm1, %v10364_v45  ;;  %v8246_v3 = vld [vmem:[%s9637_s16 + $0x1c8] sm:$0xff] }
 0x1b5   : > { %8377 = vmatmul.msk.f32.gmra.mxu2 %vm464_vm1, %v8245_v9  ;;  %7988 = vmatmul.msk.f32.gmra.mxu0 %vm464_vm1, %v7856_v2 }
 0x1b6   : > { %8117 = vmatmul.msk.f32.gmra.mxu1 %vm464_vm1, %v8241_v27 }
 0x1b7   : > { %v10377_v6 = vpop.f32.mrf.mxu3 }
 0x1b8   : > { %v10379_v31 = vpop.f32.mrf.mxu2 }
 0x1b9   : > { %13804 = vst [vmem:[#allocation132_spill] sm:$0xff] %v10379_v31 }
 0x1ba   : > { %v10385_v37 = vpop.f32.mrf.mxu0 }
 0x1bb   : > { %13805 = vst [vmem:[#allocation133_spill] sm:$0xff] %v10385_v37  ;;  %v10387_v30 = vpop.f32.mrf.mxu1  ;;  %v10400_v37 = vld [vmem:[%s9637_s16 + $0x3b0] sm:$0xff] }
 0x1bc   : > { %13806 = vst [vmem:[#allocation134_spill] sm:$0xff] %v10387_v30  ;;  %8182 = vmatmul.msk.f32.gmra.mxu3 %vm464_vm1, %v10382_v41  ;;  %v8247_v30 = vld [vmem:[%s9637_s16 + $0x1d0] sm:$0xff] }
 0x1bd   : > { %8378 = vmatmul.msk.f32.gmra.mxu2 %vm464_vm1, %v8246_v3  ;;  %7989 = vmatmul.msk.f32.gmra.mxu0 %vm464_vm1, %v7857_v34 }
 0x1be   : > { %8118 = vmatmul.msk.f32.gmra.mxu1 %vm464_vm1, %v8242_v23 }
 0x1bf   : > { %v10395_v2 = vpop.f32.mrf.mxu3 }
 0x1c0   : > { %v10397_v27 = vpop.f32.mrf.mxu2 }
 0x1c1   : > { %13807 = vst [vmem:[#allocation135_spill] sm:$0xff] %v10397_v27 }
 0x1c2   : > { %v10403_v31 = vpop.f32.mrf.mxu0 }
 0x1c3   : > { %13808 = vst [vmem:[#allocation136_spill] sm:$0xff] %v10403_v31  ;;  %v10405_v38 = vpop.f32.mrf.mxu1  ;;  %v10418_v31 = vld [vmem:[%s9637_s16 + $0x3b8] sm:$0xff] }
 0x1c4   : > { %13809 = vst [vmem:[#allocation137_spill] sm:$0xff] %v10405_v38  ;;  %8183 = vmatmul.msk.f32.gmra.mxu3 %vm464_vm1, %v10400_v37  ;;  %v8248_v38 = vld [vmem:[%s9637_s16 + $0x1d8] sm:$0xff] }
 0x1c5   : > { %8379 = vmatmul.msk.f32.gmra.mxu2 %vm464_vm1, %v8247_v30  ;;  %7990 = vmatmul.msk.f32.gmra.mxu0 %vm464_vm1, %v7858_v44 }
 0x1c6   : > { %8119 = vmatmul.msk.f32.gmra.mxu1 %vm464_vm1, %v8243_v17 }
 0x1c7   : > { %v10413_v23 = vpop.f32.mrf.mxu3 }
 0x1c8   : > { %v10415_v34 = vpop.f32.mrf.mxu2 }
 0x1c9   : > { %13810 = vst [vmem:[#allocation138_spill] sm:$0xff] %v10415_v34 }
 0x1ca   : > { %v10421_v27 = vpop.f32.mrf.mxu0 }
 0x1cb   : > { %13811 = vst [vmem:[#allocation139_spill] sm:$0xff] %v10421_v27  ;;  %v10423_v48 = vpop.f32.mrf.mxu1  ;;  %v10436_v27 = vld [vmem:[%s9637_s16 + $0x3c0] sm:$0xff] }
 0x1cc   : > { %13812 = vst [vmem:[#allocation140_spill] sm:$0xff] %v10423_v48  ;;  %8184 = vmatmul.msk.f32.gmra.mxu3 %vm464_vm1, %v10418_v31  ;;  %v8249_v48 = vld [vmem:[%s9637_s16 + $0x1e0] sm:$0xff] }
 0x1cd   : > { %8380 = vmatmul.msk.f32.gmra.mxu2 %vm464_vm1, %v8248_v38  ;;  %7991 = vmatmul.msk.f32.gmra.mxu0 %vm464_vm1, %v7859_v52 }
 0x1ce   : > { %8120 = vmatmul.msk.f32.gmra.mxu1 %vm464_vm1, %v8244_v13 }
 0x1cf   : > { %v10431_v17 = vpop.f32.mrf.mxu3 }
 0x1d0   : > { %v10433_v44 = vpop.f32.mrf.mxu2 }
 0x1d1   : > { %13813 = vst [vmem:[#allocation141_spill] sm:$0xff] %v10433_v44 }
 0x1d2   : > { %v10439_v34 = vpop.f32.mrf.mxu0 }
 0x1d3   : > { %13814 = vst [vmem:[#allocation142_spill] sm:$0xff] %v10439_v34  ;;  %v10441_v58 = vpop.f32.mrf.mxu1  ;;  %v10454_v34 = vld [vmem:[%s9637_s16 + $0x3c8] sm:$0xff] }
 0x1d4   : > { %13815 = vst [vmem:[#allocation143_spill] sm:$0xff] %v10441_v58  ;;  %8185 = vmatmul.msk.f32.gmra.mxu3 %vm464_vm1, %v10436_v27  ;;  %v8250_v58 = vld [vmem:[%s9637_s16 + $0x1e8] sm:$0xff] }
 0x1d5   : > { %8381 = vmatmul.msk.f32.gmra.mxu2 %vm464_vm1, %v8249_v48  ;;  %7992 = vmatmul.msk.f32.gmra.mxu0 %vm464_vm1, %v7860_v62 }
 0x1d6   : > { %8121 = vmatmul.msk.f32.gmra.mxu1 %vm464_vm1, %v8245_v9 }
 0x1d7   : > { %v10449_v13 = vpop.f32.mrf.mxu3 }
 0x1d8   : > { %v10451_v52 = vpop.f32.mrf.mxu2 }
 0x1d9   : > { %13816 = vst [vmem:[#allocation144_spill] sm:$0xff] %v10451_v52 }
 0x1da   : > { %v10457_v44 = vpop.f32.mrf.mxu0 }
 0x1db   : > { %13817 = vst [vmem:[#allocation145_spill] sm:$0xff] %v10457_v44  ;;  %v10459_v4 = vpop.f32.mrf.mxu1  ;;  %v10472_v44 = vld [vmem:[%s9637_s16 + $0x3d0] sm:$0xff] }
 0x1dc   : > { %13818 = vst [vmem:[#allocation146_spill] sm:$0xff] %v10459_v4  ;;  %8186 = vmatmul.msk.f32.gmra.mxu3 %vm464_vm1, %v10454_v34  ;;  %v8251_v4 = vld [vmem:[%s9637_s16 + $0x1f0] sm:$0xff] }
 0x1dd   : > { %8382 = vmatmul.msk.f32.gmra.mxu2 %vm464_vm1, %v8250_v58  ;;  %7993 = vmatmul.msk.f32.gmra.mxu0 %vm464_vm1, %v7861_v18 }
 0x1de   : > { %8122 = vmatmul.msk.f32.gmra.mxu1 %vm464_vm1, %v8246_v3 }
 0x1df   : > { %v10467_v9 = vpop.f32.mrf.mxu3 }
 0x1e0   : > { %v10469_v62 = vpop.f32.mrf.mxu2 }
 0x1e1   : > { %13819 = vst [vmem:[#allocation147_spill] sm:$0xff] %v10469_v62 }
 0x1e2   : > { %v10475_v52 = vpop.f32.mrf.mxu0 }
 0x1e3   : > { %13820 = vst [vmem:[#allocation148_spill] sm:$0xff] %v10475_v52  ;;  %v10477_v63 = vpop.f32.mrf.mxu1  ;;  %v10490_v52 = vld [vmem:[%s9637_s16 + $0x3d8] sm:$0xff] }
 0x1e4   : > { %13821 = vst [vmem:[#allocation149_spill] sm:$0xff] %v10477_v63  ;;  %8187 = vmatmul.msk.f32.gmra.mxu3 %vm464_vm1, %v10472_v44  ;;  %v8252_v63 = vld [vmem:[%s9637_s16 + $0x1f8] sm:$0xff] }
 0x1e5   : > { %8383 = vmatmul.msk.f32.gmra.mxu2 %vm464_vm1, %v8251_v4  ;;  %7994 = vmatmul.msk.f32.gmra.mxu0 %vm464_vm1, %v7862_v60 }
 0x1e6   : > { %8123 = vmatmul.msk.f32.gmra.mxu1 %vm464_vm1, %v8247_v30 }
 0x1e7   : > { %v10485_v3 = vpop.f32.mrf.mxu3 }
 0x1e8   : > { %v10487_v18 = vpop.f32.mrf.mxu2 }
 0x1e9   : > { %13822 = vst [vmem:[#allocation150_spill] sm:$0xff] %v10487_v18  ;;  %v10508_v18 = vld [vmem:[%s9637_s16 + $0x3e0] sm:$0xff] }
 0x1ea   : > { %v10493_v62 = vpop.f32.mrf.mxu0 }
 0x1eb   : > { %13823 = vst [vmem:[#allocation151_spill] sm:$0xff] %v10493_v62  ;;  %v10495_v29 = vpop.f32.mrf.mxu1  ;;  %v8253_v62 = vld [vmem:[%s9637_s16 + $0x200] sm:$0xff] }
 0x1ec   : > { %13824 = vst [vmem:[#allocation152_spill] sm:$0xff] %v10495_v29  ;;  %8188 = vmatmul.msk.f32.gmra.mxu3 %vm464_vm1, %v10490_v52 }
 0x1ed   : > { %8384 = vmatmul.msk.f32.gmra.mxu2 %vm464_vm1, %v8252_v63  ;;  %7995 = vmatmul.msk.f32.gmra.mxu0 %vm464_vm1, %v7863_v22  ;;  %v8583_v22 = vld [vmem:[%s13671_s1 + $0x58] sm:$0x1f] }
 0x1ee   : > { %8124 = vmatmul.msk.f32.gmra.mxu1 %vm464_vm1, %v8248_v38  ;;  %8584 = vmatpush.msk.msrb.mxu3 %vm849_vm0, %v8583_v22  ;;  %v8841_v22 = vld [vmem:[%s13671_s1 + $0x60] sm:$0xff] }
 0x1ef   : > { %v10503_v60 = vpop.f32.mrf.mxu3  ;;  %4680 = vmatpush.msrb.mxu0 %v8841_v22  ;;  %v8256_v22 = vld [vmem:[%s9637_s16 + $0x218] sm:$0xff] }
 0x1f0   : > { %13825 = vst [vmem:[#allocation153_spill] sm:$0xff] %v10503_v60  ;;  %v10505_v30 = vpop.f32.mrf.mxu2  ;;  %v7866_v60 = vld [vmem:[%s9637_s16 + $0x650] sm:$0xff] }
 0x1f1   : > { %13826 = vst [vmem:[#allocation154_spill] sm:$0xff] %v10505_v30  ;;  %v10533_v30 = vld [vmem:[%s9637_s16 + $0x3e8] sm:$0xff] }
 0x1f2   : > { %v10511_v29 = vpop.f32.mrf.mxu0 }
 0x1f3   : > { %13827 = vst [vmem:[#allocation155_spill] sm:$0xff] %v10511_v29  ;;  %v10513_v49 = vpop.f32.mrf.mxu1  ;;  %v9361_v29 = vld [vmem:[%s13671_s1 + $0x90] sm:$0xff] }
 0x1f4   : > { %13828 = vst [vmem:[#allocation156_spill] sm:$0xff] %v10513_v49  ;;  %8189 = vmatmul.msk.f32.gmra.mxu3 %vm464_vm1, %v10508_v18  ;;  %6781 = vmatpush.msrb.mxu2 %v9361_v29 }
 0x1f5   : > { %8385 = vmatmul.msk.f32.gmra.mxu2 %vm464_vm1, %v8253_v62  ;;  %7996 = vmatmul.msk.f32.gmra.mxu0 %vm464_vm1, %v7864_v32 }
 0x1f6   : > { %8125 = vmatmul.msk.f32.gmra.mxu1 %vm464_vm1, %v8249_v48  ;;  %v7865_v48 = vld [vmem:[%s9637_s16 + $0x648] sm:$0xff] }
 0x1f7   : > { %v10525_v38 = vpop.f32.mrf.mxu3 }
 0x1f8   : > { %13829 = vst [vmem:[#allocation157_spill] sm:$0xff] %v10525_v38  ;;  %v10527_v49 = vpop.f32.mrf.mxu2 }
 0x1f9   : > { %13830 = vst [vmem:[#allocation158_spill] sm:$0xff] %v10527_v49  ;;  %v9101_v49 = vld [vmem:[%s13671_s1 + $0x78] sm:$0xff] }
 0x1fa   : > { %v10536_v0 = vpop.f32.mrf.mxu0  ;;  %5730 = vmatpush.msrb.mxu1 %v9101_v49 }
 0x1fb   : > { %13831 = vst [vmem:[#allocation159_spill] sm:$0xff] %v10536_v0  ;;  %v10538_v32 = vpop.f32.mrf.mxu1  ;;  %v10557_v0 = vld [vmem:[%s9637_s16 + $0x3f0] sm:$0xff] }
 0x1fc   : > { %13832 = vst [vmem:[#allocation160_spill] sm:$0xff] %v10538_v32  ;;  %8190 = vmatmul.msk.f32.gmra.mxu3 %vm464_vm1, %v10533_v30 }
 0x1fd   : > { %8386 = vmatmul.msk.f32.gmra.mxu2 %vm464_vm1, %v8254_v15  ;;  %7997 = vmatmul.msk.f32.gmra.mxu0 %vm464_vm1, %v7865_v48  ;;  %v10575_v48 = vld [vmem:[%s9637_s16 + $0x3f8] sm:$0xff] }
 0x1fe   : > { %8126 = vmatmul.msk.f32.gmra.mxu1 %vm464_vm1, %v8250_v58 }
 0x1ff   : > { %v10552_v29 = vpop.f32.mrf.mxu3 }
 0x200   : > { %v10554_v32 = vpop.f32.mrf.mxu2 }
 0x201   : > { %13833 = vst [vmem:[#allocation161_spill] sm:$0xff] %v10554_v32  ;;  %v7867_v32 = vld [vmem:[%s9637_s16 + $0x658] sm:$0xff] }
 0x202   : > { %v10560_v38 = vpop.f32.mrf.mxu0 }
 0x203   : > { %13834 = vst [vmem:[#allocation162_spill] sm:$0xff] %v10560_v38  ;;  %v10562_v50 = vpop.f32.mrf.mxu1 }
 0x204   : > { %13835 = vst [vmem:[#allocation163_spill] sm:$0xff] %v10562_v50  ;;  %8191 = vmatmul.msk.f32.gmra.mxu3 %vm464_vm1, %v10557_v0 }
 0x205   : > { %8387 = vmatmul.msk.f32.gmra.mxu2 %vm464_vm1, %v8255_v7  ;;  %7998 = vmatmul.msk.f32.gmra.mxu0 %vm464_vm1, %v7866_v60 }
 0x206   : > { %8127 = vmatmul.msk.f32.gmra.mxu1 %vm464_vm1, %v8251_v4 }
 0x207   : > { %v10570_v49 = vpop.f32.mrf.mxu3 }
 0x208   : > { %13836 = vst [vmem:[#allocation164_spill] sm:$0xff] %v10570_v49  ;;  %v10572_v58 = vpop.f32.mrf.mxu2  ;;  %v7868_v49 = vld [vmem:[%s9637_s16 + $0x660] sm:$0xff] }
 0x209   : > { %13837 = vst [vmem:[#allocation165_spill] sm:$0xff] %v10572_v58  ;;  %v8257_v58 = vld [vmem:[%s9637_s16 + $0x220] sm:$0xff] }
 0x20a   : > { %v10578_v50 = vpop.f32.mrf.mxu0 }
 0x20b   : > { %13838 = vst [vmem:[#allocation166_spill] sm:$0xff] %v10578_v50  ;;  %v10580_v38 = vpop.f32.mrf.mxu1 }
 0x20c   : > { %13839 = vst [vmem:[#allocation167_spill] sm:$0xff] %v10580_v38  ;;  %8192 = vmatmul.msk.f32.gmra.mxu3 %vm464_vm1, %v10575_v48 }
 0x20d   : > { %8388 = vmatmul.msk.f32.gmra.mxu2 %vm464_vm1, %v8256_v22  ;;  %7999 = vmatmul.msk.f32.gmra.mxu0 %vm464_vm1, %v7867_v32 }
 0x20e   : > { %8128 = vmatmul.msk.f32.gmra.mxu1 %vm464_vm1, %v8252_v63 }
 0x20f   : > { %v10588_v4 = vpop.f32.mrf.mxu3 }
 0x210   : > { %13840 = vst [vmem:[#allocation168_spill] sm:$0xff] %v10588_v4  ;;  %v10590_v60 = vpop.f32.mrf.mxu2  ;;  %v7869_v4 = vld [vmem:[%s9637_s16 + $0x668] sm:$0xff] }
 0x211   : > { %13841 = vst [vmem:[#allocation169_spill] sm:$0xff] %v10590_v60  ;;  %v8258_v60 = vld [vmem:[%s9637_s16 + $0x228] sm:$0xff] }
 0x212   : > { %v10593_v50 = vpop.f32.mrf.mxu0 }
 0x213   : > { %13842 = vst [vmem:[#allocation170_spill] sm:$0xff] %v10593_v50  ;;  %v10595_v38 = vpop.f32.mrf.mxu1 }
 0x214   : > { %13843 = vst [vmem:[#allocation171_spill] sm:$0xff] %v10595_v38  ;;  %8421 = vmatmul.msk.f32.vlgmr.msra.gmra.mxu3 %vm464_vm1, %v10076_v46 }
 0x215   : > { %8389 = vmatmul.msk.f32.gmra.mxu2 %vm464_vm1, %v8257_v58  ;;  %8000 = vmatmul.msk.f32.gmra.mxu0 %vm464_vm1, %v7868_v49  ;;  %v8259_v49 = vld [vmem:[%s9637_s16 + $0x230] sm:$0xff] }
 0x216   : > { %8129 = vmatmul.msk.f32.gmra.mxu1 %vm464_vm1, %v8253_v62 }
 0x217   : > { %v10603_v63 = vpop.f32.mrf.mxu3 }
 0x218   : > { %v10605_v32 = vpop.f32.mrf.mxu2 }
 0x219   : > { %13844 = vst [vmem:[#allocation172_spill] sm:$0xff] %v10605_v32  ;;  %v7870_v32 = vld [vmem:[%s9637_s16 + $0x670] sm:$0xff] }
 0x21a   : > { %v10608_v50 = vpop.f32.mrf.mxu0 }
 0x21b   : > { %13845 = vst [vmem:[#allocation173_spill] sm:$0xff] %v10608_v50  ;;  %v10610_v38 = vpop.f32.mrf.mxu1 }
 0x21c   : > { %13846 = vst [vmem:[#allocation174_spill] sm:$0xff] %v10610_v38  ;;  %8422 = vmatmul.msk.f32.gmra.mxu3 %vm464_vm1, %v10094_v56 }
 0x21d   : > { %8390 = vmatmul.msk.f32.gmra.mxu2 %vm464_vm1, %v8258_v60  ;;  %8001 = vmatmul.msk.f32.gmra.mxu0 %vm464_vm1, %v7869_v4  ;;  %v8260_v4 = vld [vmem:[%s9637_s16 + $0x238] sm:$0xff] }
 0x21e   : > { %8130 = vmatmul.msk.f32.gmra.mxu1 %vm464_vm1, %v8254_v15 }
 0x21f   : > { %v10618_v46 = vpop.f32.mrf.mxu3 }
 0x220   : > { %v10620_v62 = vpop.f32.mrf.mxu2 }
 0x221   : > { %13847 = vst [vmem:[#allocation175_spill] sm:$0xff] %v10620_v62  ;;  %v7871_v62 = vld [vmem:[%s9637_s16 + $0x678] sm:$0xff] }
 0x222   : > { %v10623_v50 = vpop.f32.mrf.mxu0 }
 0x223   : > { %13848 = vst [vmem:[#allocation176_spill] sm:$0xff] %v10623_v50  ;;  %v10625_v38 = vpop.f32.mrf.mxu1 }
 0x224   : > { %13849 = vst [vmem:[#allocation177_spill] sm:$0xff] %v10625_v38  ;;  %8423 = vmatmul.msk.f32.gmra.mxu3 %vm464_vm1, %v10112_v53 }
 0x225   : > { %8391 = vmatmul.msk.f32.gmra.mxu2 %vm464_vm1, %v8259_v49  ;;  %8002 = vmatmul.msk.f32.gmra.mxu0 %vm464_vm1, %v7870_v32  ;;  %v8261_v32 = vld [vmem:[%s9637_s16 + $0x240] sm:$0xff] }
 0x226   : > { %8131 = vmatmul.msk.f32.gmra.mxu1 %vm464_vm1, %v8255_v7 }
 0x227   : > { %v10633_v56 = vpop.f32.mrf.mxu3 }
 0x228   : > { %v10635_v15 = vpop.f32.mrf.mxu2 }
 0x229   : > { %13850 = vst [vmem:[#allocation178_spill] sm:$0xff] %v10635_v15  ;;  %v7872_v15 = vld [vmem:[%s9637_s16 + $0x680] sm:$0xff] }
 0x22a   : > { %v10638_v50 = vpop.f32.mrf.mxu0 }
 0x22b   : > { %13851 = vst [vmem:[#allocation179_spill] sm:$0xff] %v10638_v50  ;;  %v10640_v38 = vpop.f32.mrf.mxu1 }
 0x22c   : > { %13852 = vst [vmem:[#allocation180_spill] sm:$0xff] %v10640_v38  ;;  %8424 = vmatmul.msk.f32.gmra.mxu3 %vm464_vm1, %v10130_v39 }
 0x22d   : > { %8392 = vmatmul.msk.f32.gmra.mxu2 %vm464_vm1, %v8260_v4  ;;  %8003 = vmatmul.msk.f32.gmra.mxu0 %vm464_vm1, %v7871_v62  ;;  %v8262_v62 = vld [vmem:[%s9637_s16 + $0x248] sm:$0xff] }
 0x22e   : > { %8132 = vmatmul.msk.f32.gmra.mxu1 %vm464_vm1, %v8256_v22 }
 0x22f   : > { %v10648_v7 = vpop.f32.mrf.mxu3 }
 0x230   : > { %v10650_v53 = vpop.f32.mrf.mxu2 }
 0x231   : > { %13853 = vst [vmem:[#allocation181_spill] sm:$0xff] %v10650_v53  ;;  %v7873_v53 = vld [vmem:[%s9637_s16 + $0x688] sm:$0xff] }
 0x232   : > { %v10653_v50 = vpop.f32.mrf.mxu0 }
 0x233   : > { %13854 = vst [vmem:[#allocation182_spill] sm:$0xff] %v10653_v50  ;;  %v10655_v38 = vpop.f32.mrf.mxu1 }
 0x234   : > { %13855 = vst [vmem:[#allocation183_spill] sm:$0xff] %v10655_v38  ;;  %8425 = vmatmul.msk.f32.gmra.mxu3 %vm464_vm1, %v10148_v57 }
 0x235   : > { %8393 = vmatmul.msk.f32.gmra.mxu2 %vm464_vm1, %v8261_v32  ;;  %8004 = vmatmul.msk.f32.gmra.mxu0 %vm464_vm1, %v7872_v15  ;;  %v8263_v15 = vld [vmem:[%s9637_s16 + $0x250] sm:$0xff] }
 0x236   : > { %8133 = vmatmul.msk.f32.gmra.mxu1 %vm464_vm1, %v8257_v58 }
 0x237   : > { %v10663_v39 = vpop.f32.mrf.mxu3 }
 0x238   : > { %v10665_v22 = vpop.f32.mrf.mxu2 }
 0x239   : > { %13856 = vst [vmem:[#allocation184_spill] sm:$0xff] %v10665_v22  ;;  %v7874_v22 = vld [vmem:[%s9637_s16 + $0x690] sm:$0xff] }
 0x23a   : > { %v10668_v50 = vpop.f32.mrf.mxu0 }
 0x23b   : > { %13857 = vst [vmem:[#allocation185_spill] sm:$0xff] %v10668_v50  ;;  %v10670_v38 = vpop.f32.mrf.mxu1 }
 0x23c   : > { %13858 = vst [vmem:[#allocation186_spill] sm:$0xff] %v10670_v38  ;;  %8426 = vmatmul.msk.f32.gmra.mxu3 %vm464_vm1, %v10166_v14 }
 0x23d   : > { %8394 = vmatmul.msk.f32.gmra.mxu2 %vm464_vm1, %v8262_v62  ;;  %8005 = vmatmul.msk.f32.gmra.mxu0 %vm464_vm1, %v7873_v53  ;;  %v8582_v53 = vld [vmem:[%s13671_s1 + $0x50] sm:$0xff] }
 0x23e   : > { %8134 = vmatmul.msk.f32.gmra.mxu1 %vm464_vm1, %v8258_v60  ;;  %3628 = vmatpush.msrb.mxu3 %v8582_v53  ;;  %v8265_v53 = vld [vmem:[%s9637_s16 + $0x260] sm:$0xff] }
 0x23f   : > { %v10678_v57 = vpop.f32.mrf.mxu3 }
 0x240   : > { %v10680_v58 = vpop.f32.mrf.mxu2 }
 0x241   : > { %13859 = vst [vmem:[#allocation187_spill] sm:$0xff] %v10680_v58  ;;  %v7875_v58 = vld [vmem:[%s9637_s16 + $0x698] sm:$0xff] }
 0x242   : > { %v10683_v50 = vpop.f32.mrf.mxu0 }
 0x243   : > { %13860 = vst [vmem:[#allocation188_spill] sm:$0xff] %v10683_v50  ;;  %v10685_v38 = vpop.f32.mrf.mxu1 }
 0x244   : > { %13861 = vst [vmem:[#allocation189_spill] sm:$0xff] %v10685_v38  ;;  %8427 = vmatmul.msk.f32.gmra.mxu3 %vm464_vm1, %v10184_v43  ;;  %v8264_v38 = vld [vmem:[%s9637_s16 + $0x258] sm:$0xff] }
 0x245   : > { %8395 = vmatmul.msk.f32.gmra.mxu2 %vm464_vm1, %v8263_v15  ;;  %8006 = vmatmul.msk.f32.gmra.mxu0 %vm464_vm1, %v7874_v22 }
 0x246   : > { %8135 = vmatmul.msk.f32.gmra.mxu1 %vm464_vm1, %v8259_v49 }
 0x247   : > { %v10693_v14 = vpop.f32.mrf.mxu3 }
 0x248   : > { %v10695_v60 = vpop.f32.mrf.mxu2 }
 0x249   : > { %13862 = vst [vmem:[#allocation190_spill] sm:$0xff] %v10695_v60  ;;  %v7876_v60 = vld [vmem:[%s9637_s16 + $0x6a0] sm:$0xff] }
 0x24a   : > { %v10701_v50 = vpop.f32.mrf.mxu0 }
 0x24b   : > { %13863 = vst [vmem:[#allocation191_spill] sm:$0xff] %v10701_v50  ;;  %v10703_v43 = vpop.f32.mrf.mxu1 }
 0x24c   : > { %13864 = vst [vmem:[#allocation192_spill] sm:$0xff] %v10703_v43  ;;  %8428 = vmatmul.msk.f32.gmra.mxu3 %vm464_vm1, %v10202_v36 }
 0x24d   : > { %8396 = vmatmul.msk.f32.gmra.mxu2 %vm464_vm1, %v8264_v38  ;;  %8007 = vmatmul.msk.f32.gmra.mxu0 %vm464_vm1, %v7875_v58  ;;  %v8266_v58 = vld [vmem:[%s9637_s16 + $0x268] sm:$0xff] }
 0x24e   : > { %8136 = vmatmul.msk.f32.gmra.mxu1 %vm464_vm1, %v8260_v4 }
 0x24f   : > { %v10711_v49 = vpop.f32.mrf.mxu3 }
 0x250   : > { %v10713_v22 = vpop.f32.mrf.mxu2 }
 0x251   : > { %13865 = vst [vmem:[#allocation193_spill] sm:$0xff] %v10713_v22  ;;  %v7877_v22 = vld [vmem:[%s9637_s16 + $0x6a8] sm:$0xff] }
 0x252   : > { %v10716_v50 = vpop.f32.mrf.mxu0 }
 0x253   : > { %13866 = vst [vmem:[#allocation194_spill] sm:$0xff] %v10716_v50  ;;  %v10718_v43 = vpop.f32.mrf.mxu1 }
 0x254   : > { %13867 = vst [vmem:[#allocation195_spill] sm:$0xff] %v10718_v43  ;;  %8429 = vmatmul.msk.f32.gmra.mxu3 %vm464_vm1, %v10220_v35 }
 0x255   : > { %8397 = vmatmul.msk.f32.gmra.mxu2 %vm464_vm1, %v8265_v53  ;;  %8008 = vmatmul.msk.f32.gmra.mxu0 %vm464_vm1, %v7876_v60  ;;  %v8267_v60 = vld [vmem:[%s9637_s16 + $0x270] sm:$0xff] }
 0x256   : > { %8137 = vmatmul.msk.f32.gmra.mxu1 %vm464_vm1, %v8261_v32 }
 0x257   : > { %v10726_v36 = vpop.f32.mrf.mxu3 }
 0x258   : > { %v10728_v4 = vpop.f32.mrf.mxu2 }
 0x259   : > { %13868 = vst [vmem:[#allocation196_spill] sm:$0xff] %v10728_v4  ;;  %v7878_v4 = vld [vmem:[%s9637_s16 + $0x6b0] sm:$0xff] }
 0x25a   : > { %v10731_v50 = vpop.f32.mrf.mxu0 }
 0x25b   : > { %13869 = vst [vmem:[#allocation197_spill] sm:$0xff] %v10731_v50  ;;  %v10733_v43 = vpop.f32.mrf.mxu1 }
 0x25c   : > { %13870 = vst [vmem:[#allocation198_spill] sm:$0xff] %v10733_v43  ;;  %8430 = vmatmul.msk.f32.gmra.mxu3 %vm464_vm1, %v10238_v28 }
 0x25d   : > { %8398 = vmatmul.msk.f32.gmra.mxu2 %vm464_vm1, %v8266_v58  ;;  %8009 = vmatmul.msk.f32.gmra.mxu0 %vm464_vm1, %v7877_v22  ;;  %v8268_v22 = vld [vmem:[%s9637_s16 + $0x278] sm:$0xff] }
 0x25e   : > { %8138 = vmatmul.msk.f32.gmra.mxu1 %vm464_vm1, %v8262_v62 }
 0x25f   : > { %v10741_v35 = vpop.f32.mrf.mxu3 }
 0x260   : > { %v10743_v32 = vpop.f32.mrf.mxu2 }
 0x261   : > { %13871 = vst [vmem:[#allocation199_spill] sm:$0xff] %v10743_v32  ;;  %v7879_v32 = vld [vmem:[%s9637_s16 + $0x6b8] sm:$0xff] }
 0x262   : > { %v10746_v50 = vpop.f32.mrf.mxu0 }
 0x263   : > { %13872 = vst [vmem:[#allocation200_spill] sm:$0xff] %v10746_v50  ;;  %v10748_v43 = vpop.f32.mrf.mxu1 }
 0x264   : > { %13873 = vst [vmem:[#allocation201_spill] sm:$0xff] %v10748_v43  ;;  %8431 = vmatmul.msk.f32.gmra.mxu3 %vm464_vm1, %v10256_v21 }
 0x265   : > { %8399 = vmatmul.msk.f32.gmra.mxu2 %vm464_vm1, %v8267_v60  ;;  %8010 = vmatmul.msk.f32.gmra.mxu0 %vm464_vm1, %v7878_v4  ;;  %v8269_v4 = vld [vmem:[%s9637_s16 + $0x280] sm:$0xff] }
 0x266   : > { %8139 = vmatmul.msk.f32.gmra.mxu1 %vm464_vm1, %v8263_v15 }
 0x267   : > { %v10756_v28 = vpop.f32.mrf.mxu3 }
 0x268   : > { %v10758_v62 = vpop.f32.mrf.mxu2 }
 0x269   : > { %13874 = vst [vmem:[#allocation202_spill] sm:$0xff] %v10758_v62  ;;  %v7880_v62 = vld [vmem:[%s9637_s16 + $0x6c0] sm:$0xff] }
 0x26a   : > { %v10761_v50 = vpop.f32.mrf.mxu0 }
 0x26b   : > { %13875 = vst [vmem:[#allocation203_spill] sm:$0xff] %v10761_v50  ;;  %v10763_v43 = vpop.f32.mrf.mxu1 }
 0x26c   : > { %13876 = vst [vmem:[#allocation204_spill] sm:$0xff] %v10763_v43  ;;  %8432 = vmatmul.msk.f32.gmra.mxu3 %vm464_vm1, %v10274_v11 }
 0x26d   : > { %8400 = vmatmul.msk.f32.gmra.mxu2 %vm464_vm1, %v8268_v22  ;;  %8011 = vmatmul.msk.f32.gmra.mxu0 %vm464_vm1, %v7879_v32  ;;  %v8270_v32 = vld [vmem:[%s9637_s16 + $0x288] sm:$0xff] }
 0x26e   : > { %8140 = vmatmul.msk.f32.gmra.mxu1 %vm464_vm1, %v8264_v38 }
 0x26f   : > { %v10771_v21 = vpop.f32.mrf.mxu3 }
 0x270   : > { %v10773_v15 = vpop.f32.mrf.mxu2 }
 0x271   : > { %13877 = vst [vmem:[#allocation205_spill] sm:$0xff] %v10773_v15  ;;  %v7881_v15 = vld [vmem:[%s9637_s16 + $0x6c8] sm:$0xff] }
 0x272   : > { %v10776_v50 = vpop.f32.mrf.mxu0 }
 0x273   : > { %13878 = vst [vmem:[#allocation206_spill] sm:$0xff] %v10776_v50  ;;  %v10778_v43 = vpop.f32.mrf.mxu1 }
 0x274   : > { %13879 = vst [vmem:[#allocation207_spill] sm:$0xff] %v10778_v43  ;;  %8433 = vmatmul.msk.f32.gmra.mxu3 %vm464_vm1, %v10292_v1 }
 0x275   : > { %8401 = vmatmul.msk.f32.gmra.mxu2 %vm464_vm1, %v8269_v4  ;;  %8012 = vmatmul.msk.f32.gmra.mxu0 %vm464_vm1, %v7880_v62  ;;  %v8271_v62 = vld [vmem:[%s9637_s16 + $0x290] sm:$0xff] }
 0x276   : > { %8141 = vmatmul.msk.f32.gmra.mxu1 %vm464_vm1, %v8265_v53 }
 0x277   : > { %v10786_v11 = vpop.f32.mrf.mxu3 }
 0x278   : > { %v10788_v38 = vpop.f32.mrf.mxu2 }
 0x279   : > { %13880 = vst [vmem:[#allocation208_spill] sm:$0xff] %v10788_v38  ;;  %v7882_v38 = vld [vmem:[%s9637_s16 + $0x6d0] sm:$0xff] }
 0x27a   : > { %v10791_v50 = vpop.f32.mrf.mxu0 }
 0x27b   : > { %13881 = vst [vmem:[#allocation209_spill] sm:$0xff] %v10791_v50  ;;  %v10793_v43 = vpop.f32.mrf.mxu1 }
 0x27c   : > { %13882 = vst [vmem:[#allocation210_spill] sm:$0xff] %v10793_v43  ;;  %8434 = vmatmul.msk.f32.gmra.mxu3 %vm464_vm1, %v10310_v59 }
 0x27d   : > { %8402 = vmatmul.msk.f32.gmra.mxu2 %vm464_vm1, %v8270_v32  ;;  %8013 = vmatmul.msk.f32.gmra.mxu0 %vm464_vm1, %v7881_v15  ;;  %v8272_v15 = vld [vmem:[%s9637_s16 + $0x298] sm:$0xff] }
 0x27e   : > { %8142 = vmatmul.msk.f32.gmra.mxu1 %vm464_vm1, %v8266_v58 }
 0x27f   : > { %v10801_v1 = vpop.f32.mrf.mxu3 }
 0x280   : > { %v10803_v53 = vpop.f32.mrf.mxu2 }
 0x281   : > { %13883 = vst [vmem:[#allocation211_spill] sm:$0xff] %v10803_v53  ;;  %v7883_v53 = vld [vmem:[%s9637_s16 + $0x6d8] sm:$0xff] }
 0x282   : > { %v10806_v50 = vpop.f32.mrf.mxu0 }
 0x283   : > { %13884 = vst [vmem:[#allocation212_spill] sm:$0xff] %v10806_v50  ;;  %v10808_v43 = vpop.f32.mrf.mxu1 }
 0x284   : > { %13885 = vst [vmem:[#allocation213_spill] sm:$0xff] %v10808_v43  ;;  %8435 = vmatmul.msk.f32.gmra.mxu3 %vm464_vm1, %v10328_v55 }
 0x285   : > { %8403 = vmatmul.msk.f32.gmra.mxu2 %vm464_vm1, %v8271_v62  ;;  %8014 = vmatmul.msk.f32.gmra.mxu0 %vm464_vm1, %v7882_v38  ;;  %v8273_v38 = vld [vmem:[%s9637_s16 + $0x2a0] sm:$0xff] }
 0x286   : > { %8143 = vmatmul.msk.f32.gmra.mxu1 %vm464_vm1, %v8267_v60 }
 0x287   : > { %v10816_v59 = vpop.f32.mrf.mxu3 }
 0x288   : > { %v10818_v58 = vpop.f32.mrf.mxu2 }
 0x289   : > { %13886 = vst [vmem:[#allocation214_spill] sm:$0xff] %v10818_v58  ;;  %v7884_v58 = vld [vmem:[%s9637_s16 + $0x6e0] sm:$0xff] }
 0x28a   : > { %v10821_v50 = vpop.f32.mrf.mxu0 }
 0x28b   : > { %13887 = vst [vmem:[#allocation215_spill] sm:$0xff] %v10821_v50  ;;  %v10823_v43 = vpop.f32.mrf.mxu1 }
 0x28c   : > { %13888 = vst [vmem:[#allocation216_spill] sm:$0xff] %v10823_v43  ;;  %8436 = vmatmul.msk.f32.gmra.mxu3 %vm464_vm1, %v10346_v51  ;;  %v1947_v51 = vadd.f32 %v10305_v24, %v9777_v5  ;;  %v1950_v5 = vadd.f32 %v10323_v20, %v9792_v12  ;;  %v1953_v12 = vadd.f32 %v10341_v16, %v9807_v19 }
 0x28d   : > { %8404 = vmatmul.msk.f32.gmra.mxu2 %vm464_vm1, %v8272_v15  ;;  %8015 = vmatmul.msk.f32.gmra.mxu0 %vm464_vm1, %v7883_v53  ;;  %v1956_v19 = vadd.f32 %v10359_v10, %v9822_v26  ;;  %v1959_v26 = vadd.f32 %v10377_v6, %v9837_v33  ;;  %v1962_v33 = vadd.f32 %v10395_v2, %v9852_v40 }
 0x28e   : > { %8144 = vmatmul.msk.f32.gmra.mxu1 %vm464_vm1, %v8268_v22  ;;  %v1965_v40 = vadd.f32 %v10413_v23, %v9867_v47  ;;  %v1968_v47 = vadd.f32 %v10431_v17, %v9882_v54  ;;  %v1971_v54 = vadd.f32 %v10449_v13, %v9897_v61  ;;  %v1974_v61 = vadd.f32 %v10467_v9, %v9912_v8 }
 0x28f   : > { %v10831_v55 = vpop.f32.mrf.mxu3  ;;  %v1977_v8 = vadd.f32 %v10485_v3, %v9927_v25  ;;  %v13905_v25 = vld [vmem:[#allocation153_spill] sm:$0xff] }
 0x290   : > { %13889 = vst [vmem:[#allocation217_spill] sm:$0xff] %v10831_v55  ;;  %v10833_v60 = vpop.f32.mrf.mxu2  ;;  %v7885_v55 = vld [vmem:[%s9637_s16 + $0x6e8] sm:$0xff]  ;;  %v1980_v3 = vadd.f32 %v13905_v25, %v9942_v42  ;;  %v13909_v42 = vld [vmem:[#allocation40_spill] sm:$0xff] }
 0x291   : > { %13890 = vst [vmem:[#allocation218_spill] sm:$0xff] %v10833_v60 }
 0x292   : > { %v10836_v50 = vpop.f32.mrf.mxu0 }
 0x293   : > { %13891 = vst [vmem:[#allocation219_spill] sm:$0xff] %v10836_v50  ;;  %v10838_v43 = vpop.f32.mrf.mxu1 }
 0x294   : > { %13892 = vst [vmem:[#allocation220_spill] sm:$0xff] %v10838_v43  ;;  %8437 = vmatmul.msk.f32.gmra.mxu3 %vm464_vm1, %v10364_v45  ;;  %v8274_v43 = vld [vmem:[%s9637_s16 + $0x2a8] sm:$0xff] }
 0x295   : > { %8405 = vmatmul.msk.f32.gmra.mxu2 %vm464_vm1, %v8273_v38  ;;  %8016 = vmatmul.msk.f32.gmra.mxu0 %vm464_vm1, %v7884_v58 }
 0x296   : > { %8145 = vmatmul.msk.f32.gmra.mxu1 %vm464_vm1, %v8269_v4 }
 0x297   : > { %v2869_v22 = vpop.f32.mrf.mxu3 }
 0x298   : > { %v10848_v53 = vpop.f32.mrf.mxu2  ;;  %v10850_v50 = vadd.f32 %v2869_v22, %v1947_v51  ;;  %v8581_v51 = vld [vmem:[%s13671_s1 + $0x48] sm:$0xff] }
 0x299   : > { %3629 = vmatpush.msrb.mxu3 %v8581_v51  ;;  %v8276_v51 = vld [vmem:[%s9637_s16 + $0x2b8] sm:$0xff] }
 0x29a   : > { %13893 = vst [vmem:[#allocation221_spill] sm:$0xff] %v10850_v50  ;;  %v10853_v60 = vpop.f32.mrf.mxu0  ;;  %v7887_v50 = vld [vmem:[%s9637_s16 + $0x6f8] sm:$0xff] }
 0x29b   : > { %v10855_v45 = vpop.f32.mrf.mxu1 }
 0x29c   : > { %8438 = vmatmul.msk.f32.gmra.mxu3 %vm464_vm1, %v10382_v41  ;;  %v8275_v41 = vld [vmem:[%s9637_s16 + $0x2b0] sm:$0xff] }
 0x29d   : > { %8406 = vmatmul.msk.f32.gmra.mxu2 %vm464_vm1, %v8274_v43  ;;  %8017 = vmatmul.msk.f32.gmra.mxu0 %vm464_vm1, %v7885_v55 }
 0x29e   : > { %8146 = vmatmul.msk.f32.gmra.mxu1 %vm464_vm1, %v8270_v32  ;;  %v7886_v32 = vld [vmem:[%s9637_s16 + $0x6f0] sm:$0xff] }
 0x29f   : > { %v2872_v24 = vpop.f32.mrf.mxu3 }
 0x2a0   : > { %v10865_v4 = vpop.f32.mrf.mxu2  ;;  %v10867_v58 = vadd.f32 %v2872_v24, %v1950_v5 }
 0x2a2   : > { %13894 = vst [vmem:[#allocation222_spill] sm:$0xff] %v10867_v58  ;;  %v10873_v22 = vpop.f32.mrf.mxu0 }
 0x2a3   : > { %v10875_v55 = vpop.f32.mrf.mxu1 }
 0x2a4   : > { %8439 = vmatmul.msk.f32.gmra.mxu3 %vm464_vm1, %v10400_v37 }
 0x2a5   : > { %8407 = vmatmul.msk.f32.gmra.mxu2 %vm464_vm1, %v8275_v41  ;;  %8018 = vmatmul.msk.f32.gmra.mxu0 %vm464_vm1, %v7886_v32 }
 0x2a6   : > { %8147 = vmatmul.msk.f32.gmra.mxu1 %vm464_vm1, %v8271_v62 }
 0x2a7   : > { %v2875_v20 = vpop.f32.mrf.mxu3 }
 0x2a8   : > { %v10885_v5 = vpop.f32.mrf.mxu2  ;;  %v10887_v24 = vadd.f32 %v2875_v20, %v1953_v12  ;;  %v8277_v12 = vld [vmem:[%s9637_s16 + $0x2c0] sm:$0xff] }
 0x2aa   : > { %13895 = vst [vmem:[#allocation223_spill] sm:$0xff] %v10887_v24  ;;  %v10890_v58 = vpop.f32.mrf.mxu0  ;;  %v7888_v24 = vld [vmem:[%s9637_s16 + $0x700] sm:$0xff] }
 0x2ab   : > { %v10892_v37 = vpop.f32.mrf.mxu1 }
 0x2ac   : > { %8440 = vmatmul.msk.f32.gmra.mxu3 %vm464_vm1, %v10418_v31 }
 0x2ad   : > { %8408 = vmatmul.msk.f32.gmra.mxu2 %vm464_vm1, %v8276_v51  ;;  %8019 = vmatmul.msk.f32.gmra.mxu0 %vm464_vm1, %v7887_v50 }
 0x2ae   : > { %8148 = vmatmul.msk.f32.gmra.mxu1 %vm464_vm1, %v8272_v15 }
 0x2af   : > { %v2878_v16 = vpop.f32.mrf.mxu3 }
 0x2b0   : > { %v10902_v62 = vpop.f32.mrf.mxu2  ;;  %v10904_v32 = vadd.f32 %v2878_v16, %v1956_v19  ;;  %v8278_v19 = vld [vmem:[%s9637_s16 + $0x2c8] sm:$0xff] }
 0x2b2   : > { %13896 = vst [vmem:[#allocation224_spill] sm:$0xff] %v10904_v32  ;;  %v10907_v20 = vpop.f32.mrf.mxu0  ;;  %v7889_v32 = vld [vmem:[%s9637_s16 + $0x708] sm:$0xff] }
 0x2b3   : > { %v10909_v31 = vpop.f32.mrf.mxu1 }
 0x2b4   : > { %8441 = vmatmul.msk.f32.gmra.mxu3 %vm464_vm1, %v10436_v27 }
 0x2b5   : > { %8409 = vmatmul.msk.f32.gmra.mxu2 %vm464_vm1, %v8277_v12  ;;  %8020 = vmatmul.msk.f32.gmra.mxu0 %vm464_vm1, %v7888_v24 }
 0x2b6   : > { %8149 = vmatmul.msk.f32.gmra.mxu1 %vm464_vm1, %v8273_v38 }
 0x2b7   : > { %v2881_v50 = vpop.f32.mrf.mxu3 }
 0x2b8   : > { %v10919_v10 = vpop.f32.mrf.mxu2  ;;  %v10921_v15 = vadd.f32 %v2881_v50, %v1959_v26  ;;  %v8279_v26 = vld [vmem:[%s9637_s16 + $0x2d0] sm:$0xff] }
 0x2ba   : > { %13897 = vst [vmem:[#allocation225_spill] sm:$0xff] %v10921_v15  ;;  %v10924_v16 = vpop.f32.mrf.mxu0  ;;  %v7890_v15 = vld [vmem:[%s9637_s16 + $0x710] sm:$0xff] }
 0x2bb   : > { %v10926_v27 = vpop.f32.mrf.mxu1 }
 0x2bc   : > { %8442 = vmatmul.msk.f32.gmra.mxu3 %vm464_vm1, %v10454_v34 }
 0x2bd   : > { %8410 = vmatmul.msk.f32.gmra.mxu2 %vm464_vm1, %v8278_v19  ;;  %8021 = vmatmul.msk.f32.gmra.mxu0 %vm464_vm1, %v7889_v32 }
 0x2be   : > { %8150 = vmatmul.msk.f32.gmra.mxu1 %vm464_vm1, %v8274_v43 }
 0x2bf   : > { %v2884_v6 = vpop.f32.mrf.mxu3 }
 0x2c0   : > { %v10936_v38 = vpop.f32.mrf.mxu2  ;;  %v10938_v24 = vadd.f32 %v2884_v6, %v1962_v33  ;;  %v8280_v33 = vld [vmem:[%s9637_s16 + $0x2d8] sm:$0xff] }
 0x2c2   : > { %13898 = vst [vmem:[#allocation226_spill] sm:$0xff] %v10938_v24  ;;  %v10941_v50 = vpop.f32.mrf.mxu0  ;;  %v7891_v24 = vld [vmem:[%s9637_s16 + $0x718] sm:$0xff] }
 0x2c3   : > { %v10943_v34 = vpop.f32.mrf.mxu1 }
 0x2c4   : > { %8443 = vmatmul.msk.f32.gmra.mxu3 %vm464_vm1, %v10472_v44 }
 0x2c5   : > { %8411 = vmatmul.msk.f32.gmra.mxu2 %vm464_vm1, %v8279_v26  ;;  %8022 = vmatmul.msk.f32.gmra.mxu0 %vm464_vm1, %v7890_v15 }
 0x2c6   : > { %8151 = vmatmul.msk.f32.gmra.mxu1 %vm464_vm1, %v8275_v41 }
 0x2c7   : > { %v2887_v2 = vpop.f32.mrf.mxu3 }
 0x2c8   : > { %v10953_v43 = vpop.f32.mrf.mxu2  ;;  %v10955_v32 = vadd.f32 %v2887_v2, %v1965_v40  ;;  %v8281_v40 = vld [vmem:[%s9637_s16 + $0x2e0] sm:$0xff] }
 0x2ca   : > { %13899 = vst [vmem:[#allocation227_spill] sm:$0xff] %v10955_v32  ;;  %v10958_v6 = vpop.f32.mrf.mxu0  ;;  %v7892_v32 = vld [vmem:[%s9637_s16 + $0x720] sm:$0xff] }
 0x2cb   : > { %v10960_v44 = vpop.f32.mrf.mxu1 }
 0x2cc   : > { %8444 = vmatmul.msk.f32.gmra.mxu3 %vm464_vm1, %v10490_v52 }
 0x2cd   : > { %8412 = vmatmul.msk.f32.gmra.mxu2 %vm464_vm1, %v8280_v33  ;;  %8023 = vmatmul.msk.f32.gmra.mxu0 %vm464_vm1, %v7891_v24 }
 0x2ce   : > { %8152 = vmatmul.msk.f32.gmra.mxu1 %vm464_vm1, %v8276_v51 }
 0x2cf   : > { %v2890_v23 = vpop.f32.mrf.mxu3 }
 0x2d0   : > { %v10970_v41 = vpop.f32.mrf.mxu2  ;;  %v10972_v15 = vadd.f32 %v2890_v23, %v1968_v47  ;;  %v8282_v47 = vld [vmem:[%s9637_s16 + $0x2e8] sm:$0xff] }
 0x2d2   : > { %13900 = vst [vmem:[#allocation228_spill] sm:$0xff] %v10972_v15  ;;  %v10975_v2 = vpop.f32.mrf.mxu0  ;;  %v7893_v15 = vld [vmem:[%s9637_s16 + $0x728] sm:$0xff] }
 0x2d3   : > { %v10977_v52 = vpop.f32.mrf.mxu1 }
 0x2d4   : > { %8445 = vmatmul.msk.f32.gmra.mxu3 %vm464_vm1, %v10508_v18 }
 0x2d5   : > { %8413 = vmatmul.msk.f32.gmra.mxu2 %vm464_vm1, %v8281_v40  ;;  %8024 = vmatmul.msk.f32.gmra.mxu0 %vm464_vm1, %v7892_v32 }
 0x2d6   : > { %8153 = vmatmul.msk.f32.gmra.mxu1 %vm464_vm1, %v8277_v12 }
 0x2d7   : > { %v2893_v17 = vpop.f32.mrf.mxu3 }
 0x2d8   : > { %v10987_v51 = vpop.f32.mrf.mxu2  ;;  %v10989_v24 = vadd.f32 %v2893_v17, %v1971_v54  ;;  %v8283_v54 = vld [vmem:[%s9637_s16 + $0x2f0] sm:$0xff] }
 0x2da   : > { %13901 = vst [vmem:[#allocation229_spill] sm:$0xff] %v10989_v24  ;;  %v10992_v23 = vpop.f32.mrf.mxu0  ;;  %v7894_v24 = vld [vmem:[%s9637_s16 + $0x730] sm:$0xff] }
 0x2db   : > { %v10994_v18 = vpop.f32.mrf.mxu1 }
 0x2dc   : > { %8446 = vmatmul.msk.f32.gmra.mxu3 %vm464_vm1, %v10533_v30 }
 0x2dd   : > { %8414 = vmatmul.msk.f32.gmra.mxu2 %vm464_vm1, %v8282_v47  ;;  %8025 = vmatmul.msk.f32.gmra.mxu0 %vm464_vm1, %v7893_v15 }
 0x2de   : > { %8154 = vmatmul.msk.f32.gmra.mxu1 %vm464_vm1, %v8278_v19 }
 0x2df   : > { %v2896_v13 = vpop.f32.mrf.mxu3 }
 0x2e0   : > { %v11004_v12 = vpop.f32.mrf.mxu2  ;;  %v11006_v32 = vadd.f32 %v2896_v13, %v1974_v61  ;;  %v8284_v61 = vld [vmem:[%s9637_s16 + $0x2f8] sm:$0xff] }
 0x2e2   : > { %13902 = vst [vmem:[#allocation230_spill] sm:$0xff] %v11006_v32  ;;  %v11009_v17 = vpop.f32.mrf.mxu0  ;;  %v7895_v32 = vld [vmem:[%s9637_s16 + $0x738] sm:$0xff] }
 0x2e3   : > { %v11011_v30 = vpop.f32.mrf.mxu1 }
 0x2e4   : > { %8447 = vmatmul.msk.f32.gmra.mxu3 %vm464_vm1, %v10557_v0 }
 0x2e5   : > { %8415 = vmatmul.msk.f32.gmra.mxu2 %vm464_vm1, %v8283_v54  ;;  %8026 = vmatmul.msk.f32.gmra.mxu0 %vm464_vm1, %v7894_v24 }
 0x2e6   : > { %8155 = vmatmul.msk.f32.gmra.mxu1 %vm464_vm1, %v8279_v26 }
 0x2e7   : > { %v2899_v9 = vpop.f32.mrf.mxu3 }
 0x2e8   : > { %v11021_v19 = vpop.f32.mrf.mxu2  ;;  %v11023_v15 = vadd.f32 %v2899_v9, %v1977_v8  ;;  %v8317_v9 = vld [vmem:[%s9637_s16 + $0x400] sm:$0xff] }
 0x2ea   : > { %13903 = vst [vmem:[#allocation231_spill] sm:$0xff] %v11023_v15  ;;  %v11026_v13 = vpop.f32.mrf.mxu0  ;;  %v8285_v15 = vld [vmem:[%s9637_s16 + $0x300] sm:$0xff] }
 0x2eb   : > { %v11028_v0 = vpop.f32.mrf.mxu1 }
 0x2ec   : > { %13904 = vst [vmem:[#allocation232_spill] sm:$0xff] %v11028_v0  ;;  %8448 = vmatmul.msk.f32.gmra.mxu3 %vm464_vm1, %v10575_v48 }
 0x2ed   : > { %8416 = vmatmul.msk.f32.gmra.mxu2 %vm464_vm1, %v8284_v61  ;;  %8027 = vmatmul.msk.f32.gmra.mxu0 %vm464_vm1, %v7895_v32  ;;  %v7896_v32 = vld [vmem:[%s9637_s16 + $0x740] sm:$0xff] }
 0x2ee   : > { %8156 = vmatmul.msk.f32.gmra.mxu1 %vm464_vm1, %v8280_v33  ;;  %v13910_v33 = vld [vmem:[#allocation157_spill] sm:$0xff] }
 0x2ef   : > { %v2902_v26 = vpop.f32.mrf.mxu3  ;;  %v1983_v25 = vadd.f32 %v13910_v33, %v13909_v42 }
 0x2f0   : > { %v11038_v24 = vpop.f32.mrf.mxu2  ;;  %v11040_v8 = vadd.f32 %v2902_v26, %v1980_v3 }
 0x2f2   : > { %13906 = vst [vmem:[#allocation153_spill] sm:$0xff] %v11040_v8  ;;  %v11044_v48 = vpop.f32.mrf.mxu0 }
 0x2f3   : > { %13907 = vst [vmem:[#allocation233_spill] sm:$0xff] %v11044_v48  ;;  %v11046_v0 = vpop.f32.mrf.mxu1  ;;  %v8286_v48 = vld [vmem:[%s9637_s16 + $0x308] sm:$0xff] }
 0x2f4   : > { %13908 = vst [vmem:[#allocation234_spill] sm:$0xff] %v11046_v0  ;;  %8449 = vmatmul.msk.f32.gmra.mxu3 %vm464_vm1, %v8317_v9  ;;  %v8318_v0 = vld [vmem:[%s9637_s16 + $0x408] sm:$0xff] }
 0x2f5   : > { %8417 = vmatmul.msk.f32.gmra.mxu2 %vm464_vm1, %v8285_v15  ;;  %8028 = vmatmul.msk.f32.gmra.mxu0 %vm464_vm1, %v7896_v32  ;;  %v7897_v32 = vld [vmem:[%s9637_s16 + $0x748] sm:$0xff] }
 0x2f6   : > { %8157 = vmatmul.msk.f32.gmra.mxu1 %vm464_vm1, %v8281_v40  ;;  %v13914_v40 = vld [vmem:[#allocation44_spill] sm:$0xff] }
 0x2f7   : > { %v2905_v3 = vpop.f32.mrf.mxu3  ;;  %v1986_v42 = vadd.f32 %v10552_v29, %v13914_v40  ;;  %v13919_v29 = vld [vmem:[#allocation48_spill] sm:$0xff] }
 0x2f8   : > { %v11055_v26 = vpop.f32.mrf.mxu2  ;;  %v11057_v8 = vadd.f32 %v2905_v3, %v1983_v25 }
 0x2fa   : > { %13911 = vst [vmem:[#allocation40_spill] sm:$0xff] %v11057_v8  ;;  %v11061_v9 = vpop.f32.mrf.mxu0  ;;  %v8319_v8 = vld [vmem:[%s9637_s16 + $0x410] sm:$0xff] }
 0x2fb   : > { %13912 = vst [vmem:[#allocation157_spill] sm:$0xff] %v11061_v9  ;;  %v11063_v15 = vpop.f32.mrf.mxu1  ;;  %v8716_v9 = vld [vmem:[%s9637_s16 + $0x58] sm:$0xff] }
 0x2fc   : > { %13913 = vst [vmem:[#allocation235_spill] sm:$0xff] %v11063_v15  ;;  %8450 = vmatmul.msk.f32.gmra.mxu3 %vm464_vm1, %v8318_v0  ;;  %v8287_v15 = vld [vmem:[%s9637_s16 + $0x310] sm:$0xff] }
 0x2fd   : > { %8418 = vmatmul.msk.f32.gmra.mxu2 %vm464_vm1, %v8286_v48  ;;  %8029 = vmatmul.msk.f32.gmra.mxu0 %vm464_vm1, %v7897_v32  ;;  %v7898_v32 = vld [vmem:[%s9637_s16 + $0x750] sm:$0xff] }
 0x2fe   : > { %8158 = vmatmul.msk.f32.gmra.mxu1 %vm464_vm1, %v8282_v47  ;;  %v13920_v47 = vld [vmem:[#allocation164_spill] sm:$0xff] }
 0x2ff   : > { %v2908_v33 = vpop.f32.mrf.mxu3  ;;  %v1989_v40 = vadd.f32 %v13920_v47, %v13919_v29  ;;  %v13926_v29 = vld [vmem:[#allocation168_spill] sm:$0xff] }
 0x300   : > { %v11072_v25 = vpop.f32.mrf.mxu2  ;;  %v11074_v3 = vadd.f32 %v2908_v33, %v1986_v42 }
 0x301   : > { %13915 = vst [vmem:[#allocation44_spill] sm:$0xff] %v11072_v25  ;;  %v8975_v25 = vld [vmem:[%s9637_s16 + $0x4b0] sm:$0xff] }
 0x302   : > { %13916 = vst [vmem:[#allocation236_spill] sm:$0xff] %v11074_v3  ;;  %v11078_v0 = vpop.f32.mrf.mxu0 }
 0x303   : > { %13917 = vst [vmem:[#allocation237_spill] sm:$0xff] %v11078_v0  ;;  %v11080_v48 = vpop.f32.mrf.mxu1  ;;  %v8288_v0 = vld [vmem:[%s9637_s16 + $0x318] sm:$0xff] }
 0x304   : > { %13918 = vst [vmem:[#allocation238_spill] sm:$0xff] %v11080_v48  ;;  %8451 = vmatmul.msk.f32.gmra.mxu3 %vm464_vm1, %v8319_v8  ;;  %v8320_v48 = vld [vmem:[%s9637_s16 + $0x418] sm:$0xff] }
 0x305   : > { %8419 = vmatmul.msk.f32.gmra.mxu2 %vm464_vm1, %v8287_v15  ;;  %8030 = vmatmul.msk.f32.gmra.mxu0 %vm464_vm1, %v7898_v32  ;;  %v7899_v32 = vld [vmem:[%s9637_s16 + $0x758] sm:$0xff] }
 0x306   : > { %8159 = vmatmul.msk.f32.gmra.mxu1 %vm464_vm1, %v8283_v54  ;;  %v13925_v54 = vld [vmem:[#allocation52_spill] sm:$0xff] }
 0x307   : > { %v2911_v42 = vpop.f32.mrf.mxu3  ;;  %v1992_v47 = vadd.f32 %v13926_v29, %v13925_v54 }
 0x308   : > { %v11089_v33 = vpop.f32.mrf.mxu2  ;;  %v11091_v3 = vadd.f32 %v2911_v42, %v1989_v40 }
 0x309   : > { %13921 = vst [vmem:[#allocation48_spill] sm:$0xff] %v11089_v33 }
 0x30a   : > { %13922 = vst [vmem:[#allocation164_spill] sm:$0xff] %v11091_v3  ;;  %v11095_v8 = vpop.f32.mrf.mxu0 }
 0x30b   : > { %13923 = vst [vmem:[#allocation239_spill] sm:$0xff] %v11095_v8  ;;  %v11097_v15 = vpop.f32.mrf.mxu1  ;;  %v9233_v8 = vld [vmem:[%s9637_s16 + $0x60] sm:$0xff] }
 0x30c   : > { %13924 = vst [vmem:[#allocation240_spill] sm:$0xff] %v11097_v15  ;;  %8452 = vmatmul.msk.f32.gmra.mxu3 %vm464_vm1, %v8320_v48  ;;  %v8453_v15 = vld [vmem:[%s9637_s16 + $0x480] sm:$0xff] }
 0x30d   : > { %8420 = vmatmul.msk.f32.gmra.mxu2 %vm464_vm1, %v8288_v0  ;;  %8031 = vmatmul.msk.f32.gmra.mxu0 %vm464_vm1, %v7899_v32  ;;  %v8713_v48 = vld [vmem:[%s9637_s16 + $0x40] sm:$0xff]  ;;  %v13931_v32 = vld [vmem:[#allocation56_spill] sm:$0xff] }
 0x30e   : > { %8160 = vmatmul.msk.f32.gmra.mxu1 %vm464_vm1, %v8284_v61  ;;  %v8973_v61 = vld [vmem:[%s9637_s16 + $0x4a0] sm:$0xff]  ;;  %v1995_v54 = vadd.f32 %v10603_v63, %v13931_v32  ;;  %v13936_v63 = vld [vmem:[#allocation60_spill] sm:$0xff] }
 0x30f   : > { %v2914_v40 = vpop.f32.mrf.mxu3  ;;  %v1998_v32 = vadd.f32 %v10618_v46, %v13936_v63  ;;  %v13941_v46 = vld [vmem:[#allocation64_spill] sm:$0xff] }
 0x310   : > { %v11106_v42 = vpop.f32.mrf.mxu2  ;;  %v11108_v3 = vadd.f32 %v2914_v40, %v1992_v47  ;;  %v2001_v63 = vadd.f32 %v10633_v56, %v13941_v46  ;;  %v13946_v56 = vld [vmem:[#allocation68_spill] sm:$0xff] }
 0x311   : > { %13927 = vst [vmem:[#allocation52_spill] sm:$0xff] %v11106_v42  ;;  %v8974_v42 = vld [vmem:[%s9637_s16 + $0x4a8] sm:$0xff]  ;;  %v2004_v46 = vadd.f32 %v10648_v7, %v13946_v56  ;;  %v13951_v7 = vld [vmem:[#allocation72_spill] sm:$0xff] }
 0x312   : > { %13928 = vst [vmem:[#allocation168_spill] sm:$0xff] %v11108_v3  ;;  %v11112_v33 = vpop.f32.mrf.mxu0  ;;  %v8454_v3 = vld [vmem:[%s9637_s16 + $0x488] sm:$0xff] }
 0x313   : > { %13929 = vst [vmem:[#allocation241_spill] sm:$0xff] %v11112_v33  ;;  %v11114_v0 = vpop.f32.mrf.mxu1 }
 0x314   : > { %13930 = vst [vmem:[#allocation242_spill] sm:$0xff] %v11114_v0  ;;  %8585 = vmatmul.msk.f32.vlgmr.msrb.gmra.mxu3 %vm464_vm1, %v8453_v15  ;;  %v9234_v0 = vld [vmem:[%s9637_s16 + $0x68] sm:$0xff] }
 0x315   : > { %9365 = vmatmul.msk.f32.vlgmr.msrb.gmra.mxu2 %vm464_vm1, %v9233_v8  ;;  %8845 = vmatmul.msk.f32.vlgmr.msrb.gmra.mxu0 %vm464_vm1, %v8713_v48  ;;  %v8714_v48 = vld [vmem:[%s9637_s16 + $0x48] sm:$0xff] }
 0x316   : > { %9105 = vmatmul.msk.f32.vlgmr.msrb.gmra.mxu1 %vm464_vm1, %v8973_v61 }
 0x317   : > { %v2917_v29 = vpop.f32.mrf.mxu3 }
 0x318   : > { %v11124_v47 = vpop.f32.mrf.mxu2  ;;  %v11126_v40 = vadd.f32 %v2917_v29, %v1995_v54 }
 0x319   : > { %13932 = vst [vmem:[#allocation56_spill] sm:$0xff] %v11124_v47 }
 0x31a   : > { %13933 = vst [vmem:[#allocation243_spill] sm:$0xff] %v11126_v40  ;;  %v11130_v33 = vpop.f32.mrf.mxu0 }
 0x31b   : > { %13934 = vst [vmem:[#allocation244_spill] sm:$0xff] %v11130_v33  ;;  %v11132_v15 = vpop.f32.mrf.mxu1  ;;  %v9235_v33 = vld [vmem:[%s9637_s16 + $0x70] sm:$0xff] }
 0x31c   : > { %13935 = vst [vmem:[#allocation245_spill] sm:$0xff] %v11132_v15  ;;  %8586 = vmatmul.msk.f32.gmra.mxu3 %vm464_vm1, %v8454_v3  ;;  %v8455_v15 = vld [vmem:[%s9637_s16 + $0x490] sm:$0xff] }
 0x31d   : > { %9366 = vmatmul.msk.f32.gmra.mxu2 %vm464_vm1, %v9234_v0  ;;  %8846 = vmatmul.msk.f32.gmra.mxu0 %vm464_vm1, %v8714_v48  ;;  %v8715_v48 = vld [vmem:[%s9637_s16 + $0x50] sm:$0xff] }
 0x31e   : > { %9106 = vmatmul.msk.f32.gmra.mxu1 %vm464_vm1, %v8974_v42 }
 0x31f   : > { %v2920_v54 = vpop.f32.mrf.mxu3 }
 0x320   : > { %v11142_v29 = vpop.f32.mrf.mxu2  ;;  %v11144_v40 = vadd.f32 %v2920_v54, %v1998_v32 }
 0x321   : > { %13937 = vst [vmem:[#allocation60_spill] sm:$0xff] %v11142_v29 }
 0x322   : > { %13938 = vst [vmem:[#allocation246_spill] sm:$0xff] %v11144_v40  ;;  %v11148_v47 = vpop.f32.mrf.mxu0 }
 0x323   : > { %13939 = vst [vmem:[#allocation247_spill] sm:$0xff] %v11148_v47  ;;  %v11150_v3 = vpop.f32.mrf.mxu1  ;;  %v9236_v47 = vld [vmem:[%s9637_s16 + $0x78] sm:$0xff] }
 0x324   : > { %13940 = vst [vmem:[#allocation248_spill] sm:$0xff] %v11150_v3  ;;  %8587 = vmatmul.msk.f32.gmra.mxu3 %vm464_vm1, %v8455_v15  ;;  %v8456_v3 = vld [vmem:[%s9637_s16 + $0x498] sm:$0xff] }
 0x325   : > { %9367 = vmatmul.msk.f32.gmra.mxu2 %vm464_vm1, %v9235_v33  ;;  %8847 = vmatmul.msk.f32.gmra.mxu0 %vm464_vm1, %v8715_v48  ;;  %v8976_v48 = vld [vmem:[%s9637_s16 + $0x4b8] sm:$0xff] }
 0x326   : > { %9107 = vmatmul.msk.f32.gmra.mxu1 %vm464_vm1, %v8975_v25 }
 0x327   : > { %v2923_v32 = vpop.f32.mrf.mxu3 }
 0x328   : > { %v11160_v54 = vpop.f32.mrf.mxu2  ;;  %v11162_v40 = vadd.f32 %v2923_v32, %v2001_v63 }
 0x329   : > { %13942 = vst [vmem:[#allocation64_spill] sm:$0xff] %v11160_v54  ;;  %v8977_v54 = vld [vmem:[%s9637_s16 + $0x4c0] sm:$0xff] }
 0x32a   : > { %13943 = vst [vmem:[#allocation249_spill] sm:$0xff] %v11162_v40  ;;  %v11166_v29 = vpop.f32.mrf.mxu0 }
 0x32b   : > { %13944 = vst [vmem:[#allocation250_spill] sm:$0xff] %v11166_v29  ;;  %v11168_v15 = vpop.f32.mrf.mxu1 }
 0x32c   : > { %13945 = vst [vmem:[#allocation251_spill] sm:$0xff] %v11168_v15  ;;  %8588 = vmatmul.msk.f32.gmra.mxu3 %vm464_vm1, %v8456_v3  ;;  %v9237_v15 = vld [vmem:[%s9637_s16 + $0x80] sm:$0xff] }
 0x32d   : > { %9368 = vmatmul.msk.f32.gmra.mxu2 %vm464_vm1, %v9236_v47  ;;  %8848 = vmatmul.msk.f32.gmra.mxu0 %vm464_vm1, %v8716_v9  ;;  %v2007_v9 = vadd.f32 %v10663_v39, %v13951_v7  ;;  %v13956_v39 = vld [vmem:[#allocation76_spill] sm:$0xff] }
 0x32e   : > { %9108 = vmatmul.msk.f32.gmra.mxu1 %vm464_vm1, %v8976_v48 }
 0x32f   : > { %v2926_v63 = vpop.f32.mrf.mxu3 }
 0x330   : > { %v11178_v32 = vpop.f32.mrf.mxu2  ;;  %v11180_v40 = vadd.f32 %v2926_v63, %v2004_v46 }
 0x331   : > { %13947 = vst [vmem:[#allocation68_spill] sm:$0xff] %v11178_v32  ;;  %v11454_v32 = vld [vmem:[%s9637_s16 + $0x538] sm:$0xff] }
 0x332   : > { %13948 = vst [vmem:[#allocation252_spill] sm:$0xff] %v11180_v40  ;;  %v11183_v29 = vpop.f32.mrf.mxu0  ;;  %v9238_v40 = vld [vmem:[%s9637_s16 + $0x88] sm:$0xff] }
 0x333   : > { %13949 = vst [vmem:[#allocation253_spill] sm:$0xff] %v11183_v29  ;;  %v11185_v3 = vpop.f32.mrf.mxu1  ;;  %v8978_v29 = vld [vmem:[%s9637_s16 + $0x4c8] sm:$0xff] }
 0x334   : > { %13950 = vst [vmem:[#allocation254_spill] sm:$0xff] %v11185_v3  ;;  %8589 = vmatmul.msk.f32.gmra.mxu3 %vm464_vm1, %v8973_v61 }
 0x335   : > { %9369 = vmatmul.msk.f32.gmra.mxu2 %vm464_vm1, %v9237_v15  ;;  %8849 = vmatmul.msk.f32.gmra.mxu0 %vm464_vm1, %v9233_v8  ;;  %v2010_v8 = vadd.f32 %v10678_v57, %v13956_v39  ;;  %v13961_v57 = vld [vmem:[#allocation80_spill] sm:$0xff] }
 0x336   : > { %9109 = vmatmul.msk.f32.gmra.mxu1 %vm464_vm1, %v8977_v54 }
 0x337   : > { %v2929_v56 = vpop.f32.mrf.mxu3 }
 0x338   : > { %v11194_v46 = vpop.f32.mrf.mxu2  ;;  %v11196_v63 = vadd.f32 %v2929_v56, %v2007_v9 }
 0x339   : > { %13952 = vst [vmem:[#allocation72_spill] sm:$0xff] %v11194_v46 }
 0x33a   : > { %13953 = vst [vmem:[#allocation255_spill] sm:$0xff] %v11196_v63  ;;  %v11199_v3 = vpop.f32.mrf.mxu0  ;;  %v9239_v63 = vld [vmem:[%s9637_s16 + $0x90] sm:$0xff] }
 0x33b   : > { %13954 = vst [vmem:[#allocation256_spill] sm:$0xff] %v11199_v3  ;;  %v11201_v61 = vpop.f32.mrf.mxu1  ;;  %v8979_v3 = vld [vmem:[%s9637_s16 + $0x4d0] sm:$0xff] }
 0x33c   : > { %13955 = vst [vmem:[#allocation257_spill] sm:$0xff] %v11201_v61  ;;  %8590 = vmatmul.msk.f32.gmra.mxu3 %vm464_vm1, %v8974_v42 }
 0x33d   : > { %9370 = vmatmul.msk.f32.gmra.mxu2 %vm464_vm1, %v9238_v40  ;;  %8850 = vmatmul.msk.f32.gmra.mxu0 %vm464_vm1, %v9234_v0  ;;  %v2013_v0 = vadd.f32 %v10693_v14, %v13961_v57  ;;  %v13966_v14 = vld [vmem:[#allocation84_spill] sm:$0xff] }
 0x33e   : > { %9110 = vmatmul.msk.f32.gmra.mxu1 %vm464_vm1, %v8978_v29 }
 0x33f   : > { %v2932_v7 = vpop.f32.mrf.mxu3 }
 0x340   : > { %v11210_v9 = vpop.f32.mrf.mxu2  ;;  %v11212_v56 = vadd.f32 %v2932_v7, %v2010_v8 }
 0x341   : > { %13957 = vst [vmem:[#allocation76_spill] sm:$0xff] %v11210_v9 }
 0x342   : > { %13958 = vst [vmem:[#allocation258_spill] sm:$0xff] %v11212_v56  ;;  %v11215_v61 = vpop.f32.mrf.mxu0  ;;  %v9240_v56 = vld [vmem:[%s9637_s16 + $0x98] sm:$0xff] }
 0x343   : > { %13959 = vst [vmem:[#allocation259_spill] sm:$0xff] %v11215_v61  ;;  %v11217_v42 = vpop.f32.mrf.mxu1  ;;  %v8980_v61 = vld [vmem:[%s9637_s16 + $0x4d8] sm:$0xff] }
 0x344   : > { %13960 = vst [vmem:[#allocation260_spill] sm:$0xff] %v11217_v42  ;;  %8591 = vmatmul.msk.f32.gmra.mxu3 %vm464_vm1, %v8975_v25 }
 0x345   : > { %9371 = vmatmul.msk.f32.gmra.mxu2 %vm464_vm1, %v9239_v63  ;;  %8851 = vmatmul.msk.f32.gmra.mxu0 %vm464_vm1, %v9235_v33  ;;  %v2016_v33 = vadd.f32 %v10711_v49, %v13966_v14  ;;  %v13971_v49 = vld [vmem:[#allocation88_spill] sm:$0xff] }
 0x346   : > { %9111 = vmatmul.msk.f32.gmra.mxu1 %vm464_vm1, %v8979_v3 }
 0x347   : > { %v2935_v39 = vpop.f32.mrf.mxu3 }
 0x348   : > { %v11226_v8 = vpop.f32.mrf.mxu2  ;;  %v11228_v7 = vadd.f32 %v2935_v39, %v2013_v0 }
 0x349   : > { %13962 = vst [vmem:[#allocation80_spill] sm:$0xff] %v11226_v8 }
 0x34a   : > { %13963 = vst [vmem:[#allocation261_spill] sm:$0xff] %v11228_v7  ;;  %v11231_v42 = vpop.f32.mrf.mxu0  ;;  %v9241_v7 = vld [vmem:[%s9637_s16 + $0xa0] sm:$0xff] }
 0x34b   : > { %13964 = vst [vmem:[#allocation262_spill] sm:$0xff] %v11231_v42  ;;  %v11233_v25 = vpop.f32.mrf.mxu1  ;;  %v8981_v42 = vld [vmem:[%s9637_s16 + $0x4e0] sm:$0xff] }
 0x34c   : > { %13965 = vst [vmem:[#allocation263_spill] sm:$0xff] %v11233_v25  ;;  %8592 = vmatmul.msk.f32.gmra.mxu3 %vm464_vm1, %v8976_v48 }
 0x34d   : > { %9372 = vmatmul.msk.f32.gmra.mxu2 %vm464_vm1, %v9240_v56  ;;  %8852 = vmatmul.msk.f32.gmra.mxu0 %vm464_vm1, %v9236_v47  ;;  %v2019_v47 = vadd.f32 %v10726_v36, %v13971_v49  ;;  %v13976_v36 = vld [vmem:[#allocation92_spill] sm:$0xff] }
 0x34e   : > { %9112 = vmatmul.msk.f32.gmra.mxu1 %vm464_vm1, %v8980_v61 }
 0x34f   : > { %v2938_v57 = vpop.f32.mrf.mxu3 }
 0x350   : > { %v11242_v0 = vpop.f32.mrf.mxu2  ;;  %v11244_v39 = vadd.f32 %v2938_v57, %v2016_v33 }
 0x351   : > { %13967 = vst [vmem:[#allocation84_spill] sm:$0xff] %v11242_v0  ;;  %v11434_v0 = vld [vmem:[%s9637_s16 + $0x530] sm:$0xff] }
 0x352   : > { %13968 = vst [vmem:[#allocation264_spill] sm:$0xff] %v11244_v39  ;;  %v11247_v25 = vpop.f32.mrf.mxu0  ;;  %v9242_v39 = vld [vmem:[%s9637_s16 + $0xa8] sm:$0xff] }
 0x353   : > { %13969 = vst [vmem:[#allocation265_spill] sm:$0xff] %v11247_v25  ;;  %v11249_v48 = vpop.f32.mrf.mxu1  ;;  %v8982_v25 = vld [vmem:[%s9637_s16 + $0x4e8] sm:$0xff] }
 0x354   : > { %13970 = vst [vmem:[#allocation266_spill] sm:$0xff] %v11249_v48  ;;  %8593 = vmatmul.msk.f32.gmra.mxu3 %vm464_vm1, %v8977_v54 }
 0x355   : > { %9373 = vmatmul.msk.f32.gmra.mxu2 %vm464_vm1, %v9241_v7  ;;  %8853 = vmatmul.msk.f32.gmra.mxu0 %vm464_vm1, %v9237_v15  ;;  %v2022_v15 = vadd.f32 %v10741_v35, %v13976_v36  ;;  %v13981_v35 = vld [vmem:[#allocation96_spill] sm:$0xff] }
 0x356   : > { %9113 = vmatmul.msk.f32.gmra.mxu1 %vm464_vm1, %v8981_v42 }
 0x357   : > { %v2941_v14 = vpop.f32.mrf.mxu3 }
 0x358   : > { %v11258_v33 = vpop.f32.mrf.mxu2  ;;  %v11260_v57 = vadd.f32 %v2941_v14, %v2019_v47 }
 0x359   : > { %13972 = vst [vmem:[#allocation88_spill] sm:$0xff] %v11258_v33  ;;  %v11407_v33 = vld [vmem:[%s9637_s16 + $0x528] sm:$0xff] }
 0x35a   : > { %13973 = vst [vmem:[#allocation267_spill] sm:$0xff] %v11260_v57  ;;  %v11263_v48 = vpop.f32.mrf.mxu0  ;;  %v9243_v57 = vld [vmem:[%s9637_s16 + $0xb0] sm:$0xff] }
 0x35b   : > { %13974 = vst [vmem:[#allocation268_spill] sm:$0xff] %v11263_v48  ;;  %v11265_v54 = vpop.f32.mrf.mxu1  ;;  %v8983_v48 = vld [vmem:[%s9637_s16 + $0x4f0] sm:$0xff] }
 0x35c   : > { %13975 = vst [vmem:[#allocation269_spill] sm:$0xff] %v11265_v54  ;;  %8594 = vmatmul.msk.f32.gmra.mxu3 %vm464_vm1, %v8978_v29 }
 0x35d   : > { %9374 = vmatmul.msk.f32.gmra.mxu2 %vm464_vm1, %v9242_v39  ;;  %8854 = vmatmul.msk.f32.gmra.mxu0 %vm464_vm1, %v9238_v40  ;;  %v2025_v40 = vadd.f32 %v10756_v28, %v13981_v35  ;;  %v13986_v28 = vld [vmem:[#allocation100_spill] sm:$0xff] }
 0x35e   : > { %9114 = vmatmul.msk.f32.gmra.mxu1 %vm464_vm1, %v8982_v25 }
 0x35f   : > { %v2944_v49 = vpop.f32.mrf.mxu3 }
 0x360   : > { %v11274_v47 = vpop.f32.mrf.mxu2  ;;  %v11276_v14 = vadd.f32 %v2944_v49, %v2022_v15 }
 0x361   : > { %13977 = vst [vmem:[#allocation92_spill] sm:$0xff] %v11274_v47 }
 0x362   : > { %13978 = vst [vmem:[#allocation270_spill] sm:$0xff] %v11276_v14  ;;  %v11279_v54 = vpop.f32.mrf.mxu0  ;;  %v9244_v14 = vld [vmem:[%s9637_s16 + $0xb8] sm:$0xff] }
 0x363   : > { %13979 = vst [vmem:[#allocation271_spill] sm:$0xff] %v11279_v54  ;;  %v11281_v29 = vpop.f32.mrf.mxu1  ;;  %v8984_v54 = vld [vmem:[%s9637_s16 + $0x4f8] sm:$0xff] }
 0x364   : > { %13980 = vst [vmem:[#allocation272_spill] sm:$0xff] %v11281_v29  ;;  %8595 = vmatmul.msk.f32.gmra.mxu3 %vm464_vm1, %v8979_v3 }
 0x365   : > { %9375 = vmatmul.msk.f32.gmra.mxu2 %vm464_vm1, %v9243_v57  ;;  %8855 = vmatmul.msk.f32.gmra.mxu0 %vm464_vm1, %v9239_v63  ;;  %v2028_v63 = vadd.f32 %v10771_v21, %v13986_v28  ;;  %v13991_v21 = vld [vmem:[#allocation104_spill] sm:$0xff] }
 0x366   : > { %9115 = vmatmul.msk.f32.gmra.mxu1 %vm464_vm1, %v8983_v48 }
 0x367   : > { %v2947_v36 = vpop.f32.mrf.mxu3 }
 0x368   : > { %v11290_v15 = vpop.f32.mrf.mxu2  ;;  %v11292_v49 = vadd.f32 %v2947_v36, %v2025_v40 }
 0x369   : > { %13982 = vst [vmem:[#allocation96_spill] sm:$0xff] %v11290_v15 }
 0x36a   : > { %13983 = vst [vmem:[#allocation273_spill] sm:$0xff] %v11292_v49  ;;  %v11295_v29 = vpop.f32.mrf.mxu0  ;;  %v9245_v49 = vld [vmem:[%s9637_s16 + $0xc0] sm:$0xff] }
 0x36b   : > { %13984 = vst [vmem:[#allocation274_spill] sm:$0xff] %v11295_v29  ;;  %v11297_v3 = vpop.f32.mrf.mxu1  ;;  %v8985_v29 = vld [vmem:[%s9637_s16 + $0x500] sm:$0xff] }
 0x36c   : > { %13985 = vst [vmem:[#allocation275_spill] sm:$0xff] %v11297_v3  ;;  %8596 = vmatmul.msk.f32.gmra.mxu3 %vm464_vm1, %v8980_v61 }
 0x36d   : > { %9376 = vmatmul.msk.f32.gmra.mxu2 %vm464_vm1, %v9244_v14  ;;  %8856 = vmatmul.msk.f32.gmra.mxu0 %vm464_vm1, %v9240_v56  ;;  %v2031_v56 = vadd.f32 %v10786_v11, %v13991_v21  ;;  %v13996_v11 = vld [vmem:[#allocation108_spill] sm:$0xff] }
 0x36e   : > { %9116 = vmatmul.msk.f32.gmra.mxu1 %vm464_vm1, %v8984_v54 }
 0x36f   : > { %v2950_v35 = vpop.f32.mrf.mxu3 }
 0x370   : > { %v11306_v40 = vpop.f32.mrf.mxu2  ;;  %v11308_v36 = vadd.f32 %v2950_v35, %v2028_v63 }
 0x371   : > { %13987 = vst [vmem:[#allocation100_spill] sm:$0xff] %v11306_v40 }
 0x372   : > { %13988 = vst [vmem:[#allocation276_spill] sm:$0xff] %v11308_v36  ;;  %v11311_v3 = vpop.f32.mrf.mxu0  ;;  %v9246_v36 = vld [vmem:[%s9637_s16 + $0xc8] sm:$0xff] }
 0x373   : > { %13989 = vst [vmem:[#allocation277_spill] sm:$0xff] %v11311_v3  ;;  %v11313_v61 = vpop.f32.mrf.mxu1  ;;  %v8986_v3 = vld [vmem:[%s9637_s16 + $0x508] sm:$0xff] }
 0x374   : > { %13990 = vst [vmem:[#allocation278_spill] sm:$0xff] %v11313_v61  ;;  %8597 = vmatmul.msk.f32.gmra.mxu3 %vm464_vm1, %v8981_v42 }
 0x375   : > { %9377 = vmatmul.msk.f32.gmra.mxu2 %vm464_vm1, %v9245_v49  ;;  %8857 = vmatmul.msk.f32.gmra.mxu0 %vm464_vm1, %v9241_v7  ;;  %v2034_v7 = vadd.f32 %v10801_v1, %v13996_v11  ;;  %v14001_v1 = vld [vmem:[#allocation112_spill] sm:$0xff] }
 0x376   : > { %9117 = vmatmul.msk.f32.gmra.mxu1 %vm464_vm1, %v8985_v29 }
 0x377   : > { %v2953_v28 = vpop.f32.mrf.mxu3 }
 0x378   : > { %v11322_v63 = vpop.f32.mrf.mxu2  ;;  %v11324_v35 = vadd.f32 %v2953_v28, %v2031_v56 }
 0x379   : > { %13992 = vst [vmem:[#allocation104_spill] sm:$0xff] %v11322_v63  ;;  %v11392_v63 = vld [vmem:[%s9637_s16 + $0x520] sm:$0xff] }
 0x37a   : > { %13993 = vst [vmem:[#allocation279_spill] sm:$0xff] %v11324_v35  ;;  %v11327_v61 = vpop.f32.mrf.mxu0  ;;  %v11343_v35 = vld [vmem:[%s9637_s16 + $0xd0] sm:$0xff] }
 0x37b   : > { %13994 = vst [vmem:[#allocation280_spill] sm:$0xff] %v11327_v61  ;;  %v11329_v42 = vpop.f32.mrf.mxu1  ;;  %v11350_v61 = vld [vmem:[%s9637_s16 + $0x510] sm:$0xff] }
 0x37c   : > { %13995 = vst [vmem:[#allocation281_spill] sm:$0xff] %v11329_v42  ;;  %8598 = vmatmul.msk.f32.gmra.mxu3 %vm464_vm1, %v8982_v25 }
 0x37d   : > { %9378 = vmatmul.msk.f32.gmra.mxu2 %vm464_vm1, %v9246_v36  ;;  %8858 = vmatmul.msk.f32.gmra.mxu0 %vm464_vm1, %v9242_v39  ;;  %v2037_v39 = vadd.f32 %v10816_v59, %v14001_v1  ;;  %v14006_v59 = vld [vmem:[#allocation116_spill] sm:$0xff]  ;;  %v14007_v1 = vld [vmem:[#allocation217_spill] sm:$0xff] }
 0x37e   : > { %9118 = vmatmul.msk.f32.gmra.mxu1 %vm464_vm1, %v8986_v3 }
 0x37f   : > { %v2956_v21 = vpop.f32.mrf.mxu3 }
 0x380   : > { %v11338_v56 = vpop.f32.mrf.mxu2  ;;  %v11340_v28 = vadd.f32 %v2956_v21, %v2034_v7 }
 0x381   : > { %13997 = vst [vmem:[#allocation108_spill] sm:$0xff] %v11338_v56 }
 0x382   : > { %13998 = vst [vmem:[#allocation282_spill] sm:$0xff] %v11340_v28  ;;  %v11345_v42 = vpop.f32.mrf.mxu0  ;;  %v11365_v28 = vld [vmem:[%s9637_s16 + $0xd8] sm:$0xff] }
 0x383   : > { %13999 = vst [vmem:[#allocation283_spill] sm:$0xff] %v11345_v42  ;;  %v11347_v25 = vpop.f32.mrf.mxu1 }
 0x384   : > { %14000 = vst [vmem:[#allocation284_spill] sm:$0xff] %v11347_v25  ;;  %8599 = vmatmul.msk.f32.gmra.mxu3 %vm464_vm1, %v8983_v48 }
 0x385   : > { %9379 = vmatmul.msk.f32.gmra.mxu2 %vm464_vm1, %v11343_v35  ;;  %8859 = vmatmul.msk.f32.gmra.mxu0 %vm464_vm1, %v9243_v57  ;;  %v11372_v57 = vld [vmem:[%s9637_s16 + $0x518] sm:$0xff] }
 0x386   : > { %9119 = vmatmul.msk.f32.gmra.mxu1 %vm464_vm1, %v11350_v61 }
 0x387   : > { %v2959_v11 = vpop.f32.mrf.mxu3 }
 0x388   : > { %v11360_v7 = vpop.f32.mrf.mxu2  ;;  %v11362_v21 = vadd.f32 %v2959_v11, %v2037_v39  ;;  %v2040_v39 = vadd.f32 %v14007_v1, %v14006_v59  ;;  %v14012_v59 = vld [vmem:[#allocation4_spill] sm:$0xff] }
 0x389   : > { %14002 = vst [vmem:[#allocation112_spill] sm:$0xff] %v11360_v7  ;;  %v14011_v7 = vld [vmem:[#allocation3_spill] sm:$0xff] }
 0x38a   : > { %14003 = vst [vmem:[#allocation285_spill] sm:$0xff] %v11362_v21  ;;  %v11367_v48 = vpop.f32.mrf.mxu0 }
 0x38b   : > { %14004 = vst [vmem:[#allocation286_spill] sm:$0xff] %v11367_v48  ;;  %v11369_v25 = vpop.f32.mrf.mxu1  ;;  %v11387_v48 = vld [vmem:[%s9637_s16 + $0xe0] sm:$0xff] }
 0x38c   : > { %14005 = vst [vmem:[#allocation287_spill] sm:$0xff] %v11369_v25  ;;  %8600 = vmatmul.msk.f32.gmra.mxu3 %vm464_vm1, %v8984_v54  ;;  %v14010_v54 = vld [vmem:[#allocation2_spill] sm:$0xff] }
 0x38d   : > { %9380 = vmatmul.msk.f32.gmra.mxu2 %vm464_vm1, %v11365_v28  ;;  %8860 = vmatmul.msk.f32.gmra.mxu0 %vm464_vm1, %v9244_v14  ;;  %v1659_v42 = vadd.f32 %v14011_v7, %v14010_v54  ;;  %v11402_v54 = vld [vmem:[%s9637_s16 + $0xe8] sm:$0xff] }
 0x38e   : > { %9120 = vmatmul.msk.f32.gmra.mxu1 %vm464_vm1, %v11372_v57 }
 0x38f   : > { %v2962_v11 = vpop.f32.mrf.mxu3  ;;  %v2965_v1 = vadd.f32 %v14012_v59, %v1659_v42  ;;  %v11413_v42 = vld [vmem:[%s13672_s2] ss:$0 sm:$0xff] }
 0x390   : > { %v11382_v21 = vpop.f32.mrf.mxu2  ;;  %v11384_v25 = vadd.f32 %v2962_v11, %v2040_v39 }
 0x391   : > { %14008 = vst [vmem:[#allocation116_spill] sm:$0xff] %v11382_v21  ;;  %v14014_v21 = vld [vmem:[#allocation6_spill] sm:$0xff] }
 0x392   : > { %14009 = vst [vmem:[#allocation217_spill] sm:$0xff] %v11384_v25  ;;  %v4682_v56 = vpop.f32.mrf.mxu0  ;;  %v14013_v25 = vld [vmem:[#allocation5_spill] sm:$0xff] }
 0x393   : > { %v5732_v14 = vpop.f32.mrf.mxu1  ;;  %v1662_v40 = vadd.f32 %v14014_v21, %v14013_v25 }
 0x394   : > { %8601 = vmatmul.msk.f32.gmra.mxu3 %vm464_vm1, %v8985_v29 }
 0x395   : > { %9381 = vmatmul.msk.f32.gmra.mxu2 %vm464_vm1, %v11387_v48  ;;  %8861 = vmatmul.msk.f32.gmra.mxu0 %vm464_vm1, %v9245_v49 }
 0x396   : > { %9121 = vmatmul.msk.f32.gmra.mxu1 %vm464_vm1, %v11392_v63 }
 0x397   : > { %v3631_v39 = vpop.f32.mrf.mxu3 }
 0x398   : > { %v6783_v7 = vpop.f32.mrf.mxu2  ;;  %v4015_v11 = vadd.f32 %v3631_v39, %v2965_v1  ;;  %v14016_v39 = vld [vmem:[#allocation8_spill] sm:$0xff] }
 0x39a   : > { %v5066_v29 = vadd.f32 %v4682_v56, %v4015_v11  ;;  %v4685_v15 = vpop.f32.mrf.mxu0  ;;  %v14015_v56 = vld [vmem:[#allocation7_spill] sm:$0xff]  ;;  %v14017_v11 = vld [vmem:[#allocation9_spill] sm:$0xff] }
 0x39b   : > { %v5735_v47 = vpop.f32.mrf.mxu1  ;;  %v2966_v25 = vadd.f32 %v14015_v56, %v1662_v40 }
 0x39c   : > { %v6116_v49 = vadd.f32 %v5732_v14, %v5066_v29  ;;  %8602 = vmatmul.msk.f32.gmra.mxu3 %vm464_vm1, %v8986_v3  ;;  %v1665_v29 = vadd.f32 %v14017_v11, %v14016_v39  ;;  %v14019_v11 = vld [vmem:[#allocation11_spill] sm:$0xff] }
 0x39d   : > { %9382 = vmatmul.msk.f32.gmra.mxu2 %vm464_vm1, %v11402_v54  ;;  %8862 = vmatmul.msk.f32.gmra.mxu0 %vm464_vm1, %v9246_v36  ;;  %v11429_v36 = vld [vmem:[%s9637_s16 + $0xf0] sm:$0xff] }
 0x39e   : > { %9122 = vmatmul.msk.f32.gmra.mxu1 %vm464_vm1, %v11407_v33  ;;  %v7167_v21 = vadd.f32 %v6783_v7, %v6116_v49 }
 0x39f   : > { %v3634_v14 = vpop.f32.mrf.mxu3 }
 0x3a0   : > { %v6786_v3 = vpop.f32.mrf.mxu2  ;;  %v7299_v59 = vadd.f32 %v11413_v42, %v7167_v21  ;;  %v4016_v1 = vadd.f32 %v3634_v14, %v2966_v25 }
 0x3a2   : > { %v7427_v40 = vmax.f32 %v7299_v59, 0.0  ;;  %v5067_v56 = vadd.f32 %v4685_v15, %v4016_v1  ;;  %v4688_v7 = vpop.f32.mrf.mxu0  ;;  %v14018_v15 = vld [vmem:[#allocation10_spill] sm:$0xff] }
 0x3a3   : > { %v5738_v49 = vpop.f32.mrf.mxu1  ;;  %v2967_v21 = vadd.f32 %v14018_v15, %v1665_v29  ;;  %v14021_v29 = vld [vmem:[#allocation13_spill] sm:$0xff] }
 0x3a4   : > { %7556 = vst.msk [vmem:[%s11426_s22] sm:$0xff] %vm7555_vm2, %v7427_v40  ;;  %v6117_v25 = vadd.f32 %v5735_v47, %v5067_v56  ;;  %8603 = vmatmul.msk.f32.gmra.mxu3 %vm464_vm1, %v11350_v61  ;;  %v11449_v61 = vld [vmem:[%s9637_s16 + $0xf8] sm:$0xff]  ;;  %v14020_v40 = vld [vmem:[#allocation12_spill] sm:$0xff] }
 0x3a5   : > { %9383 = vmatmul.msk.f32.gmra.mxu2 %vm464_vm1, %v11429_v36  ;;  %8863 = vmatmul.msk.f32.gmra.mxu0 %vm464_vm1, %v11343_v35  ;;  %v1668_v56 = vadd.f32 %v14020_v40, %v14019_v11  ;;  %v11474_v40 = vld [vmem:[%s9637_s16 + $0x540] sm:$0xff] }
 0x3a6   : > { %9123 = vmatmul.msk.f32.gmra.mxu1 %vm464_vm1, %v11434_v0  ;;  %v7168_v14 = vadd.f32 %v6786_v3, %v6117_v25 }
 0x3a7   : > { %v3637_v59 = vpop.f32.mrf.mxu3 }
 0x3a8   : > { %v6789_v1 = vpop.f32.mrf.mxu2  ;;  %v7300_v47 = vadd.f32 %v11413_v42, %v7168_v14  ;;  %v4017_v39 = vadd.f32 %v3637_v59, %v2967_v21  ;;  %v14022_v21 = vld [vmem:[#allocation14_spill] sm:$0xff]  ;;  %v14023_v14 = vld [vmem:[#allocation15_spill] sm:$0xff] }
 0x3a9   : > { %v1671_v59 = vadd.f32 %v14023_v14, %v14022_v21 }
 0x3aa   : > { %v7428_v8 = vmax.f32 %v7300_v47, 0.0  ;;  %v5068_v9 = vadd.f32 %v4688_v7, %v4017_v39  ;;  %v4691_v35 = vpop.f32.mrf.mxu0  ;;  %v2968_v7 = vadd.f32 %v14021_v29, %v1668_v56  ;;  %v14024_v56 = vld [vmem:[#allocation16_spill] sm:$0xff] }
 0x3ab   : > { %v5741_v46 = vpop.f32.mrf.mxu1 }
 0x3ac   : > { %7557 = vst.msk [vmem:[%s11426_s22 + $0x8] sm:$0xff] %vm7555_vm2, %v7428_v8  ;;  %v6118_v3 = vadd.f32 %v5738_v49, %v5068_v9  ;;  %8604 = vmatmul.msk.f32.gmra.mxu3 %vm464_vm1, %v11372_v57  ;;  %v11469_v57 = vld [vmem:[%s9637_s16 + $0x100] sm:$0xff] }
 0x3ad   : > { %9384 = vmatmul.msk.f32.gmra.mxu2 %vm464_vm1, %v11449_v61  ;;  %8864 = vmatmul.msk.f32.gmra.mxu0 %vm464_vm1, %v11365_v28 }
 0x3ae   : > { %9124 = vmatmul.msk.f32.gmra.mxu1 %vm464_vm1, %v11454_v32  ;;  %v7169_v25 = vadd.f32 %v6789_v1, %v6118_v3 }
 0x3af   : > { %v3640_v15 = vpop.f32.mrf.mxu3 }
 0x3b0   : > { %v6792_v8 = vpop.f32.mrf.mxu2  ;;  %v7301_v9 = vadd.f32 %v11413_v42, %v7169_v25  ;;  %v4018_v49 = vadd.f32 %v3640_v15, %v2968_v7  ;;  %v14025_v15 = vld [vmem:[#allocation17_spill] sm:$0xff] }
 0x3b2   : > { %v7429_v47 = vmax.f32 %v7301_v9, 0.0  ;;  %v5069_v39 = vadd.f32 %v4691_v35, %v4018_v49  ;;  %v4694_v28 = vpop.f32.mrf.mxu0  ;;  %v2969_v35 = vadd.f32 %v14024_v56, %v1671_v59  ;;  %v14026_v9 = vld [vmem:[#allocation18_spill] sm:$0xff]  ;;  %v14027_v59 = vld [vmem:[#allocation19_spill] sm:$0xff] }
 0x3b3   : > { %v5744_v11 = vpop.f32.mrf.mxu1  ;;  %v1674_v49 = vadd.f32 %v14026_v9, %v14025_v15 }
 0x3b4   : > { %7558 = vst.msk [vmem:[%s11426_s22 + $0x10] sm:$0xff] %vm7555_vm2, %v7429_v47  ;;  %v6119_v1 = vadd.f32 %v5741_v46, %v5069_v39  ;;  %8605 = vmatmul.msk.f32.gmra.mxu3 %vm464_vm1, %v11392_v63  ;;  %v11489_v63 = vld [vmem:[%s9637_s16 + $0x108] sm:$0xff] }
 0x3b5   : > { %9385 = vmatmul.msk.f32.gmra.mxu2 %vm464_vm1, %v11469_v57  ;;  %8865 = vmatmul.msk.f32.gmra.mxu0 %vm464_vm1, %v11387_v48  ;;  %v11494_v39 = vld [vmem:[%s9637_s16 + $0x548] sm:$0xff] }
 0x3b6   : > { %9125 = vmatmul.msk.f32.gmra.mxu1 %vm464_vm1, %v11474_v40  ;;  %v7170_v3 = vadd.f32 %v6792_v8, %v6119_v1 }
 0x3b7   : > { %v3643_v29 = vpop.f32.mrf.mxu3 }
 0x3b8   : > { %v6795_v7 = vpop.f32.mrf.mxu2  ;;  %v7302_v46 = vadd.f32 %v11413_v42, %v7170_v3  ;;  %v4019_v25 = vadd.f32 %v3643_v29, %v2969_v35  ;;  %v14028_v29 = vld [vmem:[#allocation20_spill] sm:$0xff] }
 0x3ba   : > { %v7430_v21 = vmax.f32 %v7302_v46, 0.0  ;;  %v5070_v14 = vadd.f32 %v4694_v28, %v4019_v25  ;;  %v4697_v48 = vpop.f32.mrf.mxu0  ;;  %v2970_v28 = vadd.f32 %v14027_v59, %v1674_v49  ;;  %v14029_v46 = vld [vmem:[#allocation21_spill] sm:$0xff]  ;;  %v14030_v49 = vld [vmem:[#allocation22_spill] sm:$0xff] }
 0x3bb   : > { %v5747_v47 = vpop.f32.mrf.mxu1  ;;  %v1677_v25 = vadd.f32 %v14029_v46, %v14028_v29 }
 0x3bc   : > { %7559 = vst.msk [vmem:[%s11426_s22 + $0x18] sm:$0xff] %vm7555_vm2, %v7430_v21  ;;  %v6120_v8 = vadd.f32 %v5744_v11, %v5070_v14  ;;  %8606 = vmatmul.msk.f32.gmra.mxu3 %vm464_vm1, %v11407_v33  ;;  %v11509_v33 = vld [vmem:[%s9637_s16 + $0x110] sm:$0xff] }
 0x3bd   : > { %9386 = vmatmul.msk.f32.gmra.mxu2 %vm464_vm1, %v11489_v63  ;;  %8866 = vmatmul.msk.f32.gmra.mxu0 %vm464_vm1, %v11402_v54  ;;  %v11514_v14 = vld [vmem:[%s9637_s16 + $0x550] sm:$0xff] }
 0x3be   : > { %9126 = vmatmul.msk.f32.gmra.mxu1 %vm464_vm1, %v11494_v39  ;;  %v7171_v1 = vadd.f32 %v6795_v7, %v6120_v8 }
 0x3bf   : > { %v3646_v56 = vpop.f32.mrf.mxu3 }
 0x3c0   : > { %v6798_v35 = vpop.f32.mrf.mxu2  ;;  %v7303_v11 = vadd.f32 %v11413_v42, %v7171_v1  ;;  %v4020_v3 = vadd.f32 %v3646_v56, %v2970_v28  ;;  %v14031_v56 = vld [vmem:[#allocation23_spill] sm:$0xff] }
 0x3c2   : > { %v7431_v15 = vmax.f32 %v7303_v11, 0.0  ;;  %v5071_v9 = vadd.f32 %v4697_v48, %v4020_v3  ;;  %v4700_v54 = vpop.f32.mrf.mxu0  ;;  %v2971_v48 = vadd.f32 %v14030_v49, %v1677_v25  ;;  %v14032_v11 = vld [vmem:[#allocation24_spill] sm:$0xff]  ;;  %v14033_v25 = vld [vmem:[#allocation25_spill] sm:$0xff] }
 0x3c3   : > { %v5750_v21 = vpop.f32.mrf.mxu1  ;;  %v1680_v3 = vadd.f32 %v14032_v11, %v14031_v56 }
 0x3c4   : > { %7560 = vst.msk [vmem:[%s11426_s22 + $0x20] sm:$0xff] %vm7555_vm2, %v7431_v15  ;;  %v6121_v7 = vadd.f32 %v5747_v47, %v5071_v9  ;;  %8607 = vmatmul.msk.f32.gmra.mxu3 %vm464_vm1, %v11434_v0  ;;  %v11529_v0 = vld [vmem:[%s9637_s16 + $0x118] sm:$0xff] }
 0x3c5   : > { %9387 = vmatmul.msk.f32.gmra.mxu2 %vm464_vm1, %v11509_v33  ;;  %8867 = vmatmul.msk.f32.gmra.mxu0 %vm464_vm1, %v11429_v36  ;;  %v11534_v9 = vld [vmem:[%s9637_s16 + $0x558] sm:$0xff] }
 0x3c6   : > { %9127 = vmatmul.msk.f32.gmra.mxu1 %vm464_vm1, %v11514_v14  ;;  %v7172_v8 = vadd.f32 %v6798_v35, %v6121_v7 }
 0x3c7   : > { %v3649_v59 = vpop.f32.mrf.mxu3 }
 0x3c8   : > { %v6801_v28 = vpop.f32.mrf.mxu2  ;;  %v7304_v47 = vadd.f32 %v11413_v42, %v7172_v8  ;;  %v4021_v1 = vadd.f32 %v3649_v59, %v2971_v48  ;;  %v14034_v59 = vld [vmem:[#allocation26_spill] sm:$0xff] }
 0x3ca   : > { %v7432_v29 = vmax.f32 %v7304_v47, 0.0  ;;  %v5072_v46 = vadd.f32 %v4700_v54, %v4021_v1  ;;  %v4703_v36 = vpop.f32.mrf.mxu0  ;;  %v2972_v54 = vadd.f32 %v14033_v25, %v1680_v3  ;;  %v14035_v47 = vld [vmem:[#allocation27_spill] sm:$0xff]  ;;  %v14036_v3 = vld [vmem:[#allocation28_spill] sm:$0xff] }
 0x3cb   : > { %v5753_v15 = vpop.f32.mrf.mxu1  ;;  %v1683_v1 = vadd.f32 %v14035_v47, %v14034_v59 }
 0x3cc   : > { %7561 = vst.msk [vmem:[%s11426_s22 + $0x28] sm:$0xff] %vm7555_vm2, %v7432_v29  ;;  %v6122_v35 = vadd.f32 %v5750_v21, %v5072_v46  ;;  %8608 = vmatmul.msk.f32.gmra.mxu3 %vm464_vm1, %v11454_v32  ;;  %v11549_v32 = vld [vmem:[%s9637_s16 + $0x120] sm:$0xff] }
 0x3cd   : > { %9388 = vmatmul.msk.f32.gmra.mxu2 %vm464_vm1, %v11529_v0  ;;  %8868 = vmatmul.msk.f32.gmra.mxu0 %vm464_vm1, %v11449_v61  ;;  %v11554_v46 = vld [vmem:[%s9637_s16 + $0x560] sm:$0xff] }
 0x3ce   : > { %9128 = vmatmul.msk.f32.gmra.mxu1 %vm464_vm1, %v11534_v9  ;;  %v7173_v7 = vadd.f32 %v6801_v28, %v6122_v35 }
 0x3cf   : > { %v3652_v49 = vpop.f32.mrf.mxu3 }
 0x3d0   : > { %v6804_v48 = vpop.f32.mrf.mxu2  ;;  %v7305_v21 = vadd.f32 %v11413_v42, %v7173_v7  ;;  %v4022_v8 = vadd.f32 %v3652_v49, %v2972_v54  ;;  %v14037_v49 = vld [vmem:[#allocation29_spill] sm:$0xff] }
 0x3d2   : > { %v7433_v56 = vmax.f32 %v7305_v21, 0.0  ;;  %v5073_v11 = vadd.f32 %v4703_v36, %v4022_v8  ;;  %v4706_v61 = vpop.f32.mrf.mxu0  ;;  %v2973_v36 = vadd.f32 %v14036_v3, %v1683_v1  ;;  %v14038_v21 = vld [vmem:[#allocation30_spill] sm:$0xff]  ;;  %v14039_v1 = vld [vmem:[#allocation31_spill] sm:$0xff] }
 0x3d3   : > { %v5756_v29 = vpop.f32.mrf.mxu1  ;;  %v1686_v8 = vadd.f32 %v14038_v21, %v14037_v49 }
 0x3d4   : > { %7562 = vst.msk [vmem:[%s11426_s22 + $0x30] sm:$0xff] %vm7555_vm2, %v7433_v56  ;;  %v6123_v28 = vadd.f32 %v5753_v15, %v5073_v11  ;;  %8609 = vmatmul.msk.f32.gmra.mxu3 %vm464_vm1, %v11474_v40  ;;  %v11569_v40 = vld [vmem:[%s9637_s16 + $0x128] sm:$0xff] }
 0x3d5   : > { %9389 = vmatmul.msk.f32.gmra.mxu2 %vm464_vm1, %v11549_v32  ;;  %8869 = vmatmul.msk.f32.gmra.mxu0 %vm464_vm1, %v11469_v57  ;;  %v11574_v11 = vld [vmem:[%s9637_s16 + $0x568] sm:$0xff] }
 0x3d6   : > { %9129 = vmatmul.msk.f32.gmra.mxu1 %vm464_vm1, %v11554_v46  ;;  %v7174_v35 = vadd.f32 %v6804_v48, %v6123_v28 }
 0x3d7   : > { %v3655_v25 = vpop.f32.mrf.mxu3 }
 0x3d8   : > { %v6807_v54 = vpop.f32.mrf.mxu2  ;;  %v7306_v15 = vadd.f32 %v11413_v42, %v7174_v35  ;;  %v4023_v7 = vadd.f32 %v3655_v25, %v2973_v36  ;;  %v14040_v25 = vld [vmem:[#allocation32_spill] sm:$0xff] }
 0x3da   : > { %v7434_v59 = vmax.f32 %v7306_v15, 0.0  ;;  %v5074_v47 = vadd.f32 %v4706_v61, %v4023_v7  ;;  %v4709_v57 = vpop.f32.mrf.mxu0  ;;  %v2974_v61 = vadd.f32 %v14039_v1, %v1686_v8  ;;  %v14041_v15 = vld [vmem:[#allocation33_spill] sm:$0xff]  ;;  %v14042_v8 = vld [vmem:[#allocation34_spill] sm:$0xff] }
 0x3db   : > { %v5759_v56 = vpop.f32.mrf.mxu1  ;;  %v1689_v7 = vadd.f32 %v14041_v15, %v14040_v25 }
 0x3dc   : > { %7563 = vst.msk [vmem:[%s11426_s22 + $0x38] sm:$0xff] %vm7555_vm2, %v7434_v59  ;;  %v6124_v48 = vadd.f32 %v5756_v29, %v5074_v47  ;;  %8610 = vmatmul.msk.f32.gmra.mxu3 %vm464_vm1, %v11494_v39  ;;  %v11589_v39 = vld [vmem:[%s9637_s16 + $0x130] sm:$0xff] }
 0x3dd   : > { %9390 = vmatmul.msk.f32.gmra.mxu2 %vm464_vm1, %v11569_v40  ;;  %8870 = vmatmul.msk.f32.gmra.mxu0 %vm464_vm1, %v11489_v63  ;;  %v11594_v47 = vld [vmem:[%s9637_s16 + $0x570] sm:$0xff] }
 0x3de   : > { %9130 = vmatmul.msk.f32.gmra.mxu1 %vm464_vm1, %v11574_v11  ;;  %v7175_v28 = vadd.f32 %v6807_v54, %v6124_v48 }
 0x3df   : > { %v3658_v3 = vpop.f32.mrf.mxu3 }
 0x3e0   : > { %v6810_v36 = vpop.f32.mrf.mxu2  ;;  %v7307_v29 = vadd.f32 %v11413_v42, %v7175_v28  ;;  %v4024_v35 = vadd.f32 %v3658_v3, %v2974_v61  ;;  %v14043_v3 = vld [vmem:[#allocation35_spill] sm:$0xff] }
 0x3e2   : > { %v7435_v49 = vmax.f32 %v7307_v29, 0.0  ;;  %v5075_v21 = vadd.f32 %v4709_v57, %v4024_v35  ;;  %v4712_v63 = vpop.f32.mrf.mxu0  ;;  %v2975_v57 = vadd.f32 %v14042_v8, %v1689_v7  ;;  %v14044_v29 = vld [vmem:[#allocation36_spill] sm:$0xff]  ;;  %v14045_v7 = vld [vmem:[#allocation37_spill] sm:$0xff] }
 0x3e3   : > { %v5762_v59 = vpop.f32.mrf.mxu1  ;;  %v1692_v35 = vadd.f32 %v14044_v29, %v14043_v3 }
 0x3e4   : > { %7564 = vst.msk [vmem:[%s11426_s22 + $0x40] sm:$0xff] %vm7555_vm2, %v7435_v49  ;;  %v6125_v54 = vadd.f32 %v5759_v56, %v5075_v21  ;;  %8611 = vmatmul.msk.f32.gmra.mxu3 %vm464_vm1, %v11514_v14  ;;  %v11609_v14 = vld [vmem:[%s9637_s16 + $0x138] sm:$0xff] }
 0x3e5   : > { %9391 = vmatmul.msk.f32.gmra.mxu2 %vm464_vm1, %v11589_v39  ;;  %8871 = vmatmul.msk.f32.gmra.mxu0 %vm464_vm1, %v11509_v33  ;;  %v11614_v21 = vld [vmem:[%s9637_s16 + $0x578] sm:$0xff] }
 0x3e6   : > { %9131 = vmatmul.msk.f32.gmra.mxu1 %vm464_vm1, %v11594_v47  ;;  %v7176_v48 = vadd.f32 %v6810_v36, %v6125_v54 }
 0x3e7   : > { %v3661_v1 = vpop.f32.mrf.mxu3 }
 0x3e8   : > { %v6813_v61 = vpop.f32.mrf.mxu2  ;;  %v7308_v56 = vadd.f32 %v11413_v42, %v7176_v48  ;;  %v4025_v28 = vadd.f32 %v3661_v1, %v2975_v57  ;;  %v14046_v1 = vld [vmem:[#allocation38_spill] sm:$0xff] }
 0x3ea   : > { %v7436_v25 = vmax.f32 %v7308_v56, 0.0  ;;  %v5076_v15 = vadd.f32 %v4712_v63, %v4025_v28  ;;  %v4715_v33 = vpop.f32.mrf.mxu0  ;;  %v2976_v63 = vadd.f32 %v14045_v7, %v1692_v35  ;;  %v14047_v56 = vld [vmem:[#allocation39_spill] sm:$0xff]  ;;  %v14048_v35 = vld [vmem:[#allocation41_spill] sm:$0xff] }
 0x3eb   : > { %v5765_v49 = vpop.f32.mrf.mxu1  ;;  %v1695_v28 = vadd.f32 %v14047_v56, %v14046_v1 }
 0x3ec   : > { %7565 = vst.msk [vmem:[%s11426_s22 + $0x48] sm:$0xff] %vm7555_vm2, %v7436_v25  ;;  %v6126_v36 = vadd.f32 %v5762_v59, %v5076_v15  ;;  %8612 = vmatmul.msk.f32.gmra.mxu3 %vm464_vm1, %v11534_v9  ;;  %v11629_v9 = vld [vmem:[%s9637_s16 + $0x140] sm:$0xff] }
 0x3ed   : > { %9392 = vmatmul.msk.f32.gmra.mxu2 %vm464_vm1, %v11609_v14  ;;  %8872 = vmatmul.msk.f32.gmra.mxu0 %vm464_vm1, %v11529_v0  ;;  %v11634_v15 = vld [vmem:[%s9637_s16 + $0x580] sm:$0xff] }
 0x3ee   : > { %9132 = vmatmul.msk.f32.gmra.mxu1 %vm464_vm1, %v11614_v21  ;;  %v7177_v54 = vadd.f32 %v6813_v61, %v6126_v36 }
 0x3ef   : > { %v3664_v8 = vpop.f32.mrf.mxu3 }
 0x3f0   : > { %v6816_v57 = vpop.f32.mrf.mxu2  ;;  %v7309_v59 = vadd.f32 %v11413_v42, %v7177_v54  ;;  %v4026_v48 = vadd.f32 %v3664_v8, %v2976_v63  ;;  %v14049_v8 = vld [vmem:[#allocation42_spill] sm:$0xff] }
 0x3f2   : > { %v7437_v3 = vmax.f32 %v7309_v59, 0.0  ;;  %v5077_v29 = vadd.f32 %v4715_v33, %v4026_v48  ;;  %v4718_v0 = vpop.f32.mrf.mxu0  ;;  %v2977_v33 = vadd.f32 %v14048_v35, %v1695_v28  ;;  %v14050_v59 = vld [vmem:[#allocation43_spill] sm:$0xff]  ;;  %v14051_v28 = vld [vmem:[#allocation45_spill] sm:$0xff] }
 0x3f3   : > { %v5768_v25 = vpop.f32.mrf.mxu1  ;;  %v1698_v48 = vadd.f32 %v14050_v59, %v14049_v8 }
 0x3f4   : > { %7566 = vst.msk [vmem:[%s11426_s22 + $0x50] sm:$0xff] %vm7555_vm2, %v7437_v3  ;;  %v6127_v61 = vadd.f32 %v5765_v49, %v5077_v29  ;;  %8613 = vmatmul.msk.f32.gmra.mxu3 %vm464_vm1, %v11554_v46  ;;  %v11649_v46 = vld [vmem:[%s9637_s16 + $0x148] sm:$0xff] }
 0x3f5   : > { %9393 = vmatmul.msk.f32.gmra.mxu2 %vm464_vm1, %v11629_v9  ;;  %8873 = vmatmul.msk.f32.gmra.mxu0 %vm464_vm1, %v11549_v32  ;;  %v11654_v29 = vld [vmem:[%s9637_s16 + $0x588] sm:$0xff] }
 0x3f6   : > { %9133 = vmatmul.msk.f32.gmra.mxu1 %vm464_vm1, %v11634_v15  ;;  %v7178_v36 = vadd.f32 %v6816_v57, %v6127_v61 }
 0x3f7   : > { %v3667_v7 = vpop.f32.mrf.mxu3 }
 0x3f8   : > { %v6819_v63 = vpop.f32.mrf.mxu2  ;;  %v7310_v49 = vadd.f32 %v11413_v42, %v7178_v36  ;;  %v4027_v54 = vadd.f32 %v3667_v7, %v2977_v33  ;;  %v14052_v7 = vld [vmem:[#allocation46_spill] sm:$0xff] }
 0x3fa   : > { %v7438_v1 = vmax.f32 %v7310_v49, 0.0  ;;  %v5078_v56 = vadd.f32 %v4718_v0, %v4027_v54  ;;  %v4721_v32 = vpop.f32.mrf.mxu0  ;;  %v2978_v0 = vadd.f32 %v14051_v28, %v1698_v48  ;;  %v14053_v49 = vld [vmem:[#allocation47_spill] sm:$0xff]  ;;  %v14054_v48 = vld [vmem:[#allocation49_spill] sm:$0xff] }
 0x3fb   : > { %v5771_v3 = vpop.f32.mrf.mxu1  ;;  %v1701_v54 = vadd.f32 %v14053_v49, %v14052_v7 }
 0x3fc   : > { %7567 = vst.msk [vmem:[%s11426_s22 + $0x58] sm:$0xff] %vm7555_vm2, %v7438_v1  ;;  %v6128_v57 = vadd.f32 %v5768_v25, %v5078_v56  ;;  %8614 = vmatmul.msk.f32.gmra.mxu3 %vm464_vm1, %v11574_v11  ;;  %v11669_v11 = vld [vmem:[%s9637_s16 + $0x150] sm:$0xff] }
 0x3fd   : > { %9394 = vmatmul.msk.f32.gmra.mxu2 %vm464_vm1, %v11649_v46  ;;  %8874 = vmatmul.msk.f32.gmra.mxu0 %vm464_vm1, %v11569_v40  ;;  %v11674_v56 = vld [vmem:[%s9637_s16 + $0x590] sm:$0xff] }
 0x3fe   : > { %9134 = vmatmul.msk.f32.gmra.mxu1 %vm464_vm1, %v11654_v29  ;;  %v7179_v61 = vadd.f32 %v6819_v63, %v6128_v57 }
 0x3ff   : > { %v3670_v35 = vpop.f32.mrf.mxu3 }
 0x400   : > { %v6822_v33 = vpop.f32.mrf.mxu2  ;;  %v7311_v25 = vadd.f32 %v11413_v42, %v7179_v61  ;;  %v4028_v36 = vadd.f32 %v3670_v35, %v2978_v0  ;;  %v14055_v35 = vld [vmem:[#allocation50_spill] sm:$0xff] }
 0x402   : > { %v7439_v8 = vmax.f32 %v7311_v25, 0.0  ;;  %v5079_v59 = vadd.f32 %v4721_v32, %v4028_v36  ;;  %v4724_v40 = vpop.f32.mrf.mxu0  ;;  %v2979_v32 = vadd.f32 %v14054_v48, %v1701_v54  ;;  %v14056_v25 = vld [vmem:[#allocation51_spill] sm:$0xff]  ;;  %v14057_v54 = vld [vmem:[#allocation53_spill] sm:$0xff] }
 0x403   : > { %v5774_v1 = vpop.f32.mrf.mxu1  ;;  %v1704_v36 = vadd.f32 %v14056_v25, %v14055_v35 }
 0x404   : > { %7568 = vst.msk [vmem:[%s11426_s22 + $0x60] sm:$0xff] %vm7555_vm2, %v7439_v8  ;;  %v6129_v63 = vadd.f32 %v5771_v3, %v5079_v59  ;;  %8615 = vmatmul.msk.f32.gmra.mxu3 %vm464_vm1, %v11594_v47  ;;  %v11689_v47 = vld [vmem:[%s9637_s16 + $0x158] sm:$0xff] }
 0x405   : > { %9395 = vmatmul.msk.f32.gmra.mxu2 %vm464_vm1, %v11669_v11  ;;  %8875 = vmatmul.msk.f32.gmra.mxu0 %vm464_vm1, %v11589_v39  ;;  %v11694_v59 = vld [vmem:[%s9637_s16 + $0x598] sm:$0xff] }
 0x406   : > { %9135 = vmatmul.msk.f32.gmra.mxu1 %vm464_vm1, %v11674_v56  ;;  %v7180_v57 = vadd.f32 %v6822_v33, %v6129_v63 }
 0x407   : > { %v3673_v28 = vpop.f32.mrf.mxu3 }
 0x408   : > { %v6825_v0 = vpop.f32.mrf.mxu2  ;;  %v7312_v3 = vadd.f32 %v11413_v42, %v7180_v57  ;;  %v4029_v61 = vadd.f32 %v3673_v28, %v2979_v32  ;;  %v14058_v28 = vld [vmem:[#allocation54_spill] sm:$0xff] }
 0x40a   : > { %v7440_v7 = vmax.f32 %v7312_v3, 0.0  ;;  %v5080_v49 = vadd.f32 %v4724_v40, %v4029_v61  ;;  %v4727_v39 = vpop.f32.mrf.mxu0  ;;  %v2980_v40 = vadd.f32 %v14057_v54, %v1704_v36  ;;  %v14059_v3 = vld [vmem:[#allocation55_spill] sm:$0xff]  ;;  %v14060_v36 = vld [vmem:[#allocation57_spill] sm:$0xff] }
 0x40b   : > { %v5777_v8 = vpop.f32.mrf.mxu1  ;;  %v1707_v61 = vadd.f32 %v14059_v3, %v14058_v28 }
 0x40c   : > { %7569 = vst.msk [vmem:[%s11426_s22 + $0x68] sm:$0xff] %vm7555_vm2, %v7440_v7  ;;  %v6130_v33 = vadd.f32 %v5774_v1, %v5080_v49  ;;  %8616 = vmatmul.msk.f32.gmra.mxu3 %vm464_vm1, %v11614_v21  ;;  %v11709_v21 = vld [vmem:[%s9637_s16 + $0x160] sm:$0xff] }
 0x40d   : > { %9396 = vmatmul.msk.f32.gmra.mxu2 %vm464_vm1, %v11689_v47  ;;  %8876 = vmatmul.msk.f32.gmra.mxu0 %vm464_vm1, %v11609_v14  ;;  %v11714_v49 = vld [vmem:[%s9637_s16 + $0x5a0] sm:$0xff] }
 0x40e   : > { %9136 = vmatmul.msk.f32.gmra.mxu1 %vm464_vm1, %v11694_v59  ;;  %v7181_v63 = vadd.f32 %v6825_v0, %v6130_v33 }
 0x40f   : > { %v3676_v48 = vpop.f32.mrf.mxu3 }
 0x410   : > { %v6828_v32 = vpop.f32.mrf.mxu2  ;;  %v7313_v1 = vadd.f32 %v11413_v42, %v7181_v63  ;;  %v4030_v57 = vadd.f32 %v3676_v48, %v2980_v40  ;;  %v14061_v48 = vld [vmem:[#allocation58_spill] sm:$0xff] }
 0x412   : > { %v7441_v35 = vmax.f32 %v7313_v1, 0.0  ;;  %v5081_v25 = vadd.f32 %v4727_v39, %v4030_v57  ;;  %v4730_v14 = vpop.f32.mrf.mxu0  ;;  %v2981_v39 = vadd.f32 %v14060_v36, %v1707_v61  ;;  %v14062_v1 = vld [vmem:[#allocation59_spill] sm:$0xff]  ;;  %v14063_v61 = vld [vmem:[#allocation61_spill] sm:$0xff] }
 0x413   : > { %v5780_v7 = vpop.f32.mrf.mxu1  ;;  %v1710_v57 = vadd.f32 %v14062_v1, %v14061_v48 }
 0x414   : > { %7570 = vst.msk [vmem:[%s11426_s22 + $0x70] sm:$0xff] %vm7555_vm2, %v7441_v35  ;;  %v6131_v0 = vadd.f32 %v5777_v8, %v5081_v25  ;;  %8617 = vmatmul.msk.f32.gmra.mxu3 %vm464_vm1, %v11634_v15  ;;  %v11729_v15 = vld [vmem:[%s9637_s16 + $0x168] sm:$0xff] }
 0x415   : > { %9397 = vmatmul.msk.f32.gmra.mxu2 %vm464_vm1, %v11709_v21  ;;  %8877 = vmatmul.msk.f32.gmra.mxu0 %vm464_vm1, %v11629_v9  ;;  %v11734_v25 = vld [vmem:[%s9637_s16 + $0x5a8] sm:$0xff] }
 0x416   : > { %9137 = vmatmul.msk.f32.gmra.mxu1 %vm464_vm1, %v11714_v49  ;;  %v7182_v33 = vadd.f32 %v6828_v32, %v6131_v0 }
 0x417   : > { %v3679_v54 = vpop.f32.mrf.mxu3 }
 0x418   : > { %v6831_v40 = vpop.f32.mrf.mxu2  ;;  %v7314_v8 = vadd.f32 %v11413_v42, %v7182_v33  ;;  %v4031_v63 = vadd.f32 %v3679_v54, %v2981_v39  ;;  %v14064_v54 = vld [vmem:[#allocation62_spill] sm:$0xff] }
 0x41a   : > { %v7442_v28 = vmax.f32 %v7314_v8, 0.0  ;;  %v5082_v3 = vadd.f32 %v4730_v14, %v4031_v63  ;;  %v4733_v9 = vpop.f32.mrf.mxu0  ;;  %v2982_v14 = vadd.f32 %v14063_v61, %v1710_v57  ;;  %v14065_v8 = vld [vmem:[#allocation63_spill] sm:$0xff]  ;;  %v14066_v57 = vld [vmem:[#allocation65_spill] sm:$0xff] }
 0x41b   : > { %v5783_v35 = vpop.f32.mrf.mxu1  ;;  %v1713_v63 = vadd.f32 %v14065_v8, %v14064_v54 }
 0x41c   : > { %7571 = vst.msk [vmem:[%s11426_s22 + $0x78] sm:$0xff] %vm7555_vm2, %v7442_v28  ;;  %v6132_v32 = vadd.f32 %v5780_v7, %v5082_v3  ;;  %8618 = vmatmul.msk.f32.gmra.mxu3 %vm464_vm1, %v11654_v29  ;;  %v11749_v29 = vld [vmem:[%s9637_s16 + $0x170] sm:$0xff] }
 0x41d   : > { %9398 = vmatmul.msk.f32.gmra.mxu2 %vm464_vm1, %v11729_v15  ;;  %8878 = vmatmul.msk.f32.gmra.mxu0 %vm464_vm1, %v11649_v46  ;;  %v11754_v3 = vld [vmem:[%s9637_s16 + $0x5b0] sm:$0xff] }
 0x41e   : > { %9138 = vmatmul.msk.f32.gmra.mxu1 %vm464_vm1, %v11734_v25  ;;  %v7183_v0 = vadd.f32 %v6831_v40, %v6132_v32 }
 0x41f   : > { %v3682_v36 = vpop.f32.mrf.mxu3 }
 0x420   : > { %v6834_v39 = vpop.f32.mrf.mxu2  ;;  %v7315_v7 = vadd.f32 %v11413_v42, %v7183_v0  ;;  %v4032_v33 = vadd.f32 %v3682_v36, %v2982_v14  ;;  %v14067_v36 = vld [vmem:[#allocation66_spill] sm:$0xff] }
 0x422   : > { %v7443_v48 = vmax.f32 %v7315_v7, 0.0  ;;  %v5083_v1 = vadd.f32 %v4733_v9, %v4032_v33  ;;  %v4736_v46 = vpop.f32.mrf.mxu0  ;;  %v2983_v9 = vadd.f32 %v14066_v57, %v1713_v63  ;;  %v14068_v7 = vld [vmem:[#allocation67_spill] sm:$0xff]  ;;  %v14069_v63 = vld [vmem:[#allocation69_spill] sm:$0xff] }
 0x423   : > { %v5786_v28 = vpop.f32.mrf.mxu1  ;;  %v1716_v33 = vadd.f32 %v14068_v7, %v14067_v36 }
 0x424   : > { %7572 = vst.msk [vmem:[%s11426_s22 + $0x80] sm:$0xff] %vm7555_vm2, %v7443_v48  ;;  %v6133_v40 = vadd.f32 %v5783_v35, %v5083_v1  ;;  %8619 = vmatmul.msk.f32.gmra.mxu3 %vm464_vm1, %v11674_v56  ;;  %v11769_v56 = vld [vmem:[%s9637_s16 + $0x178] sm:$0xff] }
 0x425   : > { %9399 = vmatmul.msk.f32.gmra.mxu2 %vm464_vm1, %v11749_v29  ;;  %8879 = vmatmul.msk.f32.gmra.mxu0 %vm464_vm1, %v11669_v11  ;;  %v11774_v1 = vld [vmem:[%s9637_s16 + $0x5b8] sm:$0xff] }
 0x426   : > { %9139 = vmatmul.msk.f32.gmra.mxu1 %vm464_vm1, %v11754_v3  ;;  %v7184_v32 = vadd.f32 %v6834_v39, %v6133_v40 }
 0x427   : > { %v3685_v61 = vpop.f32.mrf.mxu3 }
 0x428   : > { %v6837_v14 = vpop.f32.mrf.mxu2  ;;  %v7316_v35 = vadd.f32 %v11413_v42, %v7184_v32  ;;  %v4033_v0 = vadd.f32 %v3685_v61, %v2983_v9  ;;  %v14070_v61 = vld [vmem:[#allocation70_spill] sm:$0xff] }
 0x42a   : > { %v7444_v54 = vmax.f32 %v7316_v35, 0.0  ;;  %v5084_v8 = vadd.f32 %v4736_v46, %v4033_v0  ;;  %v4739_v11 = vpop.f32.mrf.mxu0  ;;  %v2984_v46 = vadd.f32 %v14069_v63, %v1716_v33  ;;  %v14071_v35 = vld [vmem:[#allocation71_spill] sm:$0xff]  ;;  %v14072_v33 = vld [vmem:[#allocation73_spill] sm:$0xff] }
 0x42b   : > { %v5789_v48 = vpop.f32.mrf.mxu1  ;;  %v1719_v0 = vadd.f32 %v14071_v35, %v14070_v61 }
 0x42c   : > { %7573 = vst.msk [vmem:[%s11426_s22 + $0x88] sm:$0xff] %vm7555_vm2, %v7444_v54  ;;  %v6134_v39 = vadd.f32 %v5786_v28, %v5084_v8  ;;  %8620 = vmatmul.msk.f32.gmra.mxu3 %vm464_vm1, %v11694_v59  ;;  %v11789_v59 = vld [vmem:[%s9637_s16 + $0x180] sm:$0xff] }
 0x42d   : > { %9400 = vmatmul.msk.f32.gmra.mxu2 %vm464_vm1, %v11769_v56  ;;  %8880 = vmatmul.msk.f32.gmra.mxu0 %vm464_vm1, %v11689_v47  ;;  %v11794_v8 = vld [vmem:[%s9637_s16 + $0x5c0] sm:$0xff] }
 0x42e   : > { %9140 = vmatmul.msk.f32.gmra.mxu1 %vm464_vm1, %v11774_v1  ;;  %v7185_v40 = vadd.f32 %v6837_v14, %v6134_v39 }
 0x42f   : > { %v3688_v57 = vpop.f32.mrf.mxu3 }
 0x430   : > { %v6840_v9 = vpop.f32.mrf.mxu2  ;;  %v7317_v28 = vadd.f32 %v11413_v42, %v7185_v40  ;;  %v4034_v32 = vadd.f32 %v3688_v57, %v2984_v46  ;;  %v14073_v57 = vld [vmem:[#allocation74_spill] sm:$0xff] }
 0x432   : > { %v7445_v36 = vmax.f32 %v7317_v28, 0.0  ;;  %v5085_v7 = vadd.f32 %v4739_v11, %v4034_v32  ;;  %v4742_v47 = vpop.f32.mrf.mxu0  ;;  %v2985_v11 = vadd.f32 %v14072_v33, %v1719_v0  ;;  %v14074_v28 = vld [vmem:[#allocation75_spill] sm:$0xff]  ;;  %v14075_v0 = vld [vmem:[#allocation77_spill] sm:$0xff] }
 0x433   : > { %v5792_v54 = vpop.f32.mrf.mxu1  ;;  %v1722_v32 = vadd.f32 %v14074_v28, %v14073_v57 }
 0x434   : > { %7574 = vst.msk [vmem:[%s11426_s22 + $0x90] sm:$0xff] %vm7555_vm2, %v7445_v36  ;;  %v6135_v14 = vadd.f32 %v5789_v48, %v5085_v7  ;;  %8621 = vmatmul.msk.f32.gmra.mxu3 %vm464_vm1, %v11714_v49  ;;  %v11809_v49 = vld [vmem:[%s9637_s16 + $0x188] sm:$0xff] }
 0x435   : > { %9401 = vmatmul.msk.f32.gmra.mxu2 %vm464_vm1, %v11789_v59  ;;  %8881 = vmatmul.msk.f32.gmra.mxu0 %vm464_vm1, %v11709_v21  ;;  %v11814_v7 = vld [vmem:[%s9637_s16 + $0x5c8] sm:$0xff] }
 0x436   : > { %9141 = vmatmul.msk.f32.gmra.mxu1 %vm464_vm1, %v11794_v8  ;;  %v7186_v39 = vadd.f32 %v6840_v9, %v6135_v14 }
 0x437   : > { %v3691_v63 = vpop.f32.mrf.mxu3 }
 0x438   : > { %v6843_v46 = vpop.f32.mrf.mxu2  ;;  %v7318_v48 = vadd.f32 %v11413_v42, %v7186_v39  ;;  %v4035_v40 = vadd.f32 %v3691_v63, %v2985_v11  ;;  %v14076_v63 = vld [vmem:[#allocation78_spill] sm:$0xff] }
 0x43a   : > { %v7446_v61 = vmax.f32 %v7318_v48, 0.0  ;;  %v5086_v35 = vadd.f32 %v4742_v47, %v4035_v40  ;;  %v4745_v21 = vpop.f32.mrf.mxu0  ;;  %v2986_v47 = vadd.f32 %v14075_v0, %v1722_v32  ;;  %v14077_v48 = vld [vmem:[#allocation79_spill] sm:$0xff]  ;;  %v14078_v32 = vld [vmem:[#allocation81_spill] sm:$0xff] }
 0x43b   : > { %v5795_v36 = vpop.f32.mrf.mxu1  ;;  %v1725_v40 = vadd.f32 %v14077_v48, %v14076_v63 }
 0x43c   : > { %7575 = vst.msk [vmem:[%s11426_s22 + $0x98] sm:$0xff] %vm7555_vm2, %v7446_v61  ;;  %v6136_v9 = vadd.f32 %v5792_v54, %v5086_v35  ;;  %8622 = vmatmul.msk.f32.gmra.mxu3 %vm464_vm1, %v11734_v25  ;;  %v11829_v25 = vld [vmem:[%s9637_s16 + $0x190] sm:$0xff] }
 0x43d   : > { %9402 = vmatmul.msk.f32.gmra.mxu2 %vm464_vm1, %v11809_v49  ;;  %8882 = vmatmul.msk.f32.gmra.mxu0 %vm464_vm1, %v11729_v15  ;;  %v11834_v35 = vld [vmem:[%s9637_s16 + $0x5d0] sm:$0xff] }
 0x43e   : > { %9142 = vmatmul.msk.f32.gmra.mxu1 %vm464_vm1, %v11814_v7  ;;  %v7187_v14 = vadd.f32 %v6843_v46, %v6136_v9 }
 0x43f   : > { %v3694_v33 = vpop.f32.mrf.mxu3 }
 0x440   : > { %v6846_v11 = vpop.f32.mrf.mxu2  ;;  %v7319_v54 = vadd.f32 %v11413_v42, %v7187_v14  ;;  %v4036_v39 = vadd.f32 %v3694_v33, %v2986_v47  ;;  %v14079_v33 = vld [vmem:[#allocation82_spill] sm:$0xff] }
 0x442   : > { %v7447_v57 = vmax.f32 %v7319_v54, 0.0  ;;  %v5087_v28 = vadd.f32 %v4745_v21, %v4036_v39  ;;  %v4748_v15 = vpop.f32.mrf.mxu0  ;;  %v2987_v21 = vadd.f32 %v14078_v32, %v1725_v40  ;;  %v14080_v54 = vld [vmem:[#allocation83_spill] sm:$0xff]  ;;  %v14081_v40 = vld [vmem:[#allocation85_spill] sm:$0xff] }
 0x443   : > { %v5798_v61 = vpop.f32.mrf.mxu1  ;;  %v1728_v39 = vadd.f32 %v14080_v54, %v14079_v33 }
 0x444   : > { %7576 = vst.msk [vmem:[%s11426_s22 + $0xa0] sm:$0xff] %vm7555_vm2, %v7447_v57  ;;  %v6137_v46 = vadd.f32 %v5795_v36, %v5087_v28  ;;  %8623 = vmatmul.msk.f32.gmra.mxu3 %vm464_vm1, %v11754_v3  ;;  %v11849_v3 = vld [vmem:[%s9637_s16 + $0x198] sm:$0xff] }
 0x445   : > { %9403 = vmatmul.msk.f32.gmra.mxu2 %vm464_vm1, %v11829_v25  ;;  %8883 = vmatmul.msk.f32.gmra.mxu0 %vm464_vm1, %v11749_v29  ;;  %v11854_v28 = vld [vmem:[%s9637_s16 + $0x5d8] sm:$0xff] }
 0x446   : > { %9143 = vmatmul.msk.f32.gmra.mxu1 %vm464_vm1, %v11834_v35  ;;  %v7188_v9 = vadd.f32 %v6846_v11, %v6137_v46 }
 0x447   : > { %v3697_v0 = vpop.f32.mrf.mxu3 }
 0x448   : > { %v6849_v47 = vpop.f32.mrf.mxu2  ;;  %v7320_v36 = vadd.f32 %v11413_v42, %v7188_v9  ;;  %v4037_v14 = vadd.f32 %v3697_v0, %v2987_v21  ;;  %v14082_v0 = vld [vmem:[#allocation86_spill] sm:$0xff] }
 0x44a   : > { %v7448_v63 = vmax.f32 %v7320_v36, 0.0  ;;  %v5088_v48 = vadd.f32 %v4748_v15, %v4037_v14  ;;  %v4751_v29 = vpop.f32.mrf.mxu0  ;;  %v2988_v15 = vadd.f32 %v14081_v40, %v1728_v39  ;;  %v14083_v36 = vld [vmem:[#allocation87_spill] sm:$0xff]  ;;  %v14084_v39 = vld [vmem:[#allocation89_spill] sm:$0xff] }
 0x44b   : > { %v5801_v57 = vpop.f32.mrf.mxu1  ;;  %v1731_v14 = vadd.f32 %v14083_v36, %v14082_v0 }
 0x44c   : > { %7577 = vst.msk [vmem:[%s11426_s22 + $0xa8] sm:$0xff] %vm7555_vm2, %v7448_v63  ;;  %v6138_v11 = vadd.f32 %v5798_v61, %v5088_v48  ;;  %8624 = vmatmul.msk.f32.gmra.mxu3 %vm464_vm1, %v11774_v1  ;;  %v11869_v1 = vld [vmem:[%s9637_s16 + $0x1a0] sm:$0xff] }
 0x44d   : > { %9404 = vmatmul.msk.f32.gmra.mxu2 %vm464_vm1, %v11849_v3  ;;  %8884 = vmatmul.msk.f32.gmra.mxu0 %vm464_vm1, %v11769_v56  ;;  %v11874_v48 = vld [vmem:[%s9637_s16 + $0x5e0] sm:$0xff] }
 0x44e   : > { %9144 = vmatmul.msk.f32.gmra.mxu1 %vm464_vm1, %v11854_v28  ;;  %v7189_v46 = vadd.f32 %v6849_v47, %v6138_v11 }
 0x44f   : > { %v3700_v32 = vpop.f32.mrf.mxu3 }
 0x450   : > { %v6852_v21 = vpop.f32.mrf.mxu2  ;;  %v7321_v61 = vadd.f32 %v11413_v42, %v7189_v46  ;;  %v4038_v9 = vadd.f32 %v3700_v32, %v2988_v15  ;;  %v14085_v32 = vld [vmem:[#allocation90_spill] sm:$0xff] }
 0x452   : > { %v7449_v33 = vmax.f32 %v7321_v61, 0.0  ;;  %v5089_v54 = vadd.f32 %v4751_v29, %v4038_v9  ;;  %v4754_v56 = vpop.f32.mrf.mxu0  ;;  %v2989_v29 = vadd.f32 %v14084_v39, %v1731_v14  ;;  %v14086_v61 = vld [vmem:[#allocation91_spill] sm:$0xff]  ;;  %v14087_v14 = vld [vmem:[#allocation93_spill] sm:$0xff] }
 0x453   : > { %v5804_v63 = vpop.f32.mrf.mxu1  ;;  %v1734_v9 = vadd.f32 %v14086_v61, %v14085_v32 }
 0x454   : > { %7578 = vst.msk [vmem:[%s11426_s22 + $0xb0] sm:$0xff] %vm7555_vm2, %v7449_v33  ;;  %v6139_v47 = vadd.f32 %v5801_v57, %v5089_v54  ;;  %8625 = vmatmul.msk.f32.gmra.mxu3 %vm464_vm1, %v11794_v8  ;;  %v11889_v8 = vld [vmem:[%s9637_s16 + $0x1a8] sm:$0xff] }
 0x455   : > { %9405 = vmatmul.msk.f32.gmra.mxu2 %vm464_vm1, %v11869_v1  ;;  %8885 = vmatmul.msk.f32.gmra.mxu0 %vm464_vm1, %v11789_v59  ;;  %v11894_v54 = vld [vmem:[%s9637_s16 + $0x5e8] sm:$0xff] }
 0x456   : > { %9145 = vmatmul.msk.f32.gmra.mxu1 %vm464_vm1, %v11874_v48  ;;  %v7190_v11 = vadd.f32 %v6852_v21, %v6139_v47 }
 0x457   : > { %v3703_v40 = vpop.f32.mrf.mxu3 }
 0x458   : > { %v6855_v15 = vpop.f32.mrf.mxu2  ;;  %v7322_v57 = vadd.f32 %v11413_v42, %v7190_v11  ;;  %v4039_v46 = vadd.f32 %v3703_v40, %v2989_v29  ;;  %v14088_v40 = vld [vmem:[#allocation94_spill] sm:$0xff] }
 0x45a   : > { %v7450_v0 = vmax.f32 %v7322_v57, 0.0  ;;  %v5090_v36 = vadd.f32 %v4754_v56, %v4039_v46  ;;  %v4757_v59 = vpop.f32.mrf.mxu0  ;;  %v2990_v56 = vadd.f32 %v14087_v14, %v1734_v9  ;;  %v14089_v57 = vld [vmem:[#allocation95_spill] sm:$0xff]  ;;  %v14090_v9 = vld [vmem:[#allocation97_spill] sm:$0xff] }
 0x45b   : > { %v5807_v33 = vpop.f32.mrf.mxu1  ;;  %v1737_v46 = vadd.f32 %v14089_v57, %v14088_v40 }
 0x45c   : > { %7579 = vst.msk [vmem:[%s11426_s22 + $0xb8] sm:$0xff] %vm7555_vm2, %v7450_v0  ;;  %v6140_v21 = vadd.f32 %v5804_v63, %v5090_v36  ;;  %8626 = vmatmul.msk.f32.gmra.mxu3 %vm464_vm1, %v11814_v7  ;;  %v11909_v7 = vld [vmem:[%s9637_s16 + $0x1b0] sm:$0xff] }
 0x45d   : > { %9406 = vmatmul.msk.f32.gmra.mxu2 %vm464_vm1, %v11889_v8  ;;  %8886 = vmatmul.msk.f32.gmra.mxu0 %vm464_vm1, %v11809_v49  ;;  %v11914_v36 = vld [vmem:[%s9637_s16 + $0x5f0] sm:$0xff] }
 0x45e   : > { %9146 = vmatmul.msk.f32.gmra.mxu1 %vm464_vm1, %v11894_v54  ;;  %v7191_v47 = vadd.f32 %v6855_v15, %v6140_v21 }
 0x45f   : > { %v3706_v39 = vpop.f32.mrf.mxu3 }
 0x460   : > { %v6858_v29 = vpop.f32.mrf.mxu2  ;;  %v7323_v63 = vadd.f32 %v11413_v42, %v7191_v47  ;;  %v4040_v11 = vadd.f32 %v3706_v39, %v2990_v56  ;;  %v14091_v39 = vld [vmem:[#allocation98_spill] sm:$0xff] }
 0x462   : > { %v7451_v32 = vmax.f32 %v7323_v63, 0.0  ;;  %v5091_v61 = vadd.f32 %v4757_v59, %v4040_v11  ;;  %v4760_v49 = vpop.f32.mrf.mxu0  ;;  %v2991_v59 = vadd.f32 %v14090_v9, %v1737_v46  ;;  %v14092_v63 = vld [vmem:[#allocation99_spill] sm:$0xff]  ;;  %v14093_v46 = vld [vmem:[#allocation101_spill] sm:$0xff] }
 0x463   : > { %v5810_v0 = vpop.f32.mrf.mxu1  ;;  %v1740_v11 = vadd.f32 %v14092_v63, %v14091_v39 }
 0x464   : > { %7580 = vst.msk [vmem:[%s11426_s22 + $0xc0] sm:$0xff] %vm7555_vm2, %v7451_v32  ;;  %v6141_v15 = vadd.f32 %v5807_v33, %v5091_v61  ;;  %8627 = vmatmul.msk.f32.gmra.mxu3 %vm464_vm1, %v11834_v35  ;;  %v11929_v35 = vld [vmem:[%s9637_s16 + $0x1b8] sm:$0xff] }
 0x465   : > { %9407 = vmatmul.msk.f32.gmra.mxu2 %vm464_vm1, %v11909_v7  ;;  %8887 = vmatmul.msk.f32.gmra.mxu0 %vm464_vm1, %v11829_v25  ;;  %v11934_v61 = vld [vmem:[%s9637_s16 + $0x5f8] sm:$0xff] }
 0x466   : > { %9147 = vmatmul.msk.f32.gmra.mxu1 %vm464_vm1, %v11914_v36  ;;  %v7192_v21 = vadd.f32 %v6858_v29, %v6141_v15 }
 0x467   : > { %v3709_v14 = vpop.f32.mrf.mxu3 }
 0x468   : > { %v6861_v56 = vpop.f32.mrf.mxu2  ;;  %v7324_v33 = vadd.f32 %v11413_v42, %v7192_v21  ;;  %v4041_v47 = vadd.f32 %v3709_v14, %v2991_v59  ;;  %v14094_v14 = vld [vmem:[#allocation102_spill] sm:$0xff] }
 0x46a   : > { %v7452_v40 = vmax.f32 %v7324_v33, 0.0  ;;  %v5092_v57 = vadd.f32 %v4760_v49, %v4041_v47  ;;  %v4763_v25 = vpop.f32.mrf.mxu0  ;;  %v2992_v49 = vadd.f32 %v14093_v46, %v1740_v11  ;;  %v14095_v33 = vld [vmem:[#allocation103_spill] sm:$0xff] }
 0x46b   : > { %v5813_v32 = vpop.f32.mrf.mxu1  ;;  %v1743_v47 = vadd.f32 %v14095_v33, %v14094_v14 }
 0x46c   : > { %7581 = vst.msk [vmem:[%s11426_s22 + $0xc8] sm:$0xff] %vm7555_vm2, %v7452_v40  ;;  %v6142_v29 = vadd.f32 %v5810_v0, %v5092_v57  ;;  %8628 = vmatmul.msk.f32.gmra.mxu3 %vm464_vm1, %v11854_v28  ;;  %v11949_v28 = vld [vmem:[%s9637_s16 + $0x1c0] sm:$0xff] }
 0x46d   : > { %9408 = vmatmul.msk.f32.gmra.mxu2 %vm464_vm1, %v11929_v35  ;;  %8888 = vmatmul.msk.f32.gmra.mxu0 %vm464_vm1, %v11849_v3  ;;  %v11954_v57 = vld [vmem:[%s9637_s16 + $0x600] sm:$0xff] }
 0x46e   : > { %9148 = vmatmul.msk.f32.gmra.mxu1 %vm464_vm1, %v11934_v61  ;;  %v7193_v15 = vadd.f32 %v6861_v56, %v6142_v29 }
 0x46f   : > { %v3712_v9 = vpop.f32.mrf.mxu3 }
 0x470   : > { %v6864_v59 = vpop.f32.mrf.mxu2  ;;  %v7325_v0 = vadd.f32 %v11413_v42, %v7193_v15  ;;  %v4042_v21 = vadd.f32 %v3712_v9, %v2992_v49  ;;  %v14096_v42 = vld [vmem:[#allocation105_spill] sm:$0xff]  ;;  %v11974_v15 = vld [vmem:[%s9637_s16 + $0x1c8] sm:$0xff] }
 0x471   : > { %v2993_v11 = vadd.f32 %v14096_v42, %v1743_v47  ;;  %v14098_v9 = vld [vmem:[#allocation107_spill] sm:$0xff] }
 0x472   : > { %v7453_v39 = vmax.f32 %v7325_v0, 0.0  ;;  %v5093_v63 = vadd.f32 %v4763_v25, %v4042_v21  ;;  %v4766_v40 = vpop.f32.mrf.mxu0  ;;  %v11979_v47 = vld [vmem:[%s9637_s16 + $0x608] sm:$0xff] }
 0x473   : > { %v5816_v3 = vpop.f32.mrf.mxu1 }
 0x474   : > { %7582 = vst.msk [vmem:[%s11426_s22 + $0xd0] sm:$0xff] %vm7555_vm2, %v7453_v39  ;;  %v6143_v56 = vadd.f32 %v5813_v32, %v5093_v63  ;;  %8629 = vmatmul.msk.f32.gmra.mxu3 %vm464_vm1, %v11874_v48  ;;  %v11970_v48 = vld [vmem:[%s13672_s2] ss:$0 sm:$0xff]  ;;  %v14099_v63 = vld [vmem:[#allocation109_spill] sm:$0xff] }
 0x475   : > { %9409 = vmatmul.msk.f32.gmra.mxu2 %vm464_vm1, %v11949_v28  ;;  %8889 = vmatmul.msk.f32.gmra.mxu0 %vm464_vm1, %v11869_v1  ;;  %v14097_v1 = vld [vmem:[#allocation106_spill] sm:$0xff] }
 0x476   : > { %9149 = vmatmul.msk.f32.gmra.mxu1 %vm464_vm1, %v11954_v57  ;;  %v7194_v25 = vadd.f32 %v6864_v59, %v6143_v56  ;;  %v1746_v0 = vadd.f32 %v14098_v9, %v14097_v1 }
 0x477   : > { %v3715_v29 = vpop.f32.mrf.mxu3 }
 0x478   : > { %v6867_v46 = vpop.f32.mrf.mxu2  ;;  %v7326_v32 = vadd.f32 %v11970_v48, %v7194_v25  ;;  %v4043_v49 = vadd.f32 %v3715_v29, %v2993_v11  ;;  %v14100_v29 = vld [vmem:[#allocation110_spill] sm:$0xff] }
 0x47a   : > { %v7454_v21 = vmax.f32 %v7326_v32, 0.0  ;;  %v5094_v14 = vadd.f32 %v4766_v40, %v4043_v49  ;;  %v4769_v33 = vpop.f32.mrf.mxu0  ;;  %v2994_v40 = vadd.f32 %v14099_v63, %v1746_v0  ;;  %v14101_v32 = vld [vmem:[#allocation111_spill] sm:$0xff]  ;;  %v14102_v0 = vld [vmem:[#allocation113_spill] sm:$0xff] }
 0x47b   : > { %v5819_v59 = vpop.f32.mrf.mxu1  ;;  %v1749_v49 = vadd.f32 %v14101_v32, %v14100_v29 }
 0x47c   : > { %7583 = vst.msk [vmem:[%s11426_s22 + $0xd8] sm:$0xff] %vm7555_vm2, %v7454_v21  ;;  %v6144_v39 = vadd.f32 %v5816_v3, %v5094_v14  ;;  %8630 = vmatmul.msk.f32.gmra.mxu3 %vm464_vm1, %v11894_v54  ;;  %v11994_v54 = vld [vmem:[%s9637_s16 + $0x1d0] sm:$0xff] }
 0x47d   : > { %9410 = vmatmul.msk.f32.gmra.mxu2 %vm464_vm1, %v11974_v15  ;;  %8890 = vmatmul.msk.f32.gmra.mxu0 %vm464_vm1, %v11889_v8  ;;  %v11999_v14 = vld [vmem:[%s9637_s16 + $0x610] sm:$0xff] }
 0x47e   : > { %9150 = vmatmul.msk.f32.gmra.mxu1 %vm464_vm1, %v11979_v47  ;;  %v7195_v56 = vadd.f32 %v6867_v46, %v6144_v39 }
 0x47f   : > { %v3718_v42 = vpop.f32.mrf.mxu3 }
 0x480   : > { %v6870_v11 = vpop.f32.mrf.mxu2  ;;  %v7327_v3 = vadd.f32 %v11970_v48, %v7195_v56  ;;  %v4044_v25 = vadd.f32 %v3718_v42, %v2994_v40  ;;  %v14103_v42 = vld [vmem:[#allocation114_spill] sm:$0xff] }
 0x482   : > { %v7455_v1 = vmax.f32 %v7327_v3, 0.0  ;;  %v5095_v9 = vadd.f32 %v4769_v33, %v4044_v25  ;;  %v4772_v8 = vpop.f32.mrf.mxu0  ;;  %v2995_v33 = vadd.f32 %v14102_v0, %v1749_v49  ;;  %v14104_v3 = vld [vmem:[#allocation115_spill] sm:$0xff]  ;;  %v14105_v49 = vld [vmem:[#allocation117_spill] sm:$0xff] }
 0x483   : > { %v5822_v21 = vpop.f32.mrf.mxu1  ;;  %v1752_v25 = vadd.f32 %v14104_v3, %v14103_v42 }
 0x484   : > { %7584 = vst.msk [vmem:[%s11426_s22 + $0xe0] sm:$0xff] %vm7555_vm2, %v7455_v1  ;;  %v6145_v46 = vadd.f32 %v5819_v59, %v5095_v9  ;;  %8631 = vmatmul.msk.f32.gmra.mxu3 %vm464_vm1, %v11914_v36  ;;  %v12014_v36 = vld [vmem:[%s9637_s16 + $0x1d8] sm:$0xff] }
 0x485   : > { %9411 = vmatmul.msk.f32.gmra.mxu2 %vm464_vm1, %v11994_v54  ;;  %8891 = vmatmul.msk.f32.gmra.mxu0 %vm464_vm1, %v11909_v7  ;;  %v12019_v9 = vld [vmem:[%s9637_s16 + $0x618] sm:$0xff] }
 0x486   : > { %9151 = vmatmul.msk.f32.gmra.mxu1 %vm464_vm1, %v11999_v14  ;;  %v7196_v39 = vadd.f32 %v6870_v11, %v6145_v46 }
 0x487   : > { %v3721_v63 = vpop.f32.mrf.mxu3 }
 0x488   : > { %v6873_v40 = vpop.f32.mrf.mxu2  ;;  %v7328_v59 = vadd.f32 %v11970_v48, %v7196_v39  ;;  %v4045_v56 = vadd.f32 %v3721_v63, %v2995_v33  ;;  %v14106_v63 = vld [vmem:[#allocation118_spill] sm:$0xff] }
 0x48a   : > { %v7456_v29 = vmax.f32 %v7328_v59, 0.0  ;;  %v5096_v32 = vadd.f32 %v4772_v8, %v4045_v56  ;;  %v4775_v7 = vpop.f32.mrf.mxu0  ;;  %v2996_v8 = vadd.f32 %v14105_v49, %v1752_v25  ;;  %v14107_v59 = vld [vmem:[#allocation119_spill] sm:$0xff]  ;;  %v14108_v25 = vld [vmem:[#allocation120_spill] sm:$0xff] }
 0x48b   : > { %v5825_v1 = vpop.f32.mrf.mxu1  ;;  %v1755_v56 = vadd.f32 %v14107_v59, %v14106_v63 }
 0x48c   : > { %7585 = vst.msk [vmem:[%s11426_s22 + $0xe8] sm:$0xff] %vm7555_vm2, %v7456_v29  ;;  %v6146_v11 = vadd.f32 %v5822_v21, %v5096_v32  ;;  %8632 = vmatmul.msk.f32.gmra.mxu3 %vm464_vm1, %v11934_v61  ;;  %v12034_v61 = vld [vmem:[%s9637_s16 + $0x1e0] sm:$0xff] }
 0x48d   : > { %9412 = vmatmul.msk.f32.gmra.mxu2 %vm464_vm1, %v12014_v36  ;;  %8892 = vmatmul.msk.f32.gmra.mxu0 %vm464_vm1, %v11929_v35  ;;  %v12039_v32 = vld [vmem:[%s9637_s16 + $0x620] sm:$0xff] }
 0x48e   : > { %9152 = vmatmul.msk.f32.gmra.mxu1 %vm464_vm1, %v12019_v9  ;;  %v7197_v46 = vadd.f32 %v6873_v40, %v6146_v11 }
 0x48f   : > { %v3724_v0 = vpop.f32.mrf.mxu3 }
 0x490   : > { %v6876_v33 = vpop.f32.mrf.mxu2  ;;  %v7329_v21 = vadd.f32 %v11970_v48, %v7197_v46  ;;  %v4046_v39 = vadd.f32 %v3724_v0, %v2996_v8  ;;  %v14109_v0 = vld [vmem:[#allocation121_spill] sm:$0xff] }
 0x492   : > { %v7457_v42 = vmax.f32 %v7329_v21, 0.0  ;;  %v5097_v3 = vadd.f32 %v4775_v7, %v4046_v39  ;;  %v4778_v35 = vpop.f32.mrf.mxu0  ;;  %v2997_v7 = vadd.f32 %v14108_v25, %v1755_v56  ;;  %v14110_v21 = vld [vmem:[#allocation122_spill] sm:$0xff]  ;;  %v14111_v56 = vld [vmem:[#allocation123_spill] sm:$0xff] }
 0x493   : > { %v5828_v29 = vpop.f32.mrf.mxu1  ;;  %v1758_v39 = vadd.f32 %v14110_v21, %v14109_v0 }
 0x494   : > { %7586 = vst.msk [vmem:[%s11426_s22 + $0xf0] sm:$0xff] %vm7555_vm2, %v7457_v42  ;;  %v6147_v40 = vadd.f32 %v5825_v1, %v5097_v3  ;;  %8633 = vmatmul.msk.f32.gmra.mxu3 %vm464_vm1, %v11954_v57  ;;  %v12054_v57 = vld [vmem:[%s9637_s16 + $0x1e8] sm:$0xff] }
 0x495   : > { %9413 = vmatmul.msk.f32.gmra.mxu2 %vm464_vm1, %v12034_v61  ;;  %8893 = vmatmul.msk.f32.gmra.mxu0 %vm464_vm1, %v11949_v28  ;;  %v12059_v3 = vld [vmem:[%s9637_s16 + $0x628] sm:$0xff] }
 0x496   : > { %9153 = vmatmul.msk.f32.gmra.mxu1 %vm464_vm1, %v12039_v32  ;;  %v7198_v11 = vadd.f32 %v6876_v33, %v6147_v40 }
 0x497   : > { %v3727_v49 = vpop.f32.mrf.mxu3 }
 0x498   : > { %v6879_v8 = vpop.f32.mrf.mxu2  ;;  %v7330_v1 = vadd.f32 %v11970_v48, %v7198_v11  ;;  %v4047_v46 = vadd.f32 %v3727_v49, %v2997_v7  ;;  %v14112_v49 = vld [vmem:[#allocation124_spill] sm:$0xff] }
 0x49a   : > { %v7458_v63 = vmax.f32 %v7330_v1, 0.0  ;;  %v5098_v59 = vadd.f32 %v4778_v35, %v4047_v46  ;;  %v4781_v28 = vpop.f32.mrf.mxu0  ;;  %v2998_v35 = vadd.f32 %v14111_v56, %v1758_v39  ;;  %v14113_v1 = vld [vmem:[#allocation125_spill] sm:$0xff]  ;;  %v14114_v39 = vld [vmem:[#allocation126_spill] sm:$0xff] }
 0x49b   : > { %v5831_v42 = vpop.f32.mrf.mxu1  ;;  %v1761_v46 = vadd.f32 %v14113_v1, %v14112_v49 }
 0x49c   : > { %7587 = vst.msk [vmem:[%s11426_s22 + $0xf8] sm:$0xff] %vm7555_vm2, %v7458_v63  ;;  %v6148_v33 = vadd.f32 %v5828_v29, %v5098_v59  ;;  %8634 = vmatmul.msk.f32.gmra.mxu3 %vm464_vm1, %v11979_v47  ;;  %v12074_v47 = vld [vmem:[%s9637_s16 + $0x1f0] sm:$0xff] }
 0x49d   : > { %9414 = vmatmul.msk.f32.gmra.mxu2 %vm464_vm1, %v12054_v57  ;;  %8894 = vmatmul.msk.f32.gmra.mxu0 %vm464_vm1, %v11974_v15  ;;  %v12079_v59 = vld [vmem:[%s9637_s16 + $0x630] sm:$0xff] }
 0x49e   : > { %9154 = vmatmul.msk.f32.gmra.mxu1 %vm464_vm1, %v12059_v3  ;;  %v7199_v40 = vadd.f32 %v6879_v8, %v6148_v33 }
 0x49f   : > { %v3730_v25 = vpop.f32.mrf.mxu3 }
 0x4a0   : > { %v6882_v7 = vpop.f32.mrf.mxu2  ;;  %v7331_v29 = vadd.f32 %v11970_v48, %v7199_v40  ;;  %v4048_v11 = vadd.f32 %v3730_v25, %v2998_v35  ;;  %v14115_v25 = vld [vmem:[#allocation127_spill] sm:$0xff] }
 0x4a2   : > { %v7459_v0 = vmax.f32 %v7331_v29, 0.0  ;;  %v5099_v21 = vadd.f32 %v4781_v28, %v4048_v11  ;;  %v4784_v15 = vpop.f32.mrf.mxu0  ;;  %v2999_v28 = vadd.f32 %v14114_v39, %v1761_v46  ;;  %v14116_v29 = vld [vmem:[#allocation128_spill] sm:$0xff]  ;;  %v14117_v46 = vld [vmem:[#allocation129_spill] sm:$0xff] }
 0x4a3   : > { %v5834_v63 = vpop.f32.mrf.mxu1  ;;  %v1764_v11 = vadd.f32 %v14116_v29, %v14115_v25 }
 0x4a4   : > { %7588 = vst.msk [vmem:[%s11426_s22 + $0x100] sm:$0xff] %vm7555_vm2, %v7459_v0  ;;  %v6149_v8 = vadd.f32 %v5831_v42, %v5099_v21  ;;  %8635 = vmatmul.msk.f32.gmra.mxu3 %vm464_vm1, %v11999_v14  ;;  %v12094_v14 = vld [vmem:[%s9637_s16 + $0x1f8] sm:$0xff] }
 0x4a5   : > { %9415 = vmatmul.msk.f32.gmra.mxu2 %vm464_vm1, %v12074_v47  ;;  %8895 = vmatmul.msk.f32.gmra.mxu0 %vm464_vm1, %v11994_v54  ;;  %v12099_v21 = vld [vmem:[%s9637_s16 + $0x638] sm:$0xff] }
 0x4a6   : > { %9155 = vmatmul.msk.f32.gmra.mxu1 %vm464_vm1, %v12079_v59  ;;  %v7200_v33 = vadd.f32 %v6882_v7, %v6149_v8 }
 0x4a7   : > { %v3733_v56 = vpop.f32.mrf.mxu3 }
 0x4a8   : > { %v6885_v35 = vpop.f32.mrf.mxu2  ;;  %v7332_v42 = vadd.f32 %v11970_v48, %v7200_v33  ;;  %v4049_v40 = vadd.f32 %v3733_v56, %v2999_v28  ;;  %v14118_v56 = vld [vmem:[#allocation130_spill] sm:$0xff] }
 0x4aa   : > { %v7460_v49 = vmax.f32 %v7332_v42, 0.0  ;;  %v5100_v1 = vadd.f32 %v4784_v15, %v4049_v40  ;;  %v4787_v54 = vpop.f32.mrf.mxu0  ;;  %v3000_v15 = vadd.f32 %v14117_v46, %v1764_v11  ;;  %v14119_v42 = vld [vmem:[#allocation131_spill] sm:$0xff]  ;;  %v14120_v11 = vld [vmem:[#allocation132_spill] sm:$0xff] }
 0x4ab   : > { %v5837_v0 = vpop.f32.mrf.mxu1  ;;  %v1767_v40 = vadd.f32 %v14119_v42, %v14118_v56 }
 0x4ac   : > { %7589 = vst.msk [vmem:[%s11426_s22 + $0x108] sm:$0xff] %vm7555_vm2, %v7460_v49  ;;  %v6150_v7 = vadd.f32 %v5834_v63, %v5100_v1  ;;  %8636 = vmatmul.msk.f32.gmra.mxu3 %vm464_vm1, %v12019_v9  ;;  %v12114_v9 = vld [vmem:[%s9637_s16 + $0x200] sm:$0xff] }
 0x4ad   : > { %9416 = vmatmul.msk.f32.gmra.mxu2 %vm464_vm1, %v12094_v14  ;;  %8896 = vmatmul.msk.f32.gmra.mxu0 %vm464_vm1, %v12014_v36  ;;  %v12119_v1 = vld [vmem:[%s9637_s16 + $0x640] sm:$0xff] }
 0x4ae   : > { %9156 = vmatmul.msk.f32.gmra.mxu1 %vm464_vm1, %v12099_v21  ;;  %v7201_v8 = vadd.f32 %v6885_v35, %v6150_v7 }
 0x4af   : > { %v3736_v39 = vpop.f32.mrf.mxu3 }
 0x4b0   : > { %v6888_v28 = vpop.f32.mrf.mxu2  ;;  %v7333_v63 = vadd.f32 %v11970_v48, %v7201_v8  ;;  %v4050_v33 = vadd.f32 %v3736_v39, %v3000_v15  ;;  %v14121_v39 = vld [vmem:[#allocation133_spill] sm:$0xff] }
 0x4b2   : > { %v7461_v25 = vmax.f32 %v7333_v63, 0.0  ;;  %v5101_v29 = vadd.f32 %v4787_v54, %v4050_v33  ;;  %v4790_v36 = vpop.f32.mrf.mxu0  ;;  %v3001_v54 = vadd.f32 %v14120_v11, %v1767_v40  ;;  %v14122_v63 = vld [vmem:[#allocation134_spill] sm:$0xff]  ;;  %v14123_v40 = vld [vmem:[#allocation135_spill] sm:$0xff] }
 0x4b3   : > { %v5840_v49 = vpop.f32.mrf.mxu1  ;;  %v1770_v33 = vadd.f32 %v14122_v63, %v14121_v39 }
 0x4b4   : > { %7590 = vst.msk [vmem:[%s11426_s22 + $0x110] sm:$0xff] %vm7555_vm2, %v7461_v25  ;;  %v6151_v35 = vadd.f32 %v5837_v0, %v5101_v29  ;;  %8637 = vmatmul.msk.f32.gmra.mxu3 %vm464_vm1, %v12039_v32  ;;  %v12134_v32 = vld [vmem:[%s9637_s16 + $0x208] sm:$0xff] }
 0x4b5   : > { %9417 = vmatmul.msk.f32.gmra.mxu2 %vm464_vm1, %v12114_v9  ;;  %8897 = vmatmul.msk.f32.gmra.mxu0 %vm464_vm1, %v12034_v61  ;;  %v12139_v29 = vld [vmem:[%s9637_s16 + $0x648] sm:$0xff] }
 0x4b6   : > { %9157 = vmatmul.msk.f32.gmra.mxu1 %vm464_vm1, %v12119_v1  ;;  %v7202_v7 = vadd.f32 %v6888_v28, %v6151_v35 }
 0x4b7   : > { %v3739_v46 = vpop.f32.mrf.mxu3 }
 0x4b8   : > { %v6891_v15 = vpop.f32.mrf.mxu2  ;;  %v7334_v0 = vadd.f32 %v11970_v48, %v7202_v7  ;;  %v4051_v8 = vadd.f32 %v3739_v46, %v3001_v54  ;;  %v14124_v46 = vld [vmem:[#allocation136_spill] sm:$0xff] }
 0x4ba   : > { %v7462_v56 = vmax.f32 %v7334_v0, 0.0  ;;  %v5102_v42 = vadd.f32 %v4790_v36, %v4051_v8  ;;  %v4793_v61 = vpop.f32.mrf.mxu0  ;;  %v3002_v36 = vadd.f32 %v14123_v40, %v1770_v33  ;;  %v14125_v0 = vld [vmem:[#allocation137_spill] sm:$0xff]  ;;  %v14126_v33 = vld [vmem:[#allocation138_spill] sm:$0xff] }
 0x4bb   : > { %v5843_v25 = vpop.f32.mrf.mxu1  ;;  %v1773_v8 = vadd.f32 %v14125_v0, %v14124_v46 }
 0x4bc   : > { %7591 = vst.msk [vmem:[%s11426_s22 + $0x118] sm:$0xff] %vm7555_vm2, %v7462_v56  ;;  %v6152_v28 = vadd.f32 %v5840_v49, %v5102_v42  ;;  %8638 = vmatmul.msk.f32.gmra.mxu3 %vm464_vm1, %v12059_v3  ;;  %v12154_v3 = vld [vmem:[%s9637_s16 + $0x210] sm:$0xff] }
 0x4bd   : > { %9418 = vmatmul.msk.f32.gmra.mxu2 %vm464_vm1, %v12134_v32  ;;  %8898 = vmatmul.msk.f32.gmra.mxu0 %vm464_vm1, %v12054_v57  ;;  %v12159_v42 = vld [vmem:[%s9637_s16 + $0x650] sm:$0xff] }
 0x4be   : > { %9158 = vmatmul.msk.f32.gmra.mxu1 %vm464_vm1, %v12139_v29  ;;  %v7203_v35 = vadd.f32 %v6891_v15, %v6152_v28 }
 0x4bf   : > { %v3742_v11 = vpop.f32.mrf.mxu3 }
 0x4c0   : > { %v6894_v54 = vpop.f32.mrf.mxu2  ;;  %v7335_v49 = vadd.f32 %v11970_v48, %v7203_v35  ;;  %v4052_v7 = vadd.f32 %v3742_v11, %v3002_v36  ;;  %v14127_v11 = vld [vmem:[#allocation139_spill] sm:$0xff] }
 0x4c2   : > { %v7463_v39 = vmax.f32 %v7335_v49, 0.0  ;;  %v5103_v63 = vadd.f32 %v4793_v61, %v4052_v7  ;;  %v4796_v57 = vpop.f32.mrf.mxu0  ;;  %v3003_v61 = vadd.f32 %v14126_v33, %v1773_v8  ;;  %v14128_v49 = vld [vmem:[#allocation140_spill] sm:$0xff]  ;;  %v14129_v8 = vld [vmem:[#allocation141_spill] sm:$0xff] }
 0x4c3   : > { %v5846_v56 = vpop.f32.mrf.mxu1  ;;  %v1776_v7 = vadd.f32 %v14128_v49, %v14127_v11 }
 0x4c4   : > { %7592 = vst.msk [vmem:[%s11426_s22 + $0x120] sm:$0xff] %vm7555_vm2, %v7463_v39  ;;  %v6153_v15 = vadd.f32 %v5843_v25, %v5103_v63  ;;  %8639 = vmatmul.msk.f32.gmra.mxu3 %vm464_vm1, %v12079_v59  ;;  %v12174_v59 = vld [vmem:[%s9637_s16 + $0x218] sm:$0xff] }
 0x4c5   : > { %9419 = vmatmul.msk.f32.gmra.mxu2 %vm464_vm1, %v12154_v3  ;;  %8899 = vmatmul.msk.f32.gmra.mxu0 %vm464_vm1, %v12074_v47  ;;  %v12179_v63 = vld [vmem:[%s9637_s16 + $0x658] sm:$0xff] }
 0x4c6   : > { %9159 = vmatmul.msk.f32.gmra.mxu1 %vm464_vm1, %v12159_v42  ;;  %v7204_v28 = vadd.f32 %v6894_v54, %v6153_v15 }
 0x4c7   : > { %v3745_v40 = vpop.f32.mrf.mxu3 }
 0x4c8   : > { %v6897_v36 = vpop.f32.mrf.mxu2  ;;  %v7336_v25 = vadd.f32 %v11970_v48, %v7204_v28  ;;  %v4053_v35 = vadd.f32 %v3745_v40, %v3003_v61  ;;  %v14130_v40 = vld [vmem:[#allocation142_spill] sm:$0xff] }
 0x4ca   : > { %v7464_v46 = vmax.f32 %v7336_v25, 0.0  ;;  %v5104_v0 = vadd.f32 %v4796_v57, %v4053_v35  ;;  %v4799_v47 = vpop.f32.mrf.mxu0  ;;  %v3004_v57 = vadd.f32 %v14129_v8, %v1776_v7  ;;  %v14131_v25 = vld [vmem:[#allocation143_spill] sm:$0xff]  ;;  %v14132_v7 = vld [vmem:[#allocation144_spill] sm:$0xff] }
 0x4cb   : > { %v5849_v39 = vpop.f32.mrf.mxu1  ;;  %v1779_v35 = vadd.f32 %v14131_v25, %v14130_v40 }
 0x4cc   : > { %7593 = vst.msk [vmem:[%s11426_s22 + $0x128] sm:$0xff] %vm7555_vm2, %v7464_v46  ;;  %v6154_v54 = vadd.f32 %v5846_v56, %v5104_v0  ;;  %8640 = vmatmul.msk.f32.gmra.mxu3 %vm464_vm1, %v12099_v21  ;;  %v12194_v21 = vld [vmem:[%s9637_s16 + $0x220] sm:$0xff] }
 0x4cd   : > { %9420 = vmatmul.msk.f32.gmra.mxu2 %vm464_vm1, %v12174_v59  ;;  %8900 = vmatmul.msk.f32.gmra.mxu0 %vm464_vm1, %v12094_v14  ;;  %v12199_v0 = vld [vmem:[%s9637_s16 + $0x660] sm:$0xff] }
 0x4ce   : > { %9160 = vmatmul.msk.f32.gmra.mxu1 %vm464_vm1, %v12179_v63  ;;  %v7205_v15 = vadd.f32 %v6897_v36, %v6154_v54 }
 0x4cf   : > { %v3748_v33 = vpop.f32.mrf.mxu3 }
 0x4d0   : > { %v6900_v61 = vpop.f32.mrf.mxu2  ;;  %v7337_v56 = vadd.f32 %v11970_v48, %v7205_v15  ;;  %v4054_v28 = vadd.f32 %v3748_v33, %v3004_v57  ;;  %v14133_v33 = vld [vmem:[#allocation145_spill] sm:$0xff] }
 0x4d2   : > { %v7465_v11 = vmax.f32 %v7337_v56, 0.0  ;;  %v5105_v49 = vadd.f32 %v4799_v47, %v4054_v28  ;;  %v4802_v14 = vpop.f32.mrf.mxu0  ;;  %v3005_v47 = vadd.f32 %v14132_v7, %v1779_v35  ;;  %v14134_v56 = vld [vmem:[#allocation146_spill] sm:$0xff]  ;;  %v14135_v35 = vld [vmem:[#allocation147_spill] sm:$0xff] }
 0x4d3   : > { %v5852_v46 = vpop.f32.mrf.mxu1  ;;  %v1782_v28 = vadd.f32 %v14134_v56, %v14133_v33 }
 0x4d4   : > { %7594 = vst.msk [vmem:[%s11426_s22 + $0x130] sm:$0xff] %vm7555_vm2, %v7465_v11  ;;  %v6155_v36 = vadd.f32 %v5849_v39, %v5105_v49  ;;  %8641 = vmatmul.msk.f32.gmra.mxu3 %vm464_vm1, %v12119_v1  ;;  %v12214_v1 = vld [vmem:[%s9637_s16 + $0x228] sm:$0xff] }
 0x4d5   : > { %9421 = vmatmul.msk.f32.gmra.mxu2 %vm464_vm1, %v12194_v21  ;;  %8901 = vmatmul.msk.f32.gmra.mxu0 %vm464_vm1, %v12114_v9  ;;  %v12219_v49 = vld [vmem:[%s9637_s16 + $0x668] sm:$0xff] }
 0x4d6   : > { %9161 = vmatmul.msk.f32.gmra.mxu1 %vm464_vm1, %v12199_v0  ;;  %v7206_v54 = vadd.f32 %v6900_v61, %v6155_v36 }
 0x4d7   : > { %v3751_v8 = vpop.f32.mrf.mxu3 }
 0x4d8   : > { %v6903_v57 = vpop.f32.mrf.mxu2  ;;  %v7338_v39 = vadd.f32 %v11970_v48, %v7206_v54  ;;  %v4055_v15 = vadd.f32 %v3751_v8, %v3005_v47  ;;  %v14136_v8 = vld [vmem:[#allocation148_spill] sm:$0xff] }
 0x4da   : > { %v7466_v40 = vmax.f32 %v7338_v39, 0.0  ;;  %v5106_v25 = vadd.f32 %v4802_v14, %v4055_v15  ;;  %v4805_v9 = vpop.f32.mrf.mxu0  ;;  %v3006_v14 = vadd.f32 %v14135_v35, %v1782_v28  ;;  %v14137_v39 = vld [vmem:[#allocation149_spill] sm:$0xff]  ;;  %v14138_v28 = vld [vmem:[#allocation150_spill] sm:$0xff] }
 0x4db   : > { %v5855_v11 = vpop.f32.mrf.mxu1  ;;  %v1785_v15 = vadd.f32 %v14137_v39, %v14136_v8 }
 0x4dc   : > { %7595 = vst.msk [vmem:[%s11426_s22 + $0x138] sm:$0xff] %vm7555_vm2, %v7466_v40  ;;  %v6156_v61 = vadd.f32 %v5852_v46, %v5106_v25  ;;  %8642 = vmatmul.msk.f32.gmra.mxu3 %vm464_vm1, %v12139_v29  ;;  %v12234_v29 = vld [vmem:[%s9637_s16 + $0x230] sm:$0xff] }
 0x4dd   : > { %9422 = vmatmul.msk.f32.gmra.mxu2 %vm464_vm1, %v12214_v1  ;;  %8902 = vmatmul.msk.f32.gmra.mxu0 %vm464_vm1, %v12134_v32  ;;  %v12239_v25 = vld [vmem:[%s9637_s16 + $0x670] sm:$0xff] }
 0x4de   : > { %9162 = vmatmul.msk.f32.gmra.mxu1 %vm464_vm1, %v12219_v49  ;;  %v7207_v36 = vadd.f32 %v6903_v57, %v6156_v61 }
 0x4df   : > { %v3754_v7 = vpop.f32.mrf.mxu3 }
 0x4e0   : > { %v6906_v47 = vpop.f32.mrf.mxu2  ;;  %v7339_v46 = vadd.f32 %v11970_v48, %v7207_v36  ;;  %v4056_v54 = vadd.f32 %v3754_v7, %v3006_v14  ;;  %v14139_v7 = vld [vmem:[#allocation151_spill] sm:$0xff] }
 0x4e2   : > { %v7467_v33 = vmax.f32 %v7339_v46, 0.0  ;;  %v5107_v56 = vadd.f32 %v4805_v9, %v4056_v54  ;;  %v4808_v32 = vpop.f32.mrf.mxu0  ;;  %v3007_v9 = vadd.f32 %v14138_v28, %v1785_v15  ;;  %v14140_v46 = vld [vmem:[#allocation152_spill] sm:$0xff]  ;;  %v14141_v15 = vld [vmem:[#allocation154_spill] sm:$0xff] }
 0x4e3   : > { %v5858_v40 = vpop.f32.mrf.mxu1  ;;  %v1788_v54 = vadd.f32 %v14140_v46, %v14139_v7 }
 0x4e4   : > { %7596 = vst.msk [vmem:[%s11426_s22 + $0x140] sm:$0xff] %vm7555_vm2, %v7467_v33  ;;  %v6157_v57 = vadd.f32 %v5855_v11, %v5107_v56  ;;  %8643 = vmatmul.msk.f32.gmra.mxu3 %vm464_vm1, %v12159_v42  ;;  %v12254_v42 = vld [vmem:[%s9637_s16 + $0x238] sm:$0xff] }
 0x4e5   : > { %9423 = vmatmul.msk.f32.gmra.mxu2 %vm464_vm1, %v12234_v29  ;;  %8903 = vmatmul.msk.f32.gmra.mxu0 %vm464_vm1, %v12154_v3  ;;  %v12259_v56 = vld [vmem:[%s9637_s16 + $0x678] sm:$0xff] }
 0x4e6   : > { %9163 = vmatmul.msk.f32.gmra.mxu1 %vm464_vm1, %v12239_v25  ;;  %v7208_v61 = vadd.f32 %v6906_v47, %v6157_v57 }
 0x4e7   : > { %v3757_v35 = vpop.f32.mrf.mxu3 }
 0x4e8   : > { %v6909_v14 = vpop.f32.mrf.mxu2  ;;  %v7340_v11 = vadd.f32 %v11970_v48, %v7208_v61  ;;  %v4057_v36 = vadd.f32 %v3757_v35, %v3007_v9  ;;  %v14142_v35 = vld [vmem:[#allocation155_spill] sm:$0xff] }
 0x4ea   : > { %v7468_v8 = vmax.f32 %v7340_v11, 0.0  ;;  %v5108_v39 = vadd.f32 %v4808_v32, %v4057_v36  ;;  %v4811_v3 = vpop.f32.mrf.mxu0  ;;  %v3008_v32 = vadd.f32 %v14141_v15, %v1788_v54  ;;  %v14143_v11 = vld [vmem:[#allocation156_spill] sm:$0xff]  ;;  %v14144_v54 = vld [vmem:[#allocation158_spill] sm:$0xff] }
 0x4eb   : > { %v5861_v33 = vpop.f32.mrf.mxu1  ;;  %v1791_v36 = vadd.f32 %v14143_v11, %v14142_v35 }
 0x4ec   : > { %7597 = vst.msk [vmem:[%s11426_s22 + $0x148] sm:$0xff] %vm7555_vm2, %v7468_v8  ;;  %v6158_v47 = vadd.f32 %v5858_v40, %v5108_v39  ;;  %8644 = vmatmul.msk.f32.gmra.mxu3 %vm464_vm1, %v12179_v63  ;;  %v12274_v63 = vld [vmem:[%s9637_s16 + $0x240] sm:$0xff] }
 0x4ed   : > { %9424 = vmatmul.msk.f32.gmra.mxu2 %vm464_vm1, %v12254_v42  ;;  %8904 = vmatmul.msk.f32.gmra.mxu0 %vm464_vm1, %v12174_v59  ;;  %v12279_v39 = vld [vmem:[%s9637_s16 + $0x680] sm:$0xff] }
 0x4ee   : > { %9164 = vmatmul.msk.f32.gmra.mxu1 %vm464_vm1, %v12259_v56  ;;  %v7209_v57 = vadd.f32 %v6909_v14, %v6158_v47 }
 0x4ef   : > { %v3760_v28 = vpop.f32.mrf.mxu3 }
 0x4f0   : > { %v6912_v9 = vpop.f32.mrf.mxu2  ;;  %v7341_v40 = vadd.f32 %v11970_v48, %v7209_v57  ;;  %v4058_v61 = vadd.f32 %v3760_v28, %v3008_v32  ;;  %v14145_v28 = vld [vmem:[#allocation159_spill] sm:$0xff] }
 0x4f2   : > { %v7469_v7 = vmax.f32 %v7341_v40, 0.0  ;;  %v5109_v46 = vadd.f32 %v4811_v3, %v4058_v61  ;;  %v4814_v59 = vpop.f32.mrf.mxu0  ;;  %v3009_v3 = vadd.f32 %v14144_v54, %v1791_v36  ;;  %v14146_v40 = vld [vmem:[#allocation160_spill] sm:$0xff]  ;;  %v14147_v36 = vld [vmem:[#allocation161_spill] sm:$0xff] }
 0x4f3   : > { %v5864_v8 = vpop.f32.mrf.mxu1  ;;  %v1794_v61 = vadd.f32 %v14146_v40, %v14145_v28 }
 0x4f4   : > { %7598 = vst.msk [vmem:[%s11426_s22 + $0x150] sm:$0xff] %vm7555_vm2, %v7469_v7  ;;  %v6159_v14 = vadd.f32 %v5861_v33, %v5109_v46  ;;  %8645 = vmatmul.msk.f32.gmra.mxu3 %vm464_vm1, %v12199_v0  ;;  %v12294_v0 = vld [vmem:[%s9637_s16 + $0x248] sm:$0xff] }
 0x4f5   : > { %9425 = vmatmul.msk.f32.gmra.mxu2 %vm464_vm1, %v12274_v63  ;;  %8905 = vmatmul.msk.f32.gmra.mxu0 %vm464_vm1, %v12194_v21  ;;  %v12299_v46 = vld [vmem:[%s9637_s16 + $0x688] sm:$0xff] }
 0x4f6   : > { %9165 = vmatmul.msk.f32.gmra.mxu1 %vm464_vm1, %v12279_v39  ;;  %v7210_v47 = vadd.f32 %v6912_v9, %v6159_v14 }
 0x4f7   : > { %v3763_v15 = vpop.f32.mrf.mxu3 }
 0x4f8   : > { %v6915_v32 = vpop.f32.mrf.mxu2  ;;  %v7342_v33 = vadd.f32 %v11970_v48, %v7210_v47  ;;  %v4059_v57 = vadd.f32 %v3763_v15, %v3009_v3  ;;  %v14148_v15 = vld [vmem:[#allocation162_spill] sm:$0xff] }
 0x4fa   : > { %v7470_v35 = vmax.f32 %v7342_v33, 0.0  ;;  %v5110_v11 = vadd.f32 %v4814_v59, %v4059_v57  ;;  %v4817_v21 = vpop.f32.mrf.mxu0  ;;  %v3010_v59 = vadd.f32 %v14147_v36, %v1794_v61  ;;  %v14149_v33 = vld [vmem:[#allocation163_spill] sm:$0xff]  ;;  %v14150_v61 = vld [vmem:[#allocation165_spill] sm:$0xff] }
 0x4fb   : > { %v5867_v7 = vpop.f32.mrf.mxu1  ;;  %v1797_v57 = vadd.f32 %v14149_v33, %v14148_v15 }
 0x4fc   : > { %7599 = vst.msk [vmem:[%s11426_s22 + $0x158] sm:$0xff] %vm7555_vm2, %v7470_v35  ;;  %v6160_v9 = vadd.f32 %v5864_v8, %v5110_v11  ;;  %8646 = vmatmul.msk.f32.gmra.mxu3 %vm464_vm1, %v12219_v49  ;;  %v12314_v49 = vld [vmem:[%s9637_s16 + $0x250] sm:$0xff] }
 0x4fd   : > { %9426 = vmatmul.msk.f32.gmra.mxu2 %vm464_vm1, %v12294_v0  ;;  %8906 = vmatmul.msk.f32.gmra.mxu0 %vm464_vm1, %v12214_v1  ;;  %v12319_v11 = vld [vmem:[%s9637_s16 + $0x690] sm:$0xff] }
 0x4fe   : > { %9166 = vmatmul.msk.f32.gmra.mxu1 %vm464_vm1, %v12299_v46  ;;  %v7211_v14 = vadd.f32 %v6915_v32, %v6160_v9 }
 0x4ff   : > { %v3766_v54 = vpop.f32.mrf.mxu3 }
 0x500   : > { %v6918_v3 = vpop.f32.mrf.mxu2  ;;  %v7343_v8 = vadd.f32 %v11970_v48, %v7211_v14  ;;  %v4060_v47 = vadd.f32 %v3766_v54, %v3010_v59  ;;  %v14151_v54 = vld [vmem:[#allocation166_spill] sm:$0xff] }
 0x502   : > { %v7471_v28 = vmax.f32 %v7343_v8, 0.0  ;;  %v5111_v40 = vadd.f32 %v4817_v21, %v4060_v47  ;;  %v4820_v1 = vpop.f32.mrf.mxu0  ;;  %v3011_v21 = vadd.f32 %v14150_v61, %v1797_v57  ;;  %v14152_v8 = vld [vmem:[#allocation167_spill] sm:$0xff]  ;;  %v14153_v57 = vld [vmem:[#allocation169_spill] sm:$0xff] }
 0x503   : > { %v5870_v35 = vpop.f32.mrf.mxu1  ;;  %v1800_v47 = vadd.f32 %v14152_v8, %v14151_v54 }
 0x504   : > { %7600 = vst.msk [vmem:[%s11426_s22 + $0x160] sm:$0xff] %vm7555_vm2, %v7471_v28  ;;  %v6161_v32 = vadd.f32 %v5867_v7, %v5111_v40  ;;  %8647 = vmatmul.msk.f32.gmra.mxu3 %vm464_vm1, %v12239_v25  ;;  %v12334_v25 = vld [vmem:[%s9637_s16 + $0x258] sm:$0xff] }
 0x505   : > { %9427 = vmatmul.msk.f32.gmra.mxu2 %vm464_vm1, %v12314_v49  ;;  %8907 = vmatmul.msk.f32.gmra.mxu0 %vm464_vm1, %v12234_v29  ;;  %v12339_v40 = vld [vmem:[%s9637_s16 + $0x698] sm:$0xff] }
 0x506   : > { %9167 = vmatmul.msk.f32.gmra.mxu1 %vm464_vm1, %v12319_v11  ;;  %v7212_v9 = vadd.f32 %v6918_v3, %v6161_v32 }
 0x507   : > { %v3769_v36 = vpop.f32.mrf.mxu3 }
 0x508   : > { %v6921_v59 = vpop.f32.mrf.mxu2  ;;  %v7344_v7 = vadd.f32 %v11970_v48, %v7212_v9  ;;  %v4061_v14 = vadd.f32 %v3769_v36, %v3011_v21  ;;  %v14154_v36 = vld [vmem:[#allocation170_spill] sm:$0xff] }
 0x50a   : > { %v7472_v15 = vmax.f32 %v7344_v7, 0.0  ;;  %v5112_v33 = vadd.f32 %v4820_v1, %v4061_v14  ;;  %v4823_v29 = vpop.f32.mrf.mxu0  ;;  %v3012_v1 = vadd.f32 %v14153_v57, %v1800_v47  ;;  %v14155_v7 = vld [vmem:[#allocation171_spill] sm:$0xff]  ;;  %v14156_v47 = vld [vmem:[#allocation172_spill] sm:$0xff] }
 0x50b   : > { %v5873_v28 = vpop.f32.mrf.mxu1  ;;  %v1803_v14 = vadd.f32 %v14155_v7, %v14154_v36 }
 0x50c   : > { %7601 = vst.msk [vmem:[%s11426_s22 + $0x168] sm:$0xff] %vm7555_vm2, %v7472_v15  ;;  %v6162_v3 = vadd.f32 %v5870_v35, %v5112_v33  ;;  %8648 = vmatmul.msk.f32.gmra.mxu3 %vm464_vm1, %v12259_v56  ;;  %v12354_v56 = vld [vmem:[%s9637_s16 + $0x260] sm:$0xff] }
 0x50d   : > { %9428 = vmatmul.msk.f32.gmra.mxu2 %vm464_vm1, %v12334_v25  ;;  %8908 = vmatmul.msk.f32.gmra.mxu0 %vm464_vm1, %v12254_v42  ;;  %v12359_v33 = vld [vmem:[%s9637_s16 + $0x6a0] sm:$0xff] }
 0x50e   : > { %9168 = vmatmul.msk.f32.gmra.mxu1 %vm464_vm1, %v12339_v40  ;;  %v7213_v32 = vadd.f32 %v6921_v59, %v6162_v3 }
 0x50f   : > { %v3772_v61 = vpop.f32.mrf.mxu3 }
 0x510   : > { %v6924_v21 = vpop.f32.mrf.mxu2  ;;  %v7345_v35 = vadd.f32 %v11970_v48, %v7213_v32  ;;  %v4062_v9 = vadd.f32 %v3772_v61, %v3012_v1  ;;  %v14157_v61 = vld [vmem:[#allocation173_spill] sm:$0xff] }
 0x512   : > { %v7473_v54 = vmax.f32 %v7345_v35, 0.0  ;;  %v5113_v8 = vadd.f32 %v4823_v29, %v4062_v9  ;;  %v4826_v42 = vpop.f32.mrf.mxu0  ;;  %v3013_v29 = vadd.f32 %v14156_v47, %v1803_v14  ;;  %v14158_v35 = vld [vmem:[#allocation174_spill] sm:$0xff]  ;;  %v14159_v14 = vld [vmem:[#allocation175_spill] sm:$0xff] }
 0x513   : > { %v5876_v15 = vpop.f32.mrf.mxu1  ;;  %v1806_v9 = vadd.f32 %v14158_v35, %v14157_v61 }
 0x514   : > { %7602 = vst.msk [vmem:[%s11426_s22 + $0x170] sm:$0xff] %vm7555_vm2, %v7473_v54  ;;  %v6163_v59 = vadd.f32 %v5873_v28, %v5113_v8  ;;  %8649 = vmatmul.msk.f32.gmra.mxu3 %vm464_vm1, %v12279_v39  ;;  %v12374_v39 = vld [vmem:[%s9637_s16 + $0x268] sm:$0xff] }
 0x515   : > { %9429 = vmatmul.msk.f32.gmra.mxu2 %vm464_vm1, %v12354_v56  ;;  %8909 = vmatmul.msk.f32.gmra.mxu0 %vm464_vm1, %v12274_v63  ;;  %v12379_v8 = vld [vmem:[%s9637_s16 + $0x6a8] sm:$0xff] }
 0x516   : > { %9169 = vmatmul.msk.f32.gmra.mxu1 %vm464_vm1, %v12359_v33  ;;  %v7214_v3 = vadd.f32 %v6924_v21, %v6163_v59 }
 0x517   : > { %v3775_v57 = vpop.f32.mrf.mxu3 }
 0x518   : > { %v6927_v1 = vpop.f32.mrf.mxu2  ;;  %v7346_v28 = vadd.f32 %v11970_v48, %v7214_v3  ;;  %v4063_v32 = vadd.f32 %v3775_v57, %v3013_v29  ;;  %v14160_v57 = vld [vmem:[#allocation176_spill] sm:$0xff] }
 0x51a   : > { %v7474_v36 = vmax.f32 %v7346_v28, 0.0  ;;  %v5114_v7 = vadd.f32 %v4826_v42, %v4063_v32  ;;  %v4829_v63 = vpop.f32.mrf.mxu0  ;;  %v3014_v42 = vadd.f32 %v14159_v14, %v1806_v9  ;;  %v14161_v28 = vld [vmem:[#allocation177_spill] sm:$0xff]  ;;  %v14162_v9 = vld [vmem:[#allocation178_spill] sm:$0xff] }
 0x51b   : > { %v5879_v54 = vpop.f32.mrf.mxu1  ;;  %v1809_v32 = vadd.f32 %v14161_v28, %v14160_v57 }
 0x51c   : > { %7603 = vst.msk [vmem:[%s11426_s22 + $0x178] sm:$0xff] %vm7555_vm2, %v7474_v36  ;;  %v6164_v21 = vadd.f32 %v5876_v15, %v5114_v7  ;;  %8650 = vmatmul.msk.f32.gmra.mxu3 %vm464_vm1, %v12299_v46  ;;  %v12394_v46 = vld [vmem:[%s9637_s16 + $0x270] sm:$0xff] }
 0x51d   : > { %9430 = vmatmul.msk.f32.gmra.mxu2 %vm464_vm1, %v12374_v39  ;;  %8910 = vmatmul.msk.f32.gmra.mxu0 %vm464_vm1, %v12294_v0  ;;  %v12399_v7 = vld [vmem:[%s9637_s16 + $0x6b0] sm:$0xff] }
 0x51e   : > { %9170 = vmatmul.msk.f32.gmra.mxu1 %vm464_vm1, %v12379_v8  ;;  %v7215_v59 = vadd.f32 %v6927_v1, %v6164_v21 }
 0x51f   : > { %v3778_v47 = vpop.f32.mrf.mxu3 }
 0x520   : > { %v6930_v29 = vpop.f32.mrf.mxu2  ;;  %v7347_v15 = vadd.f32 %v11970_v48, %v7215_v59  ;;  %v4064_v3 = vadd.f32 %v3778_v47, %v3014_v42  ;;  %v14163_v47 = vld [vmem:[#allocation179_spill] sm:$0xff] }
 0x522   : > { %v7475_v61 = vmax.f32 %v7347_v15, 0.0  ;;  %v5115_v35 = vadd.f32 %v4829_v63, %v4064_v3  ;;  %v4832_v0 = vpop.f32.mrf.mxu0  ;;  %v3015_v63 = vadd.f32 %v14162_v9, %v1809_v32  ;;  %v14164_v15 = vld [vmem:[#allocation180_spill] sm:$0xff]  ;;  %v14165_v32 = vld [vmem:[#allocation181_spill] sm:$0xff] }
 0x523   : > { %v5882_v36 = vpop.f32.mrf.mxu1  ;;  %v1812_v3 = vadd.f32 %v14164_v15, %v14163_v47 }
 0x524   : > { %7604 = vst.msk [vmem:[%s11426_s22 + $0x180] sm:$0xff] %vm7555_vm2, %v7475_v61  ;;  %v6165_v1 = vadd.f32 %v5879_v54, %v5115_v35  ;;  %8651 = vmatmul.msk.f32.gmra.mxu3 %vm464_vm1, %v12319_v11  ;;  %v12414_v11 = vld [vmem:[%s9637_s16 + $0x278] sm:$0xff] }
 0x525   : > { %9431 = vmatmul.msk.f32.gmra.mxu2 %vm464_vm1, %v12394_v46  ;;  %8911 = vmatmul.msk.f32.gmra.mxu0 %vm464_vm1, %v12314_v49  ;;  %v12419_v35 = vld [vmem:[%s9637_s16 + $0x6b8] sm:$0xff] }
 0x526   : > { %9171 = vmatmul.msk.f32.gmra.mxu1 %vm464_vm1, %v12399_v7  ;;  %v7216_v21 = vadd.f32 %v6930_v29, %v6165_v1 }
 0x527   : > { %v3781_v14 = vpop.f32.mrf.mxu3 }
 0x528   : > { %v6933_v42 = vpop.f32.mrf.mxu2  ;;  %v7348_v54 = vadd.f32 %v11970_v48, %v7216_v21  ;;  %v4065_v59 = vadd.f32 %v3781_v14, %v3015_v63  ;;  %v14166_v14 = vld [vmem:[#allocation182_spill] sm:$0xff] }
 0x52a   : > { %v7476_v57 = vmax.f32 %v7348_v54, 0.0  ;;  %v5116_v28 = vadd.f32 %v4832_v0, %v4065_v59  ;;  %v4835_v49 = vpop.f32.mrf.mxu0  ;;  %v3016_v0 = vadd.f32 %v14165_v32, %v1812_v3  ;;  %v14167_v54 = vld [vmem:[#allocation183_spill] sm:$0xff]  ;;  %v14168_v3 = vld [vmem:[#allocation184_spill] sm:$0xff] }
 0x52b   : > { %v5885_v61 = vpop.f32.mrf.mxu1  ;;  %v1815_v59 = vadd.f32 %v14167_v54, %v14166_v14 }
 0x52c   : > { %7605 = vst.msk [vmem:[%s11426_s22 + $0x188] sm:$0xff] %vm7555_vm2, %v7476_v57  ;;  %v6166_v29 = vadd.f32 %v5882_v36, %v5116_v28  ;;  %8652 = vmatmul.msk.f32.gmra.mxu3 %vm464_vm1, %v12339_v40  ;;  %v12434_v40 = vld [vmem:[%s9637_s16 + $0x280] sm:$0xff] }
 0x52d   : > { %9432 = vmatmul.msk.f32.gmra.mxu2 %vm464_vm1, %v12414_v11  ;;  %8912 = vmatmul.msk.f32.gmra.mxu0 %vm464_vm1, %v12334_v25  ;;  %v12439_v28 = vld [vmem:[%s9637_s16 + $0x6c0] sm:$0xff] }
 0x52e   : > { %9172 = vmatmul.msk.f32.gmra.mxu1 %vm464_vm1, %v12419_v35  ;;  %v7217_v1 = vadd.f32 %v6933_v42, %v6166_v29 }
 0x52f   : > { %v3784_v9 = vpop.f32.mrf.mxu3 }
 0x530   : > { %v6936_v63 = vpop.f32.mrf.mxu2  ;;  %v7349_v36 = vadd.f32 %v11970_v48, %v7217_v1  ;;  %v4066_v21 = vadd.f32 %v3784_v9, %v3016_v0  ;;  %v14169_v9 = vld [vmem:[#allocation185_spill] sm:$0xff] }
 0x532   : > { %v7477_v47 = vmax.f32 %v7349_v36, 0.0  ;;  %v5117_v15 = vadd.f32 %v4835_v49, %v4066_v21  ;;  %v4838_v25 = vpop.f32.mrf.mxu0  ;;  %v3017_v49 = vadd.f32 %v14168_v3, %v1815_v59  ;;  %v14170_v36 = vld [vmem:[#allocation186_spill] sm:$0xff]  ;;  %v14171_v59 = vld [vmem:[#allocation187_spill] sm:$0xff] }
 0x533   : > { %v5888_v57 = vpop.f32.mrf.mxu1  ;;  %v1818_v21 = vadd.f32 %v14170_v36, %v14169_v9 }
 0x534   : > { %7606 = vst.msk [vmem:[%s11426_s22 + $0x190] sm:$0xff] %vm7555_vm2, %v7477_v47  ;;  %v6167_v42 = vadd.f32 %v5885_v61, %v5117_v15  ;;  %8653 = vmatmul.msk.f32.gmra.mxu3 %vm464_vm1, %v12359_v33  ;;  %v12454_v33 = vld [vmem:[%s9637_s16 + $0x288] sm:$0xff] }
 0x535   : > { %9433 = vmatmul.msk.f32.gmra.mxu2 %vm464_vm1, %v12434_v40  ;;  %8913 = vmatmul.msk.f32.gmra.mxu0 %vm464_vm1, %v12354_v56  ;;  %v12459_v15 = vld [vmem:[%s9637_s16 + $0x6c8] sm:$0xff] }
 0x536   : > { %9173 = vmatmul.msk.f32.gmra.mxu1 %vm464_vm1, %v12439_v28  ;;  %v7218_v29 = vadd.f32 %v6936_v63, %v6167_v42 }
 0x537   : > { %v3787_v32 = vpop.f32.mrf.mxu3 }
 0x538   : > { %v6939_v0 = vpop.f32.mrf.mxu2  ;;  %v7350_v61 = vadd.f32 %v11970_v48, %v7218_v29  ;;  %v4067_v1 = vadd.f32 %v3787_v32, %v3017_v49  ;;  %v14172_v32 = vld [vmem:[#allocation188_spill] sm:$0xff] }
 0x53a   : > { %v7478_v14 = vmax.f32 %v7350_v61, 0.0  ;;  %v5118_v54 = vadd.f32 %v4838_v25, %v4067_v1  ;;  %v4841_v56 = vpop.f32.mrf.mxu0  ;;  %v3018_v25 = vadd.f32 %v14171_v59, %v1818_v21  ;;  %v14173_v61 = vld [vmem:[#allocation189_spill] sm:$0xff]  ;;  %v14174_v21 = vld [vmem:[#allocation190_spill] sm:$0xff] }
 0x53b   : > { %v5891_v47 = vpop.f32.mrf.mxu1  ;;  %v1821_v1 = vadd.f32 %v14173_v61, %v14172_v32 }
 0x53c   : > { %7607 = vst.msk [vmem:[%s11426_s22 + $0x198] sm:$0xff] %vm7555_vm2, %v7478_v14  ;;  %v6168_v63 = vadd.f32 %v5888_v57, %v5118_v54  ;;  %8654 = vmatmul.msk.f32.gmra.mxu3 %vm464_vm1, %v12379_v8  ;;  %v12474_v8 = vld [vmem:[%s9637_s16 + $0x290] sm:$0xff] }
 0x53d   : > { %9434 = vmatmul.msk.f32.gmra.mxu2 %vm464_vm1, %v12454_v33  ;;  %8914 = vmatmul.msk.f32.gmra.mxu0 %vm464_vm1, %v12374_v39  ;;  %v12479_v54 = vld [vmem:[%s9637_s16 + $0x6d0] sm:$0xff] }
 0x53e   : > { %9174 = vmatmul.msk.f32.gmra.mxu1 %vm464_vm1, %v12459_v15  ;;  %v7219_v42 = vadd.f32 %v6939_v0, %v6168_v63 }
 0x53f   : > { %v3790_v3 = vpop.f32.mrf.mxu3 }
 0x540   : > { %v6942_v49 = vpop.f32.mrf.mxu2  ;;  %v7351_v57 = vadd.f32 %v11970_v48, %v7219_v42  ;;  %v4068_v29 = vadd.f32 %v3790_v3, %v3018_v25  ;;  %v14175_v3 = vld [vmem:[#allocation191_spill] sm:$0xff] }
 0x542   : > { %v7479_v9 = vmax.f32 %v7351_v57, 0.0  ;;  %v5119_v36 = vadd.f32 %v4841_v56, %v4068_v29  ;;  %v4844_v39 = vpop.f32.mrf.mxu0  ;;  %v3019_v56 = vadd.f32 %v14174_v21, %v1821_v1  ;;  %v14176_v57 = vld [vmem:[#allocation192_spill] sm:$0xff] }
 0x543   : > { %v5894_v14 = vpop.f32.mrf.mxu1  ;;  %v1824_v29 = vadd.f32 %v14176_v57, %v14175_v3 }
 0x544   : > { %7608 = vst.msk [vmem:[%s11426_s22 + $0x1a0] sm:$0xff] %vm7555_vm2, %v7479_v9  ;;  %v6169_v0 = vadd.f32 %v5891_v47, %v5119_v36  ;;  %8655 = vmatmul.msk.f32.gmra.mxu3 %vm464_vm1, %v12399_v7  ;;  %v12494_v7 = vld [vmem:[%s9637_s16 + $0x298] sm:$0xff] }
 0x545   : > { %9435 = vmatmul.msk.f32.gmra.mxu2 %vm464_vm1, %v12474_v8  ;;  %8915 = vmatmul.msk.f32.gmra.mxu0 %vm464_vm1, %v12394_v46  ;;  %v12499_v36 = vld [vmem:[%s9637_s16 + $0x6d8] sm:$0xff] }
 0x546   : > { %9175 = vmatmul.msk.f32.gmra.mxu1 %vm464_vm1, %v12479_v54  ;;  %v7220_v63 = vadd.f32 %v6942_v49, %v6169_v0 }
 0x547   : > { %v3793_v59 = vpop.f32.mrf.mxu3 }
 0x548   : > { %v6945_v25 = vpop.f32.mrf.mxu2  ;;  %v7352_v47 = vadd.f32 %v11970_v48, %v7220_v63  ;;  %v4069_v42 = vadd.f32 %v3793_v59, %v3019_v56  ;;  %v14177_v48 = vld [vmem:[#allocation193_spill] sm:$0xff]  ;;  %v12519_v63 = vld [vmem:[%s9637_s16 + $0x2a0] sm:$0xff]  ;;  %v14179_v59 = vld [vmem:[#allocation195_spill] sm:$0xff] }
 0x549   : > { %v3020_v1 = vadd.f32 %v14177_v48, %v1824_v29  ;;  %v12524_v29 = vld [vmem:[%s9637_s16 + $0x6e0] sm:$0xff] }
 0x54a   : > { %v7480_v32 = vmax.f32 %v7352_v47, 0.0  ;;  %v5120_v61 = vadd.f32 %v4844_v39, %v4069_v42  ;;  %v4847_v9 = vpop.f32.mrf.mxu0 }
 0x54b   : > { %v5897_v46 = vpop.f32.mrf.mxu1 }
 0x54c   : > { %7609 = vst.msk [vmem:[%s11426_s22 + $0x1a8] sm:$0xff] %vm7555_vm2, %v7480_v32  ;;  %v6170_v49 = vadd.f32 %v5894_v14, %v5120_v61  ;;  %8656 = vmatmul.msk.f32.gmra.mxu3 %vm464_vm1, %v12419_v35  ;;  %v12515_v35 = vld [vmem:[%s13672_s2] ss:$0 sm:$0xff]  ;;  %v14180_v61 = vld [vmem:[#allocation196_spill] sm:$0xff] }
 0x54d   : > { %9436 = vmatmul.msk.f32.gmra.mxu2 %vm464_vm1, %v12494_v7  ;;  %8916 = vmatmul.msk.f32.gmra.mxu0 %vm464_vm1, %v12414_v11  ;;  %v14178_v11 = vld [vmem:[#allocation194_spill] sm:$0xff] }
 0x54e   : > { %9176 = vmatmul.msk.f32.gmra.mxu1 %vm464_vm1, %v12499_v36  ;;  %v7221_v39 = vadd.f32 %v6945_v25, %v6170_v49  ;;  %v1827_v47 = vadd.f32 %v14179_v59, %v14178_v11 }
 0x54f   : > { %v3796_v0 = vpop.f32.mrf.mxu3 }
 0x550   : > { %v6948_v21 = vpop.f32.mrf.mxu2  ;;  %v7353_v14 = vadd.f32 %v12515_v35, %v7221_v39  ;;  %v4070_v56 = vadd.f32 %v3796_v0, %v3020_v1  ;;  %v14181_v0 = vld [vmem:[#allocation197_spill] sm:$0xff] }
 0x552   : > { %v7481_v42 = vmax.f32 %v7353_v14, 0.0  ;;  %v5121_v3 = vadd.f32 %v4847_v9, %v4070_v56  ;;  %v4850_v57 = vpop.f32.mrf.mxu0  ;;  %v3021_v9 = vadd.f32 %v14180_v61, %v1827_v47  ;;  %v14182_v14 = vld [vmem:[#allocation198_spill] sm:$0xff]  ;;  %v14183_v47 = vld [vmem:[#allocation199_spill] sm:$0xff] }
 0x553   : > { %v5900_v25 = vpop.f32.mrf.mxu1  ;;  %v1830_v56 = vadd.f32 %v14182_v14, %v14181_v0 }
 0x554   : > { %7610 = vst.msk [vmem:[%s11426_s22 + $0x1b0] sm:$0xff] %vm7555_vm2, %v7481_v42  ;;  %v6171_v32 = vadd.f32 %v5897_v46, %v5121_v3  ;;  %8657 = vmatmul.msk.f32.gmra.mxu3 %vm464_vm1, %v12439_v28  ;;  %v12539_v28 = vld [vmem:[%s9637_s16 + $0x2a8] sm:$0xff] }
 0x555   : > { %9437 = vmatmul.msk.f32.gmra.mxu2 %vm464_vm1, %v12519_v63  ;;  %8917 = vmatmul.msk.f32.gmra.mxu0 %vm464_vm1, %v12434_v40  ;;  %v12544_v3 = vld [vmem:[%s9637_s16 + $0x6e8] sm:$0xff] }
 0x556   : > { %9177 = vmatmul.msk.f32.gmra.mxu1 %vm464_vm1, %v12524_v29  ;;  %v7222_v49 = vadd.f32 %v6948_v21, %v6171_v32 }
 0x557   : > { %v3799_v48 = vpop.f32.mrf.mxu3 }
 0x558   : > { %v6951_v1 = vpop.f32.mrf.mxu2  ;;  %v7354_v46 = vadd.f32 %v12515_v35, %v7222_v49  ;;  %v4071_v39 = vadd.f32 %v3799_v48, %v3021_v9  ;;  %v14184_v48 = vld [vmem:[#allocation200_spill] sm:$0xff] }
 0x55a   : > { %v7482_v11 = vmax.f32 %v7354_v46, 0.0  ;;  %v5122_v59 = vadd.f32 %v4850_v57, %v4071_v39  ;;  %v4853_v40 = vpop.f32.mrf.mxu0  ;;  %v3022_v57 = vadd.f32 %v14183_v47, %v1830_v56  ;;  %v14185_v46 = vld [vmem:[#allocation201_spill] sm:$0xff]  ;;  %v14186_v56 = vld [vmem:[#allocation202_spill] sm:$0xff] }
 0x55b   : > { %v5903_v42 = vpop.f32.mrf.mxu1  ;;  %v1833_v39 = vadd.f32 %v14185_v46, %v14184_v48 }
 0x55c   : > { %7611 = vst.msk [vmem:[%s11426_s22 + $0x1b8] sm:$0xff] %vm7555_vm2, %v7482_v11  ;;  %v6172_v21 = vadd.f32 %v5900_v25, %v5122_v59  ;;  %8658 = vmatmul.msk.f32.gmra.mxu3 %vm464_vm1, %v12459_v15  ;;  %v12559_v15 = vld [vmem:[%s9637_s16 + $0x2b0] sm:$0xff] }
 0x55d   : > { %9438 = vmatmul.msk.f32.gmra.mxu2 %vm464_vm1, %v12539_v28  ;;  %8918 = vmatmul.msk.f32.gmra.mxu0 %vm464_vm1, %v12454_v33  ;;  %v12564_v59 = vld [vmem:[%s9637_s16 + $0x6f0] sm:$0xff] }
 0x55e   : > { %9178 = vmatmul.msk.f32.gmra.mxu1 %vm464_vm1, %v12544_v3  ;;  %v7223_v32 = vadd.f32 %v6951_v1, %v6172_v21 }
 0x55f   : > { %v3802_v61 = vpop.f32.mrf.mxu3 }
 0x560   : > { %v6954_v9 = vpop.f32.mrf.mxu2  ;;  %v7355_v25 = vadd.f32 %v12515_v35, %v7223_v32  ;;  %v4072_v49 = vadd.f32 %v3802_v61, %v3022_v57  ;;  %v14187_v61 = vld [vmem:[#allocation203_spill] sm:$0xff] }
 0x562   : > { %v7483_v0 = vmax.f32 %v7355_v25, 0.0  ;;  %v5123_v14 = vadd.f32 %v4853_v40, %v4072_v49  ;;  %v4856_v33 = vpop.f32.mrf.mxu0  ;;  %v3023_v40 = vadd.f32 %v14186_v56, %v1833_v39  ;;  %v14188_v25 = vld [vmem:[#allocation204_spill] sm:$0xff]  ;;  %v14189_v39 = vld [vmem:[#allocation205_spill] sm:$0xff] }
 0x563   : > { %v5906_v11 = vpop.f32.mrf.mxu1  ;;  %v1836_v49 = vadd.f32 %v14188_v25, %v14187_v61 }
 0x564   : > { %7612 = vst.msk [vmem:[%s11426_s22 + $0x1c0] sm:$0xff] %vm7555_vm2, %v7483_v0  ;;  %v6173_v1 = vadd.f32 %v5903_v42, %v5123_v14  ;;  %8659 = vmatmul.msk.f32.gmra.mxu3 %vm464_vm1, %v12479_v54  ;;  %v12579_v54 = vld [vmem:[%s9637_s16 + $0x2b8] sm:$0xff] }
 0x565   : > { %9439 = vmatmul.msk.f32.gmra.mxu2 %vm464_vm1, %v12559_v15  ;;  %8919 = vmatmul.msk.f32.gmra.mxu0 %vm464_vm1, %v12474_v8  ;;  %v12584_v14 = vld [vmem:[%s9637_s16 + $0x6f8] sm:$0xff] }
 0x566   : > { %9179 = vmatmul.msk.f32.gmra.mxu1 %vm464_vm1, %v12564_v59  ;;  %v7224_v21 = vadd.f32 %v6954_v9, %v6173_v1 }
 0x567   : > { %v3805_v47 = vpop.f32.mrf.mxu3 }
 0x568   : > { %v6957_v57 = vpop.f32.mrf.mxu2  ;;  %v7356_v42 = vadd.f32 %v12515_v35, %v7224_v21  ;;  %v4073_v32 = vadd.f32 %v3805_v47, %v3023_v40  ;;  %v14190_v47 = vld [vmem:[#allocation206_spill] sm:$0xff] }
 0x56a   : > { %v7484_v48 = vmax.f32 %v7356_v42, 0.0  ;;  %v5124_v46 = vadd.f32 %v4856_v33, %v4073_v32  ;;  %v4859_v8 = vpop.f32.mrf.mxu0  ;;  %v3024_v33 = vadd.f32 %v14189_v39, %v1836_v49  ;;  %v14191_v42 = vld [vmem:[#allocation207_spill] sm:$0xff]  ;;  %v14192_v49 = vld [vmem:[#allocation208_spill] sm:$0xff] }
 0x56b   : > { %v5909_v0 = vpop.f32.mrf.mxu1  ;;  %v1839_v32 = vadd.f32 %v14191_v42, %v14190_v47 }
 0x56c   : > { %7613 = vst.msk [vmem:[%s11426_s22 + $0x1c8] sm:$0xff] %vm7555_vm2, %v7484_v48  ;;  %v6174_v9 = vadd.f32 %v5906_v11, %v5124_v46  ;;  %8660 = vmatmul.msk.f32.gmra.mxu3 %vm464_vm1, %v12499_v36  ;;  %v12599_v36 = vld [vmem:[%s9637_s16 + $0x2c0] sm:$0xff] }
 0x56d   : > { %9440 = vmatmul.msk.f32.gmra.mxu2 %vm464_vm1, %v12579_v54  ;;  %8920 = vmatmul.msk.f32.gmra.mxu0 %vm464_vm1, %v12494_v7  ;;  %v12604_v46 = vld [vmem:[%s9637_s16 + $0x700] sm:$0xff] }
 0x56e   : > { %9180 = vmatmul.msk.f32.gmra.mxu1 %vm464_vm1, %v12584_v14  ;;  %v7225_v1 = vadd.f32 %v6957_v57, %v6174_v9 }
 0x56f   : > { %v3808_v56 = vpop.f32.mrf.mxu3 }
 0x570   : > { %v6960_v40 = vpop.f32.mrf.mxu2  ;;  %v7357_v11 = vadd.f32 %v12515_v35, %v7225_v1  ;;  %v4074_v21 = vadd.f32 %v3808_v56, %v3024_v33  ;;  %v14193_v56 = vld [vmem:[#allocation209_spill] sm:$0xff] }
 0x572   : > { %v7485_v61 = vmax.f32 %v7357_v11, 0.0  ;;  %v5125_v25 = vadd.f32 %v4859_v8, %v4074_v21  ;;  %v4862_v7 = vpop.f32.mrf.mxu0  ;;  %v3025_v8 = vadd.f32 %v14192_v49, %v1839_v32  ;;  %v14194_v11 = vld [vmem:[#allocation210_spill] sm:$0xff]  ;;  %v14195_v32 = vld [vmem:[#allocation211_spill] sm:$0xff] }
 0x573   : > { %v5912_v48 = vpop.f32.mrf.mxu1  ;;  %v1842_v21 = vadd.f32 %v14194_v11, %v14193_v56 }
 0x574   : > { %7614 = vst.msk [vmem:[%s11426_s22 + $0x1d0] sm:$0xff] %vm7555_vm2, %v7485_v61  ;;  %v6175_v57 = vadd.f32 %v5909_v0, %v5125_v25  ;;  %8661 = vmatmul.msk.f32.gmra.mxu3 %vm464_vm1, %v12524_v29  ;;  %v12619_v29 = vld [vmem:[%s9637_s16 + $0x2c8] sm:$0xff] }
 0x575   : > { %9441 = vmatmul.msk.f32.gmra.mxu2 %vm464_vm1, %v12599_v36  ;;  %8921 = vmatmul.msk.f32.gmra.mxu0 %vm464_vm1, %v12519_v63  ;;  %v12624_v25 = vld [vmem:[%s9637_s16 + $0x708] sm:$0xff] }
 0x576   : > { %9181 = vmatmul.msk.f32.gmra.mxu1 %vm464_vm1, %v12604_v46  ;;  %v7226_v9 = vadd.f32 %v6960_v40, %v6175_v57 }
 0x577   : > { %v3811_v39 = vpop.f32.mrf.mxu3 }
 0x578   : > { %v6963_v33 = vpop.f32.mrf.mxu2  ;;  %v7358_v0 = vadd.f32 %v12515_v35, %v7226_v9  ;;  %v4075_v1 = vadd.f32 %v3811_v39, %v3025_v8  ;;  %v14196_v39 = vld [vmem:[#allocation212_spill] sm:$0xff] }
 0x57a   : > { %v7486_v47 = vmax.f32 %v7358_v0, 0.0  ;;  %v5126_v42 = vadd.f32 %v4862_v7, %v4075_v1  ;;  %v4865_v63 = vpop.f32.mrf.mxu0  ;;  %v3026_v7 = vadd.f32 %v14195_v32, %v1842_v21  ;;  %v14197_v0 = vld [vmem:[#allocation213_spill] sm:$0xff]  ;;  %v14198_v21 = vld [vmem:[#allocation214_spill] sm:$0xff] }
 0x57b   : > { %v5915_v61 = vpop.f32.mrf.mxu1  ;;  %v1845_v1 = vadd.f32 %v14197_v0, %v14196_v39 }
 0x57c   : > { %7615 = vst.msk [vmem:[%s11426_s22 + $0x1d8] sm:$0xff] %vm7555_vm2, %v7486_v47  ;;  %v6176_v40 = vadd.f32 %v5912_v48, %v5126_v42  ;;  %8662 = vmatmul.msk.f32.gmra.mxu3 %vm464_vm1, %v12544_v3  ;;  %v12639_v3 = vld [vmem:[%s9637_s16 + $0x2d0] sm:$0xff] }
 0x57d   : > { %9442 = vmatmul.msk.f32.gmra.mxu2 %vm464_vm1, %v12619_v29  ;;  %8922 = vmatmul.msk.f32.gmra.mxu0 %vm464_vm1, %v12539_v28  ;;  %v12644_v42 = vld [vmem:[%s9637_s16 + $0x710] sm:$0xff] }
 0x57e   : > { %9182 = vmatmul.msk.f32.gmra.mxu1 %vm464_vm1, %v12624_v25  ;;  %v7227_v57 = vadd.f32 %v6963_v33, %v6176_v40 }
 0x57f   : > { %v3814_v49 = vpop.f32.mrf.mxu3 }
 0x580   : > { %v6966_v8 = vpop.f32.mrf.mxu2  ;;  %v7359_v48 = vadd.f32 %v12515_v35, %v7227_v57  ;;  %v4076_v9 = vadd.f32 %v3814_v49, %v3026_v7  ;;  %v14199_v49 = vld [vmem:[#allocation215_spill] sm:$0xff] }
 0x582   : > { %v7487_v56 = vmax.f32 %v7359_v48, 0.0  ;;  %v5127_v11 = vadd.f32 %v4865_v63, %v4076_v9  ;;  %v4868_v28 = vpop.f32.mrf.mxu0  ;;  %v3027_v63 = vadd.f32 %v14198_v21, %v1845_v1  ;;  %v14200_v48 = vld [vmem:[#allocation216_spill] sm:$0xff]  ;;  %v14201_v1 = vld [vmem:[#allocation218_spill] sm:$0xff] }
 0x583   : > { %v5918_v47 = vpop.f32.mrf.mxu1  ;;  %v1848_v9 = vadd.f32 %v14200_v48, %v14199_v49 }
 0x584   : > { %7616 = vst.msk [vmem:[%s11426_s22 + $0x1e0] sm:$0xff] %vm7555_vm2, %v7487_v56  ;;  %v6177_v33 = vadd.f32 %v5915_v61, %v5127_v11  ;;  %8663 = vmatmul.msk.f32.gmra.mxu3 %vm464_vm1, %v12564_v59  ;;  %v12659_v59 = vld [vmem:[%s9637_s16 + $0x2d8] sm:$0xff] }
 0x585   : > { %9443 = vmatmul.msk.f32.gmra.mxu2 %vm464_vm1, %v12639_v3  ;;  %8923 = vmatmul.msk.f32.gmra.mxu0 %vm464_vm1, %v12559_v15  ;;  %v12664_v11 = vld [vmem:[%s9637_s16 + $0x718] sm:$0xff] }
 0x586   : > { %9183 = vmatmul.msk.f32.gmra.mxu1 %vm464_vm1, %v12644_v42  ;;  %v7228_v40 = vadd.f32 %v6966_v8, %v6177_v33 }
 0x587   : > { %v3817_v32 = vpop.f32.mrf.mxu3 }
 0x588   : > { %v6969_v7 = vpop.f32.mrf.mxu2  ;;  %v7360_v61 = vadd.f32 %v12515_v35, %v7228_v40  ;;  %v4077_v57 = vadd.f32 %v3817_v32, %v3027_v63  ;;  %v14202_v32 = vld [vmem:[#allocation219_spill] sm:$0xff] }
 0x58a   : > { %v7488_v39 = vmax.f32 %v7360_v61, 0.0  ;;  %v5128_v0 = vadd.f32 %v4868_v28, %v4077_v57  ;;  %v4871_v15 = vpop.f32.mrf.mxu0  ;;  %v3028_v28 = vadd.f32 %v14201_v1, %v1848_v9  ;;  %v14203_v61 = vld [vmem:[#allocation220_spill] sm:$0xff] }
 0x58b   : > { %v5921_v56 = vpop.f32.mrf.mxu1  ;;  %v1851_v57 = vadd.f32 %v14203_v61, %v14202_v32  ;;  %v12704_v32 = vld [vmem:[%s9637_s16 + $0x728] sm:$0xff] }
 0x58c   : > { %7617 = vst.msk [vmem:[%s11426_s22 + $0x1e8] sm:$0xff] %vm7555_vm2, %v7488_v39  ;;  %v6178_v8 = vadd.f32 %v5918_v47, %v5128_v0  ;;  %8664 = vmatmul.msk.f32.gmra.mxu3 %vm464_vm1, %v12584_v14  ;;  %v12679_v14 = vld [vmem:[%s9637_s16 + $0x2e0] sm:$0xff] }
 0x58d   : > { %9444 = vmatmul.msk.f32.gmra.mxu2 %vm464_vm1, %v12659_v59  ;;  %8924 = vmatmul.msk.f32.gmra.mxu0 %vm464_vm1, %v12579_v54  ;;  %v12684_v0 = vld [vmem:[%s9637_s16 + $0x720] sm:$0xff]  ;;  %v3029_v9 = vadd.f32 %v10848_v53, %v1851_v57 }
 0x58e   : > { %9184 = vmatmul.msk.f32.gmra.mxu1 %vm464_vm1, %v12664_v11  ;;  %v7229_v33 = vadd.f32 %v6969_v7, %v6178_v8 }
 0x58f   : > { %v3820_v21 = vpop.f32.mrf.mxu3 }
 0x590   : > { %v6972_v63 = vpop.f32.mrf.mxu2  ;;  %v7361_v47 = vadd.f32 %v12515_v35, %v7229_v33  ;;  %v4078_v40 = vadd.f32 %v3820_v21, %v3028_v28  ;;  %v1854_v33 = vadd.f32 %v10855_v45, %v10853_v60 }
 0x592   : > { %v7489_v49 = vmax.f32 %v7361_v47, 0.0  ;;  %v5129_v48 = vadd.f32 %v4871_v15, %v4078_v40  ;;  %v4874_v54 = vpop.f32.mrf.mxu0  ;;  %v3030_v60 = vadd.f32 %v10865_v4, %v1854_v33 }
 0x593   : > { %v5924_v39 = vpop.f32.mrf.mxu1 }
 0x594   : > { %7618 = vst.msk [vmem:[%s11426_s22 + $0x1f0] sm:$0xff] %vm7555_vm2, %v7489_v49  ;;  %v6179_v7 = vadd.f32 %v5921_v56, %v5129_v48  ;;  %8665 = vmatmul.msk.f32.gmra.mxu3 %vm464_vm1, %v12604_v46  ;;  %v12699_v46 = vld [vmem:[%s9637_s16 + $0x2e8] sm:$0xff]  ;;  %v1857_v48 = vadd.f32 %v10875_v55, %v10873_v22 }
 0x595   : > { %9445 = vmatmul.msk.f32.gmra.mxu2 %vm464_vm1, %v12679_v14  ;;  %8925 = vmatmul.msk.f32.gmra.mxu0 %vm464_vm1, %v12599_v36 }
 0x596   : > { %9185 = vmatmul.msk.f32.gmra.mxu1 %vm464_vm1, %v12684_v0  ;;  %v7230_v15 = vadd.f32 %v6972_v63, %v6179_v7  ;;  %v3031_v22 = vadd.f32 %v10885_v5, %v1857_v48  ;;  %v12764_v48 = vld [vmem:[%s9637_s16 + $0x740] sm:$0xff] }
 0x597   : > { %v3823_v8 = vpop.f32.mrf.mxu3 }
 0x598   : > { %v6975_v1 = vpop.f32.mrf.mxu2  ;;  %v7362_v56 = vadd.f32 %v12515_v35, %v7230_v15  ;;  %v4079_v28 = vadd.f32 %v3823_v8, %v3029_v9  ;;  %v12724_v9 = vld [vmem:[%s9637_s16 + $0x730] sm:$0xff] }
 0x59a   : > { %v7490_v21 = vmax.f32 %v7362_v56, 0.0  ;;  %v5130_v47 = vadd.f32 %v4874_v54, %v4079_v28  ;;  %v4877_v36 = vpop.f32.mrf.mxu0  ;;  %v1860_v28 = vadd.f32 %v10892_v37, %v10890_v58 }
 0x59b   : > { %v5927_v40 = vpop.f32.mrf.mxu1 }
 0x59c   : > { %7619 = vst.msk [vmem:[%s11426_s22 + $0x1f8] sm:$0xff] %vm7555_vm2, %v7490_v21  ;;  %v6180_v53 = vadd.f32 %v5924_v39, %v5130_v47  ;;  %8666 = vmatmul.msk.f32.gmra.mxu3 %vm464_vm1, %v12624_v25  ;;  %v12719_v25 = vld [vmem:[%s9637_s16 + $0x2f0] sm:$0xff]  ;;  %v3032_v58 = vadd.f32 %v10902_v62, %v1860_v28 }
 0x59d   : > { %9446 = vmatmul.msk.f32.gmra.mxu2 %vm464_vm1, %v12699_v46  ;;  %8926 = vmatmul.msk.f32.gmra.mxu0 %vm464_vm1, %v12619_v29 }
 0x59e   : > { %9186 = vmatmul.msk.f32.gmra.mxu1 %vm464_vm1, %v12704_v32  ;;  %v7231_v45 = vadd.f32 %v6975_v1, %v6180_v53 }
 0x59f   : > { %v3826_v63 = vpop.f32.mrf.mxu3 }
 0x5a0   : > { %v6978_v61 = vpop.f32.mrf.mxu2  ;;  %v7363_v57 = vadd.f32 %v12515_v35, %v7231_v45  ;;  %v4080_v49 = vadd.f32 %v3826_v63, %v3030_v60  ;;  %v1863_v63 = vadd.f32 %v10909_v31, %v10907_v20 }
 0x5a2   : > { %v7491_v54 = vmax.f32 %v7363_v57, 0.0  ;;  %v5131_v39 = vadd.f32 %v4877_v36, %v4080_v49  ;;  %v4880_v29 = vpop.f32.mrf.mxu0  ;;  %v12744_v36 = vld [vmem:[%s9637_s16 + $0x738] sm:$0xff]  ;;  %v3033_v20 = vadd.f32 %v10919_v10, %v1863_v63 }
 0x5a3   : > { %v5930_v7 = vpop.f32.mrf.mxu1 }
 0x5a4   : > { %7620 = vst.msk [vmem:[%s11426_s22 + $0x200] sm:$0xff] %vm7555_vm2, %v7491_v54  ;;  %v6181_v4 = vadd.f32 %v5927_v40, %v5131_v39  ;;  %8667 = vmatmul.msk.f32.gmra.mxu3 %vm464_vm1, %v12644_v42  ;;  %v12739_v42 = vld [vmem:[%s9637_s16 + $0x2f8] sm:$0xff] }
 0x5a5   : > { %9447 = vmatmul.msk.f32.gmra.mxu2 %vm464_vm1, %v12719_v25  ;;  %8927 = vmatmul.msk.f32.gmra.mxu0 %vm464_vm1, %v12639_v3 }
 0x5a6   : > { %9187 = vmatmul.msk.f32.gmra.mxu1 %vm464_vm1, %v12724_v9  ;;  %v7232_v55 = vadd.f32 %v6978_v61, %v6181_v4  ;;  %v1866_v4 = vadd.f32 %v10926_v27, %v10924_v16 }
 0x5a7   : > { %v3829_v15 = vpop.f32.mrf.mxu3 }
 0x5a8   : > { %v6981_v8 = vpop.f32.mrf.mxu2  ;;  %v7364_v1 = vadd.f32 %v12515_v35, %v7232_v55  ;;  %v4081_v56 = vadd.f32 %v3829_v15, %v3031_v22  ;;  %v3034_v16 = vadd.f32 %v10936_v38, %v1866_v4  ;;  %v12844_v4 = vld [vmem:[%s9637_s16 + $0x760] sm:$0xff] }
 0x5aa   : > { %v7492_v33 = vmax.f32 %v7364_v1, 0.0  ;;  %v5132_v21 = vadd.f32 %v4880_v29, %v4081_v56  ;;  %v4883_v3 = vpop.f32.mrf.mxu0 }
 0x5ab   : > { %v5933_v47 = vpop.f32.mrf.mxu1 }
 0x5ac   : > { %7621 = vst.msk [vmem:[%s11426_s22 + $0x208] sm:$0xff] %vm7555_vm2, %v7492_v33  ;;  %v6182_v5 = vadd.f32 %v5930_v7, %v5132_v21  ;;  %8668 = vmatmul.msk.f32.gmra.mxu3 %vm464_vm1, %v12664_v11  ;;  %v12759_v11 = vld [vmem:[%s9637_s16 + $0x300] sm:$0xff]  ;;  %v1869_v21 = vadd.f32 %v10943_v34, %v10941_v50 }
 0x5ad   : > { %9448 = vmatmul.msk.f32.gmra.mxu2 %vm464_vm1, %v12739_v42  ;;  %8928 = vmatmul.msk.f32.gmra.mxu0 %vm464_vm1, %v12659_v59 }
 0x5ae   : > { %9188 = vmatmul.msk.f32.gmra.mxu1 %vm464_vm1, %v12744_v36  ;;  %v7233_v37 = vadd.f32 %v6981_v8, %v6182_v5  ;;  %v12784_v8 = vld [vmem:[%s9637_s16 + $0x748] sm:$0xff]  ;;  %v3035_v50 = vadd.f32 %v10953_v43, %v1869_v21 }
 0x5af   : > { %v3832_v40 = vpop.f32.mrf.mxu3 }
 0x5b0   : > { %v6984_v53 = vpop.f32.mrf.mxu2  ;;  %v7365_v60 = vadd.f32 %v12515_v35, %v7233_v37  ;;  %v4082_v45 = vadd.f32 %v3832_v40, %v3032_v58  ;;  %v12804_v58 = vld [vmem:[%s9637_s16 + $0x750] sm:$0xff] }
 0x5b2   : > { %v7493_v61 = vmax.f32 %v7365_v60, 0.0  ;;  %v5133_v57 = vadd.f32 %v4883_v3, %v4082_v45  ;;  %v4886_v59 = vpop.f32.mrf.mxu0  ;;  %v1872_v45 = vadd.f32 %v10960_v44, %v10958_v6 }
 0x5b3   : > { %v5936_v49 = vpop.f32.mrf.mxu1 }
 0x5b4   : > { %7622 = vst.msk [vmem:[%s11426_s22 + $0x210] sm:$0xff] %vm7555_vm2, %v7493_v61  ;;  %v6183_v62 = vadd.f32 %v5933_v47, %v5133_v57  ;;  %8669 = vmatmul.msk.f32.gmra.mxu3 %vm464_vm1, %v12684_v0  ;;  %v12779_v0 = vld [vmem:[%s9637_s16 + $0x308] sm:$0xff]  ;;  %v3036_v6 = vadd.f32 %v10970_v41, %v1872_v45 }
 0x5b5   : > { %9449 = vmatmul.msk.f32.gmra.mxu2 %vm464_vm1, %v12759_v11  ;;  %8929 = vmatmul.msk.f32.gmra.mxu0 %vm464_vm1, %v12679_v14 }
 0x5b6   : > { %9189 = vmatmul.msk.f32.gmra.mxu1 %vm464_vm1, %v12764_v48  ;;  %v7234_v31 = vadd.f32 %v6984_v53, %v6183_v62 }
 0x5b7   : > { %v3835_v54 = vpop.f32.mrf.mxu3 }
 0x5b8   : > { %v6987_v39 = vpop.f32.mrf.mxu2  ;;  %v7366_v29 = vadd.f32 %v12515_v35, %v7234_v31  ;;  %v4083_v7 = vadd.f32 %v3835_v54, %v3033_v20  ;;  %v1875_v54 = vadd.f32 %v10977_v52, %v10975_v2 }
 0x5ba   : > { %v7494_v22 = vmax.f32 %v7366_v29, 0.0  ;;  %v5134_v55 = vadd.f32 %v4886_v59, %v4083_v7  ;;  %v4889_v14 = vpop.f32.mrf.mxu0  ;;  %v12824_v59 = vld [vmem:[%s9637_s16 + $0x758] sm:$0xff]  ;;  %v3037_v2 = vadd.f32 %v10987_v51, %v1875_v54 }
 0x5bb   : > { %v5939_v15 = vpop.f32.mrf.mxu1 }
 0x5bc   : > { %7623 = vst.msk [vmem:[%s11426_s22 + $0x218] sm:$0xff] %vm7555_vm2, %v7494_v22  ;;  %v6184_v10 = vadd.f32 %v5936_v49, %v5134_v55  ;;  %8670 = vmatmul.msk.f32.gmra.mxu3 %vm464_vm1, %v12704_v32  ;;  %v12799_v32 = vld [vmem:[%s9637_s16 + $0x310] sm:$0xff] }
 0x5bd   : > { %9450 = vmatmul.msk.f32.gmra.mxu2 %vm464_vm1, %v12779_v0  ;;  %8930 = vmatmul.msk.f32.gmra.mxu0 %vm464_vm1, %v12699_v46 }
 0x5be   : > { %9190 = vmatmul.msk.f32.gmra.mxu1 %vm464_vm1, %v12784_v8  ;;  %v7235_v27 = vadd.f32 %v6987_v39, %v6184_v10  ;;  %v1878_v10 = vadd.f32 %v10994_v18, %v10992_v23 }
 0x5bf   : > { %v3838_v1 = vpop.f32.mrf.mxu3 }
 0x5c0   : > { %v6990_v56 = vpop.f32.mrf.mxu2  ;;  %v7367_v28 = vadd.f32 %v12515_v35, %v7235_v27  ;;  %v4084_v33 = vadd.f32 %v3838_v1, %v3034_v16  ;;  %v3038_v23 = vadd.f32 %v11004_v12, %v1878_v10  ;;  %v14208_v10 = vld [vmem:[#allocation235_spill] sm:$0xff] }
 0x5c2   : > { %v7495_v3 = vmax.f32 %v7367_v28, 0.0  ;;  %v5135_v47 = vadd.f32 %v4889_v14, %v4084_v33  ;;  %v4892_v46 = vpop.f32.mrf.mxu0 }
 0x5c3   : > { %v5942_v5 = vpop.f32.mrf.mxu1 }
 0x5c4   : > { %7624 = vst.msk [vmem:[%s11426_s22 + $0x220] sm:$0xff] %vm7555_vm2, %v7495_v3  ;;  %v6185_v38 = vadd.f32 %v5939_v15, %v5135_v47  ;;  %8671 = vmatmul.msk.f32.gmra.mxu3 %vm464_vm1, %v12724_v9  ;;  %v12819_v9 = vld [vmem:[%s9637_s16 + $0x318] sm:$0xff]  ;;  %v1881_v47 = vadd.f32 %v11011_v30, %v11009_v17 }
 0x5c5   : > { %9451 = vmatmul.msk.f32.gmra.mxu2 %vm464_vm1, %v12799_v32  ;;  %8931 = vmatmul.msk.f32.gmra.mxu0 %vm464_vm1, %v12719_v25 }
 0x5c6   : > { %9191 = vmatmul.msk.f32.gmra.mxu1 %vm464_vm1, %v12804_v58  ;;  %v7236_v34 = vadd.f32 %v6990_v56, %v6185_v38  ;;  %v12864_v56 = vld [vmem:[%s9637_s16 + $0x768] sm:$0xff]  ;;  %v3039_v17 = vadd.f32 %v11021_v19, %v1881_v47 }
 0x5c7   : > { %v3841_v37 = vpop.f32.mrf.mxu3 }
 0x5c8   : > { %v6993_v40 = vpop.f32.mrf.mxu2  ;;  %v7368_v53 = vadd.f32 %v12515_v35, %v7236_v34  ;;  %v4085_v60 = vadd.f32 %v3841_v37, %v3035_v50  ;;  %v12884_v50 = vld [vmem:[%s9637_s16 + $0x770] sm:$0xff] }
 0x5ca   : > { %v7496_v63 = vmax.f32 %v7368_v53, 0.0  ;;  %v5136_v61 = vadd.f32 %v4892_v46, %v4085_v60  ;;  %v4895_v25 = vpop.f32.mrf.mxu0  ;;  %v14204_v60 = vld [vmem:[#allocation232_spill] sm:$0xff] }
 0x5cb   : > { %v5945_v57 = vpop.f32.mrf.mxu1  ;;  %v1884_v45 = vadd.f32 %v14204_v60, %v11026_v13 }
 0x5cc   : > { %7625 = vst.msk [vmem:[%s11426_s22 + $0x228] sm:$0xff] %vm7555_vm2, %v7496_v63  ;;  %v6186_v43 = vadd.f32 %v5942_v5, %v5136_v61  ;;  %8672 = vmatmul.msk.f32.gmra.mxu3 %vm464_vm1, %v12744_v36  ;;  %v12839_v36 = vld [vmem:[%s9637_s16 + $0x320] sm:$0xff] }
 0x5cd   : > { %9452 = vmatmul.msk.f32.gmra.mxu2 %vm464_vm1, %v12819_v9  ;;  %8932 = vmatmul.msk.f32.gmra.mxu0 %vm464_vm1, %v12739_v42  ;;  %v3040_v13 = vadd.f32 %v11038_v24, %v1884_v45 }
 0x5ce   : > { %9192 = vmatmul.msk.f32.gmra.mxu1 %vm464_vm1, %v12824_v59  ;;  %v7237_v44 = vadd.f32 %v6993_v40, %v6186_v43 }
 0x5cf   : > { %v3844_v49 = vpop.f32.mrf.mxu3 }
 0x5d0   : > { %v6996_v62 = vpop.f32.mrf.mxu2  ;;  %v7369_v20 = vadd.f32 %v12515_v35, %v7237_v44  ;;  %v4086_v31 = vadd.f32 %v3844_v49, %v3036_v6 }
 0x5d2   : > { %v7497_v39 = vmax.f32 %v7369_v20, 0.0  ;;  %v5137_v29 = vadd.f32 %v4895_v25, %v4086_v31  ;;  %v4898_v42 = vpop.f32.mrf.mxu0  ;;  %v14205_v20 = vld [vmem:[#allocation233_spill] sm:$0xff]  ;;  %v14206_v31 = vld [vmem:[#allocation234_spill] sm:$0xff] }
 0x5d3   : > { %v5948_v7 = vpop.f32.mrf.mxu1  ;;  %v1887_v54 = vadd.f32 %v14206_v31, %v14205_v20 }
 0x5d4   : > { %7626 = vst.msk [vmem:[%s11426_s22 + $0x230] sm:$0xff] %vm7555_vm2, %v7497_v39  ;;  %v6187_v41 = vadd.f32 %v5945_v57, %v5137_v29  ;;  %8673 = vmatmul.msk.f32.gmra.mxu3 %vm464_vm1, %v12764_v48  ;;  %v12859_v48 = vld [vmem:[%s9637_s16 + $0x328] sm:$0xff]  ;;  %v12904_v57 = vld [vmem:[%s9637_s16 + $0x778] sm:$0xff] }
 0x5d5   : > { %9453 = vmatmul.msk.f32.gmra.mxu2 %vm464_vm1, %v12839_v36  ;;  %8933 = vmatmul.msk.f32.gmra.mxu0 %vm464_vm1, %v12759_v11 }
 0x5d6   : > { %9193 = vmatmul.msk.f32.gmra.mxu1 %vm464_vm1, %v12844_v4  ;;  %v7238_v52 = vadd.f32 %v6996_v62, %v6187_v41  ;;  %v3041_v41 = vadd.f32 %v11055_v26, %v1887_v54 }
 0x5d7   : > { %v3847_v22 = vpop.f32.mrf.mxu3 }
 0x5d8   : > { %v6999_v55 = vpop.f32.mrf.mxu2  ;;  %v7370_v14 = vadd.f32 %v12515_v35, %v7238_v52  ;;  %v4087_v15 = vadd.f32 %v3847_v22, %v3037_v2 }
 0x5da   : > { %v7498_v16 = vmax.f32 %v7370_v14, 0.0  ;;  %v5138_v27 = vadd.f32 %v4898_v42, %v4087_v15  ;;  %v4901_v11 = vpop.f32.mrf.mxu0  ;;  %v14207_v15 = vld [vmem:[#allocation157_spill] sm:$0xff] }
 0x5db   : > { %v5951_v1 = vpop.f32.mrf.mxu1 }
 0x5dc   : > { %7627 = vst.msk [vmem:[%s11426_s22 + $0x238] sm:$0xff] %vm7555_vm2, %v7498_v16  ;;  %v6188_v51 = vadd.f32 %v5948_v7, %v5138_v27  ;;  %8674 = vmatmul.msk.f32.gmra.mxu3 %vm464_vm1, %v12784_v8  ;;  %v12879_v8 = vld [vmem:[%s9637_s16 + $0x330] sm:$0xff]  ;;  %v12924_v7 = vld [vmem:[%s9637_s16 + $0x780] sm:$0xff]  ;;  %v1890_v16 = vadd.f32 %v14208_v10, %v14207_v15 }
 0x5dd   : > { %9454 = vmatmul.msk.f32.gmra.mxu2 %vm464_vm1, %v12859_v48  ;;  %8934 = vmatmul.msk.f32.gmra.mxu0 %vm464_vm1, %v12779_v0  ;;  %v14218_v15 = vld [vmem:[#allocation56_spill] sm:$0xff] }
 0x5de   : > { %9194 = vmatmul.msk.f32.gmra.mxu1 %vm464_vm1, %v12864_v56  ;;  %v7239_v18 = vadd.f32 %v6999_v55, %v6188_v51  ;;  %v12944_v51 = vld [vmem:[%s9637_s16 + $0x788] sm:$0xff] }
 0x5df   : > { %v3850_v28 = vpop.f32.mrf.mxu3 }
 0x5e0   : > { %v7002_v33 = vpop.f32.mrf.mxu2  ;;  %v7371_v21 = vadd.f32 %v12515_v35, %v7239_v18  ;;  %v4088_v3 = vadd.f32 %v3850_v28, %v3038_v23  ;;  %v14209_v23 = vld [vmem:[#allocation44_spill] sm:$0xff] }
 0x5e1   : > { %v3042_v18 = vadd.f32 %v14209_v23, %v1890_v16  ;;  %v14220_v23 = vld [vmem:[#allocation245_spill] sm:$0xff] }
 0x5e2   : > { %v7499_v46 = vmax.f32 %v7371_v21, 0.0  ;;  %v5139_v5 = vadd.f32 %v4901_v11, %v4088_v3  ;;  %v4904_v0 = vpop.f32.mrf.mxu0 }
 0x5e3   : > { %v5954_v38 = vpop.f32.mrf.mxu1 }
 0x5e4   : > { %7628 = vst.msk [vmem:[%s11426_s22 + $0x240] sm:$0xff] %vm7555_vm2, %v7499_v46  ;;  %v6189_v12 = vadd.f32 %v5951_v1, %v5139_v5  ;;  %8675 = vmatmul.msk.f32.gmra.mxu3 %vm464_vm1, %v12804_v58  ;;  %v12899_v58 = vld [vmem:[%s9637_s16 + $0x338] sm:$0xff]  ;;  %v14211_v5 = vld [vmem:[#allocation238_spill] sm:$0xff] }
 0x5e5   : > { %9455 = vmatmul.msk.f32.gmra.mxu2 %vm464_vm1, %v12879_v8  ;;  %8935 = vmatmul.msk.f32.gmra.mxu0 %vm464_vm1, %v12799_v32  ;;  %v14210_v46 = vld [vmem:[#allocation237_spill] sm:$0xff] }
 0x5e6   : > { %9195 = vmatmul.msk.f32.gmra.mxu1 %vm464_vm1, %v12884_v50  ;;  %v7240_v30 = vadd.f32 %v7002_v33, %v6189_v12 }
 0x5e7   : > { %v3853_v34 = vpop.f32.mrf.mxu3 }
 0x5e8   : > { %v7005_v37 = vpop.f32.mrf.mxu2  ;;  %v7372_v40 = vadd.f32 %v12515_v35, %v7240_v30  ;;  %v4089_v53 = vadd.f32 %v3853_v34, %v3039_v17  ;;  %v12964_v30 = vld [vmem:[%s9637_s16 + $0x790] sm:$0xff] }
 0x5ea   : > { %v7500_v63 = vmax.f32 %v7372_v40, 0.0  ;;  %v5140_v61 = vadd.f32 %v4904_v0, %v4089_v53  ;;  %v4907_v32 = vpop.f32.mrf.mxu0  ;;  %v1893_v0 = vadd.f32 %v14211_v5, %v14210_v46  ;;  %v14221_v46 = vld [vmem:[#allocation60_spill] sm:$0xff] }
 0x5eb   : > { %v5957_v25 = vpop.f32.mrf.mxu1 }
 0x5ec   : > { %7629 = vst.msk [vmem:[%s11426_s22 + $0x248] sm:$0xff] %vm7555_vm2, %v7500_v63  ;;  %v6190_v19 = vadd.f32 %v5954_v38, %v5140_v61  ;;  %8676 = vmatmul.msk.f32.gmra.mxu3 %vm464_vm1, %v12824_v59  ;;  %v12919_v59 = vld [vmem:[%s9637_s16 + $0x340] sm:$0xff] }
 0x5ed   : > { %9456 = vmatmul.msk.f32.gmra.mxu2 %vm464_vm1, %v12899_v58  ;;  %8936 = vmatmul.msk.f32.gmra.mxu0 %vm464_vm1, %v12819_v9 }
 0x5ee   : > { %9196 = vmatmul.msk.f32.gmra.mxu1 %vm464_vm1, %v12904_v57  ;;  %v7241_v43 = vadd.f32 %v7005_v37, %v6190_v19  ;;  %v14212_v37 = vld [vmem:[#allocation48_spill] sm:$0xff] }
 0x5ef   : > { %v3856_v6 = vpop.f32.mrf.mxu3  ;;  %v3043_v40 = vadd.f32 %v14212_v37, %v1893_v0  ;;  %v14223_v37 = vld [vmem:[#allocation248_spill] sm:$0xff] }
 0x5f0   : > { %v7008_v44 = vpop.f32.mrf.mxu2  ;;  %v7373_v49 = vadd.f32 %v12515_v35, %v7241_v43  ;;  %v4090_v62 = vadd.f32 %v3856_v6, %v3040_v13 }
 0x5f2   : > { %v7501_v39 = vmax.f32 %v7373_v49, 0.0  ;;  %v5141_v29 = vadd.f32 %v4907_v32, %v4090_v62  ;;  %v4910_v9 = vpop.f32.mrf.mxu0  ;;  %v14213_v32 = vld [vmem:[#allocation239_spill] sm:$0xff]  ;;  %v14215_v62 = vld [vmem:[#allocation52_spill] sm:$0xff] }
 0x5f3   : > { %v5960_v42 = vpop.f32.mrf.mxu1 }
 0x5f4   : > { %7630 = vst.msk [vmem:[%s11426_s22 + $0x250] sm:$0xff] %vm7555_vm2, %v7501_v39  ;;  %v6191_v24 = vadd.f32 %v5957_v25, %v5141_v29  ;;  %8677 = vmatmul.msk.f32.gmra.mxu3 %vm464_vm1, %v12844_v4  ;;  %v12939_v4 = vld [vmem:[%s9637_s16 + $0x348] sm:$0xff]  ;;  %v14214_v25 = vld [vmem:[#allocation240_spill] sm:$0xff] }
 0x5f5   : > { %9457 = vmatmul.msk.f32.gmra.mxu2 %vm464_vm1, %v12919_v59  ;;  %8937 = vmatmul.msk.f32.gmra.mxu0 %vm464_vm1, %v12839_v36  ;;  %v1896_v19 = vadd.f32 %v14214_v25, %v14213_v32 }
 0x5f6   : > { %9197 = vmatmul.msk.f32.gmra.mxu1 %vm464_vm1, %v12924_v7  ;;  %v7242_v2 = vadd.f32 %v7008_v44, %v6191_v24  ;;  %v12984_v44 = vld [vmem:[%s9637_s16 + $0x798] sm:$0xff]  ;;  %v14217_v24 = vld [vmem:[#allocation242_spill] sm:$0xff] }
 0x5f7   : > { %v3859_v52 = vpop.f32.mrf.mxu3  ;;  %v3044_v20 = vadd.f32 %v14215_v62, %v1896_v19 }
 0x5f8   : > { %v7011_v22 = vpop.f32.mrf.mxu2  ;;  %v7374_v55 = vadd.f32 %v12515_v35, %v7242_v2  ;;  %v4091_v14 = vadd.f32 %v3859_v52, %v3041_v41 }
 0x5fa   : > { %v7502_v27 = vmax.f32 %v7374_v55, 0.0  ;;  %v5142_v11 = vadd.f32 %v4910_v9, %v4091_v14  ;;  %v4913_v36 = vpop.f32.mrf.mxu0  ;;  %v13004_v55 = vld [vmem:[%s9637_s16 + $0x7a0] sm:$0xff] }
 0x5fb   : > { %v5963_v1 = vpop.f32.mrf.mxu1 }
 0x5fc   : > { %7631 = vst.msk [vmem:[%s11426_s22 + $0x258] sm:$0xff] %vm7555_vm2, %v7502_v27  ;;  %v6192_v26 = vadd.f32 %v5960_v42, %v5142_v11  ;;  %8678 = vmatmul.msk.f32.gmra.mxu3 %vm464_vm1, %v12864_v56  ;;  %v12959_v56 = vld [vmem:[%s9637_s16 + $0x350] sm:$0xff]  ;;  %v14216_v42 = vld [vmem:[#allocation241_spill] sm:$0xff] }
 0x5fd   : > { %9458 = vmatmul.msk.f32.gmra.mxu2 %vm464_vm1, %v12939_v4  ;;  %8938 = vmatmul.msk.f32.gmra.mxu0 %vm464_vm1, %v12859_v48  ;;  %v1899_v41 = vadd.f32 %v14217_v24, %v14216_v42  ;;  %v14227_v42 = vld [vmem:[#allocation68_spill] sm:$0xff] }
 0x5fe   : > { %9198 = vmatmul.msk.f32.gmra.mxu1 %vm464_vm1, %v12944_v51  ;;  %v7243_v28 = vadd.f32 %v7011_v22, %v6192_v26  ;;  %v14219_v26 = vld [vmem:[#allocation244_spill] sm:$0xff] }
 0x5ff   : > { %v3862_v33 = vpop.f32.mrf.mxu3  ;;  %v3045_v10 = vadd.f32 %v14218_v15, %v1899_v41  ;;  %v14229_v15 = vld [vmem:[#allocation254_spill] sm:$0xff] }
 0x600   : > { %v7014_v21 = vpop.f32.mrf.mxu2  ;;  %v7375_v3 = vadd.f32 %v12515_v35, %v7243_v28  ;;  %v4092_v47 = vadd.f32 %v3862_v33, %v3042_v18  ;;  %v1902_v18 = vadd.f32 %v14220_v23, %v14219_v26  ;;  %v14230_v26 = vld [vmem:[#allocation72_spill] sm:$0xff] }
 0x602   : > { %v7503_v38 = vmax.f32 %v7375_v3, 0.0  ;;  %v5143_v12 = vadd.f32 %v4913_v36, %v4092_v47  ;;  %v4916_v48 = vpop.f32.mrf.mxu0  ;;  %v13024_v3 = vld [vmem:[%s9637_s16 + $0x7a8] sm:$0xff]  ;;  %v3046_v5 = vadd.f32 %v14221_v46, %v1902_v18  ;;  %v14232_v46 = vld [vmem:[#allocation257_spill] sm:$0xff] }
 0x603   : > { %v5966_v17 = vpop.f32.mrf.mxu1 }
 0x604   : > { %7632 = vst.msk [vmem:[%s11426_s22 + $0x260] sm:$0xff] %vm7555_vm2, %v7503_v38  ;;  %v6193_v34 = vadd.f32 %v5963_v1, %v5143_v12  ;;  %8679 = vmatmul.msk.f32.gmra.mxu3 %vm464_vm1, %v12884_v50  ;;  %v12979_v50 = vld [vmem:[%s9637_s16 + $0x358] sm:$0xff] }
 0x605   : > { %9459 = vmatmul.msk.f32.gmra.mxu2 %vm464_vm1, %v12959_v56  ;;  %8939 = vmatmul.msk.f32.gmra.mxu0 %vm464_vm1, %v12879_v8 }
 0x606   : > { %9199 = vmatmul.msk.f32.gmra.mxu1 %vm464_vm1, %v12964_v30  ;;  %v7244_v53 = vadd.f32 %v7014_v21, %v6193_v34  ;;  %v14222_v34 = vld [vmem:[#allocation247_spill] sm:$0xff] }
 0x607   : > { %v3865_v60 = vpop.f32.mrf.mxu3 }
 0x608   : > { %v7017_v45 = vpop.f32.mrf.mxu2  ;;  %v7376_v63 = vadd.f32 %v12515_v35, %v7244_v53  ;;  %v4093_v61 = vadd.f32 %v3865_v60, %v3043_v40  ;;  %v1905_v40 = vadd.f32 %v14223_v37, %v14222_v34  ;;  %v14233_v34 = vld [vmem:[#allocation76_spill] sm:$0xff] }
 0x60a   : > { %v7504_v13 = vmax.f32 %v7376_v63, 0.0  ;;  %v5144_v43 = vadd.f32 %v4916_v48, %v4093_v61  ;;  %v4919_v8 = vpop.f32.mrf.mxu0  ;;  %v13044_v63 = vld [vmem:[%s9637_s16 + $0x7b0] sm:$0xff] }
 0x60b   : > { %v5969_v6 = vpop.f32.mrf.mxu1 }
 0x60c   : > { %7633 = vst.msk [vmem:[%s11426_s22 + $0x268] sm:$0xff] %vm7555_vm2, %v7504_v13  ;;  %v6194_v49 = vadd.f32 %v5966_v17, %v5144_v43  ;;  %8680 = vmatmul.msk.f32.gmra.mxu3 %vm464_vm1, %v12904_v57  ;;  %v12999_v57 = vld [vmem:[%s9637_s16 + $0x360] sm:$0xff] }
 0x60d   : > { %9460 = vmatmul.msk.f32.gmra.mxu2 %vm464_vm1, %v12979_v50  ;;  %8940 = vmatmul.msk.f32.gmra.mxu0 %vm464_vm1, %v12899_v58 }
 0x60e   : > { %9200 = vmatmul.msk.f32.gmra.mxu1 %vm464_vm1, %v12984_v44  ;;  %v7245_v31 = vadd.f32 %v7017_v45, %v6194_v49  ;;  %v14226_v49 = vld [vmem:[#allocation251_spill] sm:$0xff] }
 0x60f   : > { %v3868_v54 = vpop.f32.mrf.mxu3 }
 0x610   : > { %v7020_v39 = vpop.f32.mrf.mxu2  ;;  %v7377_v29 = vadd.f32 %v12515_v35, %v7245_v31  ;;  %v4094_v9 = vadd.f32 %v3868_v54, %v3044_v20 }
 0x612   : > { %v7505_v2 = vmax.f32 %v7377_v29, 0.0  ;;  %v5145_v52 = vadd.f32 %v4919_v8, %v4094_v9  ;;  %v4922_v58 = vpop.f32.mrf.mxu0  ;;  %v13069_v29 = vld [vmem:[%s9637_s16 + $0x7b8] sm:$0xff] }
 0x613   : > { %v5972_v22 = vpop.f32.mrf.mxu1 }
 0x614   : > { %7634 = vst.msk [vmem:[%s11426_s22 + $0x270] sm:$0xff] %vm7555_vm2, %v7505_v2  ;;  %v6195_v14 = vadd.f32 %v5969_v6, %v5145_v52  ;;  %8681 = vmatmul.msk.f32.gmra.mxu3 %vm464_vm1, %v12924_v7  ;;  %v13019_v7 = vld [vmem:[%s9637_s16 + $0x368] sm:$0xff]  ;;  %v13064_v6 = vld [vmem:[%s9637_s16 + $0x378] sm:$0xff] }
 0x615   : > { %9461 = vmatmul.msk.f32.gmra.mxu2 %vm464_vm1, %v12999_v57  ;;  %8941 = vmatmul.msk.f32.gmra.mxu0 %vm464_vm1, %v12919_v59 }
 0x616   : > { %9201 = vmatmul.msk.f32.gmra.mxu1 %vm464_vm1, %v13004_v55  ;;  %v7246_v16 = vadd.f32 %v7020_v39, %v6195_v14  ;;  %v14228_v14 = vld [vmem:[#allocation253_spill] sm:$0xff] }
 0x617   : > { %v3871_v27 = vpop.f32.mrf.mxu3 }
 0x618   : > { %v7023_v11 = vpop.f32.mrf.mxu2  ;;  %v7378_v36 = vadd.f32 %v12515_v35, %v7246_v16  ;;  %v4095_v1 = vadd.f32 %v3871_v27, %v3045_v10  ;;  %v1911_v10 = vadd.f32 %v14229_v15, %v14228_v14  ;;  %v14239_v14 = vld [vmem:[#allocation84_spill] sm:$0xff] }
 0x61a   : > { %v7506_v28 = vmax.f32 %v7378_v36, 0.0  ;;  %v5146_v33 = vadd.f32 %v4922_v58, %v4095_v1  ;;  %v4925_v59 = vpop.f32.mrf.mxu0  ;;  %v13089_v36 = vld [vmem:[%s9637_s16 + $0x7c0] sm:$0xff]  ;;  %v3049_v23 = vadd.f32 %v14230_v26, %v1911_v10 }
 0x61b   : > { %v5975_v21 = vpop.f32.mrf.mxu1  ;;  %v14241_v26 = vld [vmem:[#allocation266_spill] sm:$0xff] }
 0x61c   : > { %7635 = vst.msk [vmem:[%s11426_s22 + $0x278] sm:$0xff] %vm7555_vm2, %v7506_v28  ;;  %v6196_v47 = vadd.f32 %v5972_v22, %v5146_v33  ;;  %8682 = vmatmul.msk.f32.gmra.mxu3 %vm464_vm1, %v12944_v51  ;;  %v13039_v51 = vld [vmem:[%s9637_s16 + $0x370] sm:$0xff] }
 0x61d   : > { %9462 = vmatmul.msk.f32.gmra.mxu2 %vm464_vm1, %v13019_v7  ;;  %8942 = vmatmul.msk.f32.gmra.mxu0 %vm464_vm1, %v12939_v4 }
 0x61e   : > { %9202 = vmatmul.msk.f32.gmra.mxu1 %vm464_vm1, %v13024_v3  ;;  %v7247_v0 = vadd.f32 %v7023_v11, %v6196_v47  ;;  %v14231_v47 = vld [vmem:[#allocation256_spill] sm:$0xff] }
 0x61f   : > { %v3874_v38 = vpop.f32.mrf.mxu3 }
 0x620   : > { %v7026_v12 = vpop.f32.mrf.mxu2  ;;  %v7379_v48 = vadd.f32 %v12515_v35, %v7247_v0  ;;  %v4096_v17 = vadd.f32 %v3874_v38, %v3046_v5  ;;  %v14224_v35 = vld [vmem:[#allocation64_spill] sm:$0xff]  ;;  %v1914_v5 = vadd.f32 %v14232_v46, %v14231_v47 }
 0x621   : > { %v3047_v32 = vadd.f32 %v14224_v35, %v1905_v40  ;;  %v14235_v35 = vld [vmem:[#allocation260_spill] sm:$0xff] }
 0x622   : > { %v7507_v53 = vmax.f32 %v7379_v48, 0.0  ;;  %v5147_v60 = vadd.f32 %v4925_v59, %v4096_v17  ;;  %v4928_v45 = vpop.f32.mrf.mxu0  ;;  %v13109_v48 = vld [vmem:[%s9637_s16 + $0x7c8] sm:$0xff]  ;;  %v3050_v37 = vadd.f32 %v14233_v34, %v1914_v5  ;;  %v14242_v47 = vld [vmem:[#allocation88_spill] sm:$0xff]  ;;  %v14244_v34 = vld [vmem:[#allocation269_spill] sm:$0xff] }
 0x623   : > { %v5978_v4 = vpop.f32.mrf.mxu1 }
 0x624   : > { %7636 = vst.msk [vmem:[%s11426_s22 + $0x280] sm:$0xff] %vm7555_vm2, %v7507_v53  ;;  %v6197_v61 = vadd.f32 %v5975_v21, %v5147_v60  ;;  %8683 = vmatmul.msk.f32.gmra.mxu3 %vm464_vm1, %v12964_v30  ;;  %v13060_v30 = vld [vmem:[%s13672_s2] ss:$0 sm:$0xff] }
 0x625   : > { %9463 = vmatmul.msk.f32.gmra.mxu2 %vm464_vm1, %v13039_v51  ;;  %8943 = vmatmul.msk.f32.gmra.mxu0 %vm464_vm1, %v12959_v56  ;;  %v14225_v56 = vld [vmem:[#allocation250_spill] sm:$0xff] }
 0x626   : > { %9203 = vmatmul.msk.f32.gmra.mxu1 %vm464_vm1, %v13044_v63  ;;  %v7248_v25 = vadd.f32 %v7026_v12, %v6197_v61  ;;  %v1908_v62 = vadd.f32 %v14226_v49, %v14225_v56  ;;  %v14234_v61 = vld [vmem:[#allocation259_spill] sm:$0xff]  ;;  %v14236_v56 = vld [vmem:[#allocation80_spill] sm:$0xff] }
 0x627   : > { %v3877_v19 = vpop.f32.mrf.mxu3 }
 0x628   : > { %v7029_v13 = vpop.f32.mrf.mxu2  ;;  %v7380_v43 = vadd.f32 %v13060_v30, %v7248_v25  ;;  %v4097_v8 = vadd.f32 %v3877_v19, %v3047_v32  ;;  %v3048_v24 = vadd.f32 %v14227_v42, %v1908_v62  ;;  %v1917_v32 = vadd.f32 %v14235_v35, %v14234_v61  ;;  %v14238_v42 = vld [vmem:[#allocation263_spill] sm:$0xff]  ;;  %v14245_v61 = vld [vmem:[#allocation92_spill] sm:$0xff] }
 0x62a   : > { %v7508_v20 = vmax.f32 %v7380_v43, 0.0  ;;  %v5148_v31 = vadd.f32 %v4928_v45, %v4097_v8  ;;  %v4931_v54 = vpop.f32.mrf.mxu0  ;;  %v13129_v43 = vld [vmem:[%s9637_s16 + $0x7d0] sm:$0xff]  ;;  %v3051_v49 = vadd.f32 %v14236_v56, %v1917_v32 }
 0x62b   : > { %v5981_v39 = vpop.f32.mrf.mxu1  ;;  %v14247_v56 = vld [vmem:[#allocation272_spill] sm:$0xff] }
 0x62c   : > { %7637 = vst.msk [vmem:[%s11426_s22 + $0x288] sm:$0xff] %vm7555_vm2, %v7508_v20  ;;  %v6198_v9 = vadd.f32 %v5978_v4, %v5148_v31  ;;  %8684 = vmatmul.msk.f32.gmra.mxu3 %vm464_vm1, %v12984_v44  ;;  %v13084_v44 = vld [vmem:[%s9637_s16 + $0x380] sm:$0xff] }
 0x62d   : > { %9464 = vmatmul.msk.f32.gmra.mxu2 %vm464_vm1, %v13064_v6  ;;  %8944 = vmatmul.msk.f32.gmra.mxu0 %vm464_vm1, %v12979_v50 }
 0x62e   : > { %9204 = vmatmul.msk.f32.gmra.mxu1 %vm464_vm1, %v13069_v29  ;;  %v7249_v41 = vadd.f32 %v7029_v13, %v6198_v9  ;;  %v14237_v9 = vld [vmem:[#allocation262_spill] sm:$0xff] }
 0x62f   : > { %v3880_v2 = vpop.f32.mrf.mxu3 }
 0x630   : > { %v7032_v52 = vpop.f32.mrf.mxu2  ;;  %v7381_v58 = vadd.f32 %v13060_v30, %v7249_v41  ;;  %v4098_v22 = vadd.f32 %v3880_v2, %v3048_v24  ;;  %v1920_v24 = vadd.f32 %v14238_v42, %v14237_v9  ;;  %v14248_v9 = vld [vmem:[#allocation96_spill] sm:$0xff] }
 0x632   : > { %v7509_v16 = vmax.f32 %v7381_v58, 0.0  ;;  %v5149_v27 = vadd.f32 %v4931_v54, %v4098_v22  ;;  %v4934_v50 = vpop.f32.mrf.mxu0  ;;  %v13149_v58 = vld [vmem:[%s9637_s16 + $0x7d8] sm:$0xff]  ;;  %v3052_v15 = vadd.f32 %v14239_v14, %v1920_v24  ;;  %v14250_v14 = vld [vmem:[#allocation275_spill] sm:$0xff] }
 0x633   : > { %v5984_v11 = vpop.f32.mrf.mxu1 }
 0x634   : > { %7638 = vst.msk [vmem:[%s11426_s22 + $0x290] sm:$0xff] %vm7555_vm2, %v7509_v16  ;;  %v6199_v1 = vadd.f32 %v5981_v39, %v5149_v27  ;;  %8685 = vmatmul.msk.f32.gmra.mxu3 %vm464_vm1, %v13004_v55  ;;  %v13104_v55 = vld [vmem:[%s9637_s16 + $0x388] sm:$0xff] }
 0x635   : > { %9465 = vmatmul.msk.f32.gmra.mxu2 %vm464_vm1, %v13084_v44  ;;  %8945 = vmatmul.msk.f32.gmra.mxu0 %vm464_vm1, %v12999_v57 }
 0x636   : > { %9205 = vmatmul.msk.f32.gmra.mxu1 %vm464_vm1, %v13089_v36  ;;  %v7250_v18 = vadd.f32 %v7032_v52, %v6199_v1  ;;  %v14240_v1 = vld [vmem:[#allocation265_spill] sm:$0xff] }
 0x637   : > { %v3883_v28 = vpop.f32.mrf.mxu3 }
 0x638   : > { %v7035_v33 = vpop.f32.mrf.mxu2  ;;  %v7382_v59 = vadd.f32 %v13060_v30, %v7250_v18  ;;  %v4099_v21 = vadd.f32 %v3883_v28, %v3049_v23  ;;  %v1923_v23 = vadd.f32 %v14241_v26, %v14240_v1  ;;  %v14251_v1 = vld [vmem:[#allocation100_spill] sm:$0xff] }
 0x63a   : > { %v7510_v0 = vmax.f32 %v7382_v59, 0.0  ;;  %v5150_v38 = vadd.f32 %v4934_v50, %v4099_v21  ;;  %v4937_v57 = vpop.f32.mrf.mxu0  ;;  %v13169_v59 = vld [vmem:[%s9637_s16 + $0x7e0] sm:$0xff]  ;;  %v3053_v46 = vadd.f32 %v14242_v47, %v1923_v23 }
 0x63b   : > { %v5987_v12 = vpop.f32.mrf.mxu1  ;;  %v14253_v47 = vld [vmem:[#allocation278_spill] sm:$0xff] }
 0x63c   : > { %7639 = vst.msk [vmem:[%s11426_s22 + $0x298] sm:$0xff] %vm7555_vm2, %v7510_v0  ;;  %v6200_v17 = vadd.f32 %v5984_v11, %v5150_v38  ;;  %8686 = vmatmul.msk.f32.gmra.mxu3 %vm464_vm1, %v13024_v3  ;;  %v13124_v3 = vld [vmem:[%s9637_s16 + $0x390] sm:$0xff] }
 0x63d   : > { %9466 = vmatmul.msk.f32.gmra.mxu2 %vm464_vm1, %v13104_v55  ;;  %8946 = vmatmul.msk.f32.gmra.mxu0 %vm464_vm1, %v13019_v7 }
 0x63e   : > { %9206 = vmatmul.msk.f32.gmra.mxu1 %vm464_vm1, %v13109_v48  ;;  %v7251_v40 = vadd.f32 %v7035_v33, %v6200_v17  ;;  %v14243_v17 = vld [vmem:[#allocation268_spill] sm:$0xff] }
 0x63f   : > { %v3886_v53 = vpop.f32.mrf.mxu3 }
 0x640   : > { %v7038_v60 = vpop.f32.mrf.mxu2  ;;  %v7383_v45 = vadd.f32 %v13060_v30, %v7251_v40  ;;  %v4100_v4 = vadd.f32 %v3886_v53, %v3050_v37  ;;  %v1926_v37 = vadd.f32 %v14244_v34, %v14243_v17  ;;  %v14254_v17 = vld [vmem:[#allocation104_spill] sm:$0xff] }
 0x642   : > { %v7511_v25 = vmax.f32 %v7383_v45, 0.0  ;;  %v5151_v19 = vadd.f32 %v4937_v57, %v4100_v4  ;;  %v4940_v7 = vpop.f32.mrf.mxu0  ;;  %v13189_v45 = vld [vmem:[%s9637_s16 + $0x7e8] sm:$0xff]  ;;  %v3054_v35 = vadd.f32 %v14245_v61, %v1926_v37  ;;  %v14256_v61 = vld [vmem:[#allocation281_spill] sm:$0xff] }
 0x643   : > { %v5990_v13 = vpop.f32.mrf.mxu1 }
 0x644   : > { %7640 = vst.msk [vmem:[%s11426_s22 + $0x2a0] sm:$0xff] %vm7555_vm2, %v7511_v25  ;;  %v6201_v8 = vadd.f32 %v5987_v12, %v5151_v19  ;;  %8687 = vmatmul.msk.f32.gmra.mxu3 %vm464_vm1, %v13044_v63  ;;  %v13144_v63 = vld [vmem:[%s9637_s16 + $0x398] sm:$0xff] }
 0x645   : > { %9467 = vmatmul.msk.f32.gmra.mxu2 %vm464_vm1, %v13124_v3  ;;  %8947 = vmatmul.msk.f32.gmra.mxu0 %vm464_vm1, %v13039_v51 }
 0x646   : > { %9207 = vmatmul.msk.f32.gmra.mxu1 %vm464_vm1, %v13129_v43  ;;  %v7252_v62 = vadd.f32 %v7038_v60, %v6201_v8  ;;  %v14246_v8 = vld [vmem:[#allocation271_spill] sm:$0xff] }
 0x647   : > { %v3889_v20 = vpop.f32.mrf.mxu3 }
 0x648   : > { %v7041_v31 = vpop.f32.mrf.mxu2  ;;  %v7384_v54 = vadd.f32 %v13060_v30, %v7252_v62  ;;  %v4101_v39 = vadd.f32 %v3889_v20, %v3051_v49  ;;  %v1929_v49 = vadd.f32 %v14247_v56, %v14246_v8  ;;  %v14257_v8 = vld [vmem:[#allocation108_spill] sm:$0xff] }
 0x64a   : > { %v7512_v41 = vmax.f32 %v7384_v54, 0.0  ;;  %v5152_v2 = vadd.f32 %v4940_v7, %v4101_v39  ;;  %v4943_v51 = vpop.f32.mrf.mxu0  ;;  %v13209_v54 = vld [vmem:[%s9637_s16 + $0x7f0] sm:$0xff]  ;;  %v3055_v42 = vadd.f32 %v14248_v9, %v1929_v49 }
 0x64b   : > { %v5993_v52 = vpop.f32.mrf.mxu1  ;;  %v14259_v9 = vld [vmem:[#allocation284_spill] sm:$0xff] }
 0x64c   : > { %7641 = vst.msk [vmem:[%s11426_s22 + $0x2a8] sm:$0xff] %vm7555_vm2, %v7512_v41  ;;  %v6202_v22 = vadd.f32 %v5990_v13, %v5152_v2  ;;  %8688 = vmatmul.msk.f32.gmra.mxu3 %vm464_vm1, %v13069_v29  ;;  %v13164_v29 = vld [vmem:[%s9637_s16 + $0x3a0] sm:$0xff] }
 0x64d   : > { %9468 = vmatmul.msk.f32.gmra.mxu2 %vm464_vm1, %v13144_v63  ;;  %8948 = vmatmul.msk.f32.gmra.mxu0 %vm464_vm1, %v13064_v6 }
 0x64e   : > { %9208 = vmatmul.msk.f32.gmra.mxu1 %vm464_vm1, %v13149_v58  ;;  %v7253_v10 = vadd.f32 %v7041_v31, %v6202_v22  ;;  %v14249_v22 = vld [vmem:[#allocation274_spill] sm:$0xff] }
 0x64f   : > { %v3892_v16 = vpop.f32.mrf.mxu3 }
 0x650   : > { %v7044_v27 = vpop.f32.mrf.mxu2  ;;  %v7385_v50 = vadd.f32 %v13060_v30, %v7253_v10  ;;  %v4102_v11 = vadd.f32 %v3892_v16, %v3052_v15  ;;  %v1932_v15 = vadd.f32 %v14250_v14, %v14249_v22  ;;  %v14260_v22 = vld [vmem:[#allocation112_spill] sm:$0xff] }
 0x652   : > { %v7513_v18 = vmax.f32 %v7385_v50, 0.0  ;;  %v5153_v28 = vadd.f32 %v4943_v51, %v4102_v11  ;;  %v4946_v6 = vpop.f32.mrf.mxu0  ;;  %v13229_v50 = vld [vmem:[%s9637_s16 + $0x7f8] sm:$0xff]  ;;  %v3056_v26 = vadd.f32 %v14251_v1, %v1932_v15  ;;  %v14262_v1 = vld [vmem:[#allocation287_spill] sm:$0xff] }
 0x653   : > { %v5996_v33 = vpop.f32.mrf.mxu1 }
 0x654   : > { %7642 = vst.msk [vmem:[%s11426_s22 + $0x2b0] sm:$0xff] %vm7555_vm2, %v7513_v18  ;;  %v6203_v21 = vadd.f32 %v5993_v52, %v5153_v28  ;;  %8689 = vmatmul.msk.f32.gmra.mxu3 %vm464_vm1, %v13089_v36  ;;  %v13184_v36 = vld [vmem:[%s9637_s16 + $0x3a8] sm:$0xff] }
 0x655   : > { %9469 = vmatmul.msk.f32.gmra.mxu2 %vm464_vm1, %v13164_v29  ;;  %8949 = vmatmul.msk.f32.gmra.mxu0 %vm464_vm1, %v13084_v44 }
 0x656   : > { %9209 = vmatmul.msk.f32.gmra.mxu1 %vm464_vm1, %v13169_v59  ;;  %v7254_v5 = vadd.f32 %v7044_v27, %v6203_v21  ;;  %v14252_v21 = vld [vmem:[#allocation277_spill] sm:$0xff] }
 0x657   : > { %v3895_v0 = vpop.f32.mrf.mxu3 }
 0x658   : > { %v7047_v38 = vpop.f32.mrf.mxu2  ;;  %v7386_v57 = vadd.f32 %v13060_v30, %v7254_v5  ;;  %v4103_v12 = vadd.f32 %v3895_v0, %v3053_v46  ;;  %v1935_v46 = vadd.f32 %v14253_v47, %v14252_v21  ;;  %v14263_v21 = vld [vmem:[#allocation116_spill] sm:$0xff] }
 0x65a   : > { %v7514_v40 = vmax.f32 %v7386_v57, 0.0  ;;  %v5154_v53 = vadd.f32 %v4946_v6, %v4103_v12  ;;  %v4949_v44 = vpop.f32.mrf.mxu0  ;;  %v13249_v57 = vld [vmem:[%s9637_s16 + $0x800] sm:$0xff]  ;;  %v3057_v34 = vadd.f32 %v14254_v17, %v1935_v46 }
 0x65b   : > { %v5999_v60 = vpop.f32.mrf.mxu1 }
 0x65c   : > { %7643 = vst.msk [vmem:[%s11426_s22 + $0x2b8] sm:$0xff] %vm7555_vm2, %v7514_v40  ;;  %v6204_v4 = vadd.f32 %v5996_v33, %v5154_v53  ;;  %8690 = vmatmul.msk.f32.gmra.mxu3 %vm464_vm1, %v13109_v48  ;;  %v13204_v48 = vld [vmem:[%s9637_s16 + $0x3b0] sm:$0xff] }
 0x65d   : > { %9470 = vmatmul.msk.f32.gmra.mxu2 %vm464_vm1, %v13184_v36  ;;  %8950 = vmatmul.msk.f32.gmra.mxu0 %vm464_vm1, %v13104_v55 }
 0x65e   : > { %9210 = vmatmul.msk.f32.gmra.mxu1 %vm464_vm1, %v13189_v45  ;;  %v7255_v32 = vadd.f32 %v7047_v38, %v6204_v4  ;;  %v14255_v4 = vld [vmem:[#allocation280_spill] sm:$0xff] }
 0x65f   : > { %v3898_v25 = vpop.f32.mrf.mxu3 }
 0x660   : > { %v7050_v19 = vpop.f32.mrf.mxu2  ;;  %v7387_v7 = vadd.f32 %v13060_v30, %v7255_v32  ;;  %v4104_v13 = vadd.f32 %v3898_v25, %v3054_v35  ;;  %v1938_v35 = vadd.f32 %v14256_v61, %v14255_v4  ;;  %v14264_v61 = vld [vmem:[#allocation221_spill] sm:$0xff] }
 0x662   : > { %v7515_v62 = vmax.f32 %v7387_v7, 0.0  ;;  %v5155_v20 = vadd.f32 %v4949_v44, %v4104_v13  ;;  %v4952_v55 = vpop.f32.mrf.mxu0  ;;  %v13269_v7 = vld [vmem:[%s9637_s16 + $0x808] sm:$0xff]  ;;  %v3058_v56 = vadd.f32 %v14257_v8, %v1938_v35 }
 0x663   : > { %v6002_v31 = vpop.f32.mrf.mxu1 }
 0x664   : > { %7644 = vst.msk [vmem:[%s11426_s22 + $0x2c0] sm:$0xff] %vm7555_vm2, %v7515_v62  ;;  %v6205_v39 = vadd.f32 %v5999_v60, %v5155_v20  ;;  %8691 = vmatmul.msk.f32.gmra.mxu3 %vm464_vm1, %v13129_v43  ;;  %v13224_v43 = vld [vmem:[%s9637_s16 + $0x3b8] sm:$0xff] }
 0x665   : > { %9471 = vmatmul.msk.f32.gmra.mxu2 %vm464_vm1, %v13204_v48  ;;  %8951 = vmatmul.msk.f32.gmra.mxu0 %vm464_vm1, %v13124_v3 }
 0x666   : > { %9211 = vmatmul.msk.f32.gmra.mxu1 %vm464_vm1, %v13209_v54  ;;  %v7256_v24 = vadd.f32 %v7050_v19, %v6205_v39  ;;  %v14258_v39 = vld [vmem:[#allocation283_spill] sm:$0xff] }
 0x667   : > { %v3901_v41 = vpop.f32.mrf.mxu3 }
 0x668   : > { %v7053_v2 = vpop.f32.mrf.mxu2  ;;  %v7388_v51 = vadd.f32 %v13060_v30, %v7256_v24  ;;  %v4105_v52 = vadd.f32 %v3901_v41, %v3055_v42  ;;  %v1941_v42 = vadd.f32 %v14259_v9, %v14258_v39 }
 0x66a   : > { %v7516_v10 = vmax.f32 %v7388_v51, 0.0  ;;  %v5156_v16 = vadd.f32 %v4952_v55, %v4105_v52  ;;  %v4955_v3 = vpop.f32.mrf.mxu0  ;;  %v13289_v51 = vld [vmem:[%s9637_s16 + $0x810] sm:$0xff]  ;;  %v3059_v14 = vadd.f32 %v14260_v22, %v1941_v42  ;;  %v14266_v22 = vld [vmem:[#allocation223_spill] sm:$0xff] }
 0x66b   : > { %v6005_v27 = vpop.f32.mrf.mxu1 }
 0x66c   : > { %7645 = vst.msk [vmem:[%s11426_s22 + $0x2c8] sm:$0xff] %vm7555_vm2, %v7516_v10  ;;  %v6206_v11 = vadd.f32 %v6002_v31, %v5156_v16  ;;  %8692 = vmatmul.msk.f32.gmra.mxu3 %vm464_vm1, %v13149_v58  ;;  %v13244_v58 = vld [vmem:[%s9637_s16 + $0x3c0] sm:$0xff] }
 0x66d   : > { %9472 = vmatmul.msk.f32.gmra.mxu2 %vm464_vm1, %v13224_v43  ;;  %8952 = vmatmul.msk.f32.gmra.mxu0 %vm464_vm1, %v13144_v63 }
 0x66e   : > { %9212 = vmatmul.msk.f32.gmra.mxu1 %vm464_vm1, %v13229_v50  ;;  %v7257_v23 = vadd.f32 %v7053_v2, %v6206_v11  ;;  %v14261_v11 = vld [vmem:[#allocation286_spill] sm:$0xff] }
 0x66f   : > { %v3904_v18 = vpop.f32.mrf.mxu3 }
 0x670   : > { %v7056_v28 = vpop.f32.mrf.mxu2  ;;  %v7389_v6 = vadd.f32 %v13060_v30, %v7257_v23  ;;  %v4106_v33 = vadd.f32 %v3904_v18, %v3056_v26  ;;  %v1944_v26 = vadd.f32 %v14262_v1, %v14261_v11 }
 0x672   : > { %v7517_v5 = vmax.f32 %v7389_v6, 0.0  ;;  %v5157_v0 = vadd.f32 %v4955_v3, %v4106_v33  ;;  %v4958_v63 = vpop.f32.mrf.mxu0  ;;  %v13309_v6 = vld [vmem:[%s9637_s16 + $0x818] sm:$0xff]  ;;  %v3060_v47 = vadd.f32 %v14263_v21, %v1944_v26 }
 0x673   : > { %v6008_v38 = vpop.f32.mrf.mxu1 }
 0x674   : > { %7646 = vst.msk [vmem:[%s11426_s22 + $0x2d0] sm:$0xff] %vm7555_vm2, %v7517_v5  ;;  %v6207_v12 = vadd.f32 %v6005_v27, %v5157_v0  ;;  %8693 = vmatmul.msk.f32.gmra.mxu3 %vm464_vm1, %v13169_v59  ;;  %v13264_v59 = vld [vmem:[%s9637_s16 + $0x3c8] sm:$0xff] }
 0x675   : > { %9473 = vmatmul.msk.f32.gmra.mxu2 %vm464_vm1, %v13244_v58  ;;  %8953 = vmatmul.msk.f32.gmra.mxu0 %vm464_vm1, %v13164_v29 }
 0x676   : > { %9213 = vmatmul.msk.f32.gmra.mxu1 %vm464_vm1, %v13249_v57  ;;  %v7258_v37 = vadd.f32 %v7056_v28, %v6207_v12  ;;  %v13324_v12 = vld [vmem:[%s9637_s16 + $0x3e0] sm:$0xff] }
 0x677   : > { %v3907_v40 = vpop.f32.mrf.mxu3 }
 0x678   : > { %v7059_v53 = vpop.f32.mrf.mxu2  ;;  %v7390_v44 = vadd.f32 %v13060_v30, %v7258_v37  ;;  %v4107_v60 = vadd.f32 %v3907_v40, %v3057_v34  ;;  %v13327_v40 = vld [vmem:[%s9637_s16 + $0x820] sm:$0xff] }
 0x67a   : > { %v7518_v32 = vmax.f32 %v7390_v44, 0.0  ;;  %v5158_v25 = vadd.f32 %v4958_v63, %v4107_v60  ;;  %v4961_v29 = vpop.f32.mrf.mxu0 }
 0x67b   : > { %v6011_v19 = vpop.f32.mrf.mxu1 }
 0x67c   : > { %7647 = vst.msk [vmem:[%s11426_s22 + $0x2d8] sm:$0xff] %vm7555_vm2, %v7518_v32  ;;  %v6208_v13 = vadd.f32 %v6008_v38, %v5158_v25  ;;  %8694 = vmatmul.msk.f32.gmra.mxu3 %vm464_vm1, %v13189_v45  ;;  %v13284_v45 = vld [vmem:[%s9637_s16 + $0x3d0] sm:$0xff]  ;;  %v13342_v32 = vld [vmem:[%s9637_s16 + $0x3e8] sm:$0xff] }
 0x67d   : > { %9474 = vmatmul.msk.f32.gmra.mxu2 %vm464_vm1, %v13264_v59  ;;  %8954 = vmatmul.msk.f32.gmra.mxu0 %vm464_vm1, %v13184_v36 }
 0x67e   : > { %9214 = vmatmul.msk.f32.gmra.mxu1 %vm464_vm1, %v13269_v7  ;;  %v7259_v49 = vadd.f32 %v7059_v53, %v6208_v13  ;;  %v13345_v13 = vld [vmem:[%s9637_s16 + $0x828] sm:$0xff] }
 0x67f   : > { %v3910_v62 = vpop.f32.mrf.mxu3 }
 0x680   : > { %v7062_v20 = vpop.f32.mrf.mxu2  ;;  %v7391_v55 = vadd.f32 %v13060_v30, %v7259_v49  ;;  %v4108_v31 = vadd.f32 %v3910_v62, %v3058_v56 }
 0x682   : > { %v7519_v24 = vmax.f32 %v7391_v55, 0.0  ;;  %v5159_v41 = vadd.f32 %v4961_v29, %v4108_v31  ;;  %v4964_v36 = vpop.f32.mrf.mxu0  ;;  %v13360_v31 = vld [vmem:[%s9637_s16 + $0x3f0] sm:$0xff] }
 0x683   : > { %v6014_v2 = vpop.f32.mrf.mxu1 }
 0x684   : > { %7648 = vst.msk [vmem:[%s11426_s22 + $0x2e0] sm:$0xff] %vm7555_vm2, %v7519_v24  ;;  %v6209_v52 = vadd.f32 %v6011_v19, %v5159_v41  ;;  %8695 = vmatmul.msk.f32.gmra.mxu3 %vm464_vm1, %v13209_v54  ;;  %v13304_v54 = vld [vmem:[%s9637_s16 + $0x3d8] sm:$0xff]  ;;  %v13363_v24 = vld [vmem:[%s9637_s16 + $0x830] sm:$0xff] }
 0x685   : > { %9475 = vmatmul.msk.f32.gmra.mxu2 %vm464_vm1, %v13284_v45  ;;  %8955 = vmatmul.msk.f32.gmra.mxu0 %vm464_vm1, %v13204_v48 }
 0x686   : > { %9215 = vmatmul.msk.f32.gmra.mxu1 %vm464_vm1, %v13289_v51  ;;  %v7260_v15 = vadd.f32 %v7062_v20, %v6209_v52  ;;  %v14265_v20 = vld [vmem:[#allocation222_spill] sm:$0xff] }
 0x687   : > { %v3913_v10 = vpop.f32.mrf.mxu3 }
 0x688   : > { %v7065_v16 = vpop.f32.mrf.mxu2  ;;  %v7392_v3 = vadd.f32 %v13060_v30, %v7260_v15  ;;  %v4109_v27 = vadd.f32 %v3913_v10, %v3059_v14  ;;  %v13378_v15 = vld [vmem:[%s9637_s16 + $0x3f8] sm:$0xff] }
 0x68a   : > { %v7520_v23 = vmax.f32 %v7392_v3, 0.0  ;;  %v5160_v18 = vadd.f32 %v4964_v36, %v4109_v27  ;;  %v4967_v48 = vpop.f32.mrf.mxu0  ;;  %v13381_v27 = vld [vmem:[%s9637_s16 + $0x838] sm:$0xff] }
 0x68b   : > { %v6017_v28 = vpop.f32.mrf.mxu1 }
 0x68c   : > { %7649 = vst.msk [vmem:[%s11426_s22 + $0x2e8] sm:$0xff] %vm7555_vm2, %v7520_v23  ;;  %v6210_v33 = vadd.f32 %v6014_v2, %v5160_v18  ;;  %8696 = vmatmul.msk.f32.gmra.mxu3 %vm464_vm1, %v13229_v50  ;;  %v14267_v18 = vld [vmem:[#allocation224_spill] sm:$0xff] }
 0x68d   : > { %9476 = vmatmul.msk.f32.gmra.mxu2 %vm464_vm1, %v13304_v54  ;;  %8956 = vmatmul.msk.f32.gmra.mxu0 %vm464_vm1, %v13224_v43 }
 0x68e   : > { %9216 = vmatmul.msk.f32.gmra.mxu1 %vm464_vm1, %v13309_v6  ;;  %v7261_v46 = vadd.f32 %v7065_v16, %v6210_v33 }
 0x68f   : > { %v3916_v5 = vpop.f32.mrf.mxu3 }
 0x690   : > { %v7068_v0 = vpop.f32.mrf.mxu2  ;;  %v7393_v63 = vadd.f32 %v13060_v30, %v7261_v46  ;;  %v4110_v38 = vadd.f32 %v3916_v5, %v3060_v47  ;;  %v13399_v46 = vld [vmem:[%s9637_s16 + $0x840] sm:$0xff] }
 0x692   : > { %v7521_v50 = vmax.f32 %v7393_v63, 0.0  ;;  %v5161_v17 = vadd.f32 %v4967_v48, %v4110_v38  ;;  %v4970_v34 = vpop.f32.mrf.mxu0 }
 0x693   : > { %v6020_v37 = vpop.f32.mrf.mxu1 }
 0x694   : > { %7650 = vst.msk [vmem:[%s11426_s22 + $0x2f0] sm:$0xff] %vm7555_vm2, %v7521_v50  ;;  %v6211_v43 = vadd.f32 %v6017_v28, %v5161_v17  ;;  %8697 = vmatmul.msk.f32.gmra.mxu3 %vm464_vm1, %v13249_v57  ;;  %v13396_v28 = vld [vmem:[%s9637_s16 + $0x400] sm:$0xff]  ;;  %v14268_v50 = vld [vmem:[#allocation225_spill] sm:$0xff] }
 0x695   : > { %9477 = vmatmul.msk.f32.gmra.mxu2 %vm464_vm1, %v13324_v12  ;;  %8957 = vmatmul.msk.f32.gmra.mxu0 %vm464_vm1, %v13244_v58 }
 0x696   : > { %9217 = vmatmul.msk.f32.gmra.mxu1 %vm464_vm1, %v13327_v40  ;;  %v7262_v53 = vadd.f32 %v7068_v0, %v6211_v43 }
 0x697   : > { %v3919_v44 = vpop.f32.mrf.mxu3 }
 0x698   : > { %v7071_v60 = vpop.f32.mrf.mxu2  ;;  %v7394_v4 = vadd.f32 %v13060_v30, %v7262_v53  ;;  %v4111_v35 = vadd.f32 %v3919_v44, %v14264_v61  ;;  %v13417_v44 = vld [vmem:[%s9637_s16 + $0x848] sm:$0xff] }
 0x69a   : > { %v7522_v25 = vmax.f32 %v7394_v4, 0.0  ;;  %v5162_v57 = vadd.f32 %v4970_v34, %v4111_v35  ;;  %v4973_v29 = vpop.f32.mrf.mxu0  ;;  %v13414_v34 = vld [vmem:[%s9637_s16 + $0x408] sm:$0xff] }
 0x69b   : > { %v6023_v19 = vpop.f32.mrf.mxu1 }
 0x69c   : > { %7651 = vst.msk [vmem:[%s11426_s22 + $0x2f8] sm:$0xff] %vm7555_vm2, %v7522_v25  ;;  %v6212_v58 = vadd.f32 %v6020_v37, %v5162_v57  ;;  %8698 = vmatmul.msk.f32.gmra.mxu3 %vm464_vm1, %v13269_v7  ;;  %v14269_v25 = vld [vmem:[#allocation226_spill] sm:$0xff] }
 0x69d   : > { %9478 = vmatmul.msk.f32.gmra.mxu2 %vm464_vm1, %v13342_v32  ;;  %8958 = vmatmul.msk.f32.gmra.mxu0 %vm464_vm1, %v13264_v59 }
 0x69e   : > { %9218 = vmatmul.msk.f32.gmra.mxu1 %vm464_vm1, %v13345_v13  ;;  %v7263_v8 = vadd.f32 %v7071_v60, %v6212_v58 }
 0x69f   : > { %v3922_v56 = vpop.f32.mrf.mxu3 }
 0x6a0   : > { %v7074_v49 = vpop.f32.mrf.mxu2  ;;  %v7395_v62 = vadd.f32 %v13060_v30, %v7263_v8  ;;  %v4112_v55 = vadd.f32 %v3922_v56, %v14265_v20  ;;  %v13435_v56 = vld [vmem:[%s9637_s16 + $0x850] sm:$0xff] }
 0x6a2   : > { %v7523_v39 = vmax.f32 %v7395_v62, 0.0  ;;  %v5163_v7 = vadd.f32 %v4973_v29, %v4112_v55  ;;  %v4976_v9 = vpop.f32.mrf.mxu0  ;;  %v13432_v29 = vld [vmem:[%s9637_s16 + $0x410] sm:$0xff] }
 0x6a3   : > { %v6026_v42 = vpop.f32.mrf.mxu1 }
 0x6a4   : > { %7652 = vst.msk [vmem:[%s11426_s22 + $0x300] sm:$0xff] %vm7555_vm2, %v7523_v39  ;;  %v6213_v59 = vadd.f32 %v6023_v19, %v5163_v7  ;;  %8699 = vmatmul.msk.f32.gmra.mxu3 %vm464_vm1, %v13289_v51  ;;  %v14270_v39 = vld [vmem:[#allocation227_spill] sm:$0xff] }
 0x6a5   : > { %9479 = vmatmul.msk.f32.gmra.mxu2 %vm464_vm1, %v13360_v31  ;;  %8959 = vmatmul.msk.f32.gmra.mxu0 %vm464_vm1, %v13284_v45 }
 0x6a6   : > { %9219 = vmatmul.msk.f32.gmra.mxu1 %vm464_vm1, %v13363_v24  ;;  %v7264_v41 = vadd.f32 %v7074_v49, %v6213_v59 }
 0x6a7   : > { %v3925_v36 = vpop.f32.mrf.mxu3 }
 0x6a8   : > { %v7077_v2 = vpop.f32.mrf.mxu2  ;;  %v7396_v52 = vadd.f32 %v13060_v30, %v7264_v41  ;;  %v4113_v14 = vadd.f32 %v3925_v36, %v14266_v22  ;;  %v13453_v36 = vld [vmem:[%s9637_s16 + $0x858] sm:$0xff] }
 0x6aa   : > { %v7524_v10 = vmax.f32 %v7396_v52, 0.0  ;;  %v5164_v51 = vadd.f32 %v4976_v9, %v4113_v14  ;;  %v4979_v16 = vpop.f32.mrf.mxu0  ;;  %v13450_v9 = vld [vmem:[%s9637_s16 + $0x418] sm:$0xff] }
 0x6ab   : > { %v6029_v3 = vpop.f32.mrf.mxu1 }
 0x6ac   : > { %7653 = vst.msk [vmem:[%s11426_s22 + $0x308] sm:$0xff] %vm7555_vm2, %v7524_v10  ;;  %v6214_v45 = vadd.f32 %v6026_v42, %v5164_v51  ;;  %8700 = vmatmul.msk.f32.gmra.mxu3 %vm464_vm1, %v13309_v6  ;;  %v14271_v10 = vld [vmem:[#allocation228_spill] sm:$0xff] }
 0x6ad   : > { %9480 = vmatmul.msk.f32.gmra.mxu2 %vm464_vm1, %v13378_v15  ;;  %8960 = vmatmul.msk.f32.gmra.mxu0 %vm464_vm1, %v13304_v54 }
 0x6ae   : > { %9220 = vmatmul.msk.f32.gmra.mxu1 %vm464_vm1, %v13381_v27  ;;  %v7265_v11 = vadd.f32 %v7077_v2, %v6214_v45 }
 0x6af   : > { %v3928_v1 = vpop.f32.mrf.mxu3 }
 0x6b0   : > { %v7080_v26 = vpop.f32.mrf.mxu2  ;;  %v7397_v23 = vadd.f32 %v13060_v30, %v7265_v11  ;;  %v4114_v48 = vadd.f32 %v3928_v1, %v14267_v18  ;;  %v13471_v1 = vld [vmem:[%s9637_s16 + $0x860] sm:$0xff] }
 0x6b2   : > { %v7525_v33 = vmax.f32 %v7397_v23, 0.0  ;;  %v5165_v6 = vadd.f32 %v4979_v16, %v4114_v48  ;;  %v4982_v21 = vpop.f32.mrf.mxu0  ;;  %v13468_v16 = vld [vmem:[%s9637_s16 + $0x420] sm:$0xff] }
 0x6b3   : > { %v6032_v47 = vpop.f32.mrf.mxu1 }
 0x6b4   : > { %7654 = vst.msk [vmem:[%s11426_s22 + $0x310] sm:$0xff] %vm7555_vm2, %v7525_v33  ;;  %v6215_v54 = vadd.f32 %v6029_v3, %v5165_v6  ;;  %8701 = vmatmul.msk.f32.gmra.mxu3 %vm464_vm1, %v13327_v40  ;;  %v14272_v33 = vld [vmem:[#allocation229_spill] sm:$0xff] }
 0x6b5   : > { %9481 = vmatmul.msk.f32.gmra.mxu2 %vm464_vm1, %v13396_v28  ;;  %8961 = vmatmul.msk.f32.gmra.mxu0 %vm464_vm1, %v13324_v12 }
 0x6b6   : > { %9221 = vmatmul.msk.f32.gmra.mxu1 %vm464_vm1, %v13399_v46  ;;  %v7266_v5 = vadd.f32 %v7080_v26, %v6215_v54 }
 0x6b7   : > { %v3931_v0 = vpop.f32.mrf.mxu3 }
 0x6b8   : > { %v7083_v63 = vpop.f32.mrf.mxu2  ;;  %v7398_v38 = vadd.f32 %v13060_v30, %v7266_v5  ;;  %v4115_v17 = vadd.f32 %v3931_v0, %v14268_v50  ;;  %v13489_v0 = vld [vmem:[%s9637_s16 + $0x868] sm:$0xff] }
 0x6ba   : > { %v7526_v37 = vmax.f32 %v7398_v38, 0.0  ;;  %v5166_v40 = vadd.f32 %v4982_v21, %v4115_v17  ;;  %v4985_v43 = vpop.f32.mrf.mxu0  ;;  %v13486_v21 = vld [vmem:[%s9637_s16 + $0x428] sm:$0xff] }
 0x6bb   : > { %v6035_v53 = vpop.f32.mrf.mxu1 }
 0x6bc   : > { %7655 = vst.msk [vmem:[%s11426_s22 + $0x318] sm:$0xff] %vm7555_vm2, %v7526_v37  ;;  %v6216_v12 = vadd.f32 %v6032_v47, %v5166_v40  ;;  %8702 = vmatmul.msk.f32.gmra.mxu3 %vm464_vm1, %v13345_v13  ;;  %v14273_v37 = vld [vmem:[#allocation230_spill] sm:$0xff] }
 0x6bd   : > { %9482 = vmatmul.msk.f32.gmra.mxu2 %vm464_vm1, %v13414_v34  ;;  %8962 = vmatmul.msk.f32.gmra.mxu0 %vm464_vm1, %v13342_v32 }
 0x6be   : > { %9222 = vmatmul.msk.f32.gmra.mxu1 %vm464_vm1, %v13417_v44  ;;  %v7267_v60 = vadd.f32 %v7083_v63, %v6216_v12 }
 0x6bf   : > { %v3934_v4 = vpop.f32.mrf.mxu3 }
 0x6c0   : > { %v7086_v61 = vpop.f32.mrf.mxu2  ;;  %v7399_v35 = vadd.f32 %v13060_v30, %v7267_v60  ;;  %v4116_v57 = vadd.f32 %v3934_v4, %v14269_v25  ;;  %v13507_v4 = vld [vmem:[%s9637_s16 + $0x870] sm:$0xff] }
 0x6c2   : > { %v7527_v19 = vmax.f32 %v7399_v35, 0.0  ;;  %v5167_v13 = vadd.f32 %v4985_v43, %v4116_v57  ;;  %v4988_v58 = vpop.f32.mrf.mxu0  ;;  %v13504_v43 = vld [vmem:[%s9637_s16 + $0x430] sm:$0xff] }
 0x6c3   : > { %v6038_v8 = vpop.f32.mrf.mxu1 }
 0x6c4   : > { %7656 = vst.msk [vmem:[%s11426_s22 + $0x320] sm:$0xff] %vm7555_vm2, %v7527_v19  ;;  %v6217_v32 = vadd.f32 %v6035_v53, %v5167_v13  ;;  %8703 = vmatmul.msk.f32.gmra.mxu3 %vm464_vm1, %v13363_v24  ;;  %v14274_v19 = vld [vmem:[#allocation231_spill] sm:$0xff] }
 0x6c5   : > { %9483 = vmatmul.msk.f32.gmra.mxu2 %vm464_vm1, %v13432_v29  ;;  %8963 = vmatmul.msk.f32.gmra.mxu0 %vm464_vm1, %v13360_v31 }
 0x6c6   : > { %9223 = vmatmul.msk.f32.gmra.mxu1 %vm464_vm1, %v13435_v56  ;;  %v7268_v49 = vadd.f32 %v7086_v61, %v6217_v32 }
 0x6c7   : > { %v3937_v62 = vpop.f32.mrf.mxu3 }
 0x6c8   : > { %v7089_v20 = vpop.f32.mrf.mxu2  ;;  %v7400_v55 = vadd.f32 %v13060_v30, %v7268_v49  ;;  %v4117_v7 = vadd.f32 %v3937_v62, %v14270_v39  ;;  %v13525_v62 = vld [vmem:[%s9637_s16 + $0x878] sm:$0xff] }
 0x6ca   : > { %v7528_v42 = vmax.f32 %v7400_v55, 0.0  ;;  %v5168_v24 = vadd.f32 %v4988_v58, %v4117_v7  ;;  %v4991_v59 = vpop.f32.mrf.mxu0  ;;  %v13522_v58 = vld [vmem:[%s9637_s16 + $0x438] sm:$0xff] }
 0x6cb   : > { %v6041_v41 = vpop.f32.mrf.mxu1 }
 0x6cc   : > { %7657 = vst.msk [vmem:[%s11426_s22 + $0x328] sm:$0xff] %vm7555_vm2, %v7528_v42  ;;  %v6218_v31 = vadd.f32 %v6038_v8, %v5168_v24  ;;  %8704 = vmatmul.msk.f32.gmra.mxu3 %vm464_vm1, %v13381_v27  ;;  %v14275_v42 = vld [vmem:[#allocation153_spill] sm:$0xff] }
 0x6cd   : > { %9484 = vmatmul.msk.f32.gmra.mxu2 %vm464_vm1, %v13450_v9  ;;  %8964 = vmatmul.msk.f32.gmra.mxu0 %vm464_vm1, %v13378_v15 }
 0x6ce   : > { %9224 = vmatmul.msk.f32.gmra.mxu1 %vm464_vm1, %v13453_v36  ;;  %v7269_v2 = vadd.f32 %v7089_v20, %v6218_v31 }
 0x6cf   : > { %v3940_v52 = vpop.f32.mrf.mxu3 }
 0x6d0   : > { %v7092_v22 = vpop.f32.mrf.mxu2  ;;  %v7401_v14 = vadd.f32 %v13060_v30, %v7269_v2  ;;  %v4118_v51 = vadd.f32 %v3940_v52, %v14271_v10  ;;  %v9097_v52 = vld [vmem:[%s9637_s16 + $0x880] sm:$0xff] }
 0x6d2   : > { %v7529_v3 = vmax.f32 %v7401_v14, 0.0  ;;  %v5169_v27 = vadd.f32 %v4991_v59, %v4118_v51  ;;  %v4994_v45 = vpop.f32.mrf.mxu0  ;;  %v9357_v59 = vld [vmem:[%s9637_s16 + $0x440] sm:$0xff] }
 0x6d3   : > { %v6044_v11 = vpop.f32.mrf.mxu1 }
 0x6d4   : > { %7658 = vst.msk [vmem:[%s11426_s22 + $0x330] sm:$0xff] %vm7555_vm2, %v7529_v3  ;;  %v6219_v15 = vadd.f32 %v6041_v41, %v5169_v27  ;;  %8705 = vmatmul.msk.f32.gmra.mxu3 %vm464_vm1, %v13399_v46  ;;  %v14276_v3 = vld [vmem:[#allocation40_spill] sm:$0xff] }
 0x6d5   : > { %9485 = vmatmul.msk.f32.gmra.mxu2 %vm464_vm1, %v13468_v16  ;;  %8965 = vmatmul.msk.f32.gmra.mxu0 %vm464_vm1, %v13396_v28 }
 0x6d6   : > { %9225 = vmatmul.msk.f32.gmra.mxu1 %vm464_vm1, %v13471_v1  ;;  %v7270_v26 = vadd.f32 %v7092_v22, %v6219_v15 }
 0x6d7   : > { %v3943_v23 = vpop.f32.mrf.mxu3 }
 0x6d8   : > { %v7095_v18 = vpop.f32.mrf.mxu2  ;;  %v7402_v48 = vadd.f32 %v13060_v30, %v7270_v26  ;;  %v4119_v6 = vadd.f32 %v3943_v23, %v14272_v33  ;;  %v9098_v23 = vld [vmem:[%s9637_s16 + $0x888] sm:$0xff] }
 0x6da   : > { %v7530_v47 = vmax.f32 %v7402_v48, 0.0  ;;  %v5170_v46 = vadd.f32 %v4994_v45, %v4119_v6  ;;  %v4997_v54 = vpop.f32.mrf.mxu0  ;;  %v9358_v45 = vld [vmem:[%s9637_s16 + $0x448] sm:$0xff] }
 0x6db   : > { %v6047_v5 = vpop.f32.mrf.mxu1 }
 0x6dc   : > { %7659 = vst.msk [vmem:[%s11426_s22 + $0x338] sm:$0xff] %vm7555_vm2, %v7530_v47  ;;  %v6220_v28 = vadd.f32 %v6044_v11, %v5170_v46  ;;  %8706 = vmatmul.msk.f32.gmra.mxu3 %vm464_vm1, %v13417_v44  ;;  %v14277_v47 = vld [vmem:[#allocation236_spill] sm:$0xff] }
 0x6dd   : > { %9486 = vmatmul.msk.f32.gmra.mxu2 %vm464_vm1, %v13486_v21  ;;  %8966 = vmatmul.msk.f32.gmra.mxu0 %vm464_vm1, %v13414_v34 }
 0x6de   : > { %9226 = vmatmul.msk.f32.gmra.mxu1 %vm464_vm1, %v13489_v0  ;;  %v7271_v63 = vadd.f32 %v7095_v18, %v6220_v28 }
 0x6df   : > { %v3946_v38 = vpop.f32.mrf.mxu3 }
 0x6e0   : > { %v7098_v50 = vpop.f32.mrf.mxu2  ;;  %v7403_v17 = vadd.f32 %v13060_v30, %v7271_v63  ;;  %v4120_v40 = vadd.f32 %v3946_v38, %v14273_v37  ;;  %v9099_v38 = vld [vmem:[%s9637_s16 + $0x890] sm:$0xff] }
 0x6e2   : > { %v7531_v53 = vmax.f32 %v7403_v17, 0.0  ;;  %v5171_v44 = vadd.f32 %v4997_v54, %v4120_v40  ;;  %v5000_v12 = vpop.f32.mrf.mxu0  ;;  %v9359_v54 = vld [vmem:[%s9637_s16 + $0x450] sm:$0xff] }
 0x6e3   : > { %v6050_v60 = vpop.f32.mrf.mxu1 }
 0x6e4   : > { %7660 = vst.msk [vmem:[%s11426_s22 + $0x340] sm:$0xff] %vm7555_vm2, %v7531_v53  ;;  %v6221_v34 = vadd.f32 %v6047_v5, %v5171_v44  ;;  %8707 = vmatmul.msk.f32.gmra.mxu3 %vm464_vm1, %v13435_v56  ;;  %v14278_v53 = vld [vmem:[#allocation164_spill] sm:$0xff] }
 0x6e5   : > { %9487 = vmatmul.msk.f32.gmra.mxu2 %vm464_vm1, %v13504_v43  ;;  %8967 = vmatmul.msk.f32.gmra.mxu0 %vm464_vm1, %v13432_v29 }
 0x6e6   : > { %9227 = vmatmul.msk.f32.gmra.mxu1 %vm464_vm1, %v13507_v4  ;;  %v7272_v61 = vadd.f32 %v7098_v50, %v6221_v34 }
 0x6e7   : > { %v3949_v35 = vpop.f32.mrf.mxu3 }
 0x6e8   : > { %v7101_v25 = vpop.f32.mrf.mxu2  ;;  %v7404_v57 = vadd.f32 %v13060_v30, %v7272_v61  ;;  %v4121_v13 = vadd.f32 %v3949_v35, %v14274_v19  ;;  %v13588_v19 = vld [vmem:[%s13672_s2] ss:$0 sm:$0xff] }
 0x6ea   : > { %v7532_v8 = vmax.f32 %v7404_v57, 0.0  ;;  %v5172_v56 = vadd.f32 %v5000_v12, %v4121_v13  ;;  %v5003_v32 = vpop.f32.mrf.mxu0  ;;  %v9360_v12 = vld [vmem:[%s9637_s16 + $0x458] sm:$0xff] }
 0x6eb   : > { %v6053_v49 = vpop.f32.mrf.mxu1 }
 0x6ec   : > { %7661 = vst.msk [vmem:[%s11426_s22 + $0x348] sm:$0xff] %vm7555_vm2, %v7532_v8  ;;  %v6222_v29 = vadd.f32 %v6050_v60, %v5172_v56  ;;  %8708 = vmatmul.msk.f32.gmra.mxu3 %vm464_vm1, %v13453_v36  ;;  %v14279_v8 = vld [vmem:[#allocation168_spill] sm:$0xff] }
 0x6ed   : > { %9488 = vmatmul.msk.f32.gmra.mxu2 %vm464_vm1, %v13522_v58  ;;  %8968 = vmatmul.msk.f32.gmra.mxu0 %vm464_vm1, %v13450_v9 }
 0x6ee   : > { %9228 = vmatmul.msk.f32.gmra.mxu1 %vm464_vm1, %v13525_v62  ;;  %v7273_v20 = vadd.f32 %v7101_v25, %v6222_v29 }
 0x6ef   : > { %v3952_v55 = vpop.f32.mrf.mxu3 }
 0x6f0   : > { %v7104_v39 = vpop.f32.mrf.mxu2  ;;  %v7405_v7 = vadd.f32 %v13060_v30, %v7273_v20  ;;  %v4122_v24 = vadd.f32 %v3952_v55, %v14275_v42  ;;  %v14280_v42 = vld [vmem:[#allocation243_spill] sm:$0xff] }
 0x6f2   : > { %v7533_v41 = vmax.f32 %v7405_v7, 0.0  ;;  %v5173_v36 = vadd.f32 %v5003_v32, %v4122_v24  ;;  %v5006_v31 = vpop.f32.mrf.mxu0 }
 0x6f3   : > { %v6056_v2 = vpop.f32.mrf.mxu1 }
 0x6f4   : > { %7662 = vst.msk [vmem:[%s11426_s22 + $0x350] sm:$0xff] %vm7555_vm2, %v7533_v41  ;;  %v6223_v9 = vadd.f32 %v6053_v49, %v5173_v36  ;;  %8709 = vmatmul.msk.f32.gmra.mxu3 %vm464_vm1, %v13471_v1 }
 0x6f5   : > { %9489 = vmatmul.msk.f32.gmra.mxu2 %vm464_vm1, %v9357_v59  ;;  %8969 = vmatmul.msk.f32.gmra.mxu0 %vm464_vm1, %v13468_v16 }
 0x6f6   : > { %9229 = vmatmul.msk.f32.gmra.mxu1 %vm464_vm1, %v9097_v52  ;;  %v7274_v22 = vadd.f32 %v7104_v39, %v6223_v9 }
 0x6f7   : > { %v3955_v14 = vpop.f32.mrf.mxu3 }
 0x6f8   : > { %v7107_v10 = vpop.f32.mrf.mxu2  ;;  %v7406_v51 = vadd.f32 %v13060_v30, %v7274_v22  ;;  %v4123_v27 = vadd.f32 %v3955_v14, %v14276_v3 }
 0x6fa   : > { %v7534_v11 = vmax.f32 %v7406_v51, 0.0  ;;  %v5174_v15 = vadd.f32 %v5006_v31, %v4123_v27  ;;  %v5009_v26 = vpop.f32.mrf.mxu0 }
 0x6fb   : > { %v6059_v1 = vpop.f32.mrf.mxu1 }
 0x6fc   : > { %7663 = vst.msk [vmem:[%s11426_s22 + $0x358] sm:$0xff] %vm7555_vm2, %v7534_v11  ;;  %v6224_v16 = vadd.f32 %v6056_v2, %v5174_v15  ;;  %8710 = vmatmul.msk.f32.gmra.mxu3 %vm464_vm1, %v13489_v0 }
 0x6fd   : > { %9490 = vmatmul.msk.f32.gmra.mxu2 %vm464_vm1, %v9358_v45  ;;  %8970 = vmatmul.msk.f32.gmra.mxu0 %vm464_vm1, %v13486_v21 }
 0x6fe   : > { %9230 = vmatmul.msk.f32.gmra.mxu1 %vm464_vm1, %v9098_v23  ;;  %v7275_v18 = vadd.f32 %v7107_v10, %v6224_v16  ;;  %v14281_v10 = vld [vmem:[#allocation246_spill] sm:$0xff] }
 0x6ff   : > { %v3958_v48 = vpop.f32.mrf.mxu3 }
 0x700   : > { %v7110_v33 = vpop.f32.mrf.mxu2  ;;  %v7407_v6 = vadd.f32 %v13060_v30, %v7275_v18  ;;  %v4124_v46 = vadd.f32 %v3958_v48, %v14277_v47  ;;  %v14282_v18 = vld [vmem:[#allocation249_spill] sm:$0xff] }
 0x702   : > { %v7535_v5 = vmax.f32 %v7407_v6, 0.0  ;;  %v5175_v28 = vadd.f32 %v5009_v26, %v4124_v46  ;;  %v5012_v63 = vpop.f32.mrf.mxu0 }
 0x703   : > { %v6062_v0 = vpop.f32.mrf.mxu1 }
 0x704   : > { %7664 = vst.msk [vmem:[%s11426_s22 + $0x360] sm:$0xff] %vm7555_vm2, %v7535_v5  ;;  %v6225_v21 = vadd.f32 %v6059_v1, %v5175_v28  ;;  %8711 = vmatmul.msk.f32.gmra.mxu3 %vm464_vm1, %v13507_v4  ;;  %v9100_v4 = vld [vmem:[%s9637_s16 + $0x898] sm:$0xff] }
 0x705   : > { %9491 = vmatmul.msk.f32.gmra.mxu2 %vm464_vm1, %v9359_v54  ;;  %8971 = vmatmul.msk.f32.gmra.mxu0 %vm464_vm1, %v13504_v43 }
 0x706   : > { %9231 = vmatmul.msk.f32.gmra.mxu1 %vm464_vm1, %v9099_v38  ;;  %v7276_v50 = vadd.f32 %v7110_v33, %v6225_v21  ;;  %v14283_v38 = vld [vmem:[#allocation252_spill] sm:$0xff] }
 0x707   : > { %v3961_v17 = vpop.f32.mrf.mxu3 }
 0x708   : > { %v7113_v37 = vpop.f32.mrf.mxu2  ;;  %v7408_v40 = vadd.f32 %v13060_v30, %v7276_v50  ;;  %v4125_v44 = vadd.f32 %v3961_v17, %v14278_v53 }
 0x70a   : > { %v7536_v60 = vmax.f32 %v7408_v40, 0.0  ;;  %v5176_v34 = vadd.f32 %v5012_v63, %v4125_v44  ;;  %v5015_v61 = vpop.f32.mrf.mxu0 }
 0x70b   : > { %v6065_v35 = vpop.f32.mrf.mxu1 }
 0x70c   : > { %7665 = vst.msk [vmem:[%s11426_s22 + $0x368] sm:$0xff] %vm7555_vm2, %v7536_v60  ;;  %v6226_v25 = vadd.f32 %v6062_v0, %v5176_v34  ;;  %8712 = vmatmul.msk.f32.gmra.mxu3 %vm464_vm1, %v13525_v62 }
 0x70d   : > { %9492 = vmatmul.msk.f32.gmra.mxu2 %vm464_vm1, %v9360_v12  ;;  %8972 = vmatmul.msk.f32.gmra.mxu0 %vm464_vm1, %v13522_v58 }
 0x70e   : > { %9232 = vmatmul.msk.f32.gmra.mxu1 %vm464_vm1, %v9100_v4  ;;  %v7277_v30 = vadd.f32 %v7113_v37, %v6226_v25 }
 0x70f   : > { %v3964_v43 = vpop.f32.mrf.mxu3 }
 0x710   : > { %v7116_v57 = vpop.f32.mrf.mxu2  ;;  %v7409_v13 = vadd.f32 %v13588_v19, %v7277_v30  ;;  %v4126_v56 = vadd.f32 %v3964_v43, %v14279_v8 }
 0x712   : > { %v7537_v32 = vmax.f32 %v7409_v13, 0.0  ;;  %v5177_v49 = vadd.f32 %v5015_v61, %v4126_v56  ;;  %v5018_v62 = vpop.f32.mrf.mxu0  ;;  %v14284_v61 = vld [vmem:[#allocation255_spill] sm:$0xff] }
 0x713   : > { %v6068_v29 = vpop.f32.mrf.mxu1 }
 0x714   : > { %7666 = vst.msk [vmem:[%s11426_s22 + $0x370] sm:$0xff] %vm7555_vm2, %v7537_v32  ;;  %v6227_v58 = vadd.f32 %v6065_v35, %v5177_v49  ;;  %v14285_v49 = vld [vmem:[#allocation258_spill] sm:$0xff] }
 0x716   : > { %v7278_v20 = vadd.f32 %v7116_v57, %v6227_v58 }
 0x717   : > { %v3967_v55 = vpop.f32.mrf.mxu3 }
 0x718   : > { %v7119_v39 = vpop.f32.mrf.mxu2  ;;  %v7410_v7 = vadd.f32 %v13588_v19, %v7278_v20  ;;  %v4127_v24 = vadd.f32 %v3967_v55, %v14280_v42 }
 0x71a   : > { %v7538_v59 = vmax.f32 %v7410_v7, 0.0  ;;  %v5178_v41 = vadd.f32 %v5018_v62, %v4127_v24  ;;  %v5021_v36 = vpop.f32.mrf.mxu0 }
 0x71b   : > { %v6071_v31 = vpop.f32.mrf.mxu1 }
 0x71c   : > { %7667 = vst.msk [vmem:[%s11426_s22 + $0x378] sm:$0xff] %vm7555_vm2, %v7538_v59  ;;  %v6228_v2 = vadd.f32 %v6068_v29, %v5178_v41  ;;  %v14286_v41 = vld [vmem:[#allocation261_spill] sm:$0xff] }
 0x71e   : > { %v7279_v52 = vadd.f32 %v7119_v39, %v6228_v2 }
 0x71f   : > { %v3970_v9 = vpop.f32.mrf.mxu3 }
 0x720   : > { %v7122_v22 = vpop.f32.mrf.mxu2  ;;  %v7411_v14 = vadd.f32 %v13588_v19, %v7279_v52  ;;  %v4128_v51 = vadd.f32 %v3970_v9, %v14281_v10 }
 0x722   : > { %v7539_v3 = vmax.f32 %v7411_v14, 0.0  ;;  %v5179_v27 = vadd.f32 %v5021_v36, %v4128_v51  ;;  %v5024_v45 = vpop.f32.mrf.mxu0 }
 0x723   : > { %v6074_v11 = vpop.f32.mrf.mxu1 }
 0x724   : > { %7668 = vst.msk [vmem:[%s11426_s22 + $0x380] sm:$0xff] %vm7555_vm2, %v7539_v3  ;;  %v6229_v15 = vadd.f32 %v6071_v31, %v5179_v27  ;;  %v14287_v27 = vld [vmem:[#allocation264_spill] sm:$0xff] }
 0x726   : > { %v7280_v26 = vadd.f32 %v7122_v22, %v6229_v15 }
 0x727   : > { %v3973_v1 = vpop.f32.mrf.mxu3 }
 0x728   : > { %v7125_v23 = vpop.f32.mrf.mxu2  ;;  %v7412_v16 = vadd.f32 %v13588_v19, %v7280_v26  ;;  %v4129_v48 = vadd.f32 %v3973_v1, %v14282_v18 }
 0x72a   : > { %v7540_v33 = vmax.f32 %v7412_v16, 0.0  ;;  %v5180_v6 = vadd.f32 %v5024_v45, %v4129_v48  ;;  %v5027_v47 = vpop.f32.mrf.mxu0 }
 0x72b   : > { %v6077_v46 = vpop.f32.mrf.mxu1 }
 0x72c   : > { %7669 = vst.msk [vmem:[%s11426_s22 + $0x388] sm:$0xff] %vm7555_vm2, %v7540_v33  ;;  %v6230_v54 = vadd.f32 %v6074_v11, %v5180_v6  ;;  %v14288_v6 = vld [vmem:[#allocation267_spill] sm:$0xff] }
 0x72e   : > { %v7281_v5 = vadd.f32 %v7125_v23, %v6230_v54 }
 0x72f   : > { %v3976_v28 = vpop.f32.mrf.mxu3 }
 0x730   : > { %v7128_v63 = vpop.f32.mrf.mxu2  ;;  %v7413_v0 = vadd.f32 %v13588_v19, %v7281_v5  ;;  %v4130_v21 = vadd.f32 %v3976_v28, %v14283_v38 }
 0x732   : > { %v7541_v50 = vmax.f32 %v7413_v0, 0.0  ;;  %v5181_v17 = vadd.f32 %v5027_v47, %v4130_v21  ;;  %v5030_v37 = vpop.f32.mrf.mxu0 }
 0x733   : > { %v6080_v40 = vpop.f32.mrf.mxu1 }
 0x734   : > { %7670 = vst.msk [vmem:[%s11426_s22 + $0x390] sm:$0xff] %vm7555_vm2, %v7541_v50  ;;  %v6231_v53 = vadd.f32 %v6077_v46, %v5181_v17  ;;  %v14289_v17 = vld [vmem:[#allocation270_spill] sm:$0xff] }
 0x736   : > { %v7282_v44 = vadd.f32 %v7128_v63, %v6231_v53 }
 0x737   : > { %v3979_v12 = vpop.f32.mrf.mxu3 }
 0x738   : > { %v7131_v60 = vpop.f32.mrf.mxu2  ;;  %v7414_v34 = vadd.f32 %v13588_v19, %v7282_v44  ;;  %v4131_v35 = vadd.f32 %v3979_v12, %v14284_v61 }
 0x73a   : > { %v7542_v4 = vmax.f32 %v7414_v34, 0.0  ;;  %v5182_v25 = vadd.f32 %v5030_v37, %v4131_v35  ;;  %v5033_v30 = vpop.f32.mrf.mxu0 }
 0x73b   : > { %v6083_v43 = vpop.f32.mrf.mxu1 }
 0x73c   : > { %7671 = vst.msk [vmem:[%s11426_s22 + $0x398] sm:$0xff] %vm7555_vm2, %v7542_v4  ;;  %v6232_v57 = vadd.f32 %v6080_v40, %v5182_v25  ;;  %v14290_v25 = vld [vmem:[#allocation273_spill] sm:$0xff] }
 0x73e   : > { %v7283_v13 = vadd.f32 %v7131_v60, %v6232_v57 }
 0x73f   : > { %v3982_v8 = vpop.f32.mrf.mxu3 }
 0x740   : > { %v7134_v56 = vpop.f32.mrf.mxu2  ;;  %v7415_v32 = vadd.f32 %v13588_v19, %v7283_v13  ;;  %v4132_v62 = vadd.f32 %v3982_v8, %v14285_v49 }
 0x742   : > { %v7543_v29 = vmax.f32 %v7415_v32, 0.0  ;;  %v5183_v58 = vadd.f32 %v5033_v30, %v4132_v62  ;;  %v5036_v20 = vpop.f32.mrf.mxu0 }
 0x743   : > { %v6086_v55 = vpop.f32.mrf.mxu1 }
 0x744   : > { %7672 = vst.msk [vmem:[%s11426_s22 + $0x3a0] sm:$0xff] %vm7555_vm2, %v7543_v29  ;;  %v6233_v39 = vadd.f32 %v6083_v43, %v5183_v58  ;;  %v14291_v58 = vld [vmem:[#allocation276_spill] sm:$0xff] }
 0x746   : > { %v7284_v7 = vadd.f32 %v7134_v56, %v6233_v39 }
 0x747   : > { %v3985_v42 = vpop.f32.mrf.mxu3 }
 0x748   : > { %v7137_v24 = vpop.f32.mrf.mxu2  ;;  %v7416_v59 = vadd.f32 %v13588_v19, %v7284_v7  ;;  %v4133_v36 = vadd.f32 %v3985_v42, %v14286_v41 }
 0x74a   : > { %v7544_v31 = vmax.f32 %v7416_v59, 0.0  ;;  %v5184_v2 = vadd.f32 %v5036_v20, %v4133_v36  ;;  %v5039_v52 = vpop.f32.mrf.mxu0 }
 0x74b   : > { %v6089_v9 = vpop.f32.mrf.mxu1 }
 0x74c   : > { %7673 = vst.msk [vmem:[%s11426_s22 + $0x3a8] sm:$0xff] %vm7555_vm2, %v7544_v31  ;;  %v6234_v22 = vadd.f32 %v6086_v55, %v5184_v2  ;;  %v14292_v2 = vld [vmem:[#allocation279_spill] sm:$0xff] }
 0x74e   : > { %v7285_v14 = vadd.f32 %v7137_v24, %v6234_v22 }
 0x74f   : > { %v3988_v10 = vpop.f32.mrf.mxu3 }
 0x750   : > { %v7140_v51 = vpop.f32.mrf.mxu2  ;;  %v7417_v3 = vadd.f32 %v13588_v19, %v7285_v14  ;;  %v4134_v45 = vadd.f32 %v3988_v10, %v14287_v27 }
 0x752   : > { %v7545_v11 = vmax.f32 %v7417_v3, 0.0  ;;  %v5185_v15 = vadd.f32 %v5039_v52, %v4134_v45  ;;  %v5042_v26 = vpop.f32.mrf.mxu0 }
 0x753   : > { %v6092_v1 = vpop.f32.mrf.mxu1 }
 0x754   : > { %7674 = vst.msk [vmem:[%s11426_s22 + $0x3b0] sm:$0xff] %vm7555_vm2, %v7545_v11  ;;  %v6235_v23 = vadd.f32 %v6089_v9, %v5185_v15  ;;  %v14293_v15 = vld [vmem:[#allocation282_spill] sm:$0xff] }
 0x756   : > { %v7286_v16 = vadd.f32 %v7140_v51, %v6235_v23 }
 0x757   : > { %v3991_v18 = vpop.f32.mrf.mxu3 }
 0x758   : > { %v7143_v48 = vpop.f32.mrf.mxu2  ;;  %v7418_v33 = vadd.f32 %v13588_v19, %v7286_v16  ;;  %v4135_v47 = vadd.f32 %v3991_v18, %v14288_v6 }
 0x75a   : > { %v7546_v46 = vmax.f32 %v7418_v33, 0.0  ;;  %v5186_v54 = vadd.f32 %v5042_v26, %v4135_v47  ;;  %v5045_v5 = vpop.f32.mrf.mxu0 }
 0x75b   : > { %v6095_v28 = vpop.f32.mrf.mxu1 }
 0x75c   : > { %7675 = vst.msk [vmem:[%s11426_s22 + $0x3b8] sm:$0xff] %vm7555_vm2, %v7546_v46  ;;  %v6236_v63 = vadd.f32 %v6092_v1, %v5186_v54  ;;  %v14294_v46 = vld [vmem:[#allocation285_spill] sm:$0xff] }
 0x75e   : > { %v7287_v0 = vadd.f32 %v7143_v48, %v6236_v63 }
 0x75f   : > { %v3994_v38 = vpop.f32.mrf.mxu3 }
 0x760   : > { %v7146_v21 = vpop.f32.mrf.mxu2  ;;  %v7419_v50 = vadd.f32 %v13588_v19, %v7287_v0  ;;  %v4136_v37 = vadd.f32 %v3994_v38, %v14289_v17 }
 0x762   : > { %v7547_v40 = vmax.f32 %v7419_v50, 0.0  ;;  %v5187_v53 = vadd.f32 %v5045_v5, %v4136_v37  ;;  %v5048_v44 = vpop.f32.mrf.mxu0  ;;  %v14295_v37 = vld [vmem:[#allocation217_spill] sm:$0xff] }
 0x763   : > { %v6098_v12 = vpop.f32.mrf.mxu1 }
 0x764   : > { %7676 = vst.msk [vmem:[%s11426_s22 + $0x3c0] sm:$0xff] %vm7555_vm2, %v7547_v40  ;;  %v6237_v60 = vadd.f32 %v6095_v28, %v5187_v53 }
 0x766   : > { %v7288_v34 = vadd.f32 %v7146_v21, %v6237_v60 }
 0x767   : > { %v3997_v61 = vpop.f32.mrf.mxu3 }
 0x768   : > { %v7149_v35 = vpop.f32.mrf.mxu2  ;;  %v7420_v4 = vadd.f32 %v13588_v19, %v7288_v34  ;;  %v4137_v30 = vadd.f32 %v3997_v61, %v14290_v25 }
 0x76a   : > { %v7548_v43 = vmax.f32 %v7420_v4, 0.0  ;;  %v5188_v57 = vadd.f32 %v5048_v44, %v4137_v30  ;;  %v5051_v13 = vpop.f32.mrf.mxu0 }
 0x76b   : > { %v6101_v8 = vpop.f32.mrf.mxu1 }
 0x76c   : > { %7677 = vst.msk [vmem:[%s11426_s22 + $0x3c8] sm:$0xff] %vm7555_vm2, %v7548_v43  ;;  %v6238_v56 = vadd.f32 %v6098_v12, %v5188_v57 }
 0x76e   : > { %v7289_v32 = vadd.f32 %v7149_v35, %v6238_v56 }
 0x76f   : > { %v4000_v49 = vpop.f32.mrf.mxu3 }
 0x770   : > { %v7152_v62 = vpop.f32.mrf.mxu2  ;;  %v7421_v29 = vadd.f32 %v13588_v19, %v7289_v32  ;;  %v4138_v20 = vadd.f32 %v4000_v49, %v14291_v58 }
 0x772   : > { %v7549_v55 = vmax.f32 %v7421_v29, 0.0  ;;  %v5189_v39 = vadd.f32 %v5051_v13, %v4138_v20  ;;  %v5054_v7 = vpop.f32.mrf.mxu0 }
 0x773   : > { %v6104_v42 = vpop.f32.mrf.mxu1 }
 0x774   : > { %7678 = vst.msk [vmem:[%s11426_s22 + $0x3d0] sm:$0xff] %vm7555_vm2, %v7549_v55  ;;  %v6239_v24 = vadd.f32 %v6101_v8, %v5189_v39 }
 0x776   : > { %v7290_v59 = vadd.f32 %v7152_v62, %v6239_v24 }
 0x777   : > { %v4003_v41 = vpop.f32.mrf.mxu3 }
 0x778   : > { %v7155_v36 = vpop.f32.mrf.mxu2  ;;  %v7422_v31 = vadd.f32 %v13588_v19, %v7290_v59  ;;  %v4139_v52 = vadd.f32 %v4003_v41, %v14292_v2 }
 0x77a   : > { %v7550_v9 = vmax.f32 %v7422_v31, 0.0  ;;  %v5190_v22 = vadd.f32 %v5054_v7, %v4139_v52  ;;  %v5057_v14 = vpop.f32.mrf.mxu0 }
 0x77b   : > { %v6107_v51 = vpop.f32.mrf.mxu1 }
 0x77c   : > { %7679 = vst.msk [vmem:[%s11426_s22 + $0x3d8] sm:$0xff] %vm7555_vm2, %v7550_v9  ;;  %v6240_v10 = vadd.f32 %v6104_v42, %v5190_v22 }
 0x77e   : > { %v7291_v3 = vadd.f32 %v7155_v36, %v6240_v10 }
 0x77f   : > { %v4006_v27 = vpop.f32.mrf.mxu3 }
 0x780   : > { %v7158_v45 = vpop.f32.mrf.mxu2  ;;  %v7423_v11 = vadd.f32 %v13588_v19, %v7291_v3  ;;  %v4140_v26 = vadd.f32 %v4006_v27, %v14293_v15 }
 0x782   : > { %v7551_v1 = vmax.f32 %v7423_v11, 0.0  ;;  %v5191_v23 = vadd.f32 %v5057_v14, %v4140_v26  ;;  %v5060_v18 = vpop.f32.mrf.mxu0 }
 0x783   : > { %v6110_v6 = vpop.f32.mrf.mxu1 }
 0x784   : > { %7680 = vst.msk [vmem:[%s11426_s22 + $0x3e0] sm:$0xff] %vm7555_vm2, %v7551_v1  ;;  %v6241_v16 = vadd.f32 %v6107_v51, %v5191_v23 }
 0x786   : > { %v7292_v48 = vadd.f32 %v7158_v45, %v6241_v16 }
 0x787   : > { %v4009_v33 = vpop.f32.mrf.mxu3 }
 0x788   : > { %v7424_v47 = vadd.f32 %v13588_v19, %v7292_v48  ;;  %v4141_v54 = vadd.f32 %v4009_v33, %v14294_v46  ;;  %v7161_v5 = vpop.f32.mrf.mxu2 }
 0x78a   : > { %v7552_v28 = vmax.f32 %v7424_v47, 0.0  ;;  %v5192_v63 = vadd.f32 %v5060_v18, %v4141_v54  ;;  %v5063_v50 = vpop.f32.mrf.mxu0 }
 0x78b   : > { %v6113_v53 = vpop.f32.mrf.mxu1 }
 0x78c   : > { %7681 = vst.msk [vmem:[%s11426_s22 + $0x3e8] sm:$0xff] %vm7555_vm2, %v7552_v28  ;;  %v6242_v0 = vadd.f32 %v6110_v6, %v5192_v63 }
 0x78e   : > { %v7293_v38 = vadd.f32 %v7161_v5, %v6242_v0 }
 0x78f   : > { %v4012_v21 = vpop.f32.mrf.mxu3 }
 0x790   : > { %v7425_v17 = vadd.f32 %v13588_v19, %v7293_v38  ;;  %v4142_v40 = vadd.f32 %v4012_v21, %v14295_v37  ;;  %v7164_v60 = vpop.f32.mrf.mxu2 }
 0x792   : > { %v7553_v44 = vmax.f32 %v7425_v17, 0.0  ;;  %v5193_v12 = vadd.f32 %v5063_v50, %v4142_v40 }
 0x794   : > { %7682 = vst.msk [vmem:[%s11426_s22 + $0x3f0] sm:$0xff] %vm7555_vm2, %v7553_v44  ;;  %v6243_v34 = vadd.f32 %v6113_v53, %v5193_v12 }
 0x796   : > { %v7294_v61 = vadd.f32 %v7164_v60, %v6243_v34 }
 0x798   : > { %v7426_v35 = vadd.f32 %v13588_v19, %v7294_v61 }
 0x79a   : > { %v7554_v4 = vmax.f32 %v7426_v35, 0.0 }
 0x79c   : > { %7683 = vst.msk [vmem:[%s11426_s22 + $0x3f8] sm:$0xff] %vm7555_vm2, %v7554_v4 }
 0x79d PF: > { %s13_s14 = sadd.s32 1, %s9557_s14   ;;  %s14296_s12 = smov %s9553_s13 }
 0x79e   : > { %p10_p5 = scmp.ge.s32.totalorder %s13_s14, 4   ;;  %s14297_s13 = smov %s14299_s15 }
 0x7a0   :  { %12 = sbr.rel (!%p10_p5) target bundleno = 2 (0x2), region = 75 }

</bundles_post_ra>
